<compile_context>
chip_gen: v7x
topology: tpu7x:2x2x1
jax: 0.10.0
libtpu: 0.0.40
codegen_flags: <defaults>
</compile_context>

<pallas_src>
import functools
import math

import jax
import jax.numpy as jnp
import numpy as np
from jax.experimental import pallas as pl
from jax.experimental.pallas import tpu as pltpu

D_MODEL = 512
D_FF = 2048
N_HEADS = 8
E_LAYERS = 4
WEIGHT_DTYPE = jnp.bfloat16   # streamed matmul weights; accumulation stays f32


# ----------------------------------------------------------------------------- helpers
def _layernorm(x, gamma, beta, eps=1e-5):
    mean = jnp.mean(x, axis=-1, keepdims=True)
    xc = x - mean
    var = jnp.mean(xc * xc, axis=-1, keepdims=True)
    return xc * jax.lax.rsqrt(var + eps) * gamma + beta


def _gelu(x, exact):
    if exact:  # matches torch.nn.functional.gelu (erf form)
        return 0.5 * x * (1.0 + jax.lax.erf(x * (1.0 / math.sqrt(2.0))))
    # tanh approximation fallback (only used if erf fails to lower on this backend)
    return 0.5 * x * (1.0 + jnp.tanh(math.sqrt(2.0 / math.pi) * (x + 0.044715 * x * x * x)))


def _erf_lowers():
    """Narrow probe: does lax.erf lower inside a Pallas TPU kernel? (exact torch GELU)"""
    def _k(x_ref, o_ref):
        o_ref[...] = jax.lax.erf(x_ref[...])
    try:
        x = jnp.zeros((8, 128), jnp.float32)
        jax.block_until_ready(
            pl.pallas_call(_k, out_shape=jax.ShapeDtypeStruct((8, 128), jnp.float32))(x))
        return True
    except Exception:  # the probe only exercises the erf lowering, nothing else
        return False


# ----------------------------------------------------------------------------- fused kernel
def fused_itransformer_kernel(
    tok_ref, bias_ref, emb_w_ref, emb_b_ref,
    wa_ref, w2_ref, vec_ref,
    gf_ref, bf_ref, wp_ref, bp_ref,
    out_ref, h_ref, *, n_heads, d_ff, exact_gelu,
):
    layer = pl.program_id(0)

    # ---- layer 0 only: inverted embedding Linear(hist_len -> d_model) --------------------
    @pl.when(layer == 0)
    def _embed():
        tok = tok_ref[...].astype(WEIGHT_DTYPE)                               # (BS, T)
        h_ref[...] = (
            jnp.dot(tok, emb_w_ref[...], preferred_element_type=jnp.float32)
            + emb_b_ref[...])

    x = h_ref[...]                                                            # (BS, D) f32
    d = x.shape[-1]
    ff = d_ff
    e = d // n_heads
    scale = 1.0 / math.sqrt(e)

    # ---- unpack streamed per-layer slabs (all slice offsets are multiples of 128 lanes) ---
    wqkv = wa_ref[0, :, 0:3 * d]                                              # (D, 3D)  bf16
    wo = wa_ref[0, :, 3 * d:4 * d]                                            # (D, D)
    w1 = wa_ref[0, :, 4 * d:4 * d + ff]                                       # (D, FF)
    w2 = w2_ref[0]                                                            # (FF, D)

    bqkv = vec_ref[0, :, 0:3 * d]                                             # (1, 3D) f32
    bo = vec_ref[0, :, 3 * d:4 * d]
    b1 = vec_ref[0, :, 4 * d:4 * d + ff]
    b2 = vec_ref[0, :, 4 * d + ff:5 * d + ff]
    g1 = vec_ref[0, :, 5 * d + ff:6 * d + ff]
    be1 = vec_ref[0, :, 6 * d + ff:7 * d + ff]
    g2 = vec_ref[0, :, 7 * d + ff:8 * d + ff]
    be2 = vec_ref[0, :, 8 * d + ff:9 * d + ff]

    # ---- multi-head self-attention (fused QKV; all batches share one score matmul) -------
    qkv = (jnp.dot(x.astype(WEIGHT_DTYPE), wqkv,
                   preferred_element_type=jnp.float32) + bqkv)                # (BS, 3D)
    q, k, v = qkv[:, :d], qkv[:, d:2 * d], qkv[:, 2 * d:]
    bias = bias_ref[...]                                                      # (BS, BS) 0 / -1e30

    heads = []
    for h in range(n_heads):                                                  # static unroll
        c0 = h * e
        qh, kh, vh = q[:, c0:c0 + e], k[:, c0:c0 + e], v[:, c0:c0 + e]
        s = jax.lax.dot_general(qh, kh, (((1,), (1,)), ((), ())),
                                preferred_element_type=jnp.float32) * scale + bias
        s = s - jnp.max(s, axis=-1, keepdims=True)
        p = jnp.exp(s)
        p = p / jnp.sum(p, axis=-1, keepdims=True)
        heads.append(jnp.dot(p, vh, preferred_element_type=jnp.float32))
    attn = jnp.concatenate(heads, axis=-1)                                    # (BS, D)
    attn = (jnp.dot(attn.astype(WEIGHT_DTYPE), wo,
                    preferred_element_type=jnp.float32) + bo)

    # ---- residual + norm1 + FFN(gelu) + norm2 ---------------------------------------------
    x = _layernorm(x + attn, g1, be1)
    y = (jnp.dot(x.astype(WEIGHT_DTYPE), w1,
                 preferred_element_type=jnp.float32) + b1)
    y = _gelu(y, exact_gelu)
    y = (jnp.dot(y.astype(WEIGHT_DTYPE), w2,
                 preferred_element_type=jnp.float32) + b2)
    x = _layernorm(x + y, g2, be2)
    h_ref[...] = x                                                            # stays VMEM-resident

    # ---- last layer only: encoder final LayerNorm + Linear(d_model -> pred_len) ----------
    @pl.when(layer == pl.num_programs(0) - 1)
    def _head():
        z = _layernorm(x, gf_ref[...], bf_ref[...])
        out_ref[...] = (jnp.dot(z.astype(WEIGHT_DTYPE), wp_ref[...],
                                preferred_element_type=jnp.float32) + bp_ref[...])


def itransformer_encode(tokens, attn_bias, params, *, n_heads=N_HEADS, exact_gelu=True):
    BS, T = tokens.shape
    D = params["emb_w"].shape[-1]
    WA = params["wa"].shape[-1]
    FF = params["w2"].shape[1]
    VPK = params["vec"].shape[-1]
    P = params["proj_w"].shape[-1]
    L = params["wa"].shape[0]

    def per_layer(*shape):      # streamed per grid step (layer l)
        return pl.BlockSpec((1,) + shape, lambda l, s=shape: (l,) + (0,) * len(s))

    def invariant(*shape):      # constant block index -> fetched once, no re-DMA
        return pl.BlockSpec(shape, lambda l, s=shape: (0,) * len(s))

    kern = functools.partial(fused_itransformer_kernel,
                             n_heads=n_heads, d_ff=FF, exact_gelu=exact_gelu)

    return pl.pallas_call(
        kern,
        out_shape=jax.ShapeDtypeStruct((BS, P), jnp.float32),
        grid=(L,),
        in_specs=[
            invariant(BS, T),                      # variate tokens [x_norm ; x_mark]
            invariant(BS, BS),                     # block-diagonal attention bias
            invariant(T, D),                       # embedding weight (bf16)
            invariant(1, D),                       # embedding bias
            per_layer(D, WA),                      # packed [Wq|Wk|Wv|Wo|W1] (bf16)
            per_layer(FF, D),                      # FFN conv2 (1x1) weight (bf16)
            per_layer(1, VPK),                     # packed biases + norm params (f32)
            invariant(1, D), invariant(1, D),      # encoder final LayerNorm gamma / beta
            invariant(D, P),                       # projection weight (bf16)
            invariant(1, P),                       # projection bias
        ],
        out_specs=pl.BlockSpec((BS, P), lambda l: (0, 0)),
        scratch_shapes=[pltpu.VMEM((BS, D), jnp.float32)],   # resident activation across layers
        compiler_params=pltpu.CompilerParams(
            dimension_semantics=("arbitrary",),              # layer axis is sequential
            vmem_limit_bytes=40 * 1024 * 1024,               # ~13 MiB used; safe on v5e/v6e/v7x
        ),
    )(
        tokens, attn_bias, params["emb_w"], params["emb_b"],
        params["wa"], params["w2"], params["vec"],
        params["norm_g"], params["norm_b"], params["proj_w"], params["proj_b"],
    )


# ----------------------------------------------------------------------------- params
def linear_params(key, fan_in, fan_out, w_dtype=jnp.float32):
    kw, kb = jax.random.split(key)
    bound = 1.0 / math.sqrt(fan_in)
    w = jax.random.uniform(kw, (fan_in, fan_out), jnp.float32, -bound, bound)
    b = jax.random.uniform(kb, (1, fan_out), jnp.float32, -bound, bound)
    return w.astype(w_dtype), b


def init_params(key, hist_len, pred_len, d_model=D_MODEL, d_ff=D_FF, e_layers=E_LAYERS):
    keys = jax.random.split(key, 2 + e_layers)
    emb_w, emb_b = linear_params(keys[0], hist_len, d_model, WEIGHT_DTYPE)
    proj_w, proj_b = linear_params(keys[1], d_model, pred_len, WEIGHT_DTYPE)
    ones = jnp.ones((1, d_model), jnp.float32)
    zeros = jnp.zeros((1, d_model), jnp.float32)
    wa_l, w2_l, vec_l = [], [], []
    for i in range(e_layers):
        lk = jax.random.split(keys[2 + i], 6)
        wq, bq = linear_params(lk[0], d_model, d_model, WEIGHT_DTYPE)
        wk, bk = linear_params(lk[1], d_model, d_model, WEIGHT_DTYPE)
        wv, bv = linear_params(lk[2], d_model, d_model, WEIGHT_DTYPE)
        wo, bo = linear_params(lk[3], d_model, d_model, WEIGHT_DTYPE)
        w1, b1 = linear_params(lk[4], d_model, d_ff, WEIGHT_DTYPE)
        w2, b2 = linear_params(lk[5], d_ff, d_model, WEIGHT_DTYPE)
        # packed big-weight slab [Wq|Wk|Wv|Wo|W1]  -> (d_model, 4*d_model + d_ff)
        wa_l.append(jnp.concatenate([wq, wk, wv, wo, w1], axis=-1))
        w2_l.append(w2)
        # packed per-layer vectors [bq|bk|bv|bo|b1|b2|g1|be1|g2|be2] -> (1, 9*d_model + d_ff)
        vec_l.append(jnp.concatenate(
            [bq, bk, bv, bo, b1, b2, ones, zeros, ones, zeros], axis=-1))
    return dict(
        emb_w=emb_w, emb_b=emb_b,
        wa=jnp.stack(wa_l), w2=jnp.stack(w2_l), vec=jnp.stack(vec_l),
        norm_g=jnp.ones((1, d_model), jnp.float32),
        norm_b=jnp.zeros((1, d_model), jnp.float32),
        proj_w=proj_w, proj_b=proj_b,
    )


# ----------------------------------------------------------------------------- forward
def itransformer_forward(params, x_enc, x_mark_enc, x_dec, x_mark_dec, *, exact_gelu=True):
    del x_dec, x_mark_dec  # only consumed by the (skipped) Plugin branch
    B, T, N = x_enc.shape
    M = x_mark_enc.shape[-1]
    S = N + M

    # Per-variate non-stationary normalization over time (biased variance, eps=1e-5).
    means = jnp.mean(x_enc, axis=1, keepdims=True)                          # (B, 1, N)
    xc = x_enc - means
    stdev = jnp.sqrt(jnp.mean(xc * xc, axis=1, keepdims=True) + 1e-5)
    xn = xc / stdev

    # Variate tokens [x_norm ; x_mark] -> (B, N+M, T), batch folded into the row axis.
    tokens = jnp.concatenate([xn, x_mark_enc], axis=-1)                     # (B, T, N+M)
    tokens = jnp.transpose(tokens, (0, 2, 1)).reshape(B * S, T)             # (B*S, T)

    # Block-diagonal additive bias so folded batches never attend to each other.
    bid = np.repeat(np.arange(B), S)
    attn_bias = jnp.asarray(
        np.where(bid[:, None] == bid[None, :], 0.0, -1e30), dtype=jnp.float32)

    proj = itransformer_encode(tokens, attn_bias, params,
                               n_heads=N_HEADS, exact_gelu=exact_gelu)      # (B*S, pred_len)
    P = proj.shape[-1]
    dec = jnp.transpose(proj.reshape(B, S, P)[:, :N, :], (0, 2, 1))         # (B, pred_len, N)
    return dec * stdev + means                                              # de-normalize


# ----------------------------------------------------------------------------- main
if __name__ == "__main__":
    B, HIST_LEN, N_CH, N_MARK, PRED_LEN = 2, 16, 4, 4, 8

    key = jax.random.PRNGKey(0)
    kp, k1, k2, k3, k4 = jax.random.split(key, 5)

    params = init_params(kp, HIST_LEN, PRED_LEN)
    x_enc = jax.random.normal(k1, (B, HIST_LEN, N_CH), jnp.float32)
    x_mark_enc = jax.random.normal(k2, (B, HIST_LEN, N_MARK), jnp.float32)
    x_dec = jax.random.normal(k3, (B, PRED_LEN, N_CH), jnp.float32)         # unused (no Plugin)
    x_mark_dec = jax.random.normal(k4, (B, PRED_LEN, N_MARK), jnp.float32)  # unused (no Plugin)

    use_erf = _erf_lowers()
    # TODO(synk): if erf is unavailable in this Mosaic build, the tanh-approximate GELU is used
    #             (it does not bit-match torch's erf-based GELU).
    fwd = jax.jit(functools.partial(itransformer_forward, exact_gelu=use_erf))

    pred = jax.block_until_ready(fwd(params, x_enc, x_mark_enc, x_dec, x_mark_dec))
    assert pred.shape == (B, PRED_LEN, N_CH)
    assert bool(jnp.all(jnp.isfinite(pred)))
    print("KERNEL_OK")
</pallas_src>

<mosaic_0001>
module attributes {stable_mosaic.version = 11 : i64} {
  func.func @_k(%arg0: memref<8x128xf32, #tpu.memory_space<vmem>>, %arg1: memref<8x128xf32, #tpu.memory_space<vmem>>) attributes {dimension_semantics = [], scalar_prefetch = 0 : i64, scratch_operands = 0 : i64, tpu.core_type = #tpu.core_type<tc>} {
    %c0 = arith.constant 0 : index
    %c0_0 = arith.constant 0 : index
    %0 = vector.load %arg0[%c0, %c0_0] : memref<8x128xf32, #tpu.memory_space<vmem>>, vector<8x128xf32>
    %1 = math.erf %0 : vector<8x128xf32>
    %c0_1 = arith.constant 0 : index
    %c0_2 = arith.constant 0 : index
    %2 = vector.load %arg1[%c0_1, %c0_2] : memref<8x128xf32, #tpu.memory_space<vmem>>, vector<8x128xf32>
    tpu.vector_store %arg1[%c0_1, %c0_2], %1 {strides = array<i32>} : memref<8x128xf32, #tpu.memory_space<vmem>>, vector<8x128xf32>,
    return
  }
}

module attributes {stable_mosaic.version = 11 : i64} {
  func.func @fused_itransformer_kernel(%arg0: i32, %arg1: memref<16x16xf32, #tpu.memory_space<vmem>>, %arg2: memref<16x16xf32, #tpu.memory_space<vmem>>, %arg3: memref<16x512xbf16, #tpu.memory_space<vmem>>, %arg4: memref<1x512xf32, #tpu.memory_space<vmem>>, %arg5: memref<1x512x4096xbf16, #tpu.memory_space<vmem>>, %arg6: memref<1x2048x512xbf16, #tpu.memory_space<vmem>>, %arg7: memref<1x1x6656xf32, #tpu.memory_space<vmem>>, %arg8: memref<1x512xf32, #tpu.memory_space<vmem>>, %arg9: memref<1x512xf32, #tpu.memory_space<vmem>>, %arg10: memref<512x8xbf16, #tpu.memory_space<vmem>>, %arg11: memref<1x8xf32, #tpu.memory_space<vmem>>, %arg12: memref<16x8xf32, #tpu.memory_space<vmem>>, %arg13: memref<16x512xf32, #tpu.memory_space<vmem>>) attributes {dimension_semantics = [#tpu.dimension_semantics<arbitrary>], iteration_bounds = array<i64: 4>, scalar_prefetch = 0 : i64, scratch_operands = 1 : i64, tpu.core_type = #tpu.core_type<tc>, window_params = [{pipeline_mode = #tpu.pipeline_mode<synchronous>, transform_indices = @transform_0, window_bounds = array<i64: 16, 16>}, {pipeline_mode = #tpu.pipeline_mode<synchronous>, transform_indices = @transform_1, window_bounds = array<i64: 16, 16>}, {pipeline_mode = #tpu.pipeline_mode<synchronous>, transform_indices = @transform_2, window_bounds = array<i64: 16, 512>}, {pipeline_mode = #tpu.pipeline_mode<synchronous>, transform_indices = @transform_3, window_bounds = array<i64: 1, 512>}, {transform_indices = @transform_4, window_bounds = array<i64: 1, 512, 4096>}, {transform_indices = @transform_5, window_bounds = array<i64: 1, 2048, 512>}, {transform_indices = @transform_6, window_bounds = array<i64: 1, 1, 6656>}, {pipeline_mode = #tpu.pipeline_mode<synchronous>, transform_indices = @transform_7, window_bounds = array<i64: 1, 512>}, {pipeline_mode = #tpu.pipeline_mode<synchronous>, transform_indices = @transform_8, window_bounds = array<i64: 1, 512>}, {pipeline_mode = #tpu.pipeline_mode<synchronous>, transform_indices = @transform_9, window_bounds = array<i64: 512, 8>}, {pipeline_mode = #tpu.pipeline_mode<synchronous>, transform_indices = @transform_10, window_bounds = array<i64: 1, 8>}, {pipeline_mode = #tpu.pipeline_mode<synchronous>, transform_indices = @transform_11, window_bounds = array<i64: 16, 8>}]} {
    %c0_i32 = arith.constant 0 : i32
    %0 = arith.cmpi eq, %arg0, %c0_i32 : i32
    %1 = arith.extui %0 : i1 to i32
    %c0_i32_0 = arith.constant 0 : i32
    %2 = arith.cmpi ne, %1, %c0_i32_0 : i32
    scf.if %2 {
      %c0_93 = arith.constant 0 : index
      %c0_94 = arith.constant 0 : index
      %244 = vector.load %arg1[%c0_93, %c0_94] : memref<16x16xf32, #tpu.memory_space<vmem>>, vector<16x16xf32>
      %245 = arith.truncf %244 : vector<16x16xf32> to vector<16x16xbf16>
      %c0_95 = arith.constant 0 : index
      %c0_96 = arith.constant 0 : index
      %246 = vector.load %arg3[%c0_95, %c0_96] : memref<16x512xbf16, #tpu.memory_space<vmem>>, vector<16x512xbf16>
      %cst_97 = arith.constant dense<0.000000e+00> : vector<16x512xf32>
      %247 = tpu.matmul %245, %246, %cst_97 {dimension_numbers = #tpu.dot_dimension_numbers<[1], [0], [0], [1], [0, 0, 1, 1], [], []>} : vector<16x16xbf16>, vector<16x512xbf16>, vector<16x512xf32> -> vector<16x512xf32>
      %c0_98 = arith.constant 0 : index
      %c0_99 = arith.constant 0 : index
      %248 = vector.load %arg4[%c0_98, %c0_99] : memref<1x512xf32, #tpu.memory_space<vmem>>, vector<1x512xf32>
      %249 = vector.broadcast %248 : vector<1x512xf32> to vector<16x512xf32>
      %250 = arith.addf %247, %249 : vector<16x512xf32>
      %c0_100 = arith.constant 0 : index
      %c0_101 = arith.constant 0 : index
      %251 = vector.load %arg13[%c0_100, %c0_101] : memref<16x512xf32, #tpu.memory_space<vmem>>, vector<16x512xf32>
      tpu.vector_store %arg13[%c0_100, %c0_101], %250 {strides = array<i32>} : memref<16x512xf32, #tpu.memory_space<vmem>>, vector<16x512xf32>,
    } else {
    }
    %c0 = arith.constant 0 : index
    %c0_1 = arith.constant 0 : index
    %3 = vector.load %arg13[%c0, %c0_1] : memref<16x512xf32, #tpu.memory_space<vmem>>, vector<16x512xf32>
    %c0_2 = arith.constant 0 : index
    %c0_3 = arith.constant 0 : index
    %c0_4 = arith.constant 0 : index
    %4 = vector.load %arg5[%c0_2, %c0_3, %c0_4] : memref<1x512x4096xbf16, #tpu.memory_space<vmem>>, vector<1x512x1536xbf16>
    %5 = vector.shape_cast %4 : vector<1x512x1536xbf16> to vector<512x1536xbf16>
    %c0_5 = arith.constant 0 : index
    %c0_6 = arith.constant 0 : index
    %c1536 = arith.constant 1536 : index
    %6 = vector.load %arg5[%c0_5, %c0_6, %c1536] : memref<1x512x4096xbf16, #tpu.memory_space<vmem>>, vector<1x512x512xbf16>
    %7 = vector.shape_cast %6 : vector<1x512x512xbf16> to vector<512x512xbf16>
    %c0_7 = arith.constant 0 : index
    %c0_8 = arith.constant 0 : index
    %c2048 = arith.constant 2048 : index
    %8 = vector.load %arg5[%c0_7, %c0_8, %c2048] : memref<1x512x4096xbf16, #tpu.memory_space<vmem>>, vector<1x512x2048xbf16>
    %9 = vector.shape_cast %8 : vector<1x512x2048xbf16> to vector<512x2048xbf16>
    %c0_9 = arith.constant 0 : index
    %c0_10 = arith.constant 0 : index
    %c0_11 = arith.constant 0 : index
    %10 = vector.load %arg6[%c0_9, %c0_10, %c0_11] : memref<1x2048x512xbf16, #tpu.memory_space<vmem>>, vector<1x2048x512xbf16>
    %11 = vector.shape_cast %10 : vector<1x2048x512xbf16> to vector<2048x512xbf16>
    %c0_12 = arith.constant 0 : index
    %c0_13 = arith.constant 0 : index
    %c0_14 = arith.constant 0 : index
    %12 = vector.load %arg7[%c0_12, %c0_13, %c0_14] : memref<1x1x6656xf32, #tpu.memory_space<vmem>>, vector<1x1x1536xf32>
    %13 = vector.shape_cast %12 : vector<1x1x1536xf32> to vector<1x1536xf32>
    %c0_15 = arith.constant 0 : index
    %c0_16 = arith.constant 0 : index
    %c1536_17 = arith.constant 1536 : index
    %14 = vector.load %arg7[%c0_15, %c0_16, %c1536_17] : memref<1x1x6656xf32, #tpu.memory_space<vmem>>, vector<1x1x512xf32>
    %15 = vector.shape_cast %14 : vector<1x1x512xf32> to vector<1x512xf32>
    %c0_18 = arith.constant 0 : index
    %c0_19 = arith.constant 0 : index
    %c2048_20 = arith.constant 2048 : index
    %16 = vector.load %arg7[%c0_18, %c0_19, %c2048_20] : memref<1x1x6656xf32, #tpu.memory_space<vmem>>, vector<1x1x2048xf32>
    %17 = vector.shape_cast %16 : vector<1x1x2048xf32> to vector<1x2048xf32>
    %c0_21 = arith.constant 0 : index
    %c0_22 = arith.constant 0 : index
    %c4096 = arith.constant 4096 : index
    %18 = vector.load %arg7[%c0_21, %c0_22, %c4096] : memref<1x1x6656xf32, #tpu.memory_space<vmem>>, vector<1x1x512xf32>
    %19 = vector.shape_cast %18 : vector<1x1x512xf32> to vector<1x512xf32>
    %c0_23 = arith.constant 0 : index
    %c0_24 = arith.constant 0 : index
    %c4608 = arith.constant 4608 : index
    %20 = vector.load %arg7[%c0_23, %c0_24, %c4608] : memref<1x1x6656xf32, #tpu.memory_space<vmem>>, vector<1x1x512xf32>
    %21 = vector.shape_cast %20 : vector<1x1x512xf32> to vector<1x512xf32>
    %c0_25 = arith.constant 0 : index
    %c0_26 = arith.constant 0 : index
    %c5120 = arith.constant 5120 : index
    %22 = vector.load %arg7[%c0_25, %c0_26, %c5120] : memref<1x1x6656xf32, #tpu.memory_space<vmem>>, vector<1x1x512xf32>
    %23 = vector.shape_cast %22 : vector<1x1x512xf32> to vector<1x512xf32>
    %c0_27 = arith.constant 0 : index
    %c0_28 = arith.constant 0 : index
    %c5632 = arith.constant 5632 : index
    %24 = vector.load %arg7[%c0_27, %c0_28, %c5632] : memref<1x1x6656xf32, #tpu.memory_space<vmem>>, vector<1x1x512xf32>
    %25 = vector.shape_cast %24 : vector<1x1x512xf32> to vector<1x512xf32>
    %c0_29 = arith.constant 0 : index
    %c0_30 = arith.constant 0 : index
    %c6144 = arith.constant 6144 : index
    %26 = vector.load %arg7[%c0_29, %c0_30, %c6144] : memref<1x1x6656xf32, #tpu.memory_space<vmem>>, vector<1x1x512xf32>
    %27 = vector.shape_cast %26 : vector<1x1x512xf32> to vector<1x512xf32>
    %28 = arith.truncf %3 : vector<16x512xf32> to vector<16x512xbf16>
    %cst = arith.constant dense<0.000000e+00> : vector<16x1536xf32>
    %29 = tpu.matmul %28, %5, %cst {dimension_numbers = #tpu.dot_dimension_numbers<[1], [0], [0], [1], [0, 0, 1, 1], [], []>} : vector<16x512xbf16>, vector<512x1536xbf16>, vector<16x1536xf32> -> vector<16x1536xf32>
    %30 = vector.broadcast %13 : vector<1x1536xf32> to vector<16x1536xf32>
    %31 = arith.addf %29, %30 : vector<16x1536xf32>
    %32 = vector.extract_strided_slice %31 {offsets = [0, 0], sizes = [16, 512], strides = [1, 1]} : vector<16x1536xf32> to vector<16x512xf32>
    %33 = vector.extract_strided_slice %31 {offsets = [0, 512], sizes = [16, 512], strides = [1, 1]} : vector<16x1536xf32> to vector<16x512xf32>
    %34 = vector.extract_strided_slice %31 {offsets = [0, 1024], sizes = [16, 512], strides = [1, 1]} : vector<16x1536xf32> to vector<16x512xf32>
    %c0_31 = arith.constant 0 : index
    %c0_32 = arith.constant 0 : index
    %35 = vector.load %arg2[%c0_31, %c0_32] : memref<16x16xf32, #tpu.memory_space<vmem>>, vector<16x16xf32>
    %36 = vector.extract_strided_slice %32 {offsets = [0, 0], sizes = [16, 64], strides = [1, 1]} : vector<16x512xf32> to vector<16x64xf32>
    %37 = vector.extract_strided_slice %33 {offsets = [0, 0], sizes = [16, 64], strides = [1, 1]} : vector<16x512xf32> to vector<16x64xf32>
    %38 = vector.extract_strided_slice %34 {offsets = [0, 0], sizes = [16, 64], strides = [1, 1]} : vector<16x512xf32> to vector<16x64xf32>
    %cst_33 = arith.constant dense<0.000000e+00> : vector<16x16xf32>
    %39 = tpu.matmul %36, %37, %cst_33 {dimension_numbers = #tpu.dot_dimension_numbers<[1], [1], [0], [0], [0, 0, 1, 0], [], []>} : vector<16x64xf32>, vector<16x64xf32>, vector<16x16xf32> -> vector<16x16xf32>
    %cst_34 = arith.constant 1.250000e-01 : f32
    %40 = vector.broadcast %cst_34 : f32 to vector<16x16xf32>
    %41 = arith.mulf %39, %40 : vector<16x16xf32>
    %42 = arith.addf %41, %35 : vector<16x16xf32>
    %cst_35 = arith.constant dense<0xFF800000> : vector<16xf32>
    %43 = vector.multi_reduction <maximumf>, %42, %cst_35 [1] : vector<16x16xf32> to vector<16xf32>
    %44 = vector.shape_cast %43 : vector<16xf32> to vector<16x1xf32>
    %45 = vector.broadcast %44 : vector<16x1xf32> to vector<16x16xf32>
    %46 = arith.subf %42, %45 : vector<16x16xf32>
    %47 = math.exp %46 : vector<16x16xf32>
    %cst_36 = arith.constant dense<0.000000e+00> : vector<16xf32>
    %48 = vector.multi_reduction <add>, %47, %cst_36 [1] : vector<16x16xf32> to vector<16xf32>
    %49 = vector.shape_cast %48 : vector<16xf32> to vector<16x1xf32>
    %50 = vector.broadcast %49 : vector<16x1xf32> to vector<16x16xf32>
    %51 = arith.divf %47, %50 : vector<16x16xf32>
    %cst_37 = arith.constant dense<0.000000e+00> : vector<16x64xf32>
    %52 = tpu.matmul %51, %38, %cst_37 {dimension_numbers = #tpu.dot_dimension_numbers<[1], [0], [0], [1], [0, 0, 1, 1], [], []>} : vector<16x16xf32>, vector<16x64xf32>, vector<16x64xf32> -> vector<16x64xf32>
    %53 = vector.extract_strided_slice %32 {offsets = [0, 64], sizes = [16, 64], strides = [1, 1]} : vector<16x512xf32> to vector<16x64xf32>
    %54 = vector.extract_strided_slice %33 {offsets = [0, 64], sizes = [16, 64], strides = [1, 1]} : vector<16x512xf32> to vector<16x64xf32>
    %55 = vector.extract_strided_slice %34 {offsets = [0, 64], sizes = [16, 64], strides = [1, 1]} : vector<16x512xf32> to vector<16x64xf32>
    %cst_38 = arith.constant dense<0.000000e+00> : vector<16x16xf32>
    %56 = tpu.matmul %53, %54, %cst_38 {dimension_numbers = #tpu.dot_dimension_numbers<[1], [1], [0], [0], [0, 0, 1, 0], [], []>} : vector<16x64xf32>, vector<16x64xf32>, vector<16x16xf32> -> vector<16x16xf32>
    %cst_39 = arith.constant 1.250000e-01 : f32
    %57 = vector.broadcast %cst_39 : f32 to vector<16x16xf32>
    %58 = arith.mulf %56, %57 : vector<16x16xf32>
    %59 = arith.addf %58, %35 : vector<16x16xf32>
    %cst_40 = arith.constant dense<0xFF800000> : vector<16xf32>
    %60 = vector.multi_reduction <maximumf>, %59, %cst_40 [1] : vector<16x16xf32> to vector<16xf32>
    %61 = vector.shape_cast %60 : vector<16xf32> to vector<16x1xf32>
    %62 = vector.broadcast %61 : vector<16x1xf32> to vector<16x16xf32>
    %63 = arith.subf %59, %62 : vector<16x16xf32>
    %64 = math.exp %63 : vector<16x16xf32>
    %cst_41 = arith.constant dense<0.000000e+00> : vector<16xf32>
    %65 = vector.multi_reduction <add>, %64, %cst_41 [1] : vector<16x16xf32> to vector<16xf32>
    %66 = vector.shape_cast %65 : vector<16xf32> to vector<16x1xf32>
    %67 = vector.broadcast %66 : vector<16x1xf32> to vector<16x16xf32>
    %68 = arith.divf %64, %67 : vector<16x16xf32>
    %cst_42 = arith.constant dense<0.000000e+00> : vector<16x64xf32>
    %69 = tpu.matmul %68, %55, %cst_42 {dimension_numbers = #tpu.dot_dimension_numbers<[1], [0], [0], [1], [0, 0, 1, 1], [], []>} : vector<16x16xf32>, vector<16x64xf32>, vector<16x64xf32> -> vector<16x64xf32>
    %70 = vector.extract_strided_slice %32 {offsets = [0, 128], sizes = [16, 64], strides = [1, 1]} : vector<16x512xf32> to vector<16x64xf32>
    %71 = vector.extract_strided_slice %33 {offsets = [0, 128], sizes = [16, 64], strides = [1, 1]} : vector<16x512xf32> to vector<16x64xf32>
    %72 = vector.extract_strided_slice %34 {offsets = [0, 128], sizes = [16, 64], strides = [1, 1]} : vector<16x512xf32> to vector<16x64xf32>
    %cst_43 = arith.constant dense<0.000000e+00> : vector<16x16xf32>
    %73 = tpu.matmul %70, %71, %cst_43 {dimension_numbers = #tpu.dot_dimension_numbers<[1], [1], [0], [0], [0, 0, 1, 0], [], []>} : vector<16x64xf32>, vector<16x64xf32>, vector<16x16xf32> -> vector<16x16xf32>
    %cst_44 = arith.constant 1.250000e-01 : f32
    %74 = vector.broadcast %cst_44 : f32 to vector<16x16xf32>
    %75 = arith.mulf %73, %74 : vector<16x16xf32>
    %76 = arith.addf %75, %35 : vector<16x16xf32>
    %cst_45 = arith.constant dense<0xFF800000> : vector<16xf32>
    %77 = vector.multi_reduction <maximumf>, %76, %cst_45 [1] : vector<16x16xf32> to vector<16xf32>
    %78 = vector.shape_cast %77 : vector<16xf32> to vector<16x1xf32>
    %79 = vector.broadcast %78 : vector<16x1xf32> to vector<16x16xf32>
    %80 = arith.subf %76, %79 : vector<16x16xf32>
    %81 = math.exp %80 : vector<16x16xf32>
    %cst_46 = arith.constant dense<0.000000e+00> : vector<16xf32>
    %82 = vector.multi_reduction <add>, %81, %cst_46 [1] : vector<16x16xf32> to vector<16xf32>
    %83 = vector.shape_cast %82 : vector<16xf32> to vector<16x1xf32>
    %84 = vector.broadcast %83 : vector<16x1xf32> to vector<16x16xf32>
    %85 = arith.divf %81, %84 : vector<16x16xf32>
    %cst_47 = arith.constant dense<0.000000e+00> : vector<16x64xf32>
    %86 = tpu.matmul %85, %72, %cst_47 {dimension_numbers = #tpu.dot_dimension_numbers<[1], [0], [0], [1], [0, 0, 1, 1], [], []>} : vector<16x16xf32>, vector<16x64xf32>, vector<16x64xf32> -> vector<16x64xf32>
    %87 = vector.extract_strided_slice %32 {offsets = [0, 192], sizes = [16, 64], strides = [1, 1]} : vector<16x512xf32> to vector<16x64xf32>
    %88 = vector.extract_strided_slice %33 {offsets = [0, 192], sizes = [16, 64], strides = [1, 1]} : vector<16x512xf32> to vector<16x64xf32>
    %89 = vector.extract_strided_slice %34 {offsets = [0, 192], sizes = [16, 64], strides = [1, 1]} : vector<16x512xf32> to vector<16x64xf32>
    %cst_48 = arith.constant dense<0.000000e+00> : vector<16x16xf32>
    %90 = tpu.matmul %87, %88, %cst_48 {dimension_numbers = #tpu.dot_dimension_numbers<[1], [1], [0], [0], [0, 0, 1, 0], [], []>} : vector<16x64xf32>, vector<16x64xf32>, vector<16x16xf32> -> vector<16x16xf32>
    %cst_49 = arith.constant 1.250000e-01 : f32
    %91 = vector.broadcast %cst_49 : f32 to vector<16x16xf32>
    %92 = arith.mulf %90, %91 : vector<16x16xf32>
    %93 = arith.addf %92, %35 : vector<16x16xf32>
    %cst_50 = arith.constant dense<0xFF800000> : vector<16xf32>
    %94 = vector.multi_reduction <maximumf>, %93, %cst_50 [1] : vector<16x16xf32> to vector<16xf32>
    %95 = vector.shape_cast %94 : vector<16xf32> to vector<16x1xf32>
    %96 = vector.broadcast %95 : vector<16x1xf32> to vector<16x16xf32>
    %97 = arith.subf %93, %96 : vector<16x16xf32>
    %98 = math.exp %97 : vector<16x16xf32>
    %cst_51 = arith.constant dense<0.000000e+00> : vector<16xf32>
    %99 = vector.multi_reduction <add>, %98, %cst_51 [1] : vector<16x16xf32> to vector<16xf32>
    %100 = vector.shape_cast %99 : vector<16xf32> to vector<16x1xf32>
    %101 = vector.broadcast %100 : vector<16x1xf32> to vector<16x16xf32>
    %102 = arith.divf %98, %101 : vector<16x16xf32>
    %cst_52 = arith.constant dense<0.000000e+00> : vector<16x64xf32>
    %103 = tpu.matmul %102, %89, %cst_52 {dimension_numbers = #tpu.dot_dimension_numbers<[1], [0], [0], [1], [0, 0, 1, 1], [], []>} : vector<16x16xf32>, vector<16x64xf32>, vector<16x64xf32> -> vector<16x64xf32>
    %104 = vector.extract_strided_slice %32 {offsets = [0, 256], sizes = [16, 64], strides = [1, 1]} : vector<16x512xf32> to vector<16x64xf32>
    %105 = vector.extract_strided_slice %33 {offsets = [0, 256], sizes = [16, 64], strides = [1, 1]} : vector<16x512xf32> to vector<16x64xf32>
    %106 = vector.extract_strided_slice %34 {offsets = [0, 256], sizes = [16, 64], strides = [1, 1]} : vector<16x512xf32> to vector<16x64xf32>
    %cst_53 = arith.constant dense<0.000000e+00> : vector<16x16xf32>
    %107 = tpu.matmul %104, %105, %cst_53 {dimension_numbers = #tpu.dot_dimension_numbers<[1], [1], [0], [0], [0, 0, 1, 0], [], []>} : vector<16x64xf32>, vector<16x64xf32>, vector<16x16xf32> -> vector<16x16xf32>
    %cst_54 = arith.constant 1.250000e-01 : f32
    %108 = vector.broadcast %cst_54 : f32 to vector<16x16xf32>
    %109 = arith.mulf %107, %108 : vector<16x16xf32>
    %110 = arith.addf %109, %35 : vector<16x16xf32>
    %cst_55 = arith.constant dense<0xFF800000> : vector<16xf32>
    %111 = vector.multi_reduction <maximumf>, %110, %cst_55 [1] : vector<16x16xf32> to vector<16xf32>
    %112 = vector.shape_cast %111 : vector<16xf32> to vector<16x1xf32>
    %113 = vector.broadcast %112 : vector<16x1xf32> to vector<16x16xf32>
    %114 = arith.subf %110, %113 : vector<16x16xf32>
    %115 = math.exp %114 : vector<16x16xf32>
    %cst_56 = arith.constant dense<0.000000e+00> : vector<16xf32>
    %116 = vector.multi_reduction <add>, %115, %cst_56 [1] : vector<16x16xf32> to vector<16xf32>
    %117 = vector.shape_cast %116 : vector<16xf32> to vector<16x1xf32>
    %118 = vector.broadcast %117 : vector<16x1xf32> to vector<16x16xf32>
    %119 = arith.divf %115, %118 : vector<16x16xf32>
    %cst_57 = arith.constant dense<0.000000e+00> : vector<16x64xf32>
    %120 = tpu.matmul %119, %106, %cst_57 {dimension_numbers = #tpu.dot_dimension_numbers<[1], [0], [0], [1], [0, 0, 1, 1], [], []>} : vector<16x16xf32>, vector<16x64xf32>, vector<16x64xf32> -> vector<16x64xf32>
    %121 = vector.extract_strided_slice %32 {offsets = [0, 320], sizes = [16, 64], strides = [1, 1]} : vector<16x512xf32> to vector<16x64xf32>
    %122 = vector.extract_strided_slice %33 {offsets = [0, 320], sizes = [16, 64], strides = [1, 1]} : vector<16x512xf32> to vector<16x64xf32>
    %123 = vector.extract_strided_slice %34 {offsets = [0, 320], sizes = [16, 64], strides = [1, 1]} : vector<16x512xf32> to vector<16x64xf32>
    %cst_58 = arith.constant dense<0.000000e+00> : vector<16x16xf32>
    %124 = tpu.matmul %121, %122, %cst_58 {dimension_numbers = #tpu.dot_dimension_numbers<[1], [1], [0], [0], [0, 0, 1, 0], [], []>} : vector<16x64xf32>, vector<16x64xf32>, vector<16x16xf32> -> vector<16x16xf32>
    %cst_59 = arith.constant 1.250000e-01 : f32
    %125 = vector.broadcast %cst_59 : f32 to vector<16x16xf32>
    %126 = arith.mulf %124, %125 : vector<16x16xf32>
    %127 = arith.addf %126, %35 : vector<16x16xf32>
    %cst_60 = arith.constant dense<0xFF800000> : vector<16xf32>
    %128 = vector.multi_reduction <maximumf>, %127, %cst_60 [1] : vector<16x16xf32> to vector<16xf32>
    %129 = vector.shape_cast %128 : vector<16xf32> to vector<16x1xf32>
    %130 = vector.broadcast %129 : vector<16x1xf32> to vector<16x16xf32>
    %131 = arith.subf %127, %130 : vector<16x16xf32>
    %132 = math.exp %131 : vector<16x16xf32>
    %cst_61 = arith.constant dense<0.000000e+00> : vector<16xf32>
    %133 = vector.multi_reduction <add>, %132, %cst_61 [1] : vector<16x16xf32> to vector<16xf32>
    %134 = vector.shape_cast %133 : vector<16xf32> to vector<16x1xf32>
    %135 = vector.broadcast %134 : vector<16x1xf32> to vector<16x16xf32>
    %136 = arith.divf %132, %135 : vector<16x16xf32>
    %cst_62 = arith.constant dense<0.000000e+00> : vector<16x64xf32>
    %137 = tpu.matmul %136, %123, %cst_62 {dimension_numbers = #tpu.dot_dimension_numbers<[1], [0], [0], [1], [0, 0, 1, 1], [], []>} : vector<16x16xf32>, vector<16x64xf32>, vector<16x64xf32> -> vector<16x64xf32>
    %138 = vector.extract_strided_slice %32 {offsets = [0, 384], sizes = [16, 64], strides = [1, 1]} : vector<16x512xf32> to vector<16x64xf32>
    %139 = vector.extract_strided_slice %33 {offsets = [0, 384], sizes = [16, 64], strides = [1, 1]} : vector<16x512xf32> to vector<16x64xf32>
    %140 = vector.extract_strided_slice %34 {offsets = [0, 384], sizes = [16, 64], strides = [1, 1]} : vector<16x512xf32> to vector<16x64xf32>
    %cst_63 = arith.constant dense<0.000000e+00> : vector<16x16xf32>
    %141 = tpu.matmul %138, %139, %cst_63 {dimension_numbers = #tpu.dot_dimension_numbers<[1], [1], [0], [0], [0, 0, 1, 0], [], []>} : vector<16x64xf32>, vector<16x64xf32>, vector<16x16xf32> -> vector<16x16xf32>
    %cst_64 = arith.constant 1.250000e-01 : f32
    %142 = vector.broadcast %cst_64 : f32 to vector<16x16xf32>
    %143 = arith.mulf %141, %142 : vector<16x16xf32>
    %144 = arith.addf %143, %35 : vector<16x16xf32>
    %cst_65 = arith.constant dense<0xFF800000> : vector<16xf32>
    %145 = vector.multi_reduction <maximumf>, %144, %cst_65 [1] : vector<16x16xf32> to vector<16xf32>
    %146 = vector.shape_cast %145 : vector<16xf32> to vector<16x1xf32>
    %147 = vector.broadcast %146 : vector<16x1xf32> to vector<16x16xf32>
    %148 = arith.subf %144, %147 : vector<16x16xf32>
    %149 = math.exp %148 : vector<16x16xf32>
    %cst_66 = arith.constant dense<0.000000e+00> : vector<16xf32>
    %150 = vector.multi_reduction <add>, %149, %cst_66 [1] : vector<16x16xf32> to vector<16xf32>
    %151 = vector.shape_cast %150 : vector<16xf32> to vector<16x1xf32>
    %152 = vector.broadcast %151 : vector<16x1xf32> to vector<16x16xf32>
    %153 = arith.divf %149, %152 : vector<16x16xf32>
    %cst_67 = arith.constant dense<0.000000e+00> : vector<16x64xf32>
    %154 = tpu.matmul %153, %140, %cst_67 {dimension_numbers = #tpu.dot_dimension_numbers<[1], [0], [0], [1], [0, 0, 1, 1], [], []>} : vector<16x16xf32>, vector<16x64xf32>, vector<16x64xf32> -> vector<16x64xf32>
    %155 = vector.extract_strided_slice %32 {offsets = [0, 448], sizes = [16, 64], strides = [1, 1]} : vector<16x512xf32> to vector<16x64xf32>
    %156 = vector.extract_strided_slice %33 {offsets = [0, 448], sizes = [16, 64], strides = [1, 1]} : vector<16x512xf32> to vector<16x64xf32>
    %157 = vector.extract_strided_slice %34 {offsets = [0, 448], sizes = [16, 64], strides = [1, 1]} : vector<16x512xf32> to vector<16x64xf32>
    %cst_68 = arith.constant dense<0.000000e+00> : vector<16x16xf32>
    %158 = tpu.matmul %155, %156, %cst_68 {dimension_numbers = #tpu.dot_dimension_numbers<[1], [1], [0], [0], [0, 0, 1, 0], [], []>} : vector<16x64xf32>, vector<16x64xf32>, vector<16x16xf32> -> vector<16x16xf32>
    %cst_69 = arith.constant 1.250000e-01 : f32
    %159 = vector.broadcast %cst_69 : f32 to vector<16x16xf32>
    %160 = arith.mulf %158, %159 : vector<16x16xf32>
    %161 = arith.addf %160, %35 : vector<16x16xf32>
    %cst_70 = arith.constant dense<0xFF800000> : vector<16xf32>
    %162 = vector.multi_reduction <maximumf>, %161, %cst_70 [1] : vector<16x16xf32> to vector<16xf32>
    %163 = vector.shape_cast %162 : vector<16xf32> to vector<16x1xf32>
    %164 = vector.broadcast %163 : vector<16x1xf32> to vector<16x16xf32>
    %165 = arith.subf %161, %164 : vector<16x16xf32>
    %166 = math.exp %165 : vector<16x16xf32>
    %cst_71 = arith.constant dense<0.000000e+00> : vector<16xf32>
    %167 = vector.multi_reduction <add>, %166, %cst_71 [1] : vector<16x16xf32> to vector<16xf32>
    %168 = vector.shape_cast %167 : vector<16xf32> to vector<16x1xf32>
    %169 = vector.broadcast %168 : vector<16x1xf32> to vector<16x16xf32>
    %170 = arith.divf %166, %169 : vector<16x16xf32>
    %cst_72 = arith.constant dense<0.000000e+00> : vector<16x64xf32>
    %171 = tpu.matmul %170, %157, %cst_72 {dimension_numbers = #tpu.dot_dimension_numbers<[1], [0], [0], [1], [0, 0, 1, 1], [], []>} : vector<16x16xf32>, vector<16x64xf32>, vector<16x64xf32> -> vector<16x64xf32>
    %172 = tpu.concatenate %52, %69, %86, %103, %120, %137, %154, %171 in 1 : vector<16x64xf32>, vector<16x64xf32>, vector<16x64xf32>, vector<16x64xf32>, vector<16x64xf32>, vector<16x64xf32>, vector<16x64xf32>, vector<16x64xf32> -> vector<16x512xf32>
    %173 = arith.truncf %172 : vector<16x512xf32> to vector<16x512xbf16>
    %cst_73 = arith.constant dense<0.000000e+00> : vector<16x512xf32>
    %174 = tpu.matmul %173, %7, %cst_73 {dimension_numbers = #tpu.dot_dimension_numbers<[1], [0], [0], [1], [0, 0, 1, 1], [], []>} : vector<16x512xbf16>, vector<512x512xbf16>, vector<16x512xf32> -> vector<16x512xf32>
    %175 = vector.broadcast %15 : vector<1x512xf32> to vector<16x512xf32>
    %176 = arith.addf %174, %175 : vector<16x512xf32>
    %177 = arith.addf %3, %176 : vector<16x512xf32>
    %cst_74 = arith.constant dense<0.000000e+00> : vector<16xf32>
    %178 = vector.multi_reduction <add>, %177, %cst_74 [1] : vector<16x512xf32> to vector<16xf32>
    %179 = vector.shape_cast %178 : vector<16xf32> to vector<16x1xf32>
    %cst_75 = arith.constant 5.120000e+02 : f32
    %180 = vector.broadcast %cst_75 : f32 to vector<16x1xf32>
    %181 = arith.divf %179, %180 : vector<16x1xf32>
    %182 = vector.broadcast %181 : vector<16x1xf32> to vector<16x512xf32>
    %183 = arith.subf %177, %182 : vector<16x512xf32>
    %184 = arith.mulf %183, %183 : vector<16x512xf32>
    %cst_76 = arith.constant dense<0.000000e+00> : vector<16xf32>
    %185 = vector.multi_reduction <add>, %184, %cst_76 [1] : vector<16x512xf32> to vector<16xf32>
    %186 = vector.shape_cast %185 : vector<16xf32> to vector<16x1xf32>
    %cst_77 = arith.constant 5.120000e+02 : f32
    %187 = vector.broadcast %cst_77 : f32 to vector<16x1xf32>
    %188 = arith.divf %186, %187 : vector<16x1xf32>
    %cst_78 = arith.constant 9.99999974E-6 : f32
    %189 = vector.broadcast %cst_78 : f32 to vector<16x1xf32>
    %190 = arith.addf %188, %189 : vector<16x1xf32>
    %191 = math.rsqrt %190 : vector<16x1xf32>
    %192 = vector.broadcast %191 : vector<16x1xf32> to vector<16x512xf32>
    %193 = arith.mulf %183, %192 : vector<16x512xf32>
    %194 = vector.broadcast %21 : vector<1x512xf32> to vector<16x512xf32>
    %195 = arith.mulf %193, %194 : vector<16x512xf32>
    %196 = vector.broadcast %23 : vector<1x512xf32> to vector<16x512xf32>
    %197 = arith.addf %195, %196 : vector<16x512xf32>
    %198 = arith.truncf %197 : vector<16x512xf32> to vector<16x512xbf16>
    %cst_79 = arith.constant dense<0.000000e+00> : vector<16x2048xf32>
    %199 = tpu.matmul %198, %9, %cst_79 {dimension_numbers = #tpu.dot_dimension_numbers<[1], [0], [0], [1], [0, 0, 1, 1], [], []>} : vector<16x512xbf16>, vector<512x2048xbf16>, vector<16x2048xf32> -> vector<16x2048xf32>
    %200 = vector.broadcast %17 : vector<1x2048xf32> to vector<16x2048xf32>
    %201 = arith.addf %199, %200 : vector<16x2048xf32>
    %cst_80 = arith.constant 5.000000e-01 : f32
    %202 = vector.broadcast %cst_80 : f32 to vector<16x2048xf32>
    %203 = arith.mulf %202, %201 : vector<16x2048xf32>
    %cst_81 = arith.constant 4.471500e-02 : f32
    %204 = vector.broadcast %cst_81 : f32 to vector<16x2048xf32>
    %205 = arith.mulf %204, %201 : vector<16x2048xf32>
    %206 = arith.mulf %205, %201 : vector<16x2048xf32>
    %207 = arith.mulf %206, %201 : vector<16x2048xf32>
    %208 = arith.addf %201, %207 : vector<16x2048xf32>
    %cst_82 = arith.constant 0.797884583 : f32
    %209 = vector.broadcast %cst_82 : f32 to vector<16x2048xf32>
    %210 = arith.mulf %209, %208 : vector<16x2048xf32>
    %211 = math.tanh %210 : vector<16x2048xf32>
    %cst_83 = arith.constant 1.000000e+00 : f32
    %212 = vector.broadcast %cst_83 : f32 to vector<16x2048xf32>
    %213 = arith.addf %212, %211 : vector<16x2048xf32>
    %214 = arith.mulf %203, %213 : vector<16x2048xf32>
    %215 = arith.truncf %214 : vector<16x2048xf32> to vector<16x2048xbf16>
    %cst_84 = arith.constant dense<0.000000e+00> : vector<16x512xf32>
    %216 = tpu.matmul %215, %11, %cst_84 {dimension_numbers = #tpu.dot_dimension_numbers<[1], [0], [0], [1], [0, 0, 1, 1], [], []>} : vector<16x2048xbf16>, vector<2048x512xbf16>, vector<16x512xf32> -> vector<16x512xf32>
    %217 = vector.broadcast %19 : vector<1x512xf32> to vector<16x512xf32>
    %218 = arith.addf %216, %217 : vector<16x512xf32>
    %219 = arith.addf %197, %218 : vector<16x512xf32>
    %cst_85 = arith.constant dense<0.000000e+00> : vector<16xf32>
    %220 = vector.multi_reduction <add>, %219, %cst_85 [1] : vector<16x512xf32> to vector<16xf32>
    %221 = vector.shape_cast %220 : vector<16xf32> to vector<16x1xf32>
    %cst_86 = arith.constant 5.120000e+02 : f32
    %222 = vector.broadcast %cst_86 : f32 to vector<16x1xf32>
    %223 = arith.divf %221, %222 : vector<16x1xf32>
    %224 = vector.broadcast %223 : vector<16x1xf32> to vector<16x512xf32>
    %225 = arith.subf %219, %224 : vector<16x512xf32>
    %226 = arith.mulf %225, %225 : vector<16x512xf32>
    %cst_87 = arith.constant dense<0.000000e+00> : vector<16xf32>
    %227 = vector.multi_reduction <add>, %226, %cst_87 [1] : vector<16x512xf32> to vector<16xf32>
    %228 = vector.shape_cast %227 : vector<16xf32> to vector<16x1xf32>
    %cst_88 = arith.constant 5.120000e+02 : f32
    %229 = vector.broadcast %cst_88 : f32 to vector<16x1xf32>
    %230 = arith.divf %228, %229 : vector<16x1xf32>
    %cst_89 = arith.constant 9.99999974E-6 : f32
    %231 = vector.broadcast %cst_89 : f32 to vector<16x1xf32>
    %232 = arith.addf %230, %231 : vector<16x1xf32>
    %233 = math.rsqrt %232 : vector<16x1xf32>
    %234 = vector.broadcast %233 : vector<16x1xf32> to vector<16x512xf32>
    %235 = arith.mulf %225, %234 : vector<16x512xf32>
    %236 = vector.broadcast %25 : vector<1x512xf32> to vector<16x512xf32>
    %237 = arith.mulf %235, %236 : vector<16x512xf32>
    %238 = vector.broadcast %27 : vector<1x512xf32> to vector<16x512xf32>
    %239 = arith.addf %237, %238 : vector<16x512xf32>
    %c0_90 = arith.constant 0 : index
    %c0_91 = arith.constant 0 : index
    %240 = vector.load %arg13[%c0_90, %c0_91] : memref<16x512xf32, #tpu.memory_space<vmem>>, vector<16x512xf32>
    tpu.vector_store %arg13[%c0_90, %c0_91], %239 {strides = array<i32>} : memref<16x512xf32, #tpu.memory_space<vmem>>, vector<16x512xf32>,
    %c3_i32 = arith.constant 3 : i32
    %241 = arith.cmpi eq, %arg0, %c3_i32 : i32
    %242 = arith.extui %241 : i1 to i32
    %c0_i32_92 = arith.constant 0 : i32
    %243 = arith.cmpi ne, %242, %c0_i32_92 : i32
    scf.if %243 {
      %c0_93 = arith.constant 0 : index
      %c0_94 = arith.constant 0 : index
      %244 = vector.load %arg8[%c0_93, %c0_94] : memref<1x512xf32, #tpu.memory_space<vmem>>, vector<1x512xf32>
      %c0_95 = arith.constant 0 : index
      %c0_96 = arith.constant 0 : index
      %245 = vector.load %arg9[%c0_95, %c0_96] : memref<1x512xf32, #tpu.memory_space<vmem>>, vector<1x512xf32>
      %cst_97 = arith.constant dense<0.000000e+00> : vector<16xf32>
      %246 = vector.multi_reduction <add>, %239, %cst_97 [1] : vector<16x512xf32> to vector<16xf32>
      %247 = vector.shape_cast %246 : vector<16xf32> to vector<16x1xf32>
      %cst_98 = arith.constant 5.120000e+02 : f32
      %248 = vector.broadcast %cst_98 : f32 to vector<16x1xf32>
      %249 = arith.divf %247, %248 : vector<16x1xf32>
      %250 = vector.broadcast %249 : vector<16x1xf32> to vector<16x512xf32>
      %251 = arith.subf %239, %250 : vector<16x512xf32>
      %252 = arith.mulf %251, %251 : vector<16x512xf32>
      %cst_99 = arith.constant dense<0.000000e+00> : vector<16xf32>
      %253 = vector.multi_reduction <add>, %252, %cst_99 [1] : vector<16x512xf32> to vector<16xf32>
      %254 = vector.shape_cast %253 : vector<16xf32> to vector<16x1xf32>
      %cst_100 = arith.constant 5.120000e+02 : f32
      %255 = vector.broadcast %cst_100 : f32 to vector<16x1xf32>
      %256 = arith.divf %254, %255 : vector<16x1xf32>
      %cst_101 = arith.constant 9.99999974E-6 : f32
      %257 = vector.broadcast %cst_101 : f32 to vector<16x1xf32>
      %258 = arith.addf %256, %257 : vector<16x1xf32>
      %259 = math.rsqrt %258 : vector<16x1xf32>
      %260 = vector.broadcast %259 : vector<16x1xf32> to vector<16x512xf32>
      %261 = arith.mulf %251, %260 : vector<16x512xf32>
      %262 = vector.broadcast %244 : vector<1x512xf32> to vector<16x512xf32>
      %263 = arith.mulf %261, %262 : vector<16x512xf32>
      %264 = vector.broadcast %245 : vector<1x512xf32> to vector<16x512xf32>
      %265 = arith.addf %263, %264 : vector<16x512xf32>
      %266 = arith.truncf %265 : vector<16x512xf32> to vector<16x512xbf16>
      %c0_102 = arith.constant 0 : index
      %c0_103 = arith.constant 0 : index
      %267 = vector.load %arg10[%c0_102, %c0_103] : memref<512x8xbf16, #tpu.memory_space<vmem>>, vector<512x8xbf16>
      %cst_104 = arith.constant dense<0.000000e+00> : vector<16x8xf32>
      %268 = tpu.matmul %266, %267, %cst_104 {dimension_numbers = #tpu.dot_dimension_numbers<[1], [0], [0], [1], [0, 0, 1, 1], [], []>} : vector<16x512xbf16>, vector<512x8xbf16>, vector<16x8xf32> -> vector<16x8xf32>
      %c0_105 = arith.constant 0 : index
      %c0_106 = arith.constant 0 : index
      %269 = vector.load %arg11[%c0_105, %c0_106] : memref<1x8xf32, #tpu.memory_space<vmem>>, vector<1x8xf32>
      %270 = vector.broadcast %269 : vector<1x8xf32> to vector<16x8xf32>
      %271 = arith.addf %268, %270 : vector<16x8xf32>
      %c0_107 = arith.constant 0 : index
      %c0_108 = arith.constant 0 : index
      %272 = vector.load %arg12[%c0_107, %c0_108] : memref<16x8xf32, #tpu.memory_space<vmem>>, vector<16x8xf32>
      tpu.vector_store %arg12[%c0_107, %c0_108], %271 {strides = array<i32>} : memref<16x8xf32, #tpu.memory_space<vmem>>, vector<16x8xf32>,
    } else {
    }
    return
  }
  func.func @transform_0(%arg0: i32) -> (i32, i32) {
    %c0_i32 = arith.constant 0 : i32
    %c0_i32_0 = arith.constant 0 : i32
    %c0_i32_1 = arith.constant 0 : i32
    return %c0_i32, %c0_i32_0 : i32, i32
  }
  func.func @transform_1(%arg0: i32) -> (i32, i32) {
    %c0_i32 = arith.constant 0 : i32
    %c0_i32_0 = arith.constant 0 : i32
    %c0_i32_1 = arith.constant 0 : i32
    return %c0_i32, %c0_i32_0 : i32, i32
  }
  func.func @transform_2(%arg0: i32) -> (i32, i32) {
    %c0_i32 = arith.constant 0 : i32
    %c0_i32_0 = arith.constant 0 : i32
    %c0_i32_1 = arith.constant 0 : i32
    return %c0_i32, %c0_i32_0 : i32, i32
  }
  func.func @transform_3(%arg0: i32) -> (i32, i32) {
    %c0_i32 = arith.constant 0 : i32
    %c0_i32_0 = arith.constant 0 : i32
    %c0_i32_1 = arith.constant 0 : i32
    return %c0_i32, %c0_i32_0 : i32, i32
  }
  func.func @transform_4(%arg0: i32) -> (i32, i32, i32) {
    %c0_i32 = arith.constant 0 : i32
    %c0_i32_0 = arith.constant 0 : i32
    %c0_i32_1 = arith.constant 0 : i32
    return %arg0, %c0_i32, %c0_i32_0 : i32, i32, i32
  }
  func.func @transform_5(%arg0: i32) -> (i32, i32, i32) {
    %c0_i32 = arith.constant 0 : i32
    %c0_i32_0 = arith.constant 0 : i32
    %c0_i32_1 = arith.constant 0 : i32
    return %arg0, %c0_i32, %c0_i32_0 : i32, i32, i32
  }
  func.func @transform_6(%arg0: i32) -> (i32, i32, i32) {
    %c0_i32 = arith.constant 0 : i32
    %c0_i32_0 = arith.constant 0 : i32
    %c0_i32_1 = arith.constant 0 : i32
    return %arg0, %c0_i32, %c0_i32_0 : i32, i32, i32
  }
  func.func @transform_7(%arg0: i32) -> (i32, i32) {
    %c0_i32 = arith.constant 0 : i32
    %c0_i32_0 = arith.constant 0 : i32
    %c0_i32_1 = arith.constant 0 : i32
    return %c0_i32, %c0_i32_0 : i32, i32
  }
  func.func @transform_8(%arg0: i32) -> (i32, i32) {
    %c0_i32 = arith.constant 0 : i32
    %c0_i32_0 = arith.constant 0 : i32
    %c0_i32_1 = arith.constant 0 : i32
    return %c0_i32, %c0_i32_0 : i32, i32
  }
  func.func @transform_9(%arg0: i32) -> (i32, i32) {
    %c0_i32 = arith.constant 0 : i32
    %c0_i32_0 = arith.constant 0 : i32
    %c0_i32_1 = arith.constant 0 : i32
    return %c0_i32, %c0_i32_0 : i32, i32
  }
  func.func @transform_10(%arg0: i32) -> (i32, i32) {
    %c0_i32 = arith.constant 0 : i32
    %c0_i32_0 = arith.constant 0 : i32
    %c0_i32_1 = arith.constant 0 : i32
    return %c0_i32, %c0_i32_0 : i32, i32
  }
  func.func @transform_11(%arg0: i32) -> (i32, i32) {
    %c0_i32 = arith.constant 0 : i32
    %c0_i32_0 = arith.constant 0 : i32
    %c0_i32_1 = arith.constant 0 : i32
    return %c0_i32, %c0_i32_0 : i32, i32
  }
}

</mosaic_0001>

<bundles_post_ra>
// kernel: tpu_custom_call.1
= control target key start
LH: loop header
LB: loop body
LE: loop exit
PB: predicated region body
PF: predicated region fallthrough
CT: control target
= control target key end

     0   :  { %6 = vsyncpa [#allocation3], 0  ;;  %s127_s0 = inlined_call_operand.hbm [shape: f32[8,128], index: 0, kind: input, shape index: {}]   ;;  %s128_s1 = inlined_call_operand.hbm [shape: f32[8,128], index: 1, kind: output, shape index: {}]  }
   0x1   :  { %7 = vsyncpa [#allocation4], 0  ;;  %s91_s6 = smov [#allocation2]   ;;  %s43_s10 = scalar_lea.hbm %s127_s0, 128 }
   0x2   :  { %s14_s7 = sshll.u32 %s91_s6, 4  ;;  %p44_p0 = scmp.ne.s32.totalorder %s127_s0, %s43_s10  ;;  %s15_s7 = int_to_ptr.vmem [resolvable:$true] %s14_s7 }
   0x3   :  { %p47_p1 = scmp.lt.u32.totalorder %s43_s10, %s127_s0 }
   0x5   :  { %p49_p2 = pnand %p47_p1, %p44_p0 }
   0x7   :  { %52 = shalt.err (!%p49_p2)
}
   0x8   :  { %s53_s15 = scalar_lea.vmem %s15_s7, 128  ;;  %p58_p4 = scmp.lt.s32.totalorder %s15_s7, %s15_s7 }
   0x9   :  { %p54_p3 = scmp.ne.s32.totalorder %s15_s7, %s53_s15  ;;  %p59_p5 = scmp.lt.s32.totalorder %s53_s15, %s53_s15 }
   0xb   :  { %p60_p6 = por %p59_p5, %p58_p4 }
   0xd   :  { %p61_p7 = pnand %p60_p6, %p54_p3 }
   0xf   :  { %64 = shalt.err (!%p61_p7)
}
  0x10   :  { %17 = dma.hbm_to_vmem [thread:$0]  %s127_s0, 128, %s15_s7, [#allocation3]  }
  0x11   :  { %87 = dma.done.wait [#allocation3], 128  }
  0x12   :  { %88 = vsyncadd [#allocation3], 4294967168  ;;  %v21_v0 = vld [vmem:[#allocation2] sm:$0xff]  ;;  %s92_s18 = smov [#allocation5]  }
  0x13   :  { %41 = verf.f32 %v21_v0  ;;  %s30_s19 = sshll.u32 %s92_s18, 4  ;;  %s31_s19 = int_to_ptr.vmem [resolvable:$true] %s30_s19 }
  0x14   :  { %s65_s20 = scalar_lea.vmem %s31_s19, 128  ;;  %p70_p9 = scmp.lt.s32.totalorder %s31_s19, %s31_s19 }
  0x15   :  { %p66_p8 = scmp.ne.s32.totalorder %s31_s19, %s65_s20  ;;  %p71_p10 = scmp.lt.s32.totalorder %s65_s20, %s65_s20 }
  0x17   :  { %p72_p11 = por %p71_p10, %p70_p9 }
  0x19   :  { %p73_p12 = pnand %p72_p11, %p66_p8 }
  0x1d   :  { %v42_v1 = vpop.eup %41 }
  0x1e   :  { %23 = vst [vmem:[#allocation5] sm:$0xff] %v42_v1 }
  0x1f   :  { %76 = shalt.err (!%p73_p12)
}
  0x20   :  { %s77_s0 = scalar_lea.hbm %s128_s1, 128 }
  0x21   :  { %p78_p13 = scmp.ne.s32.totalorder %s128_s1, %s77_s0  ;;  %p81_p0 = scmp.lt.u32.totalorder %s77_s0, %s128_s1 }
  0x23   :  { %p83_p1 = pnand %p81_p0, %p78_p13 }
  0x25   :  { %86 = shalt.err (!%p83_p1)
}
  0x26   :  { %33 = dma.vmem_to_hbm [thread:$0]  %s31_s19, 128, %s128_s1, [#allocation4]  }
  0x27   :  { %89 = dma.done.wait [#allocation4], 128  }
  0x28   :  { %90 = vsyncadd [#allocation4], 4294967168 }
  0x29   :  { %37 = vsyncpa [#allocation3], 1 }
  0x2a   :  { %38 = vsyncpa [#allocation4], 1 }

// kernel: itransformer_forward.1
= control target key start
LH: loop header
LB: loop body
LE: loop exit
PB: predicated region body
PF: predicated region fallthrough
CT: control target
= control target key end

     0   :  { %s21734_s0 = inlined_call_operand.vmem [shape: f32[16,16], index: 0, kind: input, shape index: {}]   ;;  %s21735_s1 = inlined_call_operand.hbm [shape: f32[16,16], index: 1, kind: input, shape index: {}]   ;;  %s21736_s2 = inlined_call_operand.hbm [shape: bf16[16,512], index: 2, kind: input, shape index: {}]   ;;  %s21737_s3 = inlined_call_operand.hbm [shape: f32[1,512], index: 3, kind: input, shape index: {}]   ;;  %s21738_s4 = inlined_call_operand.hbm [shape: bf16[4,512,4096], index: 4, kind: input, shape index: {}]   ;;  %s21739_s5 = inlined_call_operand.hbm [shape: bf16[4,2048,512], index: 5, kind: input, shape index: {}]   ;;  %s21740_s6 = inlined_call_operand.hbm [shape: f32[4,1,6656], index: 6, kind: input, shape index: {}]   ;;  %s21741_s7 = inlined_call_operand.hbm [shape: f32[1,512], index: 7, kind: input, shape index: {}]   ;;  %s21742_s8 = inlined_call_operand.hbm [shape: f32[1,512], index: 8, kind: input, shape index: {}]   ;;  %s21743_s9 = inlined_call_operand.vmem [shape: bf16[512,8], index: 9, kind: input, shape index: {}]   ;;  %s21744_s10 = inlined_call_operand.hbm [shape: f32[1,8], index: 10, kind: input, shape index: {}]   ;;  %s21745_s11 = inlined_call_operand.vmem [shape: f32[16,8], index: 11, kind: output, shape index: {}]  }
   0x1   :  { %21764 = sst [smem:[#allocation25_spill]] %s21734_s0 }
   0x2   :  { %21765 = sst [smem:[#allocation26_spill]] %s21736_s2 }
   0x3   :  { %21766 = sst [smem:[#allocation27_spill]] %s21738_s4 }
   0x4   :  { %21767 = sst [smem:[#allocation28_spill]] %s21741_s7 }
   0x5   :  { %21768 = sst [smem:[#allocation29_spill]] %s21742_s8 }
   0x6   :  { %21769 = sst [smem:[#allocation30_spill]] %s21743_s9 }
   0x7   :  { %21770 = sst [smem:[#allocation31_spill]] %s21745_s11 }
   0x8   :  { %16 = vsyncpa [#allocation4], 0 }
   0x9   :  { %17 = vsyncpa [#allocation6], 0 }
   0xa   :  { %18 = vsyncpa [#allocation9], 0 }
   0xb   :  { %20 = vsyncpa [#allocation9 + $0x1], 0 }
   0xc   :  { %21 = vsyncpa [#allocation12], 0 }
   0xd   :  { %23 = vsyncpa [#allocation12 + $0x1], 0 }
   0xe   :  { %24 = vsyncpa [#allocation15], 0  ;;  %s18668_s17 = smov 0   ;;  %s18670_s18 = smov 0  }
   0xf   :  { %s18672_s19 = smov 0   ;;  %s18674_s20 = smov 0  }
  0x10 LB: > { %21771 = sst [smem:[#allocation23_spill]] %s18586_s19  ;;  %s18592_s21 = smov [#allocation5]   ;;  %s18590_s20 = sphi %s18674_s20, %s21811_s20   ;;  %s18586_s19 = sphi %s18672_s19, %s21808_s19   ;;  %s18582_s18 = sphi %s18670_s18, %s21810_s18   ;;  %s18578_s17 = sphi %s18668_s17, %s21809_s17  }
  0x11   : > { %s330_s22 = sshll.u32 %s18592_s21, 4  ;;  %s18689_s23 = sadd.s32 4294967295, %s18590_s20   ;;  %s18695_s22 = int_to_ptr.vmem [resolvable:$true] %s330_s22 }
  0x12   : > { %p14997_p0 = scmp.ge.s32.totalorder %s18590_s20, 1  ;;  %p21751_p1 = scmp.eq.s32.totalorder %s18689_s23, 0 }
  0x13   : > { %p302_p2 = scmp.lt.s32.totalorder %s18590_s20, 5  ;;  %s18593_s25 = smov [#allocation13]  }
  0x14   : > { %s355_s26 = sshll.u32 %s18593_s25, 4  ;;  %s18594_s28 = smov [#allocation14]   ;;  %s18709_s26 = int_to_ptr.vmem [resolvable:$true] %s355_s26 }
  0x15   : > { %p18697_p4 = pnand %p14997_p0, %p302_p2  ;;  %s366_s29 = sshll.u32 %s18594_s28, 4  ;;  %s18711_s29 = int_to_ptr.vmem [resolvable:$true] %s366_s29 }
  0x16   : > { %s21774_s2 = sld [smem:[#allocation26_spill]] }
  0x17   : > { %s21772_s24 = scalar_select %p18697_p4, 1, 0 }
  0x18   : > { %p17175_p5 = pneg %p18697_p4 }
  0x1a   : > { %p18705_p6 = pnand %p17175_p5, %p21751_p1 }
  0x1c   : > { %s21773_s27 = scalar_select %p18705_p6, 1, 0 }
  0x1d   : > { %s18278_s13 = scalar_lea.hbm %s21774_s2, 512  ;;  %p18721_p8 = pneg %p18705_p6 }
  0x1e   : > { %p18279_p7 = scmp.ne.s32.totalorder %s21774_s2, %s18278_s13  ;;  %p18285_p11 = scmp.lt.u32.totalorder %s18278_s13, %s21774_s2 }
  0x1f   : > { %s21775_s16 = scalar_select %p18721_p8, 1, 0 }
  0x20   : > { %p18281_p9 = pnand %p18721_p8, %p18279_p7 }
  0x22   : > { %p18282_p10 = pneg %p18281_p9 }
  0x24   : > { %p18287_p12 = pnand %p18285_p11, %p18282_p10 }
  0x26   : > { %18290 = shalt.err (!%p18287_p12)
}
  0x27   : > { %s18291_s28 = scalar_lea.vmem %s18695_s22, 512  ;;  %p18299_p5 = scmp.lt.s32.totalorder %s18695_s22, %s18695_s22 }
  0x28   : > { %p18292_p13 = scmp.ne.s32.totalorder %s18695_s22, %s18291_s28  ;;  %p18300_p3 = scmp.lt.s32.totalorder %s18291_s28, %s18291_s28 }
  0x2a   : > { %p18294_p0 = pnand %p18292_p13, %p18721_p8  ;;  %p18301_p7 = por %p18300_p3, %p18299_p5 }
  0x2c   : > { %p18295_p2 = pneg %p18294_p0 }
  0x2e   : > { %p18302_p9 = pnand %p18301_p7, %p18295_p2 }
  0x30   : > { %18305 = shalt.err (!%p18302_p9)
}
  0x31   : > { %s21749_s30 = smov 256   ;;  %s21750_s12 = smov 16  }
  0x32   : > { %17181 = dma.hbm_to_vmem [thread:$0]  (!%p18705_p6), %s21774_s2, 512, %s18695_s22, [#allocation6], %s21749_s30, %s21749_s30, %s21750_s12  }
  0x33   : > { %s21776_s7 = sld [smem:[#allocation28_spill]] }
  0x39   : > { %s18306_s25 = scalar_lea.hbm %s21776_s7, 64 }
  0x3a   : > { %p18307_p3 = scmp.ne.s32.totalorder %s21776_s7, %s18306_s25  ;;  %p18313_p12 = scmp.lt.u32.totalorder %s18306_s25, %s21776_s7 }
  0x3c   : > { %p18309_p10 = pnand %p18307_p3, %p18721_p8 }
  0x3e   : > { %p18310_p11 = pneg %p18309_p10 }
  0x40   : > { %p18315_p13 = pnand %p18313_p12, %p18310_p11 }
  0x42   : > { %18318 = shalt.err (!%p18315_p13)
}
  0x43   : > { %s18319_s22 = scalar_lea.vmem %s18709_s26, 64  ;;  %p18327_p7 = scmp.lt.s32.totalorder %s18709_s26, %s18709_s26 }
  0x44   : > { %p18320_p0 = scmp.ne.s32.totalorder %s18709_s26, %s18319_s22  ;;  %p18328_p9 = scmp.lt.s32.totalorder %s18319_s22, %s18319_s22 }
  0x46   : > { %p18322_p2 = pnand %p18320_p0, %p18721_p8  ;;  %p18329_p3 = por %p18328_p9, %p18327_p7 }
  0x48   : > { %p18323_p5 = pneg %p18322_p2 }
  0x4a   : > { %p18330_p10 = pnand %p18329_p3, %p18323_p5 }
  0x4c   : > { %18333 = shalt.err (!%p18330_p10)
}
  0x4d   : > { %17187 = dma.hbm_to_vmem [thread:$0]  (!%p18705_p6), %s21776_s7, 64, %s18709_s26, [#allocation12]  }
  0x4e   : > { %s21777_s8 = sld [smem:[#allocation29_spill]] }
  0x54   : > { %s18334_s14 = scalar_lea.hbm %s21777_s8, 64 }
  0x55   : > { %p18335_p11 = scmp.ne.s32.totalorder %s21777_s8, %s18334_s14  ;;  %p18341_p0 = scmp.lt.u32.totalorder %s18334_s14, %s21777_s8 }
  0x57   : > { %p18337_p12 = pnand %p18335_p11, %p18721_p8 }
  0x59   : > { %p18338_p13 = pneg %p18337_p12 }
  0x5b   : > { %p18343_p2 = pnand %p18341_p0, %p18338_p13 }
  0x5d   : > { %18346 = shalt.err (!%p18343_p2)
}
  0x5e   : > { %s18347_s26 = scalar_lea.vmem %s18711_s29, 64  ;;  %p18355_p3 = scmp.lt.s32.totalorder %s18711_s29, %s18711_s29 }
  0x5f   : > { %p18348_p5 = scmp.ne.s32.totalorder %s18711_s29, %s18347_s26  ;;  %p18356_p10 = scmp.lt.s32.totalorder %s18347_s26, %s18347_s26 }
  0x61   : > { %p18350_p7 = pnand %p18348_p5, %p18721_p8  ;;  %p18357_p11 = por %p18356_p10, %p18355_p3 }
  0x63   : > { %p18351_p9 = pneg %p18350_p7 }
  0x65   : > { %p18358_p12 = pnand %p18357_p11, %p18351_p9 }
  0x67   : > { %18361 = shalt.err (!%p18358_p12)
}
  0x68   : > { %17190 = dma.hbm_to_vmem [thread:$0]  (!%p18705_p6), %s21777_s8, 64, %s18711_s29, [#allocation15]  }
  0x69   : > { %s18792_s9 = sadd.s32 1, %s18590_s20   ;;  %s121_s13 = sadd.s32 1, %s18586_s19 }
  0x6a   : > { %s118_s11 = ssub.s32 %s18590_s20, %s18792_s9  ;;  %p128_p0 = scmp.ne.s32.totalorder %s18586_s19, %s18582_s18 }
  0x6b   : > { %p119_p13 = scmp.eq.s32.totalorder %s118_s11, 0  ;;  %p129_p2 = scmp.eq.s32.totalorder %s18590_s20, 0 }
  0x6c   : > { %p134_p5 = scmp.ne.s32.totalorder %s18582_s18, %s18578_s17  ;;  %p17210_p3 = scmp.lt.s32.totalorder %s18590_s20, 4 }
  0x6d   : > { %s18803_s14 = scalar_select %p119_p13, %s18586_s19, %s121_s13  }
  0x6e   : > { %p130_p7 = por %p129_p2, %p128_p0  ;;  %p18807_p9 = por %p21751_p1, %p134_p5 }
  0x6f   : > { %21778 = sst [smem:[#allocation24_spill]] %s18803_s14  ;;  %s21753_s29 = sand.u32 1, %s18590_s20  }
  0x70   : > { %s21779_s15 = scalar_select %p18807_p9, 1, 0 }
  0x71   : > { %s18814_s21 = sand.u32 1, %s18586_s19   ;;  %s16648_s28 = sshll.u32 %s18590_s20, 17 }
  0x72   : > { %s15005_s25 = sshll.u32 %s18814_s21, 13  ;;  %s21780_s4 = sld [smem:[#allocation27_spill]] }
  0x73   : > { %s395_s0 = scalar_lea.vmem [#allocation8], %s15005_s25  ;;  %p18825_p10 = pnand %p17210_p3, %p130_p7 }
  0x74   : > { %s402_s11 = sshll.u32 %s395_s0, 4  ;;  %s18597_s30 = smov [#allocation3]   ;;  %s18823_s11 = int_to_ptr.vmem [resolvable:$true] %s402_s11 }
  0x75   : > { %s21781_s13 = scalar_select %p18825_p10, 1, 0 }
  0x76   : > { %s18829_s12 = sshll.u32 %s18597_s30, 4  ;;  %s18833_s26 = scalar_lea.sflag [#allocation9], %s21753_s29  ;;  %s318_s12 = int_to_ptr.vmem [resolvable:$true] %s18829_s12 }
  0x77   : > { %p18839_p12 = pneg %p18825_p10 }
  0x78   : > { %s18821_s17 = scalar_lea.hbm %s21780_s4, %s16648_s28  ;;  %s18367_s2 = scalar_lea.hbm %s21780_s4, 524288 }
  0x79   : > { %s18362_s28 = scalar_lea.hbm %s18821_s17, 131072  ;;  %p18368_p2 = scmp.lt.u32.totalorder %s18821_s17, %s21780_s4 }
  0x7a   : > { %p18363_p11 = scmp.ne.s32.totalorder %s18821_s17, %s18362_s28  ;;  %p18369_p5 = scmp.lt.u32.totalorder %s18367_s2, %s18362_s28 }
  0x7b   : > { %s21782_s25 = scalar_select %p18839_p12, 1, 0 }
  0x7c   : > { %p18365_p13 = pnand %p18839_p12, %p18363_p11  ;;  %p18370_p7 = por %p18369_p5, %p18368_p2 }
  0x7d   : > { %p18371_p3 = scmp.lt.u32.totalorder %s18362_s28, %s18821_s17 }
  0x7e   : > { %p18366_p0 = pneg %p18365_p13 }
  0x7f   : > { %p18372_p1 = por %p18371_p3, %p18370_p7 }
  0x81   : > { %p18373_p9 = pnand %p18372_p1, %p18366_p0 }
  0x83   : > { %18376 = shalt.err (!%p18373_p9)
}
  0x84   : > { %s18377_s29 = scalar_lea.vmem %s18823_s11, 131072  ;;  %s18598_s22 = smov [#allocation8]  }
  0x85   : > { %p18378_p11 = scmp.ne.s32.totalorder %s18823_s11, %s18377_s29  ;;  %s18382_s0 = sshll.u32 %s18598_s22, 4  ;;  %s18383_s0 = int_to_ptr.vmem [resolvable:$false] %s18382_s0 }
  0x86   : > { %s18384_s7 = scalar_lea.vmem %s18383_s0, 262144  ;;  %p18385_p6 = scmp.lt.s32.totalorder %s18823_s11, %s18383_s0 }
  0x87   : > { %p18380_p13 = pnand %p18378_p11, %p18839_p12  ;;  %p18386_p8 = scmp.lt.s32.totalorder %s18384_s7, %s18377_s29 }
  0x89   : > { %p18381_p4 = pneg %p18380_p13  ;;  %p18387_p2 = por %p18386_p8, %p18385_p6 }
  0x8b   : > { %p18388_p5 = pnand %p18387_p2, %p18381_p4 }
  0x8d   : > { %18391 = shalt.err (!%p18388_p5)
}
  0x8e   : > { %s18599_s2 = smov 2048   ;;  %s18600_s28 = smov 128  }
  0x8f   : > { %17197 = dma.hbm_to_vmem [thread:$0]  (!%p18825_p10), %s18821_s17, 131072, %s18823_s11, %s18833_s26, %s18599_s2, %s18599_s2, %s18600_s28  }
  0x90   : > { %s18392_s4 = scalar_lea.hbm %s21735_s1, 256  ;;  %p21783_p4 = scmp.ne.s32.totalorder %s21775_s16, 0 }
  0x91   : > { %p18393_p1 = scmp.ne.s32.totalorder %s21735_s1, %s18392_s4  ;;  %p18399_p9 = scmp.lt.u32.totalorder %s18392_s4, %s21735_s1 }
  0x93   : > { %p18395_p6 = pnand %p18393_p1, %p21783_p4 }
  0x95   : > { %p18396_p8 = pneg %p18395_p6 }
  0x97   : > { %p18401_p0 = pnand %p18399_p9, %p18396_p8 }
  0x99   : > { %18404 = shalt.err (!%p18401_p0)
}
  0x9a   : > { %s18405_s14 = scalar_lea.vmem %s318_s12, 256  ;;  %p18413_p13 = scmp.lt.s32.totalorder %s318_s12, %s318_s12 }
  0x9b   : > { %p18406_p7 = scmp.ne.s32.totalorder %s318_s12, %s18405_s14  ;;  %p18414_p2 = scmp.lt.s32.totalorder %s18405_s14, %s18405_s14 }
  0x9d   : > { %p18408_p3 = pnand %p18406_p7, %p21783_p4  ;;  %p18415_p5 = por %p18414_p2, %p18413_p13 }
  0x9f   : > { %p18409_p11 = pneg %p18408_p3 }
  0xa1   : > { %p18416_p10 = pnand %p18415_p5, %p18409_p11 }
  0xa3   : > { %18419 = shalt.err (!%p18416_p10)
}
  0xa4   : > { %s18601_s17 = smov 8   ;;  %p21784_p1 = scmp.ne.s32.totalorder %s21773_s27, 0 }
  0xa5   : > { %s18602_s4 = smov [#allocation7]   ;;  %s18603_s30 = smov [#allocation16]  }
  0xa6   : > { %17178 = dma.hbm_to_vmem [thread:$0]  (!%p21784_p1), %s21735_s1, 256, %s318_s12, [#allocation4], %s18600_s28, %s18600_s28, %s18601_s17  }
  0xa7   : > { %s344_s8 = sshll.u32 %s18602_s4, 4  ;;  %s380_s22 = sshll.u32 %s18603_s30, 4  ;;  %s345_s8 = int_to_ptr.vmem [resolvable:$true] %s344_s8  ;;  %s18882_s22 = int_to_ptr.vmem [resolvable:$true] %s380_s22 }
  0xa8   : > { %s18420_s29 = scalar_lea.hbm %s21737_s3, 64 }
  0xa9   : > { %p18421_p10 = scmp.ne.s32.totalorder %s21737_s3, %s18420_s29  ;;  %p18427_p9 = scmp.lt.u32.totalorder %s18420_s29, %s21737_s3 }
  0xab   : > { %p18423_p6 = pnand %p18421_p10, %p21783_p4 }
  0xad   : > { %p18424_p8 = pneg %p18423_p6 }
  0xaf   : > { %p18429_p0 = pnand %p18427_p9, %p18424_p8 }
  0xb1   : > { %18432 = shalt.err (!%p18429_p0)
}
  0xb2   : > { %s18433_s28 = scalar_lea.vmem %s345_s8, 64  ;;  %p18441_p13 = scmp.lt.s32.totalorder %s345_s8, %s345_s8 }
  0xb3   : > { %p18434_p7 = scmp.ne.s32.totalorder %s345_s8, %s18433_s28  ;;  %p18442_p2 = scmp.lt.s32.totalorder %s18433_s28, %s18433_s28 }
  0xb5   : > { %p18436_p3 = pnand %p18434_p7, %p21783_p4  ;;  %p18443_p5 = por %p18442_p2, %p18441_p13 }
  0xb7   : > { %p18437_p11 = pneg %p18436_p3 }
  0xb9   : > { %p18444_p12 = pnand %p18443_p5, %p18437_p11 }
  0xbb   : > { %18447 = shalt.err (!%p18444_p12)
}
  0xbc   : > { %17184 = dma.hbm_to_vmem [thread:$0]  (!%p21784_p1), %s21737_s3, 64, %s345_s8, [#allocation6]  }
  0xbd   : > { %s18448_s30 = scalar_lea.hbm %s21744_s10, 16 }
  0xbe   : > { %p18449_p10 = scmp.ne.s32.totalorder %s21744_s10, %s18448_s30  ;;  %p18455_p12 = scmp.lt.u32.totalorder %s18448_s30, %s21744_s10 }
  0xc0   : > { %p18451_p6 = pnand %p18449_p10, %p21783_p4 }
  0xc2   : > { %p18452_p8 = pneg %p18451_p6 }
  0xc4   : > { %p18457_p9 = pnand %p18455_p12, %p18452_p8 }
  0xc6   : > { %18460 = shalt.err (!%p18457_p9)
}
  0xc7   : > { %s18461_s8 = scalar_lea.vmem %s18882_s22, 16  ;;  %s18468_s11 = scalar_lea.vmem %s18882_s22, 32 }
  0xc8   : > { %p18462_p0 = scmp.ne.s32.totalorder %s18882_s22, %s18461_s8  ;;  %p18469_p11 = scmp.lt.s32.totalorder %s18882_s22, %s18882_s22 }
  0xc9   : > { %p18470_p13 = scmp.lt.s32.totalorder %s18468_s11, %s18461_s8 }
  0xca   : > { %p18464_p7 = pnand %p18462_p0, %p21783_p4 }
  0xcb   : > { %p18471_p2 = por %p18470_p13, %p18469_p11 }
  0xcc   : > { %p18465_p3 = pneg %p18464_p7 }
  0xce   : > { %p18472_p5 = pnand %p18471_p2, %p18465_p3 }
  0xd0   : > { %18475 = shalt.err (!%p18472_p5)
}
  0xd1   : > { %17193 = dma.hbm_to_vmem [thread:$0]  (!%p21784_p1), %s21744_s10, 16, %s18882_s22, [#allocation15]  }
  0xd2   : > { %s15008_s16 = sshll.u32 %s18814_s21, 12  ;;  %s16649_s19 = sshll.u32 %s18590_s20, 16 }
  0xd3   : > { %s18931_s4 = scalar_lea.hbm %s21739_s5, %s16649_s19  ;;  %s416_s27 = scalar_lea.vmem [#allocation10], %s15008_s16 }
  0xd4   : > { %s423_s30 = sshll.u32 %s416_s27, 4  ;;  %s17142_s0 = smul.u32 52, %s18814_s21  ;;  %s18933_s30 = int_to_ptr.vmem [resolvable:$true] %s423_s30 }
  0xd5   : > { %s18476_s14 = scalar_lea.hbm %s18931_s4, 65536  ;;  %p21785_p10 = scmp.ne.s32.totalorder %s21782_s25, 0 }
  0xd6   : > { %p18477_p4 = scmp.ne.s32.totalorder %s18931_s4, %s18476_s14  ;;  %s18481_s7 = scalar_lea.hbm %s21739_s5, 262144 }
  0xd7   : > { %p18482_p8 = scmp.lt.u32.totalorder %s18931_s4, %s21739_s5  ;;  %p18483_p12 = scmp.lt.u32.totalorder %s18481_s7, %s18476_s14 }
  0xd8   : > { %p18479_p1 = pnand %p18477_p4, %p21785_p10  ;;  %p18485_p0 = scmp.lt.u32.totalorder %s18476_s14, %s18931_s4 }
  0xd9   : > { %p18484_p9 = por %p18483_p12, %p18482_p8 }
  0xda   : > { %p18480_p6 = pneg %p18479_p1 }
  0xdb   : > { %p18486_p7 = por %p18485_p0, %p18484_p9 }
  0xdd   : > { %p18487_p3 = pnand %p18486_p7, %p18480_p6 }
  0xdf   : > { %18490 = shalt.err (!%p18487_p3)
}
  0xe0   : > { %s18491_s12 = scalar_lea.vmem %s18933_s30, 65536  ;;  %s18604_s28 = smov [#allocation10]  }
  0xe1   : > { %p18492_p11 = scmp.ne.s32.totalorder %s18933_s30, %s18491_s12  ;;  %s18496_s16 = sshll.u32 %s18604_s28, 4  ;;  %s18497_s16 = int_to_ptr.vmem [resolvable:$false] %s18496_s16 }
  0xe2   : > { %s18498_s19 = scalar_lea.vmem %s18497_s16, 131072  ;;  %p18499_p5 = scmp.lt.s32.totalorder %s18933_s30, %s18497_s16 }
  0xe3   : > { %p18494_p13 = pnand %p18492_p11, %p21785_p10  ;;  %p18500_p4 = scmp.lt.s32.totalorder %s18498_s19, %s18491_s12 }
  0xe5   : > { %p18495_p2 = pneg %p18494_p13  ;;  %p18501_p1 = por %p18500_p4, %p18499_p5 }
  0xe7   : > { %p18502_p8 = pnand %p18501_p1, %p18495_p2 }
  0xe9   : > { %18505 = shalt.err (!%p18502_p8)
}
  0xea   : > { %p21786_p6 = scmp.ne.s32.totalorder %s21781_s13, 0  ;;  %s21787_s17 = smov 16  }
  0xeb   : > { %s21788_s2 = smov 256   ;;  %s17143_s27 = smul.u32 832, %s18590_s20 }
  0xec   : > { %17200 = dma.hbm_to_vmem [thread:$0]  (!%p21786_p6), %s18931_s4, 65536, %s18933_s30, %s18833_s26, %s21788_s2, %s21788_s2, %s21787_s17  }
  0xed   : > { %s437_s14 = scalar_lea.vmem [#allocation11], %s17142_s0  ;;  %s18967_s8 = scalar_lea.hbm %s21740_s6, %s17143_s27 }
  0xee   : > { %s445_s22 = sshll.u32 %s437_s14, 4  ;;  %s21789_s11 = sand.u32 1, %s18590_s20   ;;  %s446_s22 = int_to_ptr.vmem [resolvable:$true] %s445_s22 }
  0xef   : > { %s434_s12 = scalar_lea.sflag [#allocation12], %s21789_s11  ;;  %s18506_s28 = scalar_lea.hbm %s18967_s8, 832 }
  0xf0   : > { %p18507_p12 = scmp.ne.s32.totalorder %s18967_s8, %s18506_s28  ;;  %s18511_s4 = scalar_lea.hbm %s21740_s6, 3328 }
  0xf1   : > { %p18512_p7 = scmp.lt.u32.totalorder %s18967_s8, %s21740_s6  ;;  %p18513_p3 = scmp.lt.u32.totalorder %s18511_s4, %s18506_s28 }
  0xf2   : > { %p18509_p9 = pnand %p18507_p12, %p21785_p10  ;;  %p18515_p13 = scmp.lt.u32.totalorder %s18506_s28, %s18967_s8 }
  0xf3   : > { %p18514_p11 = por %p18513_p3, %p18512_p7 }
  0xf4   : > { %p18510_p0 = pneg %p18509_p9 }
  0xf5   : > { %p18516_p2 = por %p18515_p13, %p18514_p11 }
  0xf7   : > { %p18517_p5 = pnand %p18516_p2, %p18510_p0 }
  0xf9   : > { %18520 = shalt.err (!%p18517_p5)
}
  0xfa   : > { %s18521_s20 = scalar_lea.vmem %s446_s22, 832  ;;  %s18605_s16 = smov [#allocation11]  }
  0xfb   : > { %p18522_p4 = scmp.ne.s32.totalorder %s446_s22, %s18521_s20  ;;  %s18526_s19 = sshll.u32 %s18605_s16, 4  ;;  %s18527_s19 = int_to_ptr.vmem [resolvable:$false] %s18526_s19 }
  0xfc   : > { %s18528_s17 = scalar_lea.vmem %s18527_s19, 1664  ;;  %p18529_p12 = scmp.lt.s32.totalorder %s446_s22, %s18527_s19 }
  0xfd   : > { %p18524_p1 = pnand %p18522_p4, %p21785_p10  ;;  %p18530_p9 = scmp.lt.s32.totalorder %s18528_s17, %s18521_s20 }
  0xff   : > { %p18525_p8 = pneg %p18524_p1  ;;  %p18531_p6 = por %p18530_p9, %p18529_p12 }
 0x101   : > { %p18532_p3 = pnand %p18531_p6, %p18525_p8 }
 0x103   : > { %18535 = shalt.err (!%p18532_p3)
}
 0x104   : > { %p21790_p7 = scmp.ne.s32.totalorder %s21781_s13, 0  ;;  %p21791_p0 = scmp.ne.s32.totalorder %s21772_s24, 0 }
 0x105   : > { %p21792_p11 = scmp.eq.s32.totalorder (!%p21791_p0), %s18689_s23, 0 }
 0x106   : > { %17203 = dma.hbm_to_vmem [thread:$0]  (!%p21790_p7), %s18967_s8, 832, %s446_s22, %s434_s12  }
 0x107   : > { %454 = sbr.rel (%p21791_p0) target bundleno = 7874 (0x1ec2), region = 64 }
 0x10e   : > { %18553 = dma.done.wait (%p21792_p11), [#allocation4], 256   ;;  %p21793_p10 = pmov %p21792_p11 }
 0x110   : > { %18555 = vsyncadd (%p21793_p10), [#allocation4], 4294967040  ;;  %p21794_p13 = pmov %p21793_p10 }
 0x111   : > { %p21795_p2 = pmov %p21793_p10 }
 0x112   : > { %18557 = dma.done.wait (%p21794_p13), [#allocation6], 576  }
 0x113   : > { %18559 = vsyncadd (%p21795_p2), [#allocation6], 4294966720  ;;  %s468_s13 = sand.u32 1, %s18689_s23   ;;  %s470_s25 = sand.u32 1, %s18582_s18  }
 0x114   : > { %s15016_s2 = sshll.u32 %s470_s25, 13  ;;  %s469_s24 = scalar_lea.sflag [#allocation9], %s468_s13 }
 0x115   : > { %s19000_s27 = scalar_lea.vmem [#allocation8], %s15016_s2  ;;  %p21796_p6 = scmp.ne.s32.totalorder %s21779_s15, 0 }
 0x117   : > { %18561 = dma.done.wait (%p21796_p6), %s469_s24, 196608  }
 0x118   : > { %18563 = vsyncadd (%p21796_p6), %s469_s24, 4294770688  ;;  %s15017_s14 = sshll.u32 %s470_s25, 12  ;;  %s17144_s22 = smul.u32 52, %s470_s25 }
 0x119   : > { %s19006_s29 = scalar_lea.vmem [#allocation10], %s15017_s14  ;;  %s487_s7 = scalar_lea.sflag [#allocation12], %s468_s13 }
 0x11a   : > { %s19008_s8 = scalar_lea.vmem [#allocation11], %s17144_s22 }
 0x11b   : > { %18565 = dma.done.wait (%p21796_p6), %s487_s7, 832  }
 0x11c   : > { %18567 = vsyncadd (%p21796_p6), %s487_s7, 4294966464  ;;  %p21797_p5 = pmov %p21795_p2 }
 0x11d   : > { %p21798_p4 = pmov %p21795_p2 }
 0x11e   : > { %18569 = dma.done.wait (%p21797_p5), [#allocation12], 64  }
 0x11f   : > { %18571 = vsyncadd (%p21798_p4), [#allocation12], 4294967232  ;;  %p21799_p1 = pmov %p21795_p2 }
 0x121   : > { %18573 = dma.done.wait (%p21799_p1), [#allocation15], 80   ;;  %p21800_p8 = pmov %p21799_p1 }
 0x122   : > { %p21801_p12 = scmp.ne.s32.totalorder %s18689_s23, 0 }
 0x123   : > { %18575 = vsyncadd (%p21800_p8), [#allocation15], 4294967216  ;;  %v17262_v0 = vld [vmem:[#allocation5 + $0x4] ss:$16 sps:$4 sm:$0xff] (!%p21801_p12)   ;;  %v17264_v1 = vld [vmem:[#allocation5 + $0xc] ss:$16 sps:$4 sm:$0xff] (!%p21801_p12)   ;;  %v560_v8 = vlaneseq (!%p21801_p12) }
 0x124   : > { %550 = sbr.rel (%p21801_p12) target bundleno = 520 (0x208), region = 104  ;;  %v18606_v2 = vmov (!%p21801_p12), 0   ;;  %604 = vmatprep.subr.bf16.mxu0 (!%p21801_p12), %v17262_v0  ;;  %v17266_v3 = vld [vmem:[#allocation5] ss:$16 sps:$4 sm:$0xff] (!%p21801_p12)   ;;  %v17267_v4 = vld [vmem:[#allocation5 + $0x8] ss:$16 sps:$4 sm:$0xff] (!%p21801_p12)   ;;  %647 = vmatprep.subr.bf16.mxu1 (!%p21801_p12), %v17264_v1 }
 0x125   : > { %636 = vmatprep.mubr.bf16.mxu0 (!%p21801_p12), %v18606_v2  ;;  %679 = vmatprep.mubr.bf16.mxu1 (!%p21801_p12), %v18606_v2  ;;  %s21802_s12 = sld [smem:[#allocation25_spill]] (!%p21801_p12)  ;;  %vm600_vm0 = vcmask (!%p21801_p12), 130048   ;;  %v561_v9 = vshrl.u32 (!%p21801_p12), %v560_v8, 7  ;;  %v558_v12 = vld [vmem:[#allocation7] sm:$0xf] (!%p21801_p12) }
 0x126   : > { %605 = vmatpush1.bf16.msra.mxu0 (!%p21801_p12), %v17266_v3  ;;  %648 = vmatpush1.bf16.msra.mxu1 (!%p21801_p12), %v17267_v4 }
 0x127   : > { %v562_v10 = vsub.s32 (!%p21801_p12), 0, %v561_v9  ;;  %v570_v11 = vsub.s32 (!%p21801_p12), 2, %v561_v9  ;;  %v566_v13 = vsub.s32 (!%p21801_p12), 1, %v561_v9  ;;  %v574_v14 = vsub.s32 (!%p21801_p12), 3, %v561_v9 }
 0x129   : > { %v563_v15 = vrot.slane (!%p21801_p12), %v558_v12, %v562_v10  ;;  %v571_v16 = vrot.slane (!%p21801_p12), %v558_v12, %v570_v11  ;;  %v567_v17 = vrot.slane (!%p21801_p12), %v558_v12, %v566_v13  ;;  %v575_v18 = vrot.slane (!%p21801_p12), %v558_v12, %v574_v14 }
 0x12b   : > { %v551_v5 = vld [vmem:[%s21802_s12] sm:$0xff]  ;;  %v552_v6 = vld [vmem:[%s21802_s12 + $0x8] sm:$0xff] }
 0x12c   : > { %v553_v7 = vpack.c.bf16 %v552_v6, %v551_v5 }
 0x12e   : > { %15026 = vmatmul.mubr.msk.bf16.vlgmr.msra.gmra.mrb[0].mxu0 %vm600_vm0, %v553_v7  ;;  %15027 = vmatmul.mubr.msk.bf16.vlgmr.msra.gmra.mrb[0].mxu1 %vm600_vm0, %v553_v7 }
 0x201   : > { %v638_v19 = vpop.f32.mrb[0].mxu0  ;;  %v681_v20 = vpop.f32.mrb[0].mxu1 }
 0x202   : > { %v639_v21 = vadd.f32 %v638_v19, %v563_v15  ;;  %v682_v22 = vadd.f32 %v681_v20, %v571_v16  ;;  %v640_v23 = vpop.f32.mrb[1].mxu0  ;;  %v683_v24 = vpop.f32.mrb[1].mxu1 }
 0x203   : > { %v641_v25 = vadd.f32 %v640_v23, %v567_v17  ;;  %v684_v26 = vadd.f32 %v683_v24, %v575_v18  ;;  %v642_v27 = vpop.f32.mrb[2].mxu0  ;;  %v685_v28 = vpop.f32.mrb[2].mxu1 }
 0x204   : > { %690 = vst [vmem:[#allocation2] sm:$0xff] %v639_v21  ;;  %692 = vst [vmem:[#allocation2 + $0x10] sm:$0xff] %v682_v22  ;;  %v643_v29 = vadd.f32 %v642_v27, %v563_v15  ;;  %v686_v30 = vadd.f32 %v685_v28, %v571_v16  ;;  %v644_v31 = vpop.f32.mrb[3].mxu0  ;;  %v687_v32 = vpop.f32.mrb[3].mxu1 }
 0x205   : > { %691 = vst [vmem:[#allocation2 + $0x8] sm:$0xff] %v641_v25  ;;  %693 = vst [vmem:[#allocation2 + $0x18] sm:$0xff] %v684_v26  ;;  %v645_v33 = vadd.f32 %v644_v31, %v567_v17  ;;  %v688_v34 = vadd.f32 %v687_v32, %v575_v18 }
 0x206   : > { %694 = vst [vmem:[#allocation2 + $0x20] sm:$0xff] %v643_v29  ;;  %696 = vst [vmem:[#allocation2 + $0x30] sm:$0xff] %v686_v30 }
 0x207   : > { %695 = vst [vmem:[#allocation2 + $0x28] sm:$0xff] %v645_v33  ;;  %697 = vst [vmem:[#allocation2 + $0x38] sm:$0xff] %v688_v34 }
 0x208 PF: > { %v706_v35 = vld [vmem:[%s19000_s27] sm:$0xff]  ;;  %s18607_s26 = smov 64   ;;  %vm4756_vm1 = vcmask 523264   ;;  %vm4848_vm3 = vcmask 130048   ;;  %p16612_p9 = scmp.ne.s32.totalorder %s18689_s23, 3 }
 0x209   : > { %v712_v36 = vld [vmem:[%s19000_s27 + $0x80] sm:$0xff]  ;;  %vm19422_vm2 = vmpackc.low %vm4756_vm1, %vm4756_vm1  ;;  %s21805_s0 = sld [smem:[#allocation30_spill]] (!%p16612_p9)  ;;  %vm14852_vm4 = vcmask (!%p16612_p9), 64512   ;;  %s21806_s4 = sld [smem:[#allocation31_spill]] (!%p16612_p9) }
 0x20a   : > { %v718_v37 = vld [vmem:[%s19000_s27 + $0x100] sm:$0xff]  ;;  %v15029_v38 = vcombine.high %v706_v35, %v712_v36  ;;  %v15028_v39 = vcombine.low %v706_v35, %v712_v36 }
 0x20b   : > { %v724_v40 = vld [vmem:[%s19000_s27 + $0x180] sm:$0xff] }
 0x20c   : > { %v15041_v41 = vcombine.high %v718_v37, %v724_v40  ;;  %v730_v42 = vld [vmem:[%s19000_s27 + $0x200] sm:$0xff]  ;;  %4238 = vmatprep.subr.bf16.mxu0 %v15029_v38  ;;  %v15040_v44 = vcombine.low %v718_v37, %v724_v40  ;;  %v699_v52 = vld [vmem:[#allocation2 + $0x8] sm:$0xff] }
 0x20d   : > { %v736_v43 = vld [vmem:[%s19000_s27 + $0x280] sm:$0xff]  ;;  %4239 = vmatpush1.bf16.msra.mxu0 %v15028_v39  ;;  %v698_v39 = vld [vmem:[#allocation2] sm:$0xff] }
 0x20e   : > { %4240 = vmatprep.subr.bf16.mxu0 %v15041_v41  ;;  %v15053_v45 = vcombine.high %v730_v42, %v736_v43  ;;  %v742_v46 = vld [vmem:[%s19000_s27 + $0x300] sm:$0xff]  ;;  %v15052_v48 = vcombine.low %v730_v42, %v736_v43  ;;  %v703_v53 = vld [vmem:[#allocation2 + $0x28] sm:$0xff]  ;;  %v702_v40 = vld [vmem:[#allocation2 + $0x20] sm:$0xff] }
 0x20f   : > { %v748_v47 = vld [vmem:[%s19000_s27 + $0x380] sm:$0xff]  ;;  %v19040_v55 = vpack.c.bf16 %v703_v53, %v699_v52 }
 0x210   : > { %v15065_v49 = vcombine.high %v742_v46, %v748_v47  ;;  %v754_v50 = vld [vmem:[%s19000_s27 + $0x400] sm:$0xff]  ;;  %v15064_v54 = vcombine.low %v742_v46, %v748_v47  ;;  %v19070_v47 = vpack.c.bf16 %v702_v40, %v698_v39 }
 0x211   : > { %4241 = vmatpush1.bf16.msra.mxu0 %v15040_v44  ;;  %v760_v51 = vld [vmem:[%s19000_s27 + $0x480] sm:$0xff]  ;;  %4270 = vmatprep.mubr.bf16.mxu0 %v19040_v55 }
 0x212   : > { %4242 = vmatprep.subr.bf16.mxu0 %v15053_v45  ;;  %v15077_v56 = vcombine.high %v754_v50, %v760_v51  ;;  %v766_v57 = vld [vmem:[%s19000_s27 + $0x500] sm:$0xff]  ;;  %4356 = vmatprep.mubr.bf16.mxu1 %v19040_v55  ;;  %v15076_v59 = vcombine.low %v754_v50, %v760_v51 }
 0x213   : > { %v772_v58 = vld [vmem:[%s19000_s27 + $0x580] sm:$0xff] }
 0x214   : > { %v15089_v60 = vcombine.high %v766_v57, %v772_v58  ;;  %v778_v61 = vld [vmem:[%s19000_s27 + $0x600] sm:$0xff]  ;;  %v15088_v63 = vcombine.low %v766_v57, %v772_v58 }
 0x215   : > { %4243 = vmatpush1.bf16.msra.mxu0 %v15052_v48  ;;  %v784_v62 = vld [vmem:[%s19000_s27 + $0x680] sm:$0xff] }
 0x216   : > { %4244 = vmatprep.subr.bf16.mxu0 %v15065_v49  ;;  %v15101_v0 = vcombine.high %v778_v61, %v784_v62  ;;  %v790_v1 = vld [vmem:[%s19000_s27 + $0x700] sm:$0xff]  ;;  %v15100_v3 = vcombine.low %v778_v61, %v784_v62 }
 0x217   : > { %v796_v2 = vld [vmem:[%s19000_s27 + $0x780] sm:$0xff] }
 0x218   : > { %v15113_v4 = vcombine.high %v790_v1, %v796_v2  ;;  %v802_v5 = vld [vmem:[%s19000_s27 + $0x800] sm:$0xff]  ;;  %v15112_v7 = vcombine.low %v790_v1, %v796_v2 }
 0x219   : > { %4245 = vmatpush1.bf16.msra.mxu0 %v15064_v54  ;;  %v808_v6 = vld [vmem:[%s19000_s27 + $0x880] sm:$0xff] }
 0x21a   : > { %4246 = vmatprep.subr.bf16.mxu0 %v15077_v56  ;;  %v814_v8 = vld [vmem:[%s19000_s27 + $0x900] sm:$0xff]  ;;  %v15125_v9 = vcombine.high %v802_v5, %v808_v6  ;;  %v15124_v11 = vcombine.low %v802_v5, %v808_v6 }
 0x21b   : > { %v820_v10 = vld [vmem:[%s19000_s27 + $0x980] sm:$0xff] }
 0x21c   : > { %v826_v12 = vld [vmem:[%s19000_s27 + $0xa00] sm:$0xff]  ;;  %v15137_v14 = vcombine.high %v814_v8, %v820_v10  ;;  %v15136_v15 = vcombine.low %v814_v8, %v820_v10 }
 0x21d   : > { %4247 = vmatpush1.bf16.msra.mxu0 %v15076_v59  ;;  %v832_v13 = vld [vmem:[%s19000_s27 + $0xa80] sm:$0xff] }
 0x21e   : > { %4248 = vmatprep.subr.bf16.mxu0 %v15089_v60  ;;  %v838_v16 = vld [vmem:[%s19000_s27 + $0xb00] sm:$0xff]  ;;  %v15149_v18 = vcombine.high %v826_v12, %v832_v13  ;;  %v15148_v19 = vcombine.low %v826_v12, %v832_v13 }
 0x21f   : > { %v844_v17 = vld [vmem:[%s19000_s27 + $0xb80] sm:$0xff] }
 0x220   : > { %v850_v20 = vld [vmem:[%s19000_s27 + $0xc00] sm:$0xff]  ;;  %v15161_v22 = vcombine.high %v838_v16, %v844_v17  ;;  %v15160_v23 = vcombine.low %v838_v16, %v844_v17 }
 0x221   : > { %4249 = vmatpush1.bf16.msra.mxu0 %v15088_v63  ;;  %v856_v21 = vld [vmem:[%s19000_s27 + $0xc80] sm:$0xff] }
 0x222   : > { %4250 = vmatprep.subr.bf16.mxu0 %v15101_v0  ;;  %v862_v24 = vld [vmem:[%s19000_s27 + $0xd00] sm:$0xff]  ;;  %v15173_v26 = vcombine.high %v850_v20, %v856_v21  ;;  %v15172_v27 = vcombine.low %v850_v20, %v856_v21 }
 0x223   : > { %v868_v25 = vld [vmem:[%s19000_s27 + $0xd80] sm:$0xff] }
 0x224   : > { %v874_v28 = vld [vmem:[%s19000_s27 + $0xe00] sm:$0xff]  ;;  %v15185_v30 = vcombine.high %v862_v24, %v868_v25  ;;  %v15184_v31 = vcombine.low %v862_v24, %v868_v25 }
 0x225   : > { %4251 = vmatpush1.bf16.msra.mxu0 %v15100_v3  ;;  %v880_v29 = vld [vmem:[%s19000_s27 + $0xe80] sm:$0xff] }
 0x226   : > { %4252 = vmatprep.subr.bf16.mxu0 %v15113_v4  ;;  %v886_v32 = vld [vmem:[%s19000_s27 + $0xf00] sm:$0xff]  ;;  %v15197_v34 = vcombine.high %v874_v28, %v880_v29  ;;  %v15196_v35 = vcombine.low %v874_v28, %v880_v29 }
 0x227   : > { %v892_v33 = vld [vmem:[%s19000_s27 + $0xf80] sm:$0xff] }
 0x228   : > { %v898_v36 = vld [vmem:[%s19000_s27 + $0x1000] sm:$0xff]  ;;  %v15209_v38 = vcombine.high %v886_v32, %v892_v33  ;;  %v15208_v41 = vcombine.low %v886_v32, %v892_v33 }
 0x229   : > { %4253 = vmatpush1.bf16.msra.mxu0 %v15112_v7  ;;  %v904_v37 = vld [vmem:[%s19000_s27 + $0x1080] sm:$0xff] }
 0x22a   : > { %4254 = vmatprep.subr.bf16.mxu0 %v15125_v9  ;;  %v910_v42 = vld [vmem:[%s19000_s27 + $0x1100] sm:$0xff]  ;;  %v15221_v46 = vcombine.high %v898_v36, %v904_v37  ;;  %v15220_v48 = vcombine.low %v898_v36, %v904_v37 }
 0x22b   : > { %v916_v43 = vld [vmem:[%s19000_s27 + $0x1180] sm:$0xff] }
 0x22c   : > { %v701_v44 = vld [vmem:[#allocation2 + $0x18] sm:$0xff]  ;;  %v15233_v52 = vcombine.high %v910_v42, %v916_v43  ;;  %v15232_v53 = vcombine.low %v910_v42, %v916_v43  ;;  %v708_v43 = vld [vmem:[%s19000_s27 + $0x10] sm:$0xff] }
 0x22d   : > { %4255 = vmatpush1.bf16.msra.mxu0 %v15124_v11  ;;  %v705_v45 = vld [vmem:[#allocation2 + $0x38] sm:$0xff] }
 0x22e   : > { %4256 = vmatprep.subr.bf16.mxu0 %v15137_v14  ;;  %v922_v49 = vld [vmem:[%s19000_s27 + $0x1200] sm:$0xff]  ;;  %v19074_v51 = vpack.c.bf16 %v705_v45, %v701_v44  ;;  %v714_v44 = vld [vmem:[%s19000_s27 + $0x90] sm:$0xff] }
 0x22f   : > { %v928_v50 = vld [vmem:[%s19000_s27 + $0x1280] sm:$0xff] }
 0x230   : > { %v934_v54 = vld [vmem:[%s19000_s27 + $0x1300] sm:$0xff]  ;;  %v15245_v57 = vcombine.high %v922_v49, %v928_v50  ;;  %v15244_v58 = vcombine.low %v922_v49, %v928_v50  ;;  %v720_v50 = vld [vmem:[%s19000_s27 + $0x110] sm:$0xff] }
 0x231   : > { %4257 = vmatpush1.bf16.msra.mxu0 %v15136_v15  ;;  %v940_v56 = vld [vmem:[%s19000_s27 + $0x1380] sm:$0xff] }
 0x232   : > { %4258 = vmatprep.subr.bf16.mxu0 %v15149_v18  ;;  %v946_v59 = vld [vmem:[%s19000_s27 + $0x1400] sm:$0xff]  ;;  %v15257_v61 = vcombine.high %v934_v54, %v940_v56  ;;  %v15256_v62 = vcombine.low %v934_v54, %v940_v56  ;;  %v15032_v56 = vcombine.low %v708_v43, %v714_v44 }
 0x233   : > { %v952_v60 = vld [vmem:[%s19000_s27 + $0x1480] sm:$0xff] }
 0x234   : > { %v958_v63 = vld [vmem:[%s19000_s27 + $0x1500] sm:$0xff]  ;;  %v15269_v1 = vcombine.high %v946_v59, %v952_v60  ;;  %v15268_v2 = vcombine.low %v946_v59, %v952_v60 }
 0x235   : > { %4259 = vmatpush1.bf16.msra.mxu0 %v15148_v19  ;;  %v964_v0 = vld [vmem:[%s19000_s27 + $0x1580] sm:$0xff] }
 0x236   : > { %4260 = vmatprep.subr.bf16.mxu0 %v15161_v22  ;;  %v970_v3 = vld [vmem:[%s19000_s27 + $0x1600] sm:$0xff]  ;;  %v15281_v5 = vcombine.high %v958_v63, %v964_v0  ;;  %v15280_v6 = vcombine.low %v958_v63, %v964_v0 }
 0x237   : > { %v976_v4 = vld [vmem:[%s19000_s27 + $0x1680] sm:$0xff] }
 0x238   : > { %v982_v7 = vld [vmem:[%s19000_s27 + $0x1700] sm:$0xff]  ;;  %v15293_v9 = vcombine.high %v970_v3, %v976_v4  ;;  %v15292_v10 = vcombine.low %v970_v3, %v976_v4 }
 0x239   : > { %4261 = vmatpush1.bf16.msra.mxu0 %v15160_v23  ;;  %v988_v8 = vld [vmem:[%s19000_s27 + $0x1780] sm:$0xff] }
 0x23a   : > { %4262 = vmatprep.subr.bf16.mxu0 %v15173_v26  ;;  %v994_v11 = vld [vmem:[%s19000_s27 + $0x1800] sm:$0xff]  ;;  %v15305_v13 = vcombine.high %v982_v7, %v988_v8  ;;  %v15304_v14 = vcombine.low %v982_v7, %v988_v8 }
 0x23b   : > { %v1000_v12 = vld [vmem:[%s19000_s27 + $0x1880] sm:$0xff] }
 0x23c   : > { %v1006_v15 = vld [vmem:[%s19000_s27 + $0x1900] sm:$0xff]  ;;  %v15317_v17 = vcombine.high %v994_v11, %v1000_v12  ;;  %v15316_v18 = vcombine.low %v994_v11, %v1000_v12 }
 0x23d   : > { %4263 = vmatpush1.bf16.msra.mxu0 %v15172_v27  ;;  %v1012_v16 = vld [vmem:[%s19000_s27 + $0x1980] sm:$0xff] }
 0x23e   : > { %4264 = vmatprep.subr.bf16.mxu0 %v15185_v30  ;;  %v1018_v19 = vld [vmem:[%s19000_s27 + $0x1a00] sm:$0xff]  ;;  %v15329_v21 = vcombine.high %v1006_v15, %v1012_v16  ;;  %v15328_v22 = vcombine.low %v1006_v15, %v1012_v16 }
 0x23f   : > { %v1024_v20 = vld [vmem:[%s19000_s27 + $0x1a80] sm:$0xff] }
 0x240   : > { %v1030_v23 = vld [vmem:[%s19000_s27 + $0x1b00] sm:$0xff]  ;;  %v15341_v25 = vcombine.high %v1018_v19, %v1024_v20  ;;  %v15340_v26 = vcombine.low %v1018_v19, %v1024_v20 }
 0x241   : > { %4265 = vmatpush1.bf16.msra.mxu0 %v15184_v31  ;;  %v1036_v24 = vld [vmem:[%s19000_s27 + $0x1b80] sm:$0xff] }
 0x242   : > { %4266 = vmatprep.subr.bf16.mxu0 %v15197_v34  ;;  %v1042_v27 = vld [vmem:[%s19000_s27 + $0x1c00] sm:$0xff]  ;;  %v15353_v29 = vcombine.high %v1030_v23, %v1036_v24  ;;  %v15352_v30 = vcombine.low %v1030_v23, %v1036_v24 }
 0x243   : > { %v1048_v28 = vld [vmem:[%s19000_s27 + $0x1c80] sm:$0xff] }
 0x244   : > { %v1054_v31 = vld [vmem:[%s19000_s27 + $0x1d00] sm:$0xff]  ;;  %v15365_v33 = vcombine.high %v1042_v27, %v1048_v28  ;;  %v15364_v34 = vcombine.low %v1042_v27, %v1048_v28 }
 0x245   : > { %4267 = vmatpush1.bf16.msra.mxu0 %v15196_v35  ;;  %v1060_v32 = vld [vmem:[%s19000_s27 + $0x1d80] sm:$0xff] }
 0x246   : > { %4268 = vmatprep.subr.bf16.mxu0 %v15209_v38  ;;  %v1066_v35 = vld [vmem:[%s19000_s27 + $0x1e00] sm:$0xff]  ;;  %v15377_v37 = vcombine.high %v1054_v31, %v1060_v32  ;;  %v15376_v38 = vcombine.low %v1054_v31, %v1060_v32 }
 0x247   : > { %v1072_v36 = vld [vmem:[%s19000_s27 + $0x1e80] sm:$0xff] }
 0x248   : > { %v1078_v39 = vld [vmem:[%s19000_s27 + $0x1f00] sm:$0xff]  ;;  %v15388_v42 = vcombine.low %v1066_v35, %v1072_v36 }
 0x249   : > { %4269 = vmatpush1.bf16.msra.mxu0 %v15208_v41  ;;  %v1084_v40 = vld [vmem:[%s19000_s27 + $0x1f80] sm:$0xff]  ;;  %v15389_v41 = vcombine.high %v1066_v35, %v1072_v36 }
 0x24a   : > { %4281 = vmatprep.subr.bf16.mxu0 %v15221_v46  ;;  %v15401_v45 = vcombine.high %v1078_v39, %v1084_v40  ;;  %v700_v46 = vld [vmem:[#allocation2 + $0x10] sm:$0xff]  ;;  %v15400_v49 = vcombine.low %v1078_v39, %v1084_v40 }
 0x24c   : > { %4271 = vmatmul.mubr.bf16.vlgmr.msra.gmra.mrb[0].mxu0 %v19070_v47 }
 0x24d   : > { %4282 = vmatpush1.bf16.msra.mxu0 %v15220_v48  ;;  %4313 = vmatprep.mubr.bf16.mxu0 %v19074_v51  ;;  %v704_v48 = vld [vmem:[#allocation2 + $0x30] sm:$0xff] }
 0x24e   : > { %4283 = vmatprep.subr.bf16.mxu0 %v15233_v52  ;;  %v726_v52 = vld [vmem:[%s19000_s27 + $0x190] sm:$0xff]  ;;  %v19108_v54 = vpack.c.bf16 %v704_v48, %v700_v46 }
 0x24f   : > { %v15045_v59 = vcombine.high %v720_v50, %v726_v52  ;;  %v15044_v60 = vcombine.low %v720_v50, %v726_v52  ;;  %v894_v46 = vld [vmem:[%s19000_s27 + $0xf90] sm:$0xff] }
 0x250   : > { %v900_v50 = vld [vmem:[%s19000_s27 + $0x1010] sm:$0xff] }
 0x251   : > { %4284 = vmatpush1.bf16.msra.mxu0 %v15232_v53  ;;  %v15033_v53 = vcombine.high %v708_v43, %v714_v44  ;;  %v906_v52 = vld [vmem:[%s19000_s27 + $0x1090] sm:$0xff] }
 0x252   : > { %4285 = vmatprep.subr.bf16.mxu0 %v15245_v57  ;;  %v732_v57 = vld [vmem:[%s19000_s27 + $0x210] sm:$0xff] }
 0x255   : > { %4286 = vmatpush1.bf16.msra.mxu0 %v15244_v58  ;;  %v738_v58 = vld [vmem:[%s19000_s27 + $0x290] sm:$0xff] }
 0x256   : > { %4287 = vmatprep.subr.bf16.mxu0 %v15257_v61  ;;  %v744_v61 = vld [vmem:[%s19000_s27 + $0x310] sm:$0xff]  ;;  %v15057_v63 = vcombine.high %v732_v57, %v738_v58  ;;  %v15056_v0 = vcombine.low %v732_v57, %v738_v58 }
 0x257   : > { %v912_v57 = vld [vmem:[%s19000_s27 + $0x1110] sm:$0xff] }
 0x258   : > { %v918_v58 = vld [vmem:[%s19000_s27 + $0x1190] sm:$0xff] }
 0x259   : > { %4288 = vmatpush1.bf16.msra.mxu0 %v15256_v62  ;;  %v750_v62 = vld [vmem:[%s19000_s27 + $0x390] sm:$0xff] }
 0x25a   : > { %4289 = vmatprep.subr.bf16.mxu0 %v15269_v1  ;;  %v756_v1 = vld [vmem:[%s19000_s27 + $0x410] sm:$0xff]  ;;  %v15069_v3 = vcombine.high %v744_v61, %v750_v62  ;;  %v15068_v4 = vcombine.low %v744_v61, %v750_v62 }
 0x25b   : > { %v924_v61 = vld [vmem:[%s19000_s27 + $0x1210] sm:$0xff] }
 0x25c   : > { %v930_v62 = vld [vmem:[%s19000_s27 + $0x1290] sm:$0xff] }
 0x25d   : > { %4290 = vmatpush1.bf16.msra.mxu0 %v15268_v2  ;;  %v762_v2 = vld [vmem:[%s19000_s27 + $0x490] sm:$0xff] }
 0x25e   : > { %4291 = vmatprep.subr.bf16.mxu0 %v15281_v5  ;;  %v768_v5 = vld [vmem:[%s19000_s27 + $0x510] sm:$0xff]  ;;  %v15081_v7 = vcombine.high %v756_v1, %v762_v2  ;;  %v15080_v8 = vcombine.low %v756_v1, %v762_v2 }
 0x25f   : > { %v936_v1 = vld [vmem:[%s19000_s27 + $0x1310] sm:$0xff] }
 0x260   : > { %v942_v2 = vld [vmem:[%s19000_s27 + $0x1390] sm:$0xff] }
 0x261   : > { %4292 = vmatpush1.bf16.msra.mxu0 %v15280_v6  ;;  %v774_v6 = vld [vmem:[%s19000_s27 + $0x590] sm:$0xff] }
 0x262   : > { %4293 = vmatprep.subr.bf16.mxu0 %v15293_v9  ;;  %v780_v9 = vld [vmem:[%s19000_s27 + $0x610] sm:$0xff]  ;;  %v15093_v11 = vcombine.high %v768_v5, %v774_v6  ;;  %v15092_v12 = vcombine.low %v768_v5, %v774_v6 }
 0x263   : > { %v948_v5 = vld [vmem:[%s19000_s27 + $0x1410] sm:$0xff] }
 0x264   : > { %v954_v6 = vld [vmem:[%s19000_s27 + $0x1490] sm:$0xff] }
 0x265   : > { %4294 = vmatpush1.bf16.msra.mxu0 %v15292_v10  ;;  %v786_v10 = vld [vmem:[%s19000_s27 + $0x690] sm:$0xff] }
 0x266   : > { %4295 = vmatprep.subr.bf16.mxu0 %v15305_v13  ;;  %v792_v13 = vld [vmem:[%s19000_s27 + $0x710] sm:$0xff]  ;;  %v15105_v15 = vcombine.high %v780_v9, %v786_v10  ;;  %v15104_v16 = vcombine.low %v780_v9, %v786_v10 }
 0x267   : > { %v960_v9 = vld [vmem:[%s19000_s27 + $0x1510] sm:$0xff] }
 0x268   : > { %v966_v10 = vld [vmem:[%s19000_s27 + $0x1590] sm:$0xff] }
 0x269   : > { %4296 = vmatpush1.bf16.msra.mxu0 %v15304_v14  ;;  %v798_v14 = vld [vmem:[%s19000_s27 + $0x790] sm:$0xff] }
 0x26a   : > { %4297 = vmatprep.subr.bf16.mxu0 %v15317_v17  ;;  %v804_v17 = vld [vmem:[%s19000_s27 + $0x810] sm:$0xff]  ;;  %v15117_v19 = vcombine.high %v792_v13, %v798_v14  ;;  %v15116_v20 = vcombine.low %v792_v13, %v798_v14 }
 0x26b   : > { %v972_v13 = vld [vmem:[%s19000_s27 + $0x1610] sm:$0xff] }
 0x26c   : > { %v978_v14 = vld [vmem:[%s19000_s27 + $0x1690] sm:$0xff] }
 0x26d   : > { %4298 = vmatpush1.bf16.msra.mxu0 %v15316_v18  ;;  %v810_v18 = vld [vmem:[%s19000_s27 + $0x890] sm:$0xff] }
 0x26e   : > { %4299 = vmatprep.subr.bf16.mxu0 %v15329_v21  ;;  %v816_v21 = vld [vmem:[%s19000_s27 + $0x910] sm:$0xff]  ;;  %v15129_v23 = vcombine.high %v804_v17, %v810_v18  ;;  %v15128_v24 = vcombine.low %v804_v17, %v810_v18 }
 0x26f   : > { %v984_v17 = vld [vmem:[%s19000_s27 + $0x1710] sm:$0xff] }
 0x270   : > { %v990_v18 = vld [vmem:[%s19000_s27 + $0x1790] sm:$0xff] }
 0x271   : > { %4300 = vmatpush1.bf16.msra.mxu0 %v15328_v22  ;;  %v822_v22 = vld [vmem:[%s19000_s27 + $0x990] sm:$0xff] }
 0x272   : > { %4301 = vmatprep.subr.bf16.mxu0 %v15341_v25  ;;  %v828_v25 = vld [vmem:[%s19000_s27 + $0xa10] sm:$0xff]  ;;  %v15141_v27 = vcombine.high %v816_v21, %v822_v22  ;;  %v15140_v28 = vcombine.low %v816_v21, %v822_v22 }
 0x273   : > { %v996_v21 = vld [vmem:[%s19000_s27 + $0x1810] sm:$0xff] }
 0x274   : > { %v1002_v22 = vld [vmem:[%s19000_s27 + $0x1890] sm:$0xff] }
 0x275   : > { %4302 = vmatpush1.bf16.msra.mxu0 %v15340_v26  ;;  %v834_v26 = vld [vmem:[%s19000_s27 + $0xa90] sm:$0xff] }
 0x276   : > { %4303 = vmatprep.subr.bf16.mxu0 %v15353_v29  ;;  %v840_v29 = vld [vmem:[%s19000_s27 + $0xb10] sm:$0xff]  ;;  %v15153_v31 = vcombine.high %v828_v25, %v834_v26  ;;  %v15152_v32 = vcombine.low %v828_v25, %v834_v26  ;;  %v707_v26 = vld [vmem:[%s19000_s27 + $0x8] sm:$0xff] }
 0x277   : > { %v1008_v25 = vld [vmem:[%s19000_s27 + $0x1910] sm:$0xff] }
 0x279   : > { %4304 = vmatpush1.bf16.msra.mxu0 %v15352_v30  ;;  %v846_v30 = vld [vmem:[%s19000_s27 + $0xb90] sm:$0xff] }
 0x27a   : > { %4305 = vmatprep.subr.bf16.mxu0 %v15365_v33  ;;  %v852_v33 = vld [vmem:[%s19000_s27 + $0xc10] sm:$0xff]  ;;  %v15165_v35 = vcombine.high %v840_v29, %v846_v30  ;;  %v15164_v36 = vcombine.low %v840_v29, %v846_v30 }
 0x27b   : > { %v1014_v29 = vld [vmem:[%s19000_s27 + $0x1990] sm:$0xff] }
 0x27d   : > { %4306 = vmatpush1.bf16.msra.mxu0 %v15364_v34  ;;  %v858_v34 = vld [vmem:[%s19000_s27 + $0xc90] sm:$0xff] }
 0x27e   : > { %4307 = vmatprep.subr.bf16.mxu0 %v15377_v37  ;;  %v864_v37 = vld [vmem:[%s19000_s27 + $0xd10] sm:$0xff]  ;;  %v15177_v39 = vcombine.high %v852_v33, %v858_v34  ;;  %v15176_v40 = vcombine.low %v852_v33, %v858_v34  ;;  %v719_v34 = vld [vmem:[%s19000_s27 + $0x108] sm:$0xff] }
 0x27f   : > { %v1020_v33 = vld [vmem:[%s19000_s27 + $0x1a10] sm:$0xff] }
 0x281   : > { %4308 = vmatpush1.bf16.msra.mxu0 %v15376_v38  ;;  %v870_v38 = vld [vmem:[%s19000_s27 + $0xd90] sm:$0xff] }
 0x282   : > { %4309 = vmatprep.subr.bf16.mxu0 %v15389_v41  ;;  %v876_v41 = vld [vmem:[%s19000_s27 + $0xe10] sm:$0xff]  ;;  %v15189_v43 = vcombine.high %v864_v37, %v870_v38  ;;  %v15188_v44 = vcombine.low %v864_v37, %v870_v38 }
 0x283   : > { %v1026_v37 = vld [vmem:[%s19000_s27 + $0x1a90] sm:$0xff] }
 0x285   : > { %4310 = vmatpush1.bf16.msra.mxu0 %v15388_v42  ;;  %v882_v42 = vld [vmem:[%s19000_s27 + $0xe90] sm:$0xff] }
 0x286   : > { %4311 = vmatprep.subr.bf16.mxu0 %v15401_v45  ;;  %v888_v45 = vld [vmem:[%s19000_s27 + $0xf10] sm:$0xff]  ;;  %v15201_v48 = vcombine.high %v876_v41, %v882_v42 }
 0x289   : > { %4312 = vmatpush1.bf16.msra.mxu0 %v15400_v49  ;;  %v15200_v49 = vcombine.low %v876_v41, %v882_v42  ;;  %v1032_v41 = vld [vmem:[%s19000_s27 + $0x1b10] sm:$0xff]  ;;  %v731_v42 = vld [vmem:[%s19000_s27 + $0x208] sm:$0xff] }
 0x28a   : > { %4410 = vmatprep.subr.bf16.mxu0 %v15033_v53  ;;  %v15213_v53 = vcombine.high %v888_v45, %v894_v46 }
 0x28c   : > { %4314 = vmatmul.mubr.bf16.vlgmr.msra.gmra.mrb[0].mxu0 %v19108_v54 }
 0x28d   : > { %4411 = vmatpush1.bf16.msra.mxu0 %v15032_v56  ;;  %4442 = vmatprep.mubr.bf16.mxu0 %v19040_v55  ;;  %v15212_v56 = vcombine.low %v888_v45, %v894_v46  ;;  %v1038_v45 = vld [vmem:[%s19000_s27 + $0x1b90] sm:$0xff] }
 0x28e   : > { %4412 = vmatprep.subr.bf16.mxu0 %v15045_v59  ;;  %v15225_v59 = vcombine.high %v900_v50, %v906_v52 }
 0x291   : > { %4413 = vmatpush1.bf16.msra.mxu0 %v15044_v60  ;;  %v15224_v60 = vcombine.low %v900_v50, %v906_v52  ;;  %v1044_v50 = vld [vmem:[%s19000_s27 + $0x1c10] sm:$0xff]  ;;  %v743_v52 = vld [vmem:[%s19000_s27 + $0x308] sm:$0xff] }
 0x292   : > { %4414 = vmatprep.subr.bf16.mxu0 %v15057_v63  ;;  %v15237_v63 = vcombine.high %v912_v57, %v918_v58 }
 0x295   : > { %4415 = vmatpush1.bf16.msra.mxu0 %v15056_v0  ;;  %v15236_v0 = vcombine.low %v912_v57, %v918_v58  ;;  %v1050_v57 = vld [vmem:[%s19000_s27 + $0x1c90] sm:$0xff] }
 0x296   : > { %4416 = vmatprep.subr.bf16.mxu0 %v15069_v3  ;;  %v15249_v3 = vcombine.high %v924_v61, %v930_v62 }
 0x299   : > { %4417 = vmatpush1.bf16.msra.mxu0 %v15068_v4  ;;  %v15248_v4 = vcombine.low %v924_v61, %v930_v62  ;;  %v755_v61 = vld [vmem:[%s19000_s27 + $0x408] sm:$0xff] }
 0x29a   : > { %4418 = vmatprep.subr.bf16.mxu0 %v15081_v7  ;;  %v15261_v7 = vcombine.high %v936_v1, %v942_v2  ;;  %v761_v62 = vld [vmem:[%s19000_s27 + $0x488] sm:$0xff] }
 0x29d   : > { %4419 = vmatpush1.bf16.msra.mxu0 %v15080_v8  ;;  %v15260_v8 = vcombine.low %v936_v1, %v942_v2  ;;  %v15078_v1 = vcombine.low %v755_v61, %v761_v62  ;;  %v1056_v2 = vld [vmem:[%s19000_s27 + $0x1d10] sm:$0xff] }
 0x29e   : > { %4420 = vmatprep.subr.bf16.mxu0 %v15093_v11  ;;  %v15273_v11 = vcombine.high %v948_v5, %v954_v6 }
 0x2a1   : > { %4421 = vmatpush1.bf16.msra.mxu0 %v15092_v12  ;;  %v15272_v12 = vcombine.low %v948_v5, %v954_v6  ;;  %v767_v5 = vld [vmem:[%s19000_s27 + $0x508] sm:$0xff] }
 0x2a2   : > { %4422 = vmatprep.subr.bf16.mxu0 %v15105_v15  ;;  %v15285_v15 = vcombine.high %v960_v9, %v966_v10  ;;  %v773_v6 = vld [vmem:[%s19000_s27 + $0x588] sm:$0xff] }
 0x2a5   : > { %4423 = vmatpush1.bf16.msra.mxu0 %v15104_v16  ;;  %v15284_v16 = vcombine.low %v960_v9, %v966_v10  ;;  %v15090_v9 = vcombine.low %v767_v5, %v773_v6  ;;  %v1068_v10 = vld [vmem:[%s19000_s27 + $0x1e10] sm:$0xff] }
 0x2a6   : > { %4424 = vmatprep.subr.bf16.mxu0 %v15117_v19  ;;  %v15297_v19 = vcombine.high %v972_v13, %v978_v14 }
 0x2a9   : > { %4425 = vmatpush1.bf16.msra.mxu0 %v15116_v20  ;;  %v15296_v20 = vcombine.low %v972_v13, %v978_v14  ;;  %v779_v13 = vld [vmem:[%s19000_s27 + $0x608] sm:$0xff] }
 0x2aa   : > { %4426 = vmatprep.subr.bf16.mxu0 %v15129_v23  ;;  %v15309_v23 = vcombine.high %v984_v17, %v990_v18  ;;  %v785_v14 = vld [vmem:[%s19000_s27 + $0x688] sm:$0xff] }
 0x2ad   : > { %4427 = vmatpush1.bf16.msra.mxu0 %v15128_v24  ;;  %v15308_v24 = vcombine.low %v984_v17, %v990_v18  ;;  %v15102_v17 = vcombine.low %v779_v13, %v785_v14  ;;  %v1080_v18 = vld [vmem:[%s19000_s27 + $0x1f10] sm:$0xff] }
 0x2ae   : > { %4428 = vmatprep.subr.bf16.mxu0 %v15141_v27  ;;  %v713_v27 = vld [vmem:[%s19000_s27 + $0x88] sm:$0xff] }
 0x2af   : > { %v15031_v30 = vcombine.high %v707_v26, %v713_v27 }
 0x2b1   : > { %4429 = vmatpush1.bf16.msra.mxu0 %v15140_v28  ;;  %v15321_v28 = vcombine.high %v996_v21, %v1002_v22  ;;  %4324 = vmatprep.subr.bf16.mxu1 %v15031_v30  ;;  %v809_v30 = vld [vmem:[%s19000_s27 + $0x888] sm:$0xff] }
 0x2b2   : > { %4430 = vmatprep.subr.bf16.mxu0 %v15153_v31  ;;  %v15030_v31 = vcombine.low %v707_v26, %v713_v27  ;;  %v710_v26 = vld [vmem:[%s19000_s27 + $0x20] sm:$0xff] }
 0x2b3   : > { %v716_v27 = vld [vmem:[%s19000_s27 + $0xa0] sm:$0xff] }
 0x2b4   : > { %4325 = vmatpush1.bf16.msra.mxu1 %v15030_v31  ;;  %v15037_v31 = vcombine.high %v710_v26, %v716_v27 }
 0x2b5   : > { %4431 = vmatpush1.bf16.msra.mxu0 %v15152_v32  ;;  %v15320_v32 = vcombine.low %v996_v21, %v1002_v22  ;;  %v791_v21 = vld [vmem:[%s19000_s27 + $0x708] sm:$0xff] }
 0x2b6   : > { %4432 = vmatprep.subr.bf16.mxu0 %v15165_v35  ;;  %v725_v35 = vld [vmem:[%s19000_s27 + $0x188] sm:$0xff] }
 0x2b7   : > { %v15043_v38 = vcombine.high %v719_v34, %v725_v35  ;;  %v797_v22 = vld [vmem:[%s19000_s27 + $0x788] sm:$0xff] }
 0x2b9   : > { %4433 = vmatpush1.bf16.msra.mxu0 %v15164_v36  ;;  %v15333_v36 = vcombine.high %v1008_v25, %v1014_v29  ;;  %4326 = vmatprep.subr.bf16.mxu1 %v15043_v38  ;;  %v821_v38 = vld [vmem:[%s19000_s27 + $0x988] sm:$0xff] }
 0x2ba   : > { %4434 = vmatprep.subr.bf16.mxu0 %v15177_v39  ;;  %v15042_v39 = vcombine.low %v719_v34, %v725_v35  ;;  %v722_v34 = vld [vmem:[%s19000_s27 + $0x120] sm:$0xff] }
 0x2bb   : > { %v728_v35 = vld [vmem:[%s19000_s27 + $0x1a0] sm:$0xff] }
 0x2bc   : > { %4327 = vmatpush1.bf16.msra.mxu1 %v15042_v39  ;;  %v15049_v39 = vcombine.high %v722_v34, %v728_v35 }
 0x2bd   : > { %4435 = vmatpush1.bf16.msra.mxu0 %v15176_v40  ;;  %v15332_v40 = vcombine.low %v1008_v25, %v1014_v29  ;;  %v15114_v25 = vcombine.low %v791_v21, %v797_v22  ;;  %v803_v29 = vld [vmem:[%s19000_s27 + $0x808] sm:$0xff] }
 0x2be   : > { %4436 = vmatprep.subr.bf16.mxu0 %v15189_v43  ;;  %v737_v43 = vld [vmem:[%s19000_s27 + $0x288] sm:$0xff] }
 0x2bf   : > { %v15055_v46 = vcombine.high %v731_v42, %v737_v43 }
 0x2c1   : > { %4437 = vmatpush1.bf16.msra.mxu0 %v15188_v44  ;;  %v15345_v44 = vcombine.high %v1020_v33, %v1026_v37  ;;  %4328 = vmatprep.subr.bf16.mxu1 %v15055_v46  ;;  %v833_v46 = vld [vmem:[%s19000_s27 + $0xa88] sm:$0xff] }
 0x2c2   : > { %4438 = vmatprep.subr.bf16.mxu0 %v15201_v48  ;;  %v15054_v48 = vcombine.low %v731_v42, %v737_v43  ;;  %v740_v42 = vld [vmem:[%s19000_s27 + $0x2a0] sm:$0xff] }
 0x2c4   : > { %4329 = vmatpush1.bf16.msra.mxu1 %v15054_v48  ;;  %v839_v48 = vld [vmem:[%s19000_s27 + $0xb08] sm:$0xff] }
 0x2c5   : > { %4439 = vmatpush1.bf16.msra.mxu0 %v15200_v49  ;;  %v15344_v49 = vcombine.low %v1020_v33, %v1026_v37  ;;  %v15126_v33 = vcombine.low %v803_v29, %v809_v30  ;;  %v815_v37 = vld [vmem:[%s19000_s27 + $0x908] sm:$0xff] }
 0x2c6   : > { %4440 = vmatprep.subr.bf16.mxu0 %v15213_v53  ;;  %v749_v53 = vld [vmem:[%s19000_s27 + $0x388] sm:$0xff]  ;;  %v15138_v43 = vcombine.low %v815_v37, %v821_v38 }
 0x2c7   : > { %v15067_v58 = vcombine.high %v743_v52, %v749_v53 }
 0x2c9   : > { %4441 = vmatpush1.bf16.msra.mxu0 %v15212_v56  ;;  %v15357_v56 = vcombine.high %v1032_v41, %v1038_v45  ;;  %4330 = vmatprep.subr.bf16.mxu1 %v15067_v58 }
 0x2ca   : > { %4453 = vmatprep.subr.bf16.mxu0 %v15225_v59  ;;  %v15066_v59 = vcombine.low %v743_v52, %v749_v53  ;;  %v845_v53 = vld [vmem:[%s19000_s27 + $0xb88] sm:$0xff] }
 0x2cb   : > { %v15163_v58 = vcombine.high %v839_v48, %v845_v53 }
 0x2cc   : > { %4443 = vmatmul.mubr.bf16.vlgmr.msra.gmra.mrb[4].mxu0 %v19070_v47  ;;  %4331 = vmatpush1.bf16.msra.mxu1 %v15066_v59  ;;  %v851_v59 = vld [vmem:[%s19000_s27 + $0xc08] sm:$0xff] }
 0x2cd   : > { %4454 = vmatpush1.bf16.msra.mxu0 %v15224_v60  ;;  %4485 = vmatprep.mubr.bf16.mxu0 %v19074_v51  ;;  %v15356_v60 = vcombine.low %v1032_v41, %v1038_v45  ;;  %v734_v41 = vld [vmem:[%s19000_s27 + $0x220] sm:$0xff]  ;;  %v827_v45 = vld [vmem:[%s19000_s27 + $0xa08] sm:$0xff] }
 0x2ce   : > { %4455 = vmatprep.subr.bf16.mxu0 %v15237_v63  ;;  %v15369_v63 = vcombine.high %v1044_v50, %v1050_v57  ;;  %v15150_v52 = vcombine.low %v827_v45, %v833_v46 }
 0x2d1   : > { %4456 = vmatpush1.bf16.msra.mxu0 %v15236_v0  ;;  %v15079_v0 = vcombine.high %v755_v61, %v761_v62  ;;  %v15060_v61 = vcombine.low %v734_v41, %v740_v42 }
 0x2d2   : > { %4457 = vmatprep.subr.bf16.mxu0 %v15249_v3  ;;  %v1062_v3 = vld [vmem:[%s19000_s27 + $0x1d90] sm:$0xff] }
 0x2d3   : > { %4332 = vmatprep.subr.bf16.mxu1 %v15079_v0  ;;  %v758_v0 = vld [vmem:[%s19000_s27 + $0x420] sm:$0xff] }
 0x2d4   : > { %4333 = vmatpush1.bf16.msra.mxu1 %v15078_v1  ;;  %v764_v1 = vld [vmem:[%s19000_s27 + $0x4a0] sm:$0xff] }
 0x2d5   : > { %4458 = vmatpush1.bf16.msra.mxu0 %v15248_v4  ;;  %v15368_v4 = vcombine.low %v1044_v50, %v1050_v57  ;;  %v15151_v50 = vcombine.high %v827_v45, %v833_v46  ;;  %v752_v57 = vld [vmem:[%s19000_s27 + $0x3a0] sm:$0xff] }
 0x2d6   : > { %4459 = vmatprep.subr.bf16.mxu0 %v15261_v7  ;;  %v15381_v7 = vcombine.high %v1056_v2, %v1062_v3 }
 0x2d9   : > { %4460 = vmatpush1.bf16.msra.mxu0 %v15260_v8  ;;  %v15091_v8 = vcombine.high %v767_v5, %v773_v6  ;;  %v15085_v6 = vcombine.high %v758_v0, %v764_v1 }
 0x2da   : > { %4461 = vmatprep.subr.bf16.mxu0 %v15273_v11  ;;  %v1074_v11 = vld [vmem:[%s19000_s27 + $0x1e90] sm:$0xff] }
 0x2db   : > { %4334 = vmatprep.subr.bf16.mxu1 %v15091_v8  ;;  %v770_v8 = vld [vmem:[%s19000_s27 + $0x520] sm:$0xff] }
 0x2dc   : > { %4335 = vmatpush1.bf16.msra.mxu1 %v15090_v9  ;;  %v776_v9 = vld [vmem:[%s19000_s27 + $0x5a0] sm:$0xff] }
 0x2dd   : > { %4462 = vmatpush1.bf16.msra.mxu0 %v15272_v12  ;;  %v15380_v12 = vcombine.low %v1056_v2, %v1062_v3  ;;  %v863_v3 = vld [vmem:[%s19000_s27 + $0xd08] sm:$0xff] }
 0x2de   : > { %4463 = vmatprep.subr.bf16.mxu0 %v15285_v15  ;;  %v15393_v15 = vcombine.high %v1068_v10, %v1074_v11 }
 0x2e1   : > { %4464 = vmatpush1.bf16.msra.mxu0 %v15284_v16  ;;  %v15103_v16 = vcombine.high %v779_v13, %v785_v14  ;;  %v15084_v13 = vcombine.low %v758_v0, %v764_v1  ;;  %v15097_v14 = vcombine.high %v770_v8, %v776_v9  ;;  %v953_v0 = vld [vmem:[%s19000_s27 + $0x1488] sm:$0xff] }
 0x2e2   : > { %4465 = vmatprep.subr.bf16.mxu0 %v15297_v19  ;;  %v1086_v19 = vld [vmem:[%s19000_s27 + $0x1f90] sm:$0xff] }
 0x2e3   : > { %4336 = vmatprep.subr.bf16.mxu1 %v15103_v16  ;;  %v782_v16 = vld [vmem:[%s19000_s27 + $0x620] sm:$0xff] }
 0x2e4   : > { %4337 = vmatpush1.bf16.msra.mxu1 %v15102_v17  ;;  %v788_v17 = vld [vmem:[%s19000_s27 + $0x6a0] sm:$0xff] }
 0x2e5   : > { %4466 = vmatpush1.bf16.msra.mxu0 %v15296_v20  ;;  %v15392_v20 = vcombine.low %v1068_v10, %v1074_v11  ;;  %v875_v11 = vld [vmem:[%s19000_s27 + $0xe08] sm:$0xff] }
 0x2e6   : > { %4467 = vmatprep.subr.bf16.mxu0 %v15309_v23  ;;  %v15405_v23 = vcombine.high %v1080_v18, %v1086_v19 }
 0x2e9   : > { %4468 = vmatpush1.bf16.msra.mxu0 %v15308_v24  ;;  %v15115_v24 = vcombine.high %v791_v21, %v797_v22  ;;  %v15096_v21 = vcombine.low %v770_v8, %v776_v9  ;;  %v15109_v22 = vcombine.high %v782_v16, %v788_v17  ;;  %v965_v8 = vld [vmem:[%s19000_s27 + $0x1588] sm:$0xff] }
 0x2ea   : > { %4469 = vmatprep.subr.bf16.mxu0 %v15321_v28  ;;  %v15404_v28 = vcombine.low %v1080_v18, %v1086_v19  ;;  %v887_v19 = vld [vmem:[%s19000_s27 + $0xf08] sm:$0xff] }
 0x2eb   : > { %4338 = vmatprep.subr.bf16.mxu1 %v15115_v24  ;;  %v794_v24 = vld [vmem:[%s19000_s27 + $0x720] sm:$0xff] }
 0x2ec   : > { %4339 = vmatpush1.bf16.msra.mxu1 %v15114_v25  ;;  %v800_v25 = vld [vmem:[%s19000_s27 + $0x7a0] sm:$0xff] }
 0x2ed   : > { %4470 = vmatpush1.bf16.msra.mxu0 %v15320_v32  ;;  %v15127_v32 = vcombine.high %v803_v29, %v809_v30  ;;  %v15108_v29 = vcombine.low %v782_v16, %v788_v17  ;;  %v15121_v30 = vcombine.high %v794_v24, %v800_v25  ;;  %v977_v16 = vld [vmem:[%s19000_s27 + $0x1688] sm:$0xff] }
 0x2ee   : > { %4471 = vmatprep.subr.bf16.mxu0 %v15333_v36  ;;  %v15036_v36 = vcombine.low %v710_v26, %v716_v27  ;;  %v899_v27 = vld [vmem:[%s19000_s27 + $0x1008] sm:$0xff] }
 0x2ef   : > { %4340 = vmatprep.subr.bf16.mxu1 %v15127_v32  ;;  %v806_v32 = vld [vmem:[%s19000_s27 + $0x820] sm:$0xff] }
 0x2f0   : > { %4341 = vmatpush1.bf16.msra.mxu1 %v15126_v33  ;;  %v812_v33 = vld [vmem:[%s19000_s27 + $0x8a0] sm:$0xff] }
 0x2f1   : > { %4472 = vmatpush1.bf16.msra.mxu0 %v15332_v40  ;;  %v15139_v40 = vcombine.high %v815_v37, %v821_v38  ;;  %v15120_v37 = vcombine.low %v794_v24, %v800_v25  ;;  %v15133_v38 = vcombine.high %v806_v32, %v812_v33  ;;  %v15132_v45 = vcombine.low %v806_v32, %v812_v33  ;;  %v989_v24 = vld [vmem:[%s19000_s27 + $0x1788] sm:$0xff] }
 0x2f2   : > { %4473 = vmatprep.subr.bf16.mxu0 %v15345_v44  ;;  %v15048_v44 = vcombine.low %v722_v34, %v728_v35  ;;  %v911_v35 = vld [vmem:[%s19000_s27 + $0x1108] sm:$0xff] }
 0x2f3   : > { %4342 = vmatprep.subr.bf16.mxu1 %v15139_v40  ;;  %v818_v40 = vld [vmem:[%s19000_s27 + $0x920] sm:$0xff]  ;;  %v1001_v32 = vld [vmem:[%s19000_s27 + $0x1888] sm:$0xff] }
 0x2f4   : > { %4343 = vmatpush1.bf16.msra.mxu1 %v15138_v43  ;;  %v923_v43 = vld [vmem:[%s19000_s27 + $0x1208] sm:$0xff] }
 0x2f5   : > { %4474 = vmatpush1.bf16.msra.mxu0 %v15344_v49  ;;  %v15061_v49 = vcombine.high %v734_v41, %v740_v42  ;;  %4344 = vmatprep.subr.bf16.mxu1 %v15151_v50  ;;  %v824_v41 = vld [vmem:[%s19000_s27 + $0x9a0] sm:$0xff] }
 0x2f6   : > { %4475 = vmatprep.subr.bf16.mxu0 %v15357_v56  ;;  %v746_v56 = vld [vmem:[%s19000_s27 + $0x320] sm:$0xff]  ;;  %v15145_v46 = vcombine.high %v818_v40, %v824_v41 }
 0x2f7   : > { %v15073_v62 = vcombine.high %v746_v56, %v752_v57  ;;  %v15072_v5 = vcombine.low %v746_v56, %v752_v57  ;;  %v836_v50 = vld [vmem:[%s19000_s27 + $0xaa0] sm:$0xff]  ;;  %v941_v56 = vld [vmem:[%s19000_s27 + $0x1388] sm:$0xff]  ;;  %v15144_v57 = vcombine.low %v818_v40, %v824_v41 }
 0x2f8   : > { %4345 = vmatpush1.bf16.msra.mxu1 %v15150_v52  ;;  %v1013_v40 = vld [vmem:[%s19000_s27 + $0x1988] sm:$0xff] }
 0x2f9   : > { %4476 = vmatpush1.bf16.msra.mxu0 %v15356_v60  ;;  %v857_v60 = vld [vmem:[%s19000_s27 + $0xc88] sm:$0xff]  ;;  %4346 = vmatprep.subr.bf16.mxu1 %v15163_v58 }
 0x2fa   : > { %4477 = vmatprep.subr.bf16.mxu0 %v15369_v63  ;;  %v15162_v63 = vcombine.low %v839_v48, %v845_v53  ;;  %v15175_v2 = vcombine.high %v851_v59, %v857_v60  ;;  %v935_v53 = vld [vmem:[%s19000_s27 + $0x1308] sm:$0xff] }
 0x2fc   : > { %4347 = vmatpush1.bf16.msra.mxu1 %v15162_v63  ;;  %v947_v63 = vld [vmem:[%s19000_s27 + $0x1408] sm:$0xff] }
 0x2fd   : > { %4478 = vmatpush1.bf16.msra.mxu0 %v15368_v4  ;;  %v869_v4 = vld [vmem:[%s19000_s27 + $0xd88] sm:$0xff]  ;;  %4348 = vmatprep.subr.bf16.mxu1 %v15175_v2 }
 0x2fe   : > { %4479 = vmatprep.subr.bf16.mxu0 %v15381_v7  ;;  %v15174_v7 = vcombine.low %v851_v59, %v857_v60  ;;  %v15187_v10 = vcombine.high %v863_v3, %v869_v4  ;;  %v842_v60 = vld [vmem:[%s19000_s27 + $0xb20] sm:$0xff] }
 0x300   : > { %4349 = vmatpush1.bf16.msra.mxu1 %v15174_v7  ;;  %v959_v7 = vld [vmem:[%s19000_s27 + $0x1508] sm:$0xff] }
 0x301   : > { %4480 = vmatpush1.bf16.msra.mxu0 %v15380_v12  ;;  %v881_v12 = vld [vmem:[%s19000_s27 + $0xe88] sm:$0xff]  ;;  %4350 = vmatprep.subr.bf16.mxu1 %v15187_v10 }
 0x302   : > { %4481 = vmatprep.subr.bf16.mxu0 %v15393_v15  ;;  %v15186_v15 = vcombine.low %v863_v3, %v869_v4  ;;  %v15199_v18 = vcombine.high %v875_v11, %v881_v12  ;;  %v15258_v3 = vcombine.low %v935_v53, %v941_v56  ;;  %v854_v4 = vld [vmem:[%s19000_s27 + $0xc20] sm:$0xff] }
 0x304   : > { %4351 = vmatpush1.bf16.msra.mxu1 %v15186_v15  ;;  %v971_v15 = vld [vmem:[%s19000_s27 + $0x1608] sm:$0xff] }
 0x305   : > { %4482 = vmatpush1.bf16.msra.mxu0 %v15392_v20  ;;  %v893_v20 = vld [vmem:[%s19000_s27 + $0xf88] sm:$0xff]  ;;  %4352 = vmatprep.subr.bf16.mxu1 %v15199_v18 }
 0x306   : > { %4483 = vmatprep.subr.bf16.mxu0 %v15405_v23  ;;  %v15198_v23 = vcombine.low %v875_v11, %v881_v12  ;;  %v15211_v26 = vcombine.high %v887_v19, %v893_v20  ;;  %v15270_v11 = vcombine.low %v947_v63, %v953_v0  ;;  %v866_v12 = vld [vmem:[%s19000_s27 + $0xd20] sm:$0xff] }
 0x308   : > { %4353 = vmatpush1.bf16.msra.mxu1 %v15198_v23  ;;  %v983_v23 = vld [vmem:[%s19000_s27 + $0x1708] sm:$0xff] }
 0x309   : > { %4484 = vmatpush1.bf16.msra.mxu0 %v15404_v28  ;;  %v905_v28 = vld [vmem:[%s19000_s27 + $0x1088] sm:$0xff]  ;;  %4354 = vmatprep.subr.bf16.mxu1 %v15211_v26 }
 0x30a   : > { %4582 = vmatprep.subr.bf16.mxu0 %v15037_v31  ;;  %v15210_v31 = vcombine.low %v887_v19, %v893_v20  ;;  %v15223_v34 = vcombine.high %v899_v27, %v905_v28  ;;  %v15282_v19 = vcombine.low %v959_v7, %v965_v8  ;;  %v878_v20 = vld [vmem:[%s19000_s27 + $0xe20] sm:$0xff] }
 0x30c   : > { %4486 = vmatmul.mubr.bf16.vlgmr.msra.gmra.mrb[4].mxu0 %v19108_v54  ;;  %4355 = vmatpush1.bf16.msra.mxu1 %v15210_v31  ;;  %v995_v31 = vld [vmem:[%s19000_s27 + $0x1808] sm:$0xff] }
 0x30d   : > { %4583 = vmatpush1.bf16.msra.mxu0 %v15036_v36  ;;  %4614 = vmatprep.mubr.bf16.mxu0 %v19040_v55  ;;  %v917_v36 = vld [vmem:[%s19000_s27 + $0x1188] sm:$0xff] }
 0x30e   : > { %4584 = vmatprep.subr.bf16.mxu0 %v15049_v39  ;;  %v15222_v39 = vcombine.low %v899_v27, %v905_v28  ;;  %4367 = vmatprep.subr.bf16.mxu1 %v15223_v34  ;;  %v15235_v42 = vcombine.high %v911_v35, %v917_v36  ;;  %v15234_v48 = vcombine.low %v911_v35, %v917_v36  ;;  %v890_v28 = vld [vmem:[%s19000_s27 + $0xf20] sm:$0xff] }
 0x30f   : > { %4357 = vmatmul.mubr.bf16.vlgmr.msra.gmra.mrb[0].mxu1 %v19070_v47  ;;  %v15294_v27 = vcombine.low %v971_v15, %v977_v16  ;;  %v15306_v35 = vcombine.low %v983_v23, %v989_v24  ;;  %v902_v36 = vld [vmem:[%s19000_s27 + $0x1020] sm:$0xff] }
 0x310   : > { %4368 = vmatpush1.bf16.msra.mxu1 %v15222_v39  ;;  %4399 = vmatprep.mubr.bf16.mxu1 %v19074_v51  ;;  %v1007_v39 = vld [vmem:[%s19000_s27 + $0x1908] sm:$0xff] }
 0x311   : > { %4585 = vmatpush1.bf16.msra.mxu0 %v15048_v44  ;;  %v929_v44 = vld [vmem:[%s19000_s27 + $0x1288] sm:$0xff]  ;;  %4369 = vmatprep.subr.bf16.mxu1 %v15235_v42 }
 0x312   : > { %4586 = vmatprep.subr.bf16.mxu0 %v15061_v49  ;;  %v830_v49 = vld [vmem:[%s19000_s27 + $0xa20] sm:$0xff]  ;;  %v15247_v52 = vcombine.high %v923_v43, %v929_v44  ;;  %v15246_v59 = vcombine.low %v923_v43, %v929_v44  ;;  %v15318_v43 = vcombine.low %v995_v31, %v1001_v32 }
 0x313   : > { %v15157_v58 = vcombine.high %v830_v49, %v836_v50  ;;  %v15156_v1 = vcombine.low %v830_v49, %v836_v50  ;;  %v914_v44 = vld [vmem:[%s19000_s27 + $0x1120] sm:$0xff]  ;;  %v1025_v49 = vld [vmem:[%s19000_s27 + $0x1a88] sm:$0xff] }
 0x314   : > { %4370 = vmatpush1.bf16.msra.mxu1 %v15234_v48  ;;  %v1019_v48 = vld [vmem:[%s19000_s27 + $0x1a08] sm:$0xff] }
 0x315   : > { %4587 = vmatpush1.bf16.msra.mxu0 %v15060_v61  ;;  %v848_v61 = vld [vmem:[%s19000_s27 + $0xba0] sm:$0xff]  ;;  %4371 = vmatprep.subr.bf16.mxu1 %v15247_v52 }
 0x316   : > { %4588 = vmatprep.subr.bf16.mxu0 %v15073_v62  ;;  %v15259_v62 = vcombine.high %v935_v53, %v941_v56  ;;  %v15169_v2 = vcombine.high %v842_v60, %v848_v61  ;;  %v15168_v9 = vcombine.low %v842_v60, %v848_v61  ;;  %v15330_v53 = vcombine.low %v1007_v39, %v1013_v40  ;;  %v926_v56 = vld [vmem:[%s19000_s27 + $0x1220] sm:$0xff]  ;;  %v1037_v60 = vld [vmem:[%s19000_s27 + $0x1b88] sm:$0xff] }
 0x318   : > { %4372 = vmatpush1.bf16.msra.mxu1 %v15246_v59  ;;  %v1031_v59 = vld [vmem:[%s19000_s27 + $0x1b08] sm:$0xff] }
 0x319   : > { %4589 = vmatpush1.bf16.msra.mxu0 %v15072_v5  ;;  %v860_v5 = vld [vmem:[%s19000_s27 + $0xca0] sm:$0xff]  ;;  %4373 = vmatprep.subr.bf16.mxu1 %v15259_v62 }
 0x31a   : > { %4590 = vmatprep.subr.bf16.mxu0 %v15085_v6  ;;  %v15271_v6 = vcombine.high %v947_v63, %v953_v0  ;;  %v15181_v10 = vcombine.high %v854_v4, %v860_v5  ;;  %v15180_v17 = vcombine.low %v854_v4, %v860_v5  ;;  %v15342_v63 = vcombine.low %v1019_v48, %v1025_v49  ;;  %v938_v0 = vld [vmem:[%s19000_s27 + $0x1320] sm:$0xff] }
 0x31b   : > { %v15354_v5 = vcombine.low %v1031_v59, %v1037_v60 }
 0x31c   : > { %4374 = vmatpush1.bf16.msra.mxu1 %v15258_v3 }
 0x31d   : > { %4591 = vmatpush1.bf16.msra.mxu0 %v15084_v13  ;;  %v872_v13 = vld [vmem:[%s19000_s27 + $0xda0] sm:$0xff]  ;;  %4375 = vmatprep.subr.bf16.mxu1 %v15271_v6 }
 0x31e   : > { %4592 = vmatprep.subr.bf16.mxu0 %v15097_v14  ;;  %v15283_v14 = vcombine.high %v959_v7, %v965_v8  ;;  %v15193_v18 = vcombine.high %v866_v12, %v872_v13  ;;  %v15192_v25 = vcombine.low %v866_v12, %v872_v13  ;;  %v950_v6 = vld [vmem:[%s19000_s27 + $0x1420] sm:$0xff]  ;;  %v2258_v8 = vlaneseq }
 0x31f   : > { %v956_v7 = vld [vmem:[%s19000_s27 + $0x14a0] sm:$0xff] }
 0x320   : > { %4376 = vmatpush1.bf16.msra.mxu1 %v15270_v11  ;;  %v1049_v11 = vld [vmem:[%s19000_s27 + $0x1c88] sm:$0xff]  ;;  %v15277_v12 = vcombine.high %v950_v6, %v956_v7 }
 0x321   : > { %4593 = vmatpush1.bf16.msra.mxu0 %v15096_v21  ;;  %v884_v21 = vld [vmem:[%s19000_s27 + $0xea0] sm:$0xff]  ;;  %4377 = vmatprep.subr.bf16.mxu1 %v15283_v14 }
 0x322   : > { %4594 = vmatprep.subr.bf16.mxu0 %v15109_v22  ;;  %v15295_v22 = vcombine.high %v971_v15, %v977_v16  ;;  %v15205_v26 = vcombine.high %v878_v20, %v884_v21  ;;  %v15204_v33 = vcombine.low %v878_v20, %v884_v21  ;;  %v1055_v15 = vld [vmem:[%s19000_s27 + $0x1d08] sm:$0xff]  ;;  %v19284_v20 = vshrl.u32 %v2258_v8, 7  ;;  %v739_v8 = vld [vmem:[%s19000_s27 + $0x298] sm:$0xff] }
 0x323   : > { %v1061_v16 = vld [vmem:[%s19000_s27 + $0x1d88] sm:$0xff]  ;;  %v15276_v21 = vcombine.low %v950_v6, %v956_v7  ;;  %v733_v7 = vld [vmem:[%s19000_s27 + $0x218] sm:$0xff] }
 0x324   : > { %4378 = vmatpush1.bf16.msra.mxu1 %v15282_v19  ;;  %v15379_v19 = vcombine.high %v1055_v15, %v1061_v16 }
 0x325   : > { %4595 = vmatpush1.bf16.msra.mxu0 %v15108_v29  ;;  %v896_v29 = vld [vmem:[%s19000_s27 + $0xfa0] sm:$0xff]  ;;  %4379 = vmatprep.subr.bf16.mxu1 %v15295_v22 }
 0x326   : > { %4596 = vmatprep.subr.bf16.mxu0 %v15121_v30  ;;  %v15307_v30 = vcombine.high %v983_v23, %v989_v24  ;;  %v15217_v34 = vcombine.high %v890_v28, %v896_v29  ;;  %v15216_v41 = vcombine.low %v890_v28, %v896_v29  ;;  %v15378_v23 = vcombine.low %v1055_v15, %v1061_v16  ;;  %v974_v24 = vld [vmem:[%s19000_s27 + $0x1620] sm:$0xff]  ;;  %v1067_v29 = vld [vmem:[%s19000_s27 + $0x1e08] sm:$0xff] }
 0x327   : > { %v1040_v15 = vld [vmem:[%s19000_s27 + $0x1ba0] sm:$0xff] }
 0x328   : > { %4380 = vmatpush1.bf16.msra.mxu1 %v15294_v27  ;;  %v19292_v27 = vld [vmem:[%s19008_s8] sm:$0xff] }
 0x329   : > { %4597 = vmatpush1.bf16.msra.mxu0 %v15120_v37  ;;  %v908_v37 = vld [vmem:[%s19000_s27 + $0x10a0] sm:$0xff]  ;;  %4381 = vmatprep.subr.bf16.mxu1 %v15307_v30  ;;  %v1073_v30 = vld [vmem:[%s19000_s27 + $0x1e88] sm:$0xff] }
 0x32a   : > { %4598 = vmatprep.subr.bf16.mxu0 %v15133_v38  ;;  %v15319_v38 = vcombine.high %v995_v31, %v1001_v32  ;;  %v15229_v42 = vcombine.high %v902_v36, %v908_v37  ;;  %v15228_v50 = vcombine.low %v902_v36, %v908_v37  ;;  %v15391_v32 = vcombine.high %v1067_v29, %v1073_v30 }
 0x32b   : > { %v15390_v36 = vcombine.low %v1067_v29, %v1073_v30  ;;  %v775_v29 = vld [vmem:[%s19000_s27 + $0x598] sm:$0xff] }
 0x32c   : > { %4382 = vmatpush1.bf16.msra.mxu1 %v15306_v35  ;;  %v992_v35 = vld [vmem:[%s19000_s27 + $0x17a0] sm:$0xff] }
 0x32d   : > { %4599 = vmatpush1.bf16.msra.mxu0 %v15132_v45  ;;  %v920_v45 = vld [vmem:[%s19000_s27 + $0x11a0] sm:$0xff]  ;;  %4383 = vmatprep.subr.bf16.mxu1 %v15319_v38 }
 0x32e   : > { %4600 = vmatprep.subr.bf16.mxu0 %v15145_v46  ;;  %v15331_v46 = vcombine.high %v1007_v39, %v1013_v40  ;;  %v15241_v52 = vcombine.high %v914_v44, %v920_v45  ;;  %v15240_v61 = vcombine.low %v914_v44, %v920_v45 }
 0x330   : > { %4384 = vmatpush1.bf16.msra.mxu1 %v15318_v43 }
 0x331   : > { %4601 = vmatpush1.bf16.msra.mxu0 %v15144_v57  ;;  %v932_v57 = vld [vmem:[%s19000_s27 + $0x12a0] sm:$0xff]  ;;  %4385 = vmatprep.subr.bf16.mxu1 %v15331_v46 }
 0x332   : > { %4602 = vmatprep.subr.bf16.mxu0 %v15157_v58  ;;  %v15343_v58 = vcombine.high %v1019_v48, %v1025_v49  ;;  %v15253_v62 = vcombine.high %v926_v56, %v932_v57  ;;  %v15252_v3 = vcombine.low %v926_v56, %v932_v57  ;;  %v998_v48 = vld [vmem:[%s19000_s27 + $0x1820] sm:$0xff]  ;;  %v715_v56 = vld [vmem:[%s19000_s27 + $0x98] sm:$0xff] }
 0x333   : > { %v1004_v49 = vld [vmem:[%s19000_s27 + $0x18a0] sm:$0xff] }
 0x334   : > { %4386 = vmatpush1.bf16.msra.mxu1 %v15330_v53  ;;  %v709_v53 = vld [vmem:[%s19000_s27 + $0x18] sm:$0xff]  ;;  %v15325_v57 = vcombine.high %v998_v48, %v1004_v49 }
 0x335   : > { %4603 = vmatpush1.bf16.msra.mxu0 %v15156_v1  ;;  %v944_v1 = vld [vmem:[%s19000_s27 + $0x13a0] sm:$0xff]  ;;  %4387 = vmatprep.subr.bf16.mxu1 %v15343_v58  ;;  %v15035_v58 = vcombine.high %v709_v53, %v715_v56 }
 0x336   : > { %4604 = vmatprep.subr.bf16.mxu0 %v15169_v2  ;;  %v15355_v2 = vcombine.high %v1031_v59, %v1037_v60  ;;  %v15265_v4 = vcombine.high %v938_v0, %v944_v1  ;;  %v1010_v59 = vld [vmem:[%s19000_s27 + $0x1920] sm:$0xff] }
 0x337   : > { %v1016_v60 = vld [vmem:[%s19000_s27 + $0x19a0] sm:$0xff] }
 0x338   : > { %4388 = vmatpush1.bf16.msra.mxu1 %v15342_v63  ;;  %v721_v63 = vld [vmem:[%s19000_s27 + $0x118] sm:$0xff]  ;;  %v15336_v6 = vcombine.low %v1010_v59, %v1016_v60 }
 0x339   : > { %4605 = vmatpush1.bf16.msra.mxu0 %v15168_v9  ;;  %4389 = vmatprep.subr.bf16.mxu1 %v15355_v2  ;;  %v15264_v9 = vcombine.low %v938_v0, %v944_v1  ;;  %v727_v0 = vld [vmem:[%s19000_s27 + $0x198] sm:$0xff]  ;;  %v15337_v1 = vcombine.high %v1010_v59, %v1016_v60  ;;  %v1088_v59 = vld [vmem:[%s19000_s27 + $0x1fa0] sm:$0xff] }
 0x33a   : > { %4606 = vmatprep.subr.bf16.mxu0 %v15181_v10  ;;  %v1043_v10 = vld [vmem:[%s19000_s27 + $0x1c08] sm:$0xff]  ;;  %v15046_v2 = vcombine.low %v721_v63, %v727_v0 }
 0x33b   : > { %v15366_v13 = vcombine.low %v1043_v10, %v1049_v11  ;;  %v15367_v14 = vcombine.high %v1043_v10, %v1049_v11  ;;  %v15058_v10 = vcombine.low %v733_v7, %v739_v8  ;;  %v15059_v11 = vcombine.high %v733_v7, %v739_v8  ;;  %v829_v8 = vld [vmem:[%s19000_s27 + $0xa18] sm:$0xff] }
 0x33c   : > { %4390 = vmatpush1.bf16.msra.mxu1 %v15354_v5  ;;  %v1028_v5 = vld [vmem:[%s19000_s27 + $0x1aa0] sm:$0xff] }
 0x33d   : > { %4607 = vmatpush1.bf16.msra.mxu0 %v15180_v17  ;;  %v962_v17 = vld [vmem:[%s19000_s27 + $0x1520] sm:$0xff]  ;;  %4391 = vmatprep.subr.bf16.mxu1 %v15367_v14 }
 0x33e   : > { %4608 = vmatprep.subr.bf16.mxu0 %v15193_v18  ;;  %v968_v18 = vld [vmem:[%s19000_s27 + $0x15a0] sm:$0xff] }
 0x33f   : > { %v15289_v22 = vcombine.high %v962_v17, %v968_v18  ;;  %v15288_v28 = vcombine.low %v962_v17, %v968_v18  ;;  %v1034_v14 = vld [vmem:[%s19000_s27 + $0x1b20] sm:$0xff]  ;;  %v757_v17 = vld [vmem:[%s19000_s27 + $0x418] sm:$0xff] }
 0x340   : > { %4392 = vmatpush1.bf16.msra.mxu1 %v15366_v13  ;;  %v751_v13 = vld [vmem:[%s19000_s27 + $0x398] sm:$0xff]  ;;  %v15360_v30 = vcombine.low %v1034_v14, %v1040_v15 }
 0x341   : > { %4609 = vmatpush1.bf16.msra.mxu0 %v15192_v25  ;;  %v980_v25 = vld [vmem:[%s19000_s27 + $0x16a0] sm:$0xff]  ;;  %4393 = vmatprep.subr.bf16.mxu1 %v15379_v19  ;;  %v763_v18 = vld [vmem:[%s19000_s27 + $0x498] sm:$0xff] }
 0x342   : > { %4610 = vmatprep.subr.bf16.mxu0 %v15205_v26  ;;  %v19289_v26 = vsub.s32 0, %v19284_v20  ;;  %v15301_v31 = vcombine.high %v974_v24, %v980_v25  ;;  %v15300_v40 = vcombine.low %v974_v24, %v980_v25  ;;  %v1052_v24 = vld [vmem:[%s19000_s27 + $0x1ca0] sm:$0xff]  ;;  %v15083_v25 = vcombine.high %v757_v17, %v763_v18 }
 0x344   : > { %4394 = vmatpush1.bf16.msra.mxu1 %v15378_v23  ;;  %v19302_v37 = vrot.slane %v19292_v27, %v19289_v26  ;;  %v1046_v23 = vld [vmem:[%s19000_s27 + $0x1c20] sm:$0xff] }
 0x345   : > { %4611 = vmatpush1.bf16.msra.mxu0 %v15204_v33  ;;  %4395 = vmatprep.subr.bf16.mxu1 %v15391_v32  ;;  %v15082_v32 = vcombine.low %v757_v17, %v763_v18  ;;  %v853_v17 = vld [vmem:[%s19000_s27 + $0xc18] sm:$0xff] }
 0x346   : > { %4612 = vmatprep.subr.bf16.mxu0 %v15217_v34  ;;  %v986_v34 = vld [vmem:[%s19000_s27 + $0x1720] sm:$0xff] }
 0x347   : > { %v15313_v45 = vcombine.high %v986_v34, %v992_v35 }
 0x348   : > { %4396 = vmatpush1.bf16.msra.mxu1 %v15390_v36 }
 0x349   : > { %4613 = vmatpush1.bf16.msra.mxu0 %v15216_v41  ;;  %v1079_v41 = vld [vmem:[%s19000_s27 + $0x1f08] sm:$0xff] }
 0x34a   : > { %4625 = vmatprep.subr.bf16.mxu0 %v15229_v42  ;;  %v1085_v42 = vld [vmem:[%s19000_s27 + $0x1f88] sm:$0xff] }
 0x34b   : > { %v15403_v46 = vcombine.high %v1079_v41, %v1085_v42 }
 0x34c   : > { %4615 = vmatmul.mubr.bf16.vlgmr.msra.gmra.mrb[8].mxu0 %v19070_v47 }
 0x34d   : > { %4626 = vmatpush1.bf16.msra.mxu0 %v15228_v50  ;;  %4657 = vmatprep.mubr.bf16.mxu0 %v19074_v51  ;;  %v15402_v50 = vcombine.low %v1079_v41, %v1085_v42  ;;  %v15372_v41 = vcombine.low %v1046_v23, %v1052_v24 }
 0x34e   : > { %4627 = vmatprep.subr.bf16.mxu0 %v15241_v52  ;;  %4397 = vmatprep.subr.bf16.mxu1 %v15403_v46  ;;  %v15312_v52 = vcombine.low %v986_v34, %v992_v35  ;;  %v1058_v34 = vld [vmem:[%s19000_s27 + $0x1d20] sm:$0xff] }
 0x34f   : > { %4398 = vmatpush1.bf16.msra.mxu1 %v15402_v50  ;;  %v1064_v35 = vld [vmem:[%s19000_s27 + $0x1da0] sm:$0xff]  ;;  %v793_v50 = vld [vmem:[%s19000_s27 + $0x718] sm:$0xff] }
 0x350   : > { %4496 = vmatprep.subr.bf16.mxu1 %v15035_v58  ;;  %v15385_v42 = vcombine.high %v1058_v34, %v1064_v35  ;;  %v1070_v46 = vld [vmem:[%s19000_s27 + $0x1e20] sm:$0xff] }
 0x351   : > { %4628 = vmatpush1.bf16.msra.mxu0 %v15240_v61  ;;  %v15034_v61 = vcombine.low %v709_v53, %v715_v56  ;;  %v15384_v53 = vcombine.low %v1058_v34, %v1064_v35  ;;  %v1082_v58 = vld [vmem:[%s19000_s27 + $0x1f20] sm:$0xff]  ;;  %v901_v35 = vld [vmem:[%s19000_s27 + $0x1018] sm:$0xff] }
 0x352   : > { %4629 = vmatprep.subr.bf16.mxu0 %v15253_v62  ;;  %v15324_v62 = vcombine.low %v998_v48, %v1004_v49  ;;  %4400 = vmatmul.mubr.bf16.vlgmr.msra.gmra.mrb[0].mxu1 %v19108_v54  ;;  %v1076_v48 = vld [vmem:[%s19000_s27 + $0x1ea0] sm:$0xff] }
 0x353   : > { %4497 = vmatpush1.bf16.msra.mxu1 %v15034_v61  ;;  %4528 = vmatprep.mubr.bf16.mxu1 %v19040_v55  ;;  %v15397_v56 = vcombine.high %v1070_v46, %v1076_v48  ;;  %v805_v61 = vld [vmem:[%s19000_s27 + $0x818] sm:$0xff] }
 0x355   : > { %4630 = vmatpush1.bf16.msra.mxu0 %v15252_v3  ;;  %v15047_v3 = vcombine.high %v721_v63, %v727_v0  ;;  %v15396_v63 = vcombine.low %v1070_v46, %v1076_v48  ;;  %v15409_v0 = vcombine.high %v1082_v58, %v1088_v59  ;;  %v925_v48 = vld [vmem:[%s19000_s27 + $0x1218] sm:$0xff] }
 0x356   : > { %4631 = vmatprep.subr.bf16.mxu0 %v15265_v4  ;;  %v1022_v4 = vld [vmem:[%s19000_s27 + $0x1a20] sm:$0xff] }
 0x357   : > { %4498 = vmatprep.subr.bf16.mxu1 %v15047_v3  ;;  %v15348_v19 = vcombine.low %v1022_v4, %v1028_v5  ;;  %v817_v3 = vld [vmem:[%s19000_s27 + $0x918] sm:$0xff] }
 0x358   : > { %4499 = vmatpush1.bf16.msra.mxu1 %v15046_v2 }
 0x359   : > { %4632 = vmatpush1.bf16.msra.mxu0 %v15264_v9  ;;  %v15349_v9 = vcombine.high %v1022_v4, %v1028_v5  ;;  %4500 = vmatprep.subr.bf16.mxu1 %v15059_v11  ;;  %v823_v4 = vld [vmem:[%s19000_s27 + $0x998] sm:$0xff]  ;;  %v15408_v5 = vcombine.low %v1082_v58, %v1088_v59 }
 0x35a   : > { %4633 = vmatprep.subr.bf16.mxu0 %v15277_v12  ;;  %v745_v12 = vld [vmem:[%s19000_s27 + $0x318] sm:$0xff]  ;;  %v15143_v7 = vcombine.high %v817_v3, %v823_v4 }
 0x35b   : > { %v15071_v16 = vcombine.high %v745_v12, %v751_v13  ;;  %v949_v59 = vld [vmem:[%s19000_s27 + $0x1418] sm:$0xff] }
 0x35c   : > { %4501 = vmatpush1.bf16.msra.mxu1 %v15058_v10  ;;  %v15142_v10 = vcombine.low %v817_v3, %v823_v4  ;;  %v973_v3 = vld [vmem:[%s19000_s27 + $0x1618] sm:$0xff] }
 0x35d   : > { %4634 = vmatpush1.bf16.msra.mxu0 %v15276_v21  ;;  %v15361_v21 = vcombine.high %v1034_v14, %v1040_v15  ;;  %4502 = vmatprep.subr.bf16.mxu1 %v15071_v16  ;;  %v847_v14 = vld [vmem:[%s19000_s27 + $0xb98] sm:$0xff] }
 0x35e   : > { %4635 = vmatprep.subr.bf16.mxu0 %v15289_v22  ;;  %v15070_v22 = vcombine.low %v745_v12, %v751_v13  ;;  %v841_v13 = vld [vmem:[%s19000_s27 + $0xb18] sm:$0xff] }
 0x35f   : > { %v19296_v33 = vpop.f32.mrb[0].mxu0  ;;  %v15167_v16 = vcombine.high %v841_v13, %v847_v14  ;;  %v979_v4 = vld [vmem:[%s19000_s27 + $0x1698] sm:$0xff] }
 0x360   : > { %v19304_v38 = vpop.f32.mrb[1].mxu0  ;;  %4503 = vmatpush1.bf16.msra.mxu1 %v15070_v22  ;;  %v19357_v11 = vadd.f32 %v19296_v33, %v19302_v37  ;;  %v859_v33 = vld [vmem:[%s19000_s27 + $0xc98] sm:$0xff] }
 0x361   : > { %v4319_v39 = vpop.f32.mrb[2].mxu0  ;;  %4636 = vmatpush1.bf16.msra.mxu0 %v15288_v28  ;;  %v769_v28 = vld [vmem:[%s19000_s27 + $0x518] sm:$0xff]  ;;  %4504 = vmatprep.subr.bf16.mxu1 %v15083_v25  ;;  %v15179_v18 = vcombine.high %v853_v17, %v859_v33  ;;  %v15178_v22 = vcombine.low %v853_v17, %v859_v33 }
 0x362   : > { %v19309_v43 = vadd.f32 %v4319_v39, %v19302_v37  ;;  %v19311_v44 = vpop.f32.mrb[3].mxu0  ;;  %4637 = vmatprep.subr.bf16.mxu0 %v15301_v31  ;;  %v15373_v31 = vcombine.high %v1046_v23, %v1052_v24  ;;  %v15095_v36 = vcombine.high %v769_v28, %v775_v29  ;;  %v781_v39 = vld [vmem:[%s19000_s27 + $0x618] sm:$0xff]  ;;  %v15166_v37 = vcombine.low %v841_v13, %v847_v14 }
 0x363   : > { %v877_v24 = vld [vmem:[%s19000_s27 + $0xe18] sm:$0xff] }
 0x364   : > { %4954 = vrot.lane.b32.xlu1 %v19309_v43, %s18607_s26  ;;  %4505 = vmatpush1.bf16.msra.mxu1 %v15082_v32  ;;  %v883_v25 = vld [vmem:[%s19000_s27 + $0xe98] sm:$0xff] }
 0x365   : > { %4638 = vmatpush1.bf16.msra.mxu0 %v15300_v40  ;;  %v787_v40 = vld [vmem:[%s19000_s27 + $0x698] sm:$0xff]  ;;  %4506 = vmatprep.subr.bf16.mxu1 %v15095_v36  ;;  %v15202_v32 = vcombine.low %v877_v24, %v883_v25 }
 0x366   : > { %4639 = vmatprep.subr.bf16.mxu0 %v15313_v45  ;;  %v15094_v45 = vcombine.low %v769_v28, %v775_v29  ;;  %v15107_v49 = vcombine.high %v781_v39, %v787_v40  ;;  %v15203_v29 = vcombine.high %v877_v24, %v883_v25  ;;  %v907_v36 = vld [vmem:[%s19000_s27 + $0x1098] sm:$0xff] }
 0x367   : > { %v1003_v13 = vld [vmem:[%s19000_s27 + $0x1898] sm:$0xff] }
 0x368   : > { %4507 = vmatpush1.bf16.msra.mxu1 %v15094_v45  ;;  %v15226_v45 = vcombine.low %v901_v35, %v907_v36  ;;  %v1015_v17 = vld [vmem:[%s19000_s27 + $0x1998] sm:$0xff] }
 0x369   : > { %4640 = vmatpush1.bf16.msra.mxu0 %v15312_v52  ;;  %v799_v52 = vld [vmem:[%s19000_s27 + $0x798] sm:$0xff]  ;;  %4508 = vmatprep.subr.bf16.mxu1 %v15107_v49 }
 0x36a   : > { %4641 = vmatprep.subr.bf16.mxu0 %v15325_v57  ;;  %v15106_v57 = vcombine.low %v781_v39, %v787_v40  ;;  %v15119_v60 = vcombine.high %v793_v50, %v799_v52  ;;  %v15227_v40 = vcombine.high %v901_v35, %v907_v36  ;;  %v931_v49 = vld [vmem:[%s19000_s27 + $0x1298] sm:$0xff] }
 0x36b   : > { %v1039_v24 = vld [vmem:[%s19000_s27 + $0x1b98] sm:$0xff] }
 0x36c   : > { %4509 = vmatpush1.bf16.msra.mxu1 %v15106_v57  ;;  %v15250_v57 = vcombine.low %v925_v48, %v931_v49  ;;  %v1057_v35 = vld [vmem:[%s19000_s27 + $0x1d18] sm:$0xff] }
 0x36d   : > { %4642 = vmatpush1.bf16.msra.mxu0 %v15324_v62  ;;  %v811_v62 = vld [vmem:[%s19000_s27 + $0x898] sm:$0xff]  ;;  %4510 = vmatprep.subr.bf16.mxu1 %v15119_v60 }
 0x36e   : > { %4643 = vmatprep.subr.bf16.mxu0 %v15337_v1  ;;  %v15118_v1 = vcombine.low %v793_v50, %v799_v52  ;;  %v15131_v2 = vcombine.high %v805_v61, %v811_v62  ;;  %v15251_v52 = vcombine.high %v925_v48, %v931_v49  ;;  %v955_v60 = vld [vmem:[%s19000_s27 + $0x1498] sm:$0xff] }
 0x36f   : > { %v1063_v36 = vld [vmem:[%s19000_s27 + $0x1d98] sm:$0xff] }
 0x370   : > { %4511 = vmatpush1.bf16.msra.mxu1 %v15118_v1  ;;  %v15274_v1 = vcombine.low %v949_v59, %v955_v60 }
 0x371   : > { %4644 = vmatpush1.bf16.msra.mxu0 %v15336_v6  ;;  %v15130_v6 = vcombine.low %v805_v61, %v811_v62  ;;  %4512 = vmatprep.subr.bf16.mxu1 %v15131_v2  ;;  %v15275_v62 = vcombine.high %v949_v59, %v955_v60 }
 0x372   : > { %4645 = vmatprep.subr.bf16.mxu0 %v15349_v9  ;;  %v835_v9 = vld [vmem:[%s19000_s27 + $0xa98] sm:$0xff] }
 0x373   : > { %v15155_v12 = vcombine.high %v829_v8, %v835_v9  ;;  %v15154_v15 = vcombine.low %v829_v8, %v835_v9  ;;  %v991_v8 = vld [vmem:[%s19000_s27 + $0x1798] sm:$0xff]  ;;  %v15298_v9 = vcombine.low %v973_v3, %v979_v4 }
 0x374   : > { %4513 = vmatpush1.bf16.msra.mxu1 %v15130_v6  ;;  %v15299_v6 = vcombine.high %v973_v3, %v979_v4 }
 0x375   : > { %4646 = vmatpush1.bf16.msra.mxu0 %v15348_v19  ;;  %4514 = vmatprep.subr.bf16.mxu1 %v15143_v7  ;;  %v865_v19 = vld [vmem:[%s19000_s27 + $0xd18] sm:$0xff] }
 0x376   : > { %4647 = vmatprep.subr.bf16.mxu0 %v15361_v21  ;;  %v871_v21 = vld [vmem:[%s19000_s27 + $0xd98] sm:$0xff] }
 0x377   : > { %v15191_v23 = vcombine.high %v865_v19, %v871_v21  ;;  %v15190_v28 = vcombine.low %v865_v19, %v871_v21  ;;  %v985_v7 = vld [vmem:[%s19000_s27 + $0x1718] sm:$0xff] }
 0x378   : > { %4515 = vmatpush1.bf16.msra.mxu1 %v15142_v10  ;;  %v15311_v10 = vcombine.high %v985_v7, %v991_v8  ;;  %v15310_v14 = vcombine.low %v985_v7, %v991_v8  ;;  %v1027_v19 = vld [vmem:[%s19000_s27 + $0x1a98] sm:$0xff]  ;;  %v711_v7 = vld [vmem:[%s19000_s27 + $0x28] sm:$0xff] }
 0x379   : > { %4648 = vmatpush1.bf16.msra.mxu0 %v15360_v30  ;;  %4516 = vmatprep.subr.bf16.mxu1 %v15155_v12  ;;  %v889_v30 = vld [vmem:[%s19000_s27 + $0xf18] sm:$0xff]  ;;  %v717_v8 = vld [vmem:[%s19000_s27 + $0xa8] sm:$0xff] }
 0x37a   : > { %4649 = vmatprep.subr.bf16.mxu0 %v15373_v31  ;;  %v895_v31 = vld [vmem:[%s19000_s27 + $0xf98] sm:$0xff] }
 0x37b   : > { %v15215_v34 = vcombine.high %v889_v30, %v895_v31  ;;  %v15214_v39 = vcombine.low %v889_v30, %v895_v31  ;;  %v997_v12 = vld [vmem:[%s19000_s27 + $0x1818] sm:$0xff] }
 0x37c   : > { %4517 = vmatpush1.bf16.msra.mxu1 %v15154_v15  ;;  %v15323_v15 = vcombine.high %v997_v12, %v1003_v13  ;;  %v15322_v33 = vcombine.low %v997_v12, %v1003_v13  ;;  %v1051_v30 = vld [vmem:[%s19000_s27 + $0x1c98] sm:$0xff]  ;;  %v729_v12 = vld [vmem:[%s19000_s27 + $0x1a8] sm:$0xff]  ;;  %v15038_v13 = vcombine.low %v711_v7, %v717_v8 }
 0x37d   : > { %4650 = vmatpush1.bf16.msra.mxu0 %v15372_v41  ;;  %4518 = vmatprep.subr.bf16.mxu1 %v15167_v16  ;;  %v913_v41 = vld [vmem:[%s19000_s27 + $0x1118] sm:$0xff] }
 0x37e   : > { %4651 = vmatprep.subr.bf16.mxu0 %v15385_v42  ;;  %v919_v42 = vld [vmem:[%s19000_s27 + $0x1198] sm:$0xff] }
 0x37f   : > { %v15239_v46 = vcombine.high %v913_v41, %v919_v42  ;;  %v15238_v50 = vcombine.low %v913_v41, %v919_v42  ;;  %v1009_v16 = vld [vmem:[%s19000_s27 + $0x1918] sm:$0xff]  ;;  %v19406_v41 = vsub.s32 5, %v19284_v20  ;;  %v15382_v42 = vcombine.low %v1057_v35, %v1063_v36 }
 0x380   : > { %4519 = vmatpush1.bf16.msra.mxu1 %v15166_v37  ;;  %v15335_v37 = vcombine.high %v1009_v16, %v1015_v17  ;;  %v15334_v21 = vcombine.low %v1009_v16, %v1015_v17  ;;  %v741_v16 = vld [vmem:[%s19000_s27 + $0x2a8] sm:$0xff] }
 0x381   : > { %4652 = vmatpush1.bf16.msra.mxu0 %v15384_v53  ;;  %4520 = vmatprep.subr.bf16.mxu1 %v15179_v18  ;;  %v937_v53 = vld [vmem:[%s19000_s27 + $0x1318] sm:$0xff] }
 0x382   : > { %4653 = vmatprep.subr.bf16.mxu0 %v15397_v56  ;;  %v943_v56 = vld [vmem:[%s19000_s27 + $0x1398] sm:$0xff] }
 0x383   : > { %v15263_v58 = vcombine.high %v937_v53, %v943_v56  ;;  %v15262_v61 = vcombine.low %v937_v53, %v943_v56  ;;  %v1021_v18 = vld [vmem:[%s19000_s27 + $0x1a18] sm:$0xff] }
 0x384   : > { %4521 = vmatpush1.bf16.msra.mxu1 %v15178_v22  ;;  %v15347_v22 = vcombine.high %v1021_v18, %v1027_v19  ;;  %v15346_v25 = vcombine.low %v1021_v18, %v1027_v19  ;;  %v1087_v53 = vld [vmem:[%s19000_s27 + $0x1f98] sm:$0xff]  ;;  %v753_v18 = vld [vmem:[%s19000_s27 + $0x3a8] sm:$0xff] }
 0x385   : > { %4654 = vmatpush1.bf16.msra.mxu0 %v15396_v63  ;;  %4522 = vmatprep.subr.bf16.mxu1 %v15191_v23  ;;  %v961_v63 = vld [vmem:[%s19000_s27 + $0x1518] sm:$0xff] }
 0x386   : > { %4655 = vmatprep.subr.bf16.mxu0 %v15409_v0  ;;  %v967_v0 = vld [vmem:[%s19000_s27 + $0x1598] sm:$0xff] }
 0x387   : > { %v15287_v2 = vcombine.high %v961_v63, %v967_v0  ;;  %v1033_v23 = vld [vmem:[%s19000_s27 + $0x1b18] sm:$0xff] }
 0x388   : > { %4523 = vmatpush1.bf16.msra.mxu1 %v15190_v28  ;;  %v15359_v28 = vcombine.high %v1033_v23, %v1039_v24  ;;  %v15358_v31 = vcombine.low %v1033_v23, %v1039_v24 }
 0x389   : > { %4656 = vmatpush1.bf16.msra.mxu0 %v15408_v5  ;;  %4524 = vmatprep.subr.bf16.mxu1 %v15203_v29  ;;  %v15286_v5 = vcombine.low %v961_v63, %v967_v0  ;;  %v1045_v29 = vld [vmem:[%s19000_s27 + $0x1c18] sm:$0xff] }
 0x38c   : > { %4658 = vmatmul.mubr.bf16.vlgmr.msra.gmra.mrb[8].mxu0 %v19108_v54  ;;  %4525 = vmatpush1.bf16.msra.mxu1 %v15202_v32  ;;  %v15371_v32 = vcombine.high %v1045_v29, %v1051_v30 }
 0x38d   : > { %16762 = vmatprep.mubr.msk.f32.mxu0 %vm4756_vm1, %v19357_v11  ;;  %4526 = vmatprep.subr.bf16.mxu1 %v15215_v34  ;;  %v15370_v34 = vcombine.low %v1045_v29, %v1051_v30  ;;  %v783_v29 = vld [vmem:[%s19000_s27 + $0x628] sm:$0xff] }
 0x38e   : > { %v789_v30 = vld [vmem:[%s19000_s27 + $0x6a8] sm:$0xff] }
 0x390   : > { %4527 = vmatpush1.bf16.msra.mxu1 %v15214_v39  ;;  %v19403_v39 = vsub.s32 4, %v19284_v20 }
 0x391   : > { %4539 = vmatprep.subr.bf16.mxu1 %v15227_v40  ;;  %v15383_v40 = vcombine.high %v1057_v35, %v1063_v36  ;;  %v801_v35 = vld [vmem:[%s19000_s27 + $0x7a8] sm:$0xff]  ;;  %v15110_v36 = vcombine.low %v783_v29, %v789_v30 }
 0x392   : > { %v2277_v48 = vrot.slane %v19292_v27, %v19403_v39 }
 0x393   : > { %4529 = vmatmul.mubr.bf16.vlgmr.msra.gmra.mrb[4].mxu1 %v19070_v47 }
 0x394   : > { %4540 = vmatpush1.bf16.msra.mxu1 %v15226_v45  ;;  %4571 = vmatprep.mubr.bf16.mxu1 %v19074_v51  ;;  %v1069_v45 = vld [vmem:[%s19000_s27 + $0x1e18] sm:$0xff] }
 0x395   : > { %4541 = vmatprep.subr.bf16.mxu1 %v15239_v46  ;;  %v1075_v46 = vld [vmem:[%s19000_s27 + $0x1e98] sm:$0xff] }
 0x396   : > { %v15394_v49 = vcombine.low %v1069_v45, %v1075_v46 }
 0x398   : > { %4542 = vmatpush1.bf16.msra.mxu1 %v15238_v50  ;;  %v15395_v50 = vcombine.high %v1069_v45, %v1075_v46  ;;  %v813_v45 = vld [vmem:[%s19000_s27 + $0x8a8] sm:$0xff] }
 0x399   : > { %4543 = vmatprep.subr.bf16.mxu1 %v15251_v52  ;;  %v1081_v52 = vld [vmem:[%s19000_s27 + $0x1f18] sm:$0xff] }
 0x39c   : > { %4544 = vmatpush1.bf16.msra.mxu1 %v15250_v57  ;;  %v2281_v57 = vrot.slane %v19292_v27, %v19406_v41 }
 0x39d   : > { %4545 = vmatprep.subr.bf16.mxu1 %v15263_v58  ;;  %v15407_v58 = vcombine.high %v1081_v52, %v1087_v53 }
 0x3a0   : > { %4546 = vmatpush1.bf16.msra.mxu1 %v15262_v61 }
 0x3a1   : > { %4547 = vmatprep.subr.bf16.mxu1 %v15275_v62 }
 0x3a4   : > { %4548 = vmatpush1.bf16.msra.mxu1 %v15274_v1 }
 0x3a5   : > { %4549 = vmatprep.subr.bf16.mxu1 %v15287_v2  ;;  %v15406_v2 = vcombine.low %v1081_v52, %v1087_v53 }
 0x3a8   : > { %4550 = vmatpush1.bf16.msra.mxu1 %v15286_v5 }
 0x3a9   : > { %4551 = vmatprep.subr.bf16.mxu1 %v15299_v6 }
 0x3ac   : > { %4552 = vmatpush1.bf16.msra.mxu1 %v15298_v9  ;;  %v723_v9 = vld [vmem:[%s19000_s27 + $0x128] sm:$0xff] }
 0x3ad   : > { %4553 = vmatprep.subr.bf16.mxu1 %v15311_v10  ;;  %v15039_v10 = vcombine.high %v711_v7, %v717_v8  ;;  %v15050_v17 = vcombine.low %v723_v9, %v729_v12  ;;  %v867_v8 = vld [vmem:[%s19000_s27 + $0xd28] sm:$0xff] }
 0x3b0   : > { %4554 = vmatpush1.bf16.msra.mxu1 %v15310_v14  ;;  %v15051_v14 = vcombine.high %v723_v9, %v729_v12  ;;  %v873_v9 = vld [vmem:[%s19000_s27 + $0xda8] sm:$0xff] }
 0x3b1   : > { %4555 = vmatprep.subr.bf16.mxu1 %v15323_v15  ;;  %v735_v15 = vld [vmem:[%s19000_s27 + $0x228] sm:$0xff]  ;;  %v15195_v12 = vcombine.high %v867_v8, %v873_v9 }
 0x3b2   : > { %v15062_v19 = vcombine.low %v735_v15, %v741_v16 }
 0x3b4   : > { %4556 = vmatpush1.bf16.msra.mxu1 %v15322_v33  ;;  %v15063_v33 = vcombine.high %v735_v15, %v741_v16  ;;  %v15194_v15 = vcombine.low %v867_v8, %v873_v9  ;;  %v1023_v8 = vld [vmem:[%s19000_s27 + $0x1a28] sm:$0xff] }
 0x3b5   : > { %4557 = vmatprep.subr.bf16.mxu1 %v15335_v37  ;;  %v747_v37 = vld [vmem:[%s19000_s27 + $0x328] sm:$0xff] }
 0x3b6   : > { %v15074_v23 = vcombine.low %v747_v37, %v753_v18  ;;  %v1029_v9 = vld [vmem:[%s19000_s27 + $0x1aa8] sm:$0xff] }
 0x3b8   : > { %4558 = vmatpush1.bf16.msra.mxu1 %v15334_v21  ;;  %v759_v21 = vld [vmem:[%s19000_s27 + $0x428] sm:$0xff] }
 0x3b9   : > { %4559 = vmatprep.subr.bf16.mxu1 %v15347_v22  ;;  %v765_v22 = vld [vmem:[%s19000_s27 + $0x4a8] sm:$0xff] }
 0x3ba   : > { %v15087_v24 = vcombine.high %v759_v21, %v765_v22 }
 0x3bc   : > { %4560 = vmatpush1.bf16.msra.mxu1 %v15346_v25  ;;  %v777_v25 = vld [vmem:[%s19000_s27 + $0x5a8] sm:$0xff] }
 0x3bd   : > { %4561 = vmatprep.subr.bf16.mxu1 %v15359_v28  ;;  %v15086_v28 = vcombine.low %v759_v21, %v765_v22 }
 0x3c0   : > { %4562 = vmatpush1.bf16.msra.mxu1 %v15358_v31 }
 0x3c1   : > { %4563 = vmatprep.subr.bf16.mxu1 %v15371_v32  ;;  %v15111_v32 = vcombine.high %v783_v29, %v789_v30 }
 0x3c4   : > { %4564 = vmatpush1.bf16.msra.mxu1 %v15370_v34  ;;  %v795_v34 = vld [vmem:[%s19000_s27 + $0x728] sm:$0xff] }
 0x3c5   : > { %4565 = vmatprep.subr.bf16.mxu1 %v15383_v40  ;;  %v15123_v40 = vcombine.high %v795_v34, %v801_v35  ;;  %v15122_v46 = vcombine.low %v795_v34, %v801_v35 }
 0x3c8   : > { %4566 = vmatpush1.bf16.msra.mxu1 %v15382_v42  ;;  %v807_v42 = vld [vmem:[%s19000_s27 + $0x828] sm:$0xff] }
 0x3c9   : > { %4567 = vmatprep.subr.bf16.mxu1 %v15395_v50  ;;  %v825_v50 = vld [vmem:[%s19000_s27 + $0x9a8] sm:$0xff]  ;;  %v15134_v52 = vcombine.low %v807_v42, %v813_v45 }
 0x3cc   : > { %4568 = vmatpush1.bf16.msra.mxu1 %v15394_v49  ;;  %v819_v49 = vld [vmem:[%s19000_s27 + $0x928] sm:$0xff] }
 0x3cd   : > { %4569 = vmatprep.subr.bf16.mxu1 %v15407_v58  ;;  %v15147_v53 = vcombine.high %v819_v49, %v825_v50  ;;  %v15146_v58 = vcombine.low %v819_v49, %v825_v50  ;;  %v975_v49 = vld [vmem:[%s19000_s27 + $0x1628] sm:$0xff] }
 0x3ce   : > { %v981_v50 = vld [vmem:[%s19000_s27 + $0x16a8] sm:$0xff] }
 0x3d0   : > { %4570 = vmatpush1.bf16.msra.mxu1 %v15406_v2  ;;  %v855_v2 = vld [vmem:[%s19000_s27 + $0xc28] sm:$0xff] }
 0x3d1   : > { %4668 = vmatprep.subr.bf16.mxu1 %v15039_v10 }
 0x3d3   : > { %4572 = vmatmul.mubr.bf16.vlgmr.msra.gmra.mrb[4].mxu1 %v19108_v54 }
 0x3d4   : > { %4669 = vmatpush1.bf16.msra.mxu1 %v15038_v13  ;;  %4700 = vmatprep.mubr.bf16.mxu1 %v19040_v55  ;;  %v771_v55 = vld [vmem:[%s19000_s27 + $0x528] sm:$0xff] }
 0x3d5   : > { %4670 = vmatprep.subr.bf16.mxu1 %v15051_v14  ;;  %v15098_v31 = vcombine.low %v771_v55, %v777_v25  ;;  %v879_v13 = vld [vmem:[%s19000_s27 + $0xe28] sm:$0xff] }
 0x3d6   : > { %v885_v14 = vld [vmem:[%s19000_s27 + $0xea8] sm:$0xff] }
 0x3d7   : > { %v15207_v16 = vcombine.high %v879_v13, %v885_v14 }
 0x3d8   : > { %4671 = vmatpush1.bf16.msra.mxu1 %v15050_v17  ;;  %v891_v17 = vld [vmem:[%s19000_s27 + $0xf28] sm:$0xff] }
 0x3d9   : > { %4672 = vmatprep.subr.bf16.mxu1 %v15063_v33  ;;  %v897_v33 = vld [vmem:[%s19000_s27 + $0xfa8] sm:$0xff] }
 0x3da   : > { %v15218_v21 = vcombine.low %v891_v17, %v897_v33 }
 0x3dc   : > { %4673 = vmatpush1.bf16.msra.mxu1 %v15062_v19  ;;  %v903_v19 = vld [vmem:[%s19000_s27 + $0x1028] sm:$0xff] }
 0x3df   : > { %v4487_v56 = vpop.f32.mrb[4].mxu0 }
 0x3e0   : > { %v4489_v59 = vpop.f32.mrb[5].mxu0  ;;  %v16958_v61 = vadd.f32 %v4487_v56, %v2277_v48  ;;  %v831_v56 = vld [vmem:[%s19000_s27 + $0xa28] sm:$0xff] }
 0x3e1   : > { %v4491_v60 = vpop.f32.mrb[6].mxu0  ;;  %v19416_v0 = vadd.f32 %v4489_v59, %v2281_v57 }
 0x3e2   : > { %v16960_v62 = vadd.f32 %v4491_v60, %v2277_v48  ;;  %v4493_v63 = vpop.f32.mrb[7].mxu0  ;;  %v15135_v48 = vcombine.high %v807_v42, %v813_v45  ;;  %v843_v60 = vld [vmem:[%s19000_s27 + $0xb28] sm:$0xff] }
 0x3e3   : > { %v19418_v1 = vadd.f32 %v4493_v63, %v2281_v57  ;;  %v837_v57 = vld [vmem:[%s19000_s27 + $0xaa8] sm:$0xff] }
 0x3e4   : > { %v16870_v3 = vpack.c.bf16 %v16960_v62, %v16958_v61  ;;  %v17268_v4 = vpack.i.bf16 %v16960_v62, %v16958_v61  ;;  %v15159_v59 = vcombine.high %v831_v56, %v837_v57  ;;  %v849_v61 = vld [vmem:[%s19000_s27 + $0xba8] sm:$0xff]  ;;  %v15158_v62 = vcombine.low %v831_v56, %v837_v57 }
 0x3e5   : > { %v17278_v5 = vpack.i.bf16 %v19418_v1, %v19416_v0  ;;  %v19430_v6 = vpack.c.bf16 %v19418_v1, %v19416_v0  ;;  %v15171_v63 = vcombine.high %v843_v60, %v849_v61  ;;  %v963_v45 = vld [vmem:[%s19000_s27 + $0x1528] sm:$0xff]  ;;  %v15302_v56 = vcombine.low %v975_v49, %v981_v50 }
 0x3e6   : > { %17269 = vrot.lane.b32.xlu0 %v17268_v4, %s18607_s26  ;;  %16872 = vmatprep.subr.msk.bf16.mxu0 %vm19422_vm2, %v16870_v3  ;;  %v15170_v4 = vcombine.low %v843_v60, %v849_v61  ;;  %v987_v57 = vld [vmem:[%s19000_s27 + $0x1728] sm:$0xff] }
 0x3e7   : > { %16875 = vmatpush3.bf16.xpose.msk.msra.mxu0 %vm19422_vm2, %v16870_v3  ;;  %v861_v3 = vld [vmem:[%s19000_s27 + $0xca8] sm:$0xff] }
 0x3e8   : > { %v15183_v7 = vcombine.high %v855_v2, %v861_v3  ;;  %v15182_v10 = vcombine.low %v855_v2, %v861_v3  ;;  %v999_v61 = vld [vmem:[%s19000_s27 + $0x1828] sm:$0xff] }
 0x3e9   : > { %v1011_v3 = vld [vmem:[%s19000_s27 + $0x1928] sm:$0xff] }
 0x3ea   : > { %4952 = vrot.lane.b32.xlu0 %v19357_v11, %s18607_s26  ;;  %v15075_v11 = vcombine.high %v747_v37, %v753_v18  ;;  %v15206_v37 = vcombine.low %v879_v13, %v885_v14  ;;  %v15219_v18 = vcombine.high %v891_v17, %v897_v33  ;;  %v1035_v13 = vld [vmem:[%s19000_s27 + $0x1b28] sm:$0xff] }
 0x3eb   : > { %v1041_v14 = vld [vmem:[%s19000_s27 + $0x1ba8] sm:$0xff] }
 0x3ec   : > { %4674 = vmatprep.subr.bf16.mxu1 %v15075_v11  ;;  %v909_v11 = vld [vmem:[%s19000_s27 + $0x10a8] sm:$0xff] }
 0x3ed   : > { %4675 = vmatpush1.bf16.msra.mxu1 %v15074_v23  ;;  %v15231_v22 = vcombine.high %v903_v19, %v909_v11  ;;  %v915_v23 = vld [vmem:[%s19000_s27 + $0x1128] sm:$0xff] }
 0x3ee   : > { %16763 = vmatmul.mubr.msk.f32.vlgmr.msra.gmra.mrb[12].mxu0 %vm4756_vm1, %v19309_v43  ;;  %4676 = vmatprep.subr.bf16.mxu1 %v15087_v24  ;;  %v15099_v43 = vcombine.high %v771_v55, %v777_v25  ;;  %v921_v24 = vld [vmem:[%s19000_s27 + $0x11a8] sm:$0xff]  ;;  %v15230_v55 = vcombine.low %v903_v19, %v909_v11 }
 0x3ef   : > { %v15243_v25 = vcombine.high %v915_v23, %v921_v24  ;;  %v15242_v29 = vcombine.low %v915_v23, %v921_v24  ;;  %v1047_v17 = vld [vmem:[%s19000_s27 + $0x1c28] sm:$0xff] }
 0x3f0   : > { %v1053_v33 = vld [vmem:[%s19000_s27 + $0x1ca8] sm:$0xff] }
 0x3f1   : > { %4677 = vmatpush1.bf16.msra.mxu1 %v15086_v28  ;;  %v927_v28 = vld [vmem:[%s19000_s27 + $0x1228] sm:$0xff] }
 0x3f2   : > { %4678 = vmatprep.subr.bf16.mxu1 %v15099_v43  ;;  %v933_v43 = vld [vmem:[%s19000_s27 + $0x12a8] sm:$0xff] }
 0x3f3   : > { %v15255_v30 = vcombine.high %v927_v28, %v933_v43  ;;  %v15254_v34 = vcombine.low %v927_v28, %v933_v43  ;;  %v1059_v19 = vld [vmem:[%s19000_s27 + $0x1d28] sm:$0xff] }
 0x3f4   : > { %v1065_v11 = vld [vmem:[%s19000_s27 + $0x1da8] sm:$0xff] }
 0x3f5   : > { %4679 = vmatpush1.bf16.msra.mxu1 %v15098_v31  ;;  %v939_v31 = vld [vmem:[%s19000_s27 + $0x1328] sm:$0xff]  ;;  %v15387_v23 = vcombine.high %v1059_v19, %v1065_v11 }
 0x3f6   : > { %4680 = vmatprep.subr.bf16.mxu1 %v15111_v32  ;;  %v945_v32 = vld [vmem:[%s19000_s27 + $0x13a8] sm:$0xff] }
 0x3f7   : > { %v15267_v35 = vcombine.high %v939_v31, %v945_v32  ;;  %v1071_v28 = vld [vmem:[%s19000_s27 + $0x1e28] sm:$0xff] }
 0x3f8   : > { %v1077_v43 = vld [vmem:[%s19000_s27 + $0x1ea8] sm:$0xff] }
 0x3f9   : > { %4681 = vmatpush1.bf16.msra.mxu1 %v15110_v36  ;;  %v951_v36 = vld [vmem:[%s19000_s27 + $0x1428] sm:$0xff] }
 0x3fa   : > { %4682 = vmatprep.subr.bf16.mxu1 %v15123_v40  ;;  %v957_v40 = vld [vmem:[%s19000_s27 + $0x14a8] sm:$0xff] }
 0x3fb   : > { %v15279_v42 = vcombine.high %v951_v36, %v957_v40 }
 0x3fd   : > { %4683 = vmatpush1.bf16.msra.mxu1 %v15122_v46  ;;  %v15278_v46 = vcombine.low %v951_v36, %v957_v40  ;;  %v1083_v40 = vld [vmem:[%s19000_s27 + $0x1f28] sm:$0xff] }
 0x3fe   : > { %4684 = vmatprep.subr.bf16.mxu1 %v15135_v48 }
 0x401   : > { %4685 = vmatpush1.bf16.msra.mxu1 %v15134_v52 }
 0x402   : > { %4686 = vmatprep.subr.bf16.mxu1 %v15147_v53  ;;  %v15303_v53 = vcombine.high %v975_v49, %v981_v50 }
 0x405   : > { %4687 = vmatpush1.bf16.msra.mxu1 %v15146_v58  ;;  %v993_v58 = vld [vmem:[%s19000_s27 + $0x17a8] sm:$0xff] }
 0x406   : > { %4688 = vmatprep.subr.bf16.mxu1 %v15159_v59  ;;  %v15315_v59 = vcombine.high %v987_v57, %v993_v58  ;;  %v15314_v60 = vcombine.low %v987_v57, %v993_v58  ;;  %v4955_v58 = vpop.permute.xlu1 %4954 }
 0x409   : > { %4689 = vmatpush1.bf16.msra.mxu1 %v15158_v62  ;;  %v1005_v62 = vld [vmem:[%s19000_s27 + $0x18a8] sm:$0xff] }
 0x40a   : > { %4690 = vmatprep.subr.bf16.mxu1 %v15171_v63  ;;  %v15327_v63 = vcombine.high %v999_v61, %v1005_v62  ;;  %v15326_v2 = vcombine.low %v999_v61, %v1005_v62 }
 0x40d   : > { %4691 = vmatpush1.bf16.msra.mxu1 %v15170_v4  ;;  %v1017_v4 = vld [vmem:[%s19000_s27 + $0x19a8] sm:$0xff] }
 0x40e   : > { %4692 = vmatprep.subr.bf16.mxu1 %v15183_v7  ;;  %v15339_v7 = vcombine.high %v1011_v3, %v1017_v4 }
 0x411   : > { %4693 = vmatpush1.bf16.msra.mxu1 %v15182_v10  ;;  %v15338_v10 = vcombine.low %v1011_v3, %v1017_v4 }
 0x412   : > { %4694 = vmatprep.subr.bf16.mxu1 %v15195_v12  ;;  %v15351_v12 = vcombine.high %v1023_v8, %v1029_v9 }
 0x415   : > { %4695 = vmatpush1.bf16.msra.mxu1 %v15194_v15  ;;  %v15350_v15 = vcombine.low %v1023_v8, %v1029_v9 }
 0x416   : > { %4696 = vmatprep.subr.bf16.mxu1 %v15207_v16  ;;  %v15363_v16 = vcombine.high %v1035_v13, %v1041_v14 }
 0x419   : > { %4697 = vmatpush1.bf16.msra.mxu1 %v15206_v37  ;;  %v15362_v37 = vcombine.low %v1035_v13, %v1041_v14 }
 0x41a   : > { %4698 = vmatprep.subr.bf16.mxu1 %v15219_v18  ;;  %v15375_v18 = vcombine.high %v1047_v17, %v1053_v33 }
 0x41d   : > { %4699 = vmatpush1.bf16.msra.mxu1 %v15218_v21  ;;  %v15374_v21 = vcombine.low %v1047_v17, %v1053_v33 }
 0x41e   : > { %4711 = vmatprep.subr.bf16.mxu1 %v15231_v22 }
 0x420   : > { %4701 = vmatmul.mubr.bf16.vlgmr.msra.gmra.mrb[8].mxu1 %v19070_v47  ;;  %v15266_v47 = vcombine.low %v939_v31, %v945_v32  ;;  %v15386_v31 = vcombine.low %v1059_v19, %v1065_v11 }
 0x421   : > { %4712 = vmatpush1.bf16.msra.mxu1 %v15230_v55  ;;  %4743 = vmatprep.mubr.bf16.mxu1 %v19074_v51  ;;  %v969_v51 = vld [vmem:[%s19000_s27 + $0x15a8] sm:$0xff] }
 0x422   : > { %4713 = vmatprep.subr.bf16.mxu1 %v15243_v25  ;;  %v15291_v48 = vcombine.high %v963_v45, %v969_v51  ;;  %v15290_v52 = vcombine.low %v963_v45, %v969_v51  ;;  %v19506_v25 = vld [vmem:[%s19008_s8 + $0x8] sm:$0xf]  ;;  %v15398_v45 = vcombine.low %v1071_v28, %v1077_v43 }
 0x425   : > { %4714 = vmatpush1.bf16.msra.mxu1 %v15242_v29  ;;  %v19511_v29 = vsub.s32 1, %v19284_v20 }
 0x426   : > { %4715 = vmatprep.subr.bf16.mxu1 %v15255_v30 }
 0x427   : > { %v2297_v36 = vrot.slane %v19506_v25, %v19511_v29 }
 0x429   : > { %4716 = vmatpush1.bf16.msra.mxu1 %v15254_v34  ;;  %v2293_v34 = vrot.slane %v19506_v25, %v19289_v26 }
 0x42a   : > { %4717 = vmatprep.subr.bf16.mxu1 %v15267_v35  ;;  %v15399_v35 = vcombine.high %v1071_v28, %v1077_v43 }
 0x42d   : > { %4718 = vmatpush1.bf16.msra.mxu1 %v15266_v47  ;;  %v1089_v47 = vld [vmem:[%s19000_s27 + $0x1fa8] sm:$0xff] }
 0x42e   : > { %4719 = vmatprep.subr.bf16.mxu1 %v15279_v42  ;;  %v15410_v57 = vcombine.low %v1083_v40, %v1089_v47 }
 0x431   : > { %4720 = vmatpush1.bf16.msra.mxu1 %v15278_v46 }
 0x432   : > { %4721 = vmatprep.subr.bf16.mxu1 %v15291_v48  ;;  %v15411_v48 = vcombine.high %v1083_v40, %v1089_v47 }
 0x435   : > { %4722 = vmatpush1.bf16.msra.mxu1 %v15290_v52 }
 0x436   : > { %4723 = vmatprep.subr.bf16.mxu1 %v15303_v53 }
 0x439   : > { %4724 = vmatpush1.bf16.msra.mxu1 %v15302_v56 }
 0x43a   : > { %4725 = vmatprep.subr.bf16.mxu1 %v15315_v59 }
 0x43d   : > { %4726 = vmatpush1.bf16.msra.mxu1 %v15314_v60 }
 0x43e   : > { %4727 = vmatprep.subr.bf16.mxu1 %v15327_v63 }
 0x441   : > { %4728 = vmatpush1.bf16.msra.mxu1 %v15326_v2  ;;  %v19542_v2 = vld [vmem:[#allocation3 + $0x8] sm:$0xff] }
 0x442   : > { %4729 = vmatprep.subr.bf16.mxu1 %v15339_v7  ;;  %v19544_v7 = vld [vmem:[#allocation3] sm:$0xff] }
 0x445   : > { %4730 = vmatpush1.bf16.msra.mxu1 %v15338_v10 }
 0x446   : > { %4731 = vmatprep.subr.bf16.mxu1 %v15351_v12 }
 0x449   : > { %4732 = vmatpush1.bf16.msra.mxu1 %v15350_v15 }
 0x44a   : > { %4733 = vmatprep.subr.bf16.mxu1 %v15363_v16 }
 0x44d   : > { %4734 = vmatpush1.bf16.msra.mxu1 %v15362_v37 }
 0x44e   : > { %4735 = vmatprep.subr.bf16.mxu1 %v15375_v18 }
 0x451   : > { %4736 = vmatpush1.bf16.msra.mxu1 %v15374_v21 }
 0x452   : > { %4737 = vmatprep.subr.bf16.mxu1 %v15387_v23 }
 0x455   : > { %4738 = vmatpush1.bf16.msra.mxu1 %v15386_v31  ;;  %v19556_v31 = vpop.f32.mrb[0].mxu1 }
 0x456   : > { %4739 = vmatprep.subr.bf16.mxu1 %v15399_v35 }
 0x458   : > { %v17270_v22 = vpop.permute.xlu0 %17269 }
 0x459   : > { %v17272_v24 = vunpack.i.h.bf16 %v17270_v22  ;;  %v17271_v55 = vunpack.i.l.bf16 %v17270_v22  ;;  %4740 = vmatpush1.bf16.msra.mxu1 %v15398_v45 }
 0x45a   : > { %4741 = vmatprep.subr.bf16.mxu1 %v15411_v48 }
 0x45b   : > { %v16880_v30 = vpack.c.bf16 %v17272_v24, %v17271_v55 }
 0x45c   : > { %v4953_v32 = vpop.permute.xlu0 %4952 }
 0x45d   : > { %16882 = vmatprep.subr.msk.bf16.mxu0 %vm19422_vm2, %v16880_v30  ;;  %16776 = vmatprep.mubr.msk.f32.mxu0 %vm4756_vm1, %v4953_v32  ;;  %v19558_v32 = vpop.f32.mrb[1].mxu1 }
 0x45e   : > { %16885 = vmatpush3.bf16.xpose.msk.msra.mxu0 %vm19422_vm2, %v16880_v30  ;;  %4742 = vmatpush1.bf16.msra.mxu1 %v15410_v57 }
 0x45f   : > { %v4659_v42 = vpop.f32.mrb[8].mxu0 }
 0x460   : > { %v19524_v51 = vadd.f32 %v4659_v42, %v2293_v34  ;;  %v4661_v46 = vpop.f32.mrb[9].mxu0 }
 0x461   : > { %v19526_v49 = vadd.f32 %v4661_v46, %v2297_v36  ;;  %v4663_v50 = vpop.f32.mrb[10].mxu0  ;;  %4744 = vmatmul.mubr.bf16.vlgmr.msra.gmra.mrb[8].mxu1 %v19108_v54 }
 0x462   : > { %v19528_v52 = vadd.f32 %v4663_v50, %v2293_v34  ;;  %v4665_v53 = vpop.f32.mrb[11].mxu0  ;;  %v19560_v34 = vpop.f32.mrb[2].mxu1 }
 0x463   : > { %v19530_v56 = vadd.f32 %v4665_v53, %v2297_v36  ;;  %v19562_v35 = vpop.f32.mrb[3].mxu1 }
 0x464   : > { %v17273_v59 = vpack.i.bf16 %v19528_v52, %v19524_v51  ;;  %v16876_v60 = vpack.c.bf16 %v19528_v52, %v19524_v51 }
 0x465   : > { %16777 = vmatmul.mubr.msk.f32.vlgmr.msra.gmra.mrb[14].mxu0 %vm4756_vm1, %v4955_v58  ;;  %v17283_v61 = vpack.i.bf16 %v19530_v56, %v19526_v49  ;;  %v16896_v62 = vpack.c.bf16 %v19530_v56, %v19526_v49  ;;  %v19573_v58 = vld [vmem:[%s19008_s8] sm:$0xff] }
 0x466   : > { %16877 = vmatprep.subr.bf16.mxu1 %v16876_v60 }
 0x467   : > { %16897 = vmatprep.subr.bf16.mxu0 %v16896_v62  ;;  %16879 = vmatpush3.bf16.msra.mxu1 %v16876_v60  ;;  %v2265_v60 = vrot.slane %v19573_v58, %v19511_v29 }
 0x468   : > { %16899 = vmatpush3.bf16.msra.mxu0 %v16896_v62 }
 0x4c1   : > { %v16764_v63 = vpop.f32.mrb[12].mxu0 }
 0x4c2   : > { %v4845_v3 = vmul.f32 0.125, %v16764_v63  ;;  %v4835_v4 = vpop.f32.mrb[13].mxu0 }
 0x4c3   : > { %v4844_v8 = vmul.f32 0.125, %v4835_v4  ;;  %v16953_v4 = vadd.f32 %v19311_v44, %v2265_v60 }
 0x4c4   : > { %v4847_v9 = vadd.f32 %v4845_v3, %v19542_v2  ;;  %v16951_v3 = vadd.f32 %v19304_v38, %v2265_v60 }
 0x4c5   : > { %v4846_v10 = vadd.f32 %v4844_v8, %v19544_v7  ;;  %v19585_v8 = vsub.s32 6, %v19284_v20 }
 0x4c6   : > { %v4852_v12 = vsel %vm4848_vm3, %v4847_v9, -inf }
 0x4c7   : > { %4853 = vmax.xlane.f32.xlu0 %v4852_v12  ;;  %v4849_v13 = vsel %vm4848_vm3, %v4846_v10, -inf  ;;  %v2285_v51 = vrot.slane %v19573_v58, %v19585_v8 }
 0x4c8   : > { %4850 = vmax.xlane.f32.xlu1 %v4849_v13 }
 0x538   : > { %v16778_v54 = vpop.f32.mrb[14].mxu0 }
 0x539   : > { %v5044_v14 = vmul.f32 0.125, %v16778_v54  ;;  %v5034_v15 = vpop.f32.mrb[15].mxu0 }
 0x53a   : > { %v5043_v16 = vmul.f32 0.125, %v5034_v15 }
 0x53b   : > { %v5046_v17 = vadd.f32 %v5044_v14, %v19542_v2 }
 0x53c   : > { %v5045_v33 = vadd.f32 %v5043_v16, %v19544_v7 }
 0x53d   : > { %v5050_v37 = vsel %vm4848_vm3, %v5046_v17, -inf }
 0x53e   : > { %5051 = vmax.xlane.f32.xlu1 %v5050_v37  ;;  %v5047_v18 = vsel %vm4848_vm3, %v5045_v33, -inf }
 0x53f   : > { %5048 = vmax.xlane.f32.xlu0 %v5047_v18 }
 0x554   : > { %v4854_v19 = vpop.xlane.xlu0 %4853 }
 0x555   : > { %v4856_v11 = vsub.f32 %v4847_v9, %v4854_v19  ;;  %v4851_v21 = vpop.xlane.xlu1 %4850  ;;  %v4573_v9 = vpop.f32.mrb[4].mxu1 }
 0x556   : > { %v4855_v22 = vsub.f32 %v4846_v10, %v4851_v21  ;;  %v19588_v10 = vsub.s32 7, %v19284_v20  ;;  %v4575_v12 = vpop.f32.mrb[5].mxu1  ;;  %v19595_v44 = vadd.f32 %v4573_v9, %v2285_v51  ;;  %v19617_v21 = vsub.s32 2, %v19284_v20 }
 0x557   : > { %v4859_v23 = vmul.f32 1.442695, %v4856_v11 }
 0x558   : > { %v4857_v24 = vmul.f32 1.442695, %v4855_v22  ;;  %v2289_v38 = vrot.slane %v19573_v58, %v19588_v10  ;;  %v19620_v22 = vsub.s32 3, %v19284_v20 }
 0x559   : > { %18096 = vpow2.f32 %v4859_v23  ;;  %v2301_v23 = vrot.slane %v19506_v25, %v19617_v21 }
 0x55a   : > { %18098 = vpow2.f32 %v4857_v24  ;;  %v19597_v54 = vadd.f32 %v4575_v12, %v2289_v38 }
 0x563   : > { %v18097_v55 = vpop.eup %18096 }
 0x564   : > { %v18099_v28 = vpop.eup %18098  ;;  %v4864_v43 = vsel %vm4848_vm3, %v18097_v55, 0.0 }
 0x565   : > { %4865 = vadd.xlane.f32.xlu1 %v4864_v43  ;;  %v4861_v30 = vsel %vm4848_vm3, %v18099_v28, 0.0 }
 0x566   : > { %4862 = vadd.xlane.f32.xlu0 %v4861_v30 }
 0x5cb   : > { %v5052_v36 = vpop.xlane.xlu1 %5051 }
 0x5cc   : > { %v5054_v40 = vsub.f32 %v5046_v17, %v5052_v36  ;;  %v5049_v47 = vpop.xlane.xlu0 %5048 }
 0x5cd   : > { %v5053_v42 = vsub.f32 %v5045_v33, %v5049_v47 }
 0x5ce   : > { %v5057_v45 = vmul.f32 1.442695, %v5054_v40 }
 0x5cf   : > { %v5055_v46 = vmul.f32 1.442695, %v5053_v42 }
 0x5d0   : > { %18100 = vpow2.f32 %v5057_v45 }
 0x5d1   : > { %18102 = vpow2.f32 %v5055_v46 }
 0x5da   : > { %v19564_v48 = vpop.eup %18100 }
 0x5db   : > { %v19566_v50 = vpop.eup %18102  ;;  %v5062_v53 = vsel %vm4848_vm3, %v19564_v48, 0.0 }
 0x5dc   : > { %5063 = vadd.xlane.f32.xlu1 %v5062_v53  ;;  %v5059_v57 = vsel %vm4848_vm3, %v19566_v50, 0.0 }
 0x5dd   : > { %5060 = vadd.xlane.f32.xlu0 %v5059_v57 }
 0x5f2   : > { %v4866_v62 = vpop.xlane.xlu1 %4865 }
 0x5f3   : > { %18104 = vrcp.f32 %v4866_v62  ;;  %17274 = vrot.lane.b32.xlu0 %v17273_v59, %s18607_s26  ;;  %v4863_v63 = vpop.xlane.xlu0 %4862  ;;  %v4577_v59 = vpop.f32.mrb[6].mxu1 }
 0x5f4   : > { %18106 = vrcp.f32 %v4863_v63  ;;  %v19599_v14 = vadd.f32 %v4577_v59, %v2285_v51  ;;  %v4579_v15 = vpop.f32.mrb[7].mxu1 }
 0x5f5   : > { %v19601_v17 = vadd.f32 %v4579_v15, %v2289_v38  ;;  %v4745_v24 = vpop.f32.mrb[8].mxu1 }
 0x5f6   : > { %v17288_v37 = vpack.i.bf16 %v19599_v14, %v19595_v44  ;;  %v19607_v18 = vpack.c.bf16 %v19599_v14, %v19595_v44  ;;  %v19627_v43 = vadd.f32 %v4745_v24, %v2301_v23 }
 0x5f7   : > { %5352 = vrot.lane.b32.xlu0 %v16951_v3, %s18607_s26  ;;  %v17298_v19 = vpack.i.bf16 %v19601_v17, %v19597_v54  ;;  %v19614_v11 = vpack.c.bf16 %v19601_v17, %v19597_v54 }
 0x5fb   : > { %5354 = vrot.lane.b32.xlu0 %v16953_v4, %s18607_s26 }
 0x5fd   : > { %v18105_v52 = vpop.eup %18104 }
 0x5fe   : > { %v18107_v13 = vpop.eup %18106  ;;  %v4870_v33 = vmul.f32 %v18105_v52, %v18097_v55  ;;  %v2305_v55 = vrot.slane %v19506_v25, %v19620_v22 }
 0x5ff   : > { %v4868_v16 = vmul.f32 %v18107_v13, %v18099_v28  ;;  %v4747_v28 = vpop.f32.mrb[9].mxu1 }
 0x600   : > { %v19629_v30 = vadd.f32 %v4747_v28, %v2305_v55  ;;  %v4749_v36 = vpop.f32.mrb[10].mxu1 }
 0x601   : > { %16769 = vmatprep.mubr.msk.f32.mxu1 %vm4848_vm3, %v4868_v16  ;;  %v19631_v40 = vadd.f32 %v4749_v36, %v2301_v23  ;;  %v4751_v47 = vpop.f32.mrb[11].mxu1 }
 0x602   : > { %16770 = vmatmul.mubr.msk.f32.vlgmr.msra.gmra.mrb[12].mxu1 %vm4848_vm3, %v4870_v33  ;;  %v19633_v20 = vadd.f32 %v4751_v47, %v2305_v55 }
 0x603   : > { %v17293_v42 = vpack.i.bf16 %v19631_v40, %v19627_v43  ;;  %v19639_v45 = vpack.c.bf16 %v19631_v40, %v19627_v43 }
 0x604   : > { %v17303_v25 = vpack.i.bf16 %v19633_v20, %v19629_v30  ;;  %v19645_v46 = vpack.c.bf16 %v19633_v20, %v19629_v30  ;;  %v1094_v30 = vld [vmem:[%s19000_s27 + $0x130] sm:$0xff] }
 0x605   : > { %v1096_v20 = vld [vmem:[%s19000_s27 + $0x1b0] sm:$0xff] }
 0x669   : > { %v5064_v53 = vpop.xlane.xlu1 %5063 }
 0x66a   : > { %18108 = vrcp.f32 %v5064_v53  ;;  %v5061_v57 = vpop.xlane.xlu0 %5060 }
 0x66b   : > { %18110 = vrcp.f32 %v5061_v57 }
 0x66e   : > { %v17275_v60 = vpop.permute.xlu0 %17274 }
 0x66f   : > { %v17277_v62 = vunpack.i.h.bf16 %v17275_v60  ;;  %v17276_v63 = vunpack.i.l.bf16 %v17275_v60 }
 0x671   : > { %v16886_v9 = vpack.c.bf16 %v17277_v62, %v17276_v63 }
 0x673   : > { %16887 = vmatprep.subr.bf16.mxu1 %v16886_v9 }
 0x674   : > { %v18109_v12 = vpop.eup %18108  ;;  %16889 = vmatpush3.bf16.msra.mxu1 %v16886_v9 }
 0x675   : > { %v18111_v51 = vpop.eup %18110  ;;  %16892 = vmatprep.subr.msk.bf16.mxu1 %vm19422_vm2, %v19430_v6  ;;  %v5068_v52 = vmul.f32 %v18109_v12, %v19564_v48 }
 0x676   : > { %v5066_v38 = vmul.f32 %v18111_v51, %v19566_v50 }
 0x678   : > { %16783 = vmatprep.mubr.msk.f32.mxu1 %vm4848_vm3, %v5066_v38 }
 0x679   : > { %16784 = vmatmul.mubr.msk.f32.vlgmr.msra.gmra.mrb[14].mxu1 %vm4848_vm3, %v5068_v52 }
 0x67a   : > { %16790 = vmatprep.mubr.msk.f32.mxu1 %vm4756_vm1, %v16951_v3 }
 0x67d   : > { %16895 = vmatpush3.bf16.xpose.msk.msra.mxu1 %vm19422_vm2, %v19430_v6 }
 0x684   : > { %16791 = vmatmul.mubr.msk.f32.vlgmr.msra.gmra.mrb[16].mxu1 %vm4756_vm1, %v16953_v4 }
 0x6d5   : > { %v19659_v59 = vpop.f32.mrb[12].mxu1 }
 0x6d6   : > { %v19661_v13 = vpop.f32.mrb[13].mxu1 }
 0x74c   : > { %v19663_v15 = vpop.f32.mrb[14].mxu1 }
 0x74d   : > { %v19665_v50 = vpop.f32.mrb[15].mxu1 }
 0x74e   : > { %v17313_v48 = vpack.i.bf16 %v19663_v15, %v19665_v50 }
 0x757   : > { %v16792_v16 = vpop.f32.mrb[16].mxu1 }
 0x758   : > { %v5236_v33 = vpop.f32.mrb[17].mxu1  ;;  %v5246_v3 = vmul.f32 0.125, %v16792_v16 }
 0x759   : > { %v5245_v23 = vmul.f32 0.125, %v5236_v33 }
 0x75a   : > { %v5248_v4 = vadd.f32 %v5246_v3, %v19542_v2 }
 0x75b   : > { %v5247_v24 = vadd.f32 %v5245_v23, %v19544_v7 }
 0x75c   : > { %v5252_v55 = vsel %vm4848_vm3, %v5248_v4, -inf }
 0x75d   : > { %v5249_v6 = vsel %vm4848_vm3, %v5247_v24, -inf }
 0x75e   : > { %5250 = vmax.xlane.f32.xlu1 %v5249_v6 }
 0x762   : > { %5253 = vmax.xlane.f32.xlu1 %v5252_v55  ;;  %v5353_v55 = vpop.permute.xlu0 %5352 }
 0x766   : > { %v5355_v0 = vpop.permute.xlu0 %5354 }
 0x7eb   : > { %v5251_v28 = vpop.xlane.xlu1 %5250 }
 0x7ec   : > { %v5255_v36 = vsub.f32 %v5247_v24, %v5251_v28 }
 0x7ee   : > { %v5257_v57 = vmul.f32 1.442695, %v5255_v36 }
 0x7ef   : > { %v5254_v47 = vpop.xlane.xlu1 %5253 }
 0x7f0   : > { %v5256_v53 = vsub.f32 %v5248_v4, %v5254_v47 }
 0x7f2   : > { %v5259_v60 = vmul.f32 1.442695, %v5256_v53 }
 0x7f4   : > { %18112 = vpow2.f32 %v5259_v60 }
 0x7f5   : > { %18114 = vpow2.f32 %v5257_v57 }
 0x7fe   : > { %v18113_v62 = vpop.eup %18112 }
 0x7ff   : > { %v5264_v63 = vsel %vm4848_vm3, %v18113_v62, 0.0  ;;  %v18115_v9 = vpop.eup %18114 }
 0x800   : > { %5265 = vadd.xlane.f32.xlu1 %v5264_v63  ;;  %v5261_v12 = vsel %vm4848_vm3, %v18115_v9, 0.0 }
 0x804   : > { %5262 = vadd.xlane.f32.xlu1 %v5261_v12 }
 0x815   : > { %17279 = vrot.lane.b32.xlu1 %v17278_v5, %s18607_s26 }
 0x88d   : > { %v5266_v51 = vpop.xlane.xlu1 %5265 }
 0x88e   : > { %18116 = vrcp.f32 %v5266_v51 }
 0x891   : > { %v5263_v38 = vpop.xlane.xlu1 %5262 }
 0x892   : > { %18118 = vrcp.f32 %v5263_v38 }
 0x895   : > { %v17280_v52 = vpop.permute.xlu1 %17279 }
 0x896   : > { %v17282_v16 = vunpack.i.h.bf16 %v17280_v52  ;;  %v17281_v33 = vunpack.i.l.bf16 %v17280_v52 }
 0x898   : > { %v16900_v3 = vpack.c.bf16 %v17282_v16, %v17281_v33  ;;  %v18117_v23 = vpop.eup %18116 }
 0x899   : > { %v5270_v4 = vmul.f32 %v18117_v23, %v18113_v62 }
 0x89a   : > { %16902 = vmatprep.subr.msk.bf16.mxu0 %vm19422_vm2, %v16900_v3 }
 0x89c   : > { %v18119_v24 = vpop.eup %18118 }
 0x89d   : > { %v5268_v6 = vmul.f32 %v18119_v24, %v18115_v9  ;;  %v2269_v24 = vrot.slane %v19573_v58, %v19617_v21 }
 0x89f   : > { %16797 = vmatprep.mubr.msk.f32.mxu0 %vm4848_vm3, %v5268_v6  ;;  %v16954_v6 = vadd.f32 %v19556_v31, %v2269_v24 }
 0x8a0   : > { %16798 = vmatmul.mubr.msk.f32.vlgmr.msra.gmra.mrb[16].mxu0 %vm4848_vm3, %v5270_v4  ;;  %v16956_v4 = vadd.f32 %v19560_v34, %v2269_v24 }
 0x8a1   : > { %16905 = vmatpush3.bf16.xpose.msk.msra.mxu0 %vm19422_vm2, %v16900_v3  ;;  %16804 = vmatprep.mubr.msk.f32.mxu0 %vm4756_vm1, %v5353_v55 }
 0x8a2   : > { %16917 = vmatprep.subr.bf16.mxu0 %v19639_v45 }
 0x8a8   : > { %16805 = vmatmul.mubr.msk.f32.vlgmr.msra.gmra.mrb[18].mxu0 %vm4756_vm1, %v5355_v0 }
 0x8a9   : > { %16919 = vmatpush3.bf16.msra.mxu0 %v19639_v45 }
 0x973   : > { %v19689_v1 = vpop.f32.mrb[16].mxu0 }
 0x974   : > { %v19691_v5 = vpop.f32.mrb[17].mxu0 }
 0x97b   : > { %v16806_v28 = vpop.f32.mrb[18].mxu0 }
 0x97c   : > { %v5444_v36 = vmul.f32 0.125, %v16806_v28  ;;  %v5434_v47 = vpop.f32.mrb[19].mxu0 }
 0x97d   : > { %v5443_v53 = vmul.f32 0.125, %v5434_v47 }
 0x97e   : > { %v5446_v57 = vadd.f32 %v5444_v36, %v19542_v2 }
 0x97f   : > { %v5445_v60 = vadd.f32 %v5443_v53, %v19544_v7 }
 0x980   : > { %v5450_v62 = vsel %vm4848_vm3, %v5446_v57, -inf }
 0x981   : > { %5451 = vmax.xlane.f32.xlu1 %v5450_v62  ;;  %v5447_v63 = vsel %vm4848_vm3, %v5445_v60, -inf }
 0x982   : > { %5448 = vmax.xlane.f32.xlu0 %v5447_v63 }
 0xa0e   : > { %v5452_v9 = vpop.xlane.xlu1 %5451 }
 0xa0f   : > { %v5454_v45 = vsub.f32 %v5446_v57, %v5452_v9  ;;  %v5449_v12 = vpop.xlane.xlu0 %5448 }
 0xa10   : > { %v5453_v51 = vsub.f32 %v5445_v60, %v5449_v12 }
 0xa11   : > { %v5457_v38 = vmul.f32 1.442695, %v5454_v45 }
 0xa12   : > { %v5455_v52 = vmul.f32 1.442695, %v5453_v51 }
 0xa13   : > { %18120 = vpow2.f32 %v5457_v38 }
 0xa14   : > { %18122 = vpow2.f32 %v5455_v52 }
 0xa1d   : > { %v18121_v16 = vpop.eup %18120 }
 0xa1e   : > { %v5462_v33 = vsel %vm4848_vm3, %v18121_v16, 0.0  ;;  %v18123_v3 = vpop.eup %18122 }
 0xa1f   : > { %5463 = vadd.xlane.f32.xlu0 %v5462_v33  ;;  %v5459_v23 = vsel %vm4848_vm3, %v18123_v3, 0.0 }
 0xa23   : > { %5460 = vadd.xlane.f32.xlu0 %v5459_v23 }
 0xa39   : > { %17284 = vrot.lane.b32.xlu0 %v17283_v61, %s18607_s26 }
 0xa3d   : > { %5752 = vrot.lane.b32.xlu0 %v16954_v6, %s18607_s26 }
 0xa41   : > { %5754 = vrot.lane.b32.xlu0 %v16956_v4, %s18607_s26 }
 0xaac   : > { %v5464_v55 = vpop.xlane.xlu0 %5463 }
 0xaad   : > { %18124 = vrcp.f32 %v5464_v55 }
 0xab0   : > { %v5461_v0 = vpop.xlane.xlu0 %5460 }
 0xab1   : > { %18126 = vrcp.f32 %v5461_v0 }
 0xab4   : > { %v17285_v28 = vpop.permute.xlu0 %17284 }
 0xab5   : > { %v17287_v36 = vunpack.i.h.bf16 %v17285_v28  ;;  %v17286_v47 = vunpack.i.l.bf16 %v17285_v28 }
 0xab7   : > { %v16906_v53 = vpack.c.bf16 %v17287_v36, %v17286_v47  ;;  %v18125_v57 = vpop.eup %18124 }
 0xab8   : > { %v5468_v61 = vmul.f32 %v18125_v57, %v18121_v16 }
 0xab9   : > { %16907 = vmatprep.subr.bf16.mxu1 %v16906_v53 }
 0xaba   : > { %16909 = vmatpush3.bf16.msra.mxu1 %v16906_v53 }
 0xabb   : > { %v18127_v49 = vpop.eup %18126  ;;  %16912 = vmatprep.subr.msk.bf16.mxu1 %vm19422_vm2, %v19607_v18 }
 0xabc   : > { %v5466_v56 = vmul.f32 %v18127_v49, %v18123_v3 }
 0xabe   : > { %16811 = vmatprep.mubr.msk.f32.mxu1 %vm4848_vm3, %v5466_v56 }
 0xabf   : > { %16812 = vmatmul.mubr.msk.f32.vlgmr.msra.gmra.mrb[18].mxu1 %vm4848_vm3, %v5468_v61 }
 0xac0   : > { %16818 = vmatprep.mubr.msk.f32.mxu1 %vm4756_vm1, %v16954_v6 }
 0xac3   : > { %16915 = vmatpush3.bf16.xpose.msk.msra.mxu1 %vm19422_vm2, %v19607_v18 }
 0xaca   : > { %16819 = vmatmul.mubr.msk.f32.vlgmr.msra.gmra.mrb[20].mxu1 %vm4756_vm1, %v16956_v4 }
 0xb92   : > { %v19719_v31 = vpop.f32.mrb[18].mxu1 }
 0xb93   : > { %v19721_v34 = vpop.f32.mrb[19].mxu1 }
 0xb94   : > { %v17308_v60 = vpack.i.bf16 %v19719_v31, %v19721_v34 }
 0xb9d   : > { %v16820_v62 = vpop.f32.mrb[20].mxu1 }
 0xb9e   : > { %v5636_v63 = vpop.f32.mrb[21].mxu1  ;;  %v5646_v9 = vmul.f32 0.125, %v16820_v62 }
 0xb9f   : > { %v5645_v45 = vmul.f32 0.125, %v5636_v63 }
 0xba0   : > { %v5648_v38 = vadd.f32 %v5646_v9, %v19542_v2  ;;  %v5753_v9 = vpop.permute.xlu0 %5752 }
 0xba1   : > { %v5647_v12 = vadd.f32 %v5645_v45, %v19544_v7 }
 0xba2   : > { %v5652_v18 = vsel %vm4848_vm3, %v5648_v38, -inf }
 0xba3   : > { %v5649_v51 = vsel %vm4848_vm3, %v5647_v12, -inf }
 0xba4   : > { %5650 = vmax.xlane.f32.xlu1 %v5649_v51  ;;  %v5755_v44 = vpop.permute.xlu0 %5754 }
 0xba8   : > { %5653 = vmax.xlane.f32.xlu1 %v5652_v18 }
 0xc31   : > { %v5651_v52 = vpop.xlane.xlu1 %5650 }
 0xc32   : > { %v5655_v16 = vsub.f32 %v5647_v12, %v5651_v52 }
 0xc34   : > { %v5657_v23 = vmul.f32 1.442695, %v5655_v16 }
 0xc35   : > { %v5654_v33 = vpop.xlane.xlu1 %5653 }
 0xc36   : > { %v5656_v3 = vsub.f32 %v5648_v38, %v5654_v33 }
 0xc38   : > { %v5659_v24 = vmul.f32 1.442695, %v5656_v3 }
 0xc3a   : > { %18128 = vpow2.f32 %v5659_v24 }
 0xc3b   : > { %18130 = vpow2.f32 %v5657_v23 }
 0xc44   : > { %v18129_v6 = vpop.eup %18128 }
 0xc45   : > { %v5664_v4 = vsel %vm4848_vm3, %v18129_v6, 0.0  ;;  %v18131_v55 = vpop.eup %18130 }
 0xc46   : > { %5665 = vadd.xlane.f32.xlu1 %v5664_v4  ;;  %v5661_v0 = vsel %vm4848_vm3, %v18131_v55, 0.0 }
 0xc4a   : > { %5662 = vadd.xlane.f32.xlu1 %v5661_v0 }
 0xc5b   : > { %17289 = vrot.lane.b32.xlu1 %v17288_v37, %s18607_s26 }
 0xcd3   : > { %v5666_v28 = vpop.xlane.xlu1 %5665 }
 0xcd4   : > { %18132 = vrcp.f32 %v5666_v28 }
 0xcd7   : > { %v5663_v36 = vpop.xlane.xlu1 %5662 }
 0xcd8   : > { %18134 = vrcp.f32 %v5663_v36 }
 0xcdb   : > { %v17290_v47 = vpop.permute.xlu1 %17289 }
 0xcdc   : > { %v17292_v53 = vunpack.i.h.bf16 %v17290_v47  ;;  %v17291_v57 = vunpack.i.l.bf16 %v17290_v47  ;;  %v2273_v47 = vrot.slane %v19573_v58, %v19620_v22 }
 0xcde   : > { %v16920_v49 = vpack.c.bf16 %v17292_v53, %v17291_v57  ;;  %v18133_v56 = vpop.eup %18132  ;;  %v16955_v53 = vadd.f32 %v19558_v32, %v2273_v47  ;;  %v16957_v57 = vadd.f32 %v19562_v35, %v2273_v47 }
 0xcdf   : > { %v5670_v63 = vmul.f32 %v18133_v56, %v18129_v6 }
 0xce0   : > { %16922 = vmatprep.subr.msk.bf16.mxu0 %vm19422_vm2, %v16920_v49 }
 0xce2   : > { %v18135_v61 = vpop.eup %18134 }
 0xce3   : > { %v5668_v62 = vmul.f32 %v18135_v61, %v18131_v55 }
 0xce5   : > { %16825 = vmatprep.mubr.msk.f32.mxu0 %vm4848_vm3, %v5668_v62 }
 0xce6   : > { %16826 = vmatmul.mubr.msk.f32.vlgmr.msra.gmra.mrb[20].mxu0 %vm4848_vm3, %v5670_v63 }
 0xce7   : > { %16925 = vmatpush3.bf16.xpose.msk.msra.mxu0 %vm19422_vm2, %v16920_v49  ;;  %16832 = vmatprep.mubr.msk.f32.mxu0 %vm4756_vm1, %v5753_v9 }
 0xce8   : > { %16937 = vmatprep.subr.bf16.mxu0 %v19645_v46 }
 0xcee   : > { %16833 = vmatmul.mubr.msk.f32.vlgmr.msra.gmra.mrb[22].mxu0 %vm4756_vm1, %v5755_v44 }
 0xcef   : > { %16939 = vmatpush3.bf16.msra.mxu0 %v19645_v46 }
 0xdb9   : > { %v19745_v14 = vpop.f32.mrb[20].mxu0 }
 0xdba   : > { %v19747_v37 = vpop.f32.mrb[21].mxu0 }
 0xdc1   : > { %v16834_v45 = vpop.f32.mrb[22].mxu0 }
 0xdc2   : > { %v5844_v12 = vmul.f32 0.125, %v16834_v45  ;;  %v5834_v51 = vpop.f32.mrb[23].mxu0 }
 0xdc3   : > { %v5843_v38 = vmul.f32 0.125, %v5834_v51 }
 0xdc4   : > { %v5846_v18 = vadd.f32 %v5844_v12, %v19542_v2 }
 0xdc5   : > { %v5845_v52 = vadd.f32 %v5843_v38, %v19544_v7 }
 0xdc6   : > { %v5850_v16 = vsel %vm4848_vm3, %v5846_v18, -inf }
 0xdc7   : > { %5851 = vmax.xlane.f32.xlu1 %v5850_v16  ;;  %v5847_v33 = vsel %vm4848_vm3, %v5845_v52, -inf }
 0xdc8   : > { %5848 = vmax.xlane.f32.xlu0 %v5847_v33 }
 0xe54   : > { %v5852_v3 = vpop.xlane.xlu1 %5851 }
 0xe55   : > { %v5854_v46 = vsub.f32 %v5846_v18, %v5852_v3  ;;  %v5849_v23 = vpop.xlane.xlu0 %5848 }
 0xe56   : > { %v5853_v24 = vsub.f32 %v5845_v52, %v5849_v23 }
 0xe57   : > { %v5857_v6 = vmul.f32 1.442695, %v5854_v46 }
 0xe58   : > { %v5855_v4 = vmul.f32 1.442695, %v5853_v24 }
 0xe59   : > { %18136 = vpow2.f32 %v5857_v6 }
 0xe5a   : > { %18138 = vpow2.f32 %v5855_v4 }
 0xe63   : > { %v18137_v55 = vpop.eup %18136 }
 0xe64   : > { %v5862_v0 = vsel %vm4848_vm3, %v18137_v55, 0.0  ;;  %v18139_v28 = vpop.eup %18138 }
 0xe65   : > { %5863 = vadd.xlane.f32.xlu0 %v5862_v0  ;;  %v5859_v36 = vsel %vm4848_vm3, %v18139_v28, 0.0 }
 0xe69   : > { %5860 = vadd.xlane.f32.xlu0 %v5859_v36 }
 0xe7f   : > { %17294 = vrot.lane.b32.xlu0 %v17293_v42, %s18607_s26 }
 0xe83   : > { %6152 = vrot.lane.b32.xlu0 %v16955_v53, %s18607_s26 }
 0xe87   : > { %6154 = vrot.lane.b32.xlu0 %v16957_v57, %s18607_s26 }
 0xef2   : > { %v5864_v49 = vpop.xlane.xlu0 %5863 }
 0xef3   : > { %18140 = vrcp.f32 %v5864_v49 }
 0xef6   : > { %v5861_v56 = vpop.xlane.xlu0 %5860 }
 0xef7   : > { %18142 = vrcp.f32 %v5861_v56 }
 0xefa   : > { %v17295_v61 = vpop.permute.xlu0 %17294 }
 0xefb   : > { %v17297_v62 = vunpack.i.h.bf16 %v17295_v61  ;;  %v17296_v58 = vunpack.i.l.bf16 %v17295_v61 }
 0xefd   : > { %v16926_v63 = vpack.c.bf16 %v17297_v62, %v17296_v58  ;;  %v18141_v9 = vpop.eup %18140 }
 0xefe   : > { %v5868_v35 = vmul.f32 %v18141_v9, %v18137_v55  ;;  %v6153_v17 = vpop.permute.xlu0 %6152  ;;  %v1093_v9 = vld [vmem:[%s19000_s27 + $0xb8] sm:$0xff] }
 0xeff   : > { %16927 = vmatprep.subr.bf16.mxu1 %v16926_v63 }
 0xf00   : > { %16929 = vmatpush3.bf16.msra.mxu1 %v16926_v63  ;;  %v1091_v63 = vld [vmem:[%s19000_s27 + $0x38] sm:$0xff] }
 0xf01   : > { %v18143_v43 = vpop.eup %18142  ;;  %16932 = vmatprep.subr.msk.bf16.mxu1 %vm19422_vm2, %v19614_v11 }
 0xf02   : > { %v5866_v32 = vmul.f32 %v18143_v43, %v18139_v28  ;;  %v1095_v43 = vld [vmem:[%s19000_s27 + $0x138] sm:$0xff] }
 0xf04   : > { %16839 = vmatprep.mubr.msk.f32.mxu1 %vm4848_vm3, %v5866_v32  ;;  %v15462_v32 = vcombine.low %v1091_v63, %v1093_v9 }
 0xf05   : > { %16840 = vmatmul.mubr.msk.f32.vlgmr.msra.gmra.mrb[22].mxu1 %vm4848_vm3, %v5868_v35  ;;  %v15463_v35 = vcombine.high %v1091_v63, %v1093_v9  ;;  %v1129_v63 = vld [vmem:[%s19000_s27 + $0x9b8] sm:$0xff] }
 0xf06   : > { %16846 = vmatprep.mubr.msk.f32.mxu1 %vm4756_vm1, %v16955_v53 }
 0xf09   : > { %16935 = vmatpush3.bf16.xpose.msk.msra.mxu1 %vm19422_vm2, %v19614_v11 }
 0xf10   : > { %16847 = vmatmul.mubr.msk.f32.vlgmr.msra.gmra.mrb[24].mxu1 %vm4756_vm1, %v16957_v57 }
 0xfd8   : > { %v19775_v40 = vpop.f32.mrb[22].mxu1 }
 0xfd9   : > { %v19777_v42 = vpop.f32.mrb[23].mxu1 }
 0xfda   : > { %v17323_v44 = vpack.i.bf16 %v19775_v40, %v19777_v42 }
 0xfe3   : > { %v16848_v45 = vpop.f32.mrb[24].mxu1 }
 0xfe4   : > { %v6036_v12 = vpop.f32.mrb[25].mxu1  ;;  %v6046_v51 = vmul.f32 0.125, %v16848_v45  ;;  %v1097_v45 = vld [vmem:[%s19000_s27 + $0x1b8] sm:$0xff] }
 0xfe5   : > { %v6045_v38 = vmul.f32 0.125, %v6036_v12  ;;  %v15467_v12 = vcombine.high %v1095_v43, %v1097_v45  ;;  %v15466_v27 = vcombine.low %v1095_v43, %v1097_v45 }
 0xfe6   : > { %v6048_v16 = vadd.f32 %v6046_v51, %v19542_v2  ;;  %v1099_v51 = vld [vmem:[%s19000_s27 + $0x238] sm:$0xff] }
 0xfe7   : > { %v6047_v18 = vadd.f32 %v6045_v38, %v19544_v7  ;;  %v1101_v38 = vld [vmem:[%s19000_s27 + $0x2b8] sm:$0xff] }
 0xfe8   : > { %v6052_v11 = vsel %vm4848_vm3, %v6048_v16, -inf }
 0xfe9   : > { %v6049_v52 = vsel %vm4848_vm3, %v6047_v18, -inf }
 0xfea   : > { %6050 = vmax.xlane.f32.xlu1 %v6049_v52  ;;  %v1103_v52 = vld [vmem:[%s19000_s27 + $0x338] sm:$0xff] }
 0xfee   : > { %6053 = vmax.xlane.f32.xlu1 %v6052_v11  ;;  %v15470_v11 = vcombine.low %v1099_v51, %v1101_v38 }
0x1077   : > { %v6051_v33 = vpop.xlane.xlu1 %6050 }
0x1078   : > { %v6055_v3 = vsub.f32 %v6047_v18, %v6051_v33  ;;  %v15471_v18 = vcombine.high %v1099_v51, %v1101_v38  ;;  %v1135_v51 = vld [vmem:[%s19000_s27 + $0xb38] sm:$0xff] }
0x1079   : > { %v1137_v38 = vld [vmem:[%s19000_s27 + $0xbb8] sm:$0xff] }
0x107a   : > { %v6057_v24 = vmul.f32 1.442695, %v6055_v3  ;;  %v1107_v3 = vld [vmem:[%s19000_s27 + $0x438] sm:$0xff] }
0x107b   : > { %v6054_v46 = vpop.xlane.xlu1 %6053 }
0x107c   : > { %v6056_v23 = vsub.f32 %v6048_v16, %v6054_v46  ;;  %v1105_v16 = vld [vmem:[%s19000_s27 + $0x3b8] sm:$0xff] }
0x107d   : > { %v15475_v33 = vcombine.high %v1103_v52, %v1105_v16  ;;  %v1109_v46 = vld [vmem:[%s19000_s27 + $0x4b8] sm:$0xff] }
0x107e   : > { %v6059_v6 = vmul.f32 1.442695, %v6056_v23  ;;  %v15474_v23 = vcombine.low %v1103_v52, %v1105_v16  ;;  %v1139_v52 = vld [vmem:[%s19000_s27 + $0xc38] sm:$0xff] }
0x107f   : > { %v1141_v16 = vld [vmem:[%s19000_s27 + $0xcb8] sm:$0xff] }
0x1080   : > { %18144 = vpow2.f32 %v6059_v6  ;;  %v1111_v6 = vld [vmem:[%s19000_s27 + $0x538] sm:$0xff] }
0x1081   : > { %18146 = vpow2.f32 %v6057_v24  ;;  %v15479_v24 = vcombine.high %v1107_v3, %v1109_v46 }
0x108a   : > { %v18145_v4 = vpop.eup %18144 }
0x108b   : > { %v6064_v55 = vsel %vm4848_vm3, %v18145_v4, 0.0  ;;  %v18147_v0 = vpop.eup %18146 }
0x108c   : > { %6065 = vadd.xlane.f32.xlu1 %v6064_v55  ;;  %v6061_v28 = vsel %vm4848_vm3, %v18147_v0, 0.0  ;;  %v15478_v55 = vcombine.low %v1107_v3, %v1109_v46  ;;  %v15510_v3 = vcombine.low %v1139_v52, %v1141_v16 }
0x1090   : > { %6062 = vadd.xlane.f32.xlu1 %v6061_v28  ;;  %v1115_v28 = vld [vmem:[%s19000_s27 + $0x638] sm:$0xff] }
0x10a1   : > { %17299 = vrot.lane.b32.xlu1 %v17298_v19, %s18607_s26  ;;  %v6155_v19 = vpop.permute.xlu0 %6154 }
0x1119   : > { %v6066_v36 = vpop.xlane.xlu1 %6065 }
0x111a   : > { %18148 = vrcp.f32 %v6066_v36  ;;  %v1117_v36 = vld [vmem:[%s19000_s27 + $0x6b8] sm:$0xff] }
0x111d   : > { %v6063_v47 = vpop.xlane.xlu1 %6062 }
0x111e   : > { %18150 = vrcp.f32 %v6063_v47 }
0x1121   : > { %v17300_v53 = vpop.permute.xlu1 %17299 }
0x1122   : > { %v17302_v57 = vunpack.i.h.bf16 %v17300_v53  ;;  %v17301_v49 = vunpack.i.l.bf16 %v17300_v53  ;;  %v15487_v53 = vcombine.high %v1115_v28, %v1117_v36 }
0x1124   : > { %v16940_v56 = vpack.c.bf16 %v17302_v57, %v17301_v49  ;;  %v18149_v61 = vpop.eup %18148  ;;  %v1119_v57 = vld [vmem:[%s19000_s27 + $0x738] sm:$0xff] }
0x1125   : > { %v6070_v54 = vmul.f32 %v18149_v61, %v18145_v4  ;;  %v1113_v4 = vld [vmem:[%s19000_s27 + $0x5b8] sm:$0xff] }
0x1126   : > { %16942 = vmatprep.subr.msk.bf16.mxu0 %vm19422_vm2, %v16940_v56  ;;  %v15482_v47 = vcombine.low %v1111_v6, %v1113_v4  ;;  %v1121_v49 = vld [vmem:[%s19000_s27 + $0x7b8] sm:$0xff] }
0x1127   : > { %v15491_v61 = vcombine.high %v1119_v57, %v1121_v49 }
0x1128   : > { %v18151_v62 = vpop.eup %18150 }
0x1129   : > { %v6068_v58 = vmul.f32 %v18151_v62, %v18147_v0  ;;  %v15483_v0 = vcombine.high %v1111_v6, %v1113_v4  ;;  %v1123_v62 = vld [vmem:[%s19000_s27 + $0x838] sm:$0xff] }
0x112b   : > { %16853 = vmatprep.mubr.msk.f32.mxu0 %vm4848_vm3, %v6068_v58  ;;  %v1125_v58 = vld [vmem:[%s19000_s27 + $0x8b8] sm:$0xff] }
0x112c   : > { %16854 = vmatmul.mubr.msk.f32.vlgmr.msra.gmra.mrb[24].mxu0 %vm4848_vm3, %v6070_v54  ;;  %v15490_v54 = vcombine.low %v1119_v57, %v1121_v49  ;;  %v15494_v9 = vcombine.low %v1123_v62, %v1125_v58  ;;  %v1145_v57 = vld [vmem:[%s19000_s27 + $0xdb8] sm:$0xff] }
0x112d   : > { %16945 = vmatpush3.bf16.xpose.msk.msra.mxu0 %vm19422_vm2, %v16940_v56  ;;  %16860 = vmatprep.mubr.msk.f32.mxu0 %vm4756_vm1, %v6153_v17  ;;  %v15486_v56 = vcombine.low %v1115_v28, %v1117_v36  ;;  %v15495_v17 = vcombine.high %v1123_v62, %v1125_v58  ;;  %v1149_v62 = vld [vmem:[%s19000_s27 + $0xeb8] sm:$0xff] }
0x112e   : > { %7149 = vmatprep.subr.bf16.mxu0 %v15463_v35  ;;  %v1133_v35 = vld [vmem:[%s19000_s27 + $0xab8] sm:$0xff] }
0x112f   : > { %v1151_v58 = vld [vmem:[%s19000_s27 + $0xf38] sm:$0xff] }
0x1134   : > { %16861 = vmatmul.mubr.msk.f32.vlgmr.msra.gmra.mrb[26].mxu0 %vm4756_vm1, %v6155_v19  ;;  %v1127_v19 = vld [vmem:[%s19000_s27 + $0x938] sm:$0xff] }
0x1135   : > { %7150 = vmatpush1.bf16.msra.mxu0 %v15462_v32  ;;  %v15499_v43 = vcombine.high %v1127_v19, %v1129_v63  ;;  %v1131_v32 = vld [vmem:[%s19000_s27 + $0xa38] sm:$0xff]  ;;  %v15498_v45 = vcombine.low %v1127_v19, %v1129_v63 }
0x1136   : > { %7151 = vmatprep.subr.bf16.mxu0 %v15467_v12  ;;  %v15503_v12 = vcombine.high %v1131_v32, %v1133_v35 }
0x1139   : > { %7152 = vmatpush1.bf16.msra.mxu0 %v15466_v27  ;;  %v15502_v27 = vcombine.low %v1131_v32, %v1133_v35 }
0x113a   : > { %7153 = vmatprep.subr.bf16.mxu0 %v15471_v18  ;;  %v15507_v18 = vcombine.high %v1135_v51, %v1137_v38 }
0x113d   : > { %7154 = vmatpush1.bf16.msra.mxu0 %v15470_v11  ;;  %v15506_v11 = vcombine.low %v1135_v51, %v1137_v38 }
0x113e   : > { %7155 = vmatprep.subr.bf16.mxu0 %v15475_v33  ;;  %v15511_v33 = vcombine.high %v1139_v52, %v1141_v16 }
0x1141   : > { %7156 = vmatpush1.bf16.msra.mxu0 %v15474_v23 }
0x1142   : > { %7157 = vmatprep.subr.bf16.mxu0 %v15479_v24 }
0x1145   : > { %7158 = vmatpush1.bf16.msra.mxu0 %v15478_v55 }
0x1146   : > { %7159 = vmatprep.subr.bf16.mxu0 %v15483_v0 }
0x1149   : > { %7160 = vmatpush1.bf16.msra.mxu0 %v15482_v47 }
0x114a   : > { %7161 = vmatprep.subr.bf16.mxu0 %v15487_v53  ;;  %v1143_v53 = vld [vmem:[%s19000_s27 + $0xd38] sm:$0xff] }
0x114b   : > { %v15515_v49 = vcombine.high %v1143_v53, %v1145_v57 }
0x114d   : > { %7162 = vmatpush1.bf16.msra.mxu0 %v15486_v56  ;;  %v15514_v56 = vcombine.low %v1143_v53, %v1145_v57 }
0x114e   : > { %7163 = vmatprep.subr.bf16.mxu0 %v15491_v61  ;;  %v1147_v61 = vld [vmem:[%s19000_s27 + $0xe38] sm:$0xff] }
0x1151   : > { %7164 = vmatpush1.bf16.msra.mxu0 %v15490_v54  ;;  %v1153_v54 = vld [vmem:[%s19000_s27 + $0xfb8] sm:$0xff] }
0x1152   : > { %7165 = vmatprep.subr.bf16.mxu0 %v15495_v17  ;;  %v15523_v17 = vcombine.high %v1151_v58, %v1153_v54  ;;  %v15522_v19 = vcombine.low %v1151_v58, %v1153_v54  ;;  %v1104_v58 = vld [vmem:[%s19000_s27 + $0x3b0] sm:$0xff] }
0x1155   : > { %7166 = vmatpush1.bf16.msra.mxu0 %v15494_v9 }
0x1156   : > { %7167 = vmatprep.subr.bf16.mxu0 %v15499_v43 }
0x1159   : > { %7168 = vmatpush1.bf16.msra.mxu0 %v15498_v45 }
0x115a   : > { %7169 = vmatprep.subr.bf16.mxu0 %v15503_v12 }
0x115d   : > { %7170 = vmatpush1.bf16.msra.mxu0 %v15502_v27 }
0x115e   : > { %7171 = vmatprep.subr.bf16.mxu0 %v15507_v18 }
0x1161   : > { %7172 = vmatpush1.bf16.msra.mxu0 %v15506_v11 }
0x1162   : > { %7173 = vmatprep.subr.bf16.mxu0 %v15511_v33 }
0x1165   : > { %7174 = vmatpush1.bf16.msra.mxu0 %v15510_v3 }
0x1166   : > { %7175 = vmatprep.subr.bf16.mxu0 %v15515_v49  ;;  %v15465_v49 = vcombine.high %v1094_v30, %v1096_v20 }
0x1169   : > { %7176 = vmatpush1.bf16.msra.mxu0 %v15514_v56  ;;  %v1098_v56 = vld [vmem:[%s19000_s27 + $0x230] sm:$0xff] }
0x11ff   : > { %v19825_v46 = vpop.f32.mrb[24].mxu0 }
0x1200   : > { %v19827_v23 = vpop.f32.mrb[25].mxu0 }
0x1207   : > { %v16862_v24 = vpop.f32.mrb[26].mxu0 }
0x1208   : > { %v6244_v6 = vmul.f32 0.125, %v16862_v24  ;;  %v6234_v4 = vpop.f32.mrb[27].mxu0  ;;  %v1090_v24 = vld [vmem:[%s19000_s27 + $0x30] sm:$0xff] }
0x1209   : > { %v6243_v55 = vmul.f32 0.125, %v6234_v4 }
0x120a   : > { %v6246_v0 = vadd.f32 %v6244_v6, %v19542_v2  ;;  %v15519_v2 = vcombine.high %v1147_v61, %v1149_v62  ;;  %v1092_v6 = vld [vmem:[%s19000_s27 + $0xb0] sm:$0xff] }
0x120b   : > { %v6245_v28 = vadd.f32 %v6243_v55, %v19544_v7  ;;  %v15518_v7 = vcombine.low %v1147_v61, %v1149_v62  ;;  %v15460_v53 = vcombine.low %v1090_v24, %v1092_v6  ;;  %v1100_v61 = vld [vmem:[%s19000_s27 + $0x2b0] sm:$0xff]  ;;  %v15464_v62 = vcombine.low %v1094_v30, %v1096_v20 }
0x120c   : > { %v6250_v36 = vsel %vm4848_vm3, %v6246_v0, -inf  ;;  %7177 = vmatprep.subr.bf16.mxu0 %v15519_v2  ;;  %v15469_v2 = vcombine.high %v1098_v56, %v1100_v61  ;;  %v15468_v54 = vcombine.low %v1098_v56, %v1100_v61  ;;  %v1144_v30 = vld [vmem:[%s19000_s27 + $0xdb0] sm:$0xff] }
0x120d   : > { %6251 = vmax.xlane.f32.xlu1 %v6250_v36  ;;  %v6247_v47 = vsel %vm4848_vm3, %v6245_v28, -inf  ;;  %7178 = vmatpush1.bf16.msra.mxu0 %v15518_v7  ;;  %v1102_v7 = vld [vmem:[%s19000_s27 + $0x330] sm:$0xff] }
0x120e   : > { %6248 = vmax.xlane.f32.xlu0 %v6247_v47  ;;  %7179 = vmatprep.subr.bf16.mxu0 %v15523_v17  ;;  %v15473_v17 = vcombine.high %v1102_v7, %v1104_v58  ;;  %v1150_v56 = vld [vmem:[%s19000_s27 + $0xf30] sm:$0xff] }
0x120f   : > { %v1152_v61 = vld [vmem:[%s19000_s27 + $0xfb0] sm:$0xff] }
0x1211   : > { %7180 = vmatpush1.bf16.msra.mxu0 %v15522_v19  ;;  %v1106_v19 = vld [vmem:[%s19000_s27 + $0x430] sm:$0xff] }
0x121e   : > { %17309 = vrot.lane.b32.xlu1 %v17308_v60, %s18607_s26 }
0x1222   : > { %17314 = vrot.lane.b32.xlu1 %v17313_v48, %s18607_s26 }
0x1226   : > { %17324 = vrot.lane.b32.xlu1 %v17323_v44, %s18607_s26 }
0x129a   : > { %v6252_v31 = vpop.xlane.xlu1 %6251 }
0x129b   : > { %v6254_v34 = vsub.f32 %v6246_v0, %v6252_v31  ;;  %v6249_v60 = vpop.xlane.xlu0 %6248  ;;  %v1108_v31 = vld [vmem:[%s19000_s27 + $0x4b0] sm:$0xff] }
0x129c   : > { %v6253_v63 = vsub.f32 %v6245_v28, %v6249_v60  ;;  %v15461_v28 = vcombine.high %v1090_v24, %v1092_v6  ;;  %v15477_v60 = vcombine.high %v1106_v19, %v1108_v31 }
0x129d   : > { %v6257_v9 = vmul.f32 1.442695, %v6254_v34  ;;  %v15472_v34 = vcombine.low %v1102_v7, %v1104_v58  ;;  %v15520_v7 = vcombine.low %v1150_v56, %v1152_v61  ;;  %v1154_v58 = vld [vmem:[%s19000_s27 + $0x1030] sm:$0xff] }
0x129e   : > { %v6255_v43 = vmul.f32 1.442695, %v6253_v63  ;;  %v17310_v32 = vpop.permute.xlu1 %17309  ;;  %v1110_v63 = vld [vmem:[%s19000_s27 + $0x530] sm:$0xff] }
0x129f   : > { %18152 = vpow2.f32 %v6257_v9  ;;  %v17312_v35 = vunpack.i.h.bf16 %v17310_v32  ;;  %v17311_v15 = vunpack.i.l.bf16 %v17310_v32  ;;  %v1112_v9 = vld [vmem:[%s19000_s27 + $0x5b0] sm:$0xff] }
0x12a0   : > { %18154 = vpow2.f32 %v6255_v43  ;;  %v15476_v43 = vcombine.low %v1106_v19, %v1108_v31  ;;  %v15481_v32 = vcombine.high %v1110_v63, %v1112_v9 }
0x12a1   : > { %v6392_v50 = vsel %vm4756_vm1, %v19691_v5, %v17311_v15  ;;  %v6393_v48 = vsel %vm4756_vm1, %v19689_v1, %v17312_v35  ;;  %v1114_v35 = vld [vmem:[%s19000_s27 + $0x630] sm:$0xff] }
0x12a2   : > { %v17315_v45 = vpop.permute.xlu1 %17314  ;;  %v6399_v40 = vpack.c.bf16 %v6393_v48, %v6392_v50  ;;  %v1116_v15 = vld [vmem:[%s19000_s27 + $0x6b0] sm:$0xff]  ;;  %v15480_v50 = vcombine.low %v1110_v63, %v1112_v9 }
0x12a3   : > { %v17317_v42 = vunpack.i.h.bf16 %v17315_v45  ;;  %v17316_v44 = vunpack.i.l.bf16 %v17315_v45  ;;  %v15485_v48 = vcombine.high %v1114_v35, %v1116_v15  ;;  %v1118_v45 = vld [vmem:[%s19000_s27 + $0x730] sm:$0xff] }
0x12a4   : > { %7181 = vmatprep.mubr.bf16.mxu0 %v6399_v40  ;;  %v1160_v63 = vld [vmem:[%s19000_s27 + $0x11b0] sm:$0xff] }
0x12a5   : > { %v6391_v12 = vsel %vm4756_vm1, %v19659_v59, %v17317_v42  ;;  %v6390_v51 = vsel %vm4756_vm1, %v19661_v13, %v17316_v44  ;;  %v15484_v42 = vcombine.low %v1114_v35, %v1116_v15  ;;  %v1159_v35 = vld [vmem:[%s19000_s27 + $0x1138] sm:$0xff] }
0x12a6   : > { %v19859_v38 = vpack.c.bf16 %v6391_v12, %v6390_v51  ;;  %v17325_v27 = vpop.permute.xlu1 %17324  ;;  %v1122_v12 = vld [vmem:[%s19000_s27 + $0x830] sm:$0xff]  ;;  %v1161_v15 = vld [vmem:[%s19000_s27 + $0x11b8] sm:$0xff] }
0x12a7   : > { %v17327_v18 = vunpack.i.h.bf16 %v17325_v27  ;;  %v17326_v52 = vunpack.i.l.bf16 %v17325_v27  ;;  %v1124_v51 = vld [vmem:[%s19000_s27 + $0x8b0] sm:$0xff] }
0x12a8   : > { %7182 = vmatmul.mubr.bf16.vlgmr.msra.gmra.mrb[28].mxu0 %v19859_v38 }
0x12a9   : > { %v18153_v1 = vpop.eup %18152  ;;  %v6395_v5 = vsel %vm4756_vm1, %v19745_v14, %v17327_v18  ;;  %v6394_v16 = vsel %vm4756_vm1, %v19747_v37, %v17326_v52  ;;  %v15493_v18 = vcombine.high %v1122_v12, %v1124_v51  ;;  %v1126_v52 = vld [vmem:[%s19000_s27 + $0x930] sm:$0xff] }
0x12aa   : > { %v19866_v59 = vpack.c.bf16 %v6395_v5, %v6394_v16  ;;  %v6262_v13 = vsel %vm4848_vm3, %v18153_v1, 0.0  ;;  %v18155_v11 = vpop.eup %18154  ;;  %v15492_v5 = vcombine.low %v1122_v12, %v1124_v51 }
0x12ab   : > { %6263 = vadd.xlane.f32.xlu0 %v6262_v13  ;;  %v6259_v33 = vsel %vm4848_vm3, %v18155_v11, 0.0  ;;  %v1130_v13 = vld [vmem:[%s19000_s27 + $0xa30] sm:$0xff] }
0x12af   : > { %6260 = vadd.xlane.f32.xlu0 %v6259_v33 }
0x12c5   : > { %17304 = vrot.lane.b32.xlu0 %v17303_v25, %s18607_s26 }
0x1338   : > { %v6264_v14 = vpop.xlane.xlu0 %6263 }
0x1339   : > { %18156 = vrcp.f32 %v6264_v14 }
0x133c   : > { %v6261_v3 = vpop.xlane.xlu0 %6260 }
0x133d   : > { %18158 = vrcp.f32 %v6261_v3  ;;  %v1134_v3 = vld [vmem:[%s19000_s27 + $0xb30] sm:$0xff] }
0x1340   : > { %v17305_v37 = vpop.permute.xlu0 %17304 }
0x1341   : > { %v17307_v4 = vunpack.i.h.bf16 %v17305_v37  ;;  %v17306_v55 = vunpack.i.l.bf16 %v17305_v37  ;;  %v1136_v37 = vld [vmem:[%s19000_s27 + $0xbb0] sm:$0xff] }
0x1342   : > { %v15505_v6 = vcombine.high %v1134_v3, %v1136_v37 }
0x1343   : > { %v16946_v0 = vpack.c.bf16 %v17307_v4, %v17306_v55  ;;  %v18157_v36 = vpop.eup %18156  ;;  %v1138_v4 = vld [vmem:[%s19000_s27 + $0xc30] sm:$0xff] }
0x1344   : > { %v6268_v57 = vmul.f32 %v18157_v36, %v18153_v1  ;;  %v1128_v1 = vld [vmem:[%s19000_s27 + $0x9b0] sm:$0xff] }
0x1345   : > { %16947 = vmatprep.subr.bf16.mxu1 %v16946_v0  ;;  %v15497_v16 = vcombine.high %v1126_v52, %v1128_v1  ;;  %v15496_v33 = vcombine.low %v1126_v52, %v1128_v1  ;;  %v1140_v55 = vld [vmem:[%s19000_s27 + $0xcb0] sm:$0xff]  ;;  %v1167_v52 = vld [vmem:[%s19000_s27 + $0x1338] sm:$0xff] }
0x1346   : > { %16949 = vmatpush3.bf16.msra.mxu1 %v16946_v0  ;;  %v15504_v0 = vcombine.low %v1134_v3, %v1136_v37  ;;  %v1142_v36 = vld [vmem:[%s19000_s27 + $0xd30] sm:$0xff]  ;;  %v15508_v20 = vcombine.low %v1138_v4, %v1140_v55  ;;  %v1169_v1 = vld [vmem:[%s19000_s27 + $0x13b8] sm:$0xff] }
0x1347   : > { %v18159_v25 = vpop.eup %18158  ;;  %7063 = vmatprep.subr.bf16.mxu1 %v15461_v28  ;;  %v15509_v28 = vcombine.high %v1138_v4, %v1140_v55  ;;  %v1171_v3 = vld [vmem:[%s19000_s27 + $0x1438] sm:$0xff] }
0x1348   : > { %v6266_v47 = vmul.f32 %v18159_v25, %v18155_v11  ;;  %v1132_v11 = vld [vmem:[%s19000_s27 + $0xab0] sm:$0xff]  ;;  %v15513_v25 = vcombine.high %v1142_v36, %v1144_v30  ;;  %v1173_v37 = vld [vmem:[%s19000_s27 + $0x14b8] sm:$0xff] }
0x1349   : > { %v15501_v14 = vcombine.high %v1130_v13, %v1132_v11  ;;  %v15500_v24 = vcombine.low %v1130_v13, %v1132_v11  ;;  %v15539_v11 = vcombine.high %v1167_v52, %v1169_v1  ;;  %v15543_v55 = vcombine.high %v1171_v3, %v1173_v37 }
0x134a   : > { %16867 = vmatprep.mubr.msk.f32.mxu1 %vm4848_vm3, %v6266_v47  ;;  %v1146_v47 = vld [vmem:[%s19000_s27 + $0xe30] sm:$0xff] }
0x134b   : > { %16868 = vmatmul.mubr.msk.f32.vlgmr.msra.gmra.mrb[26].mxu1 %vm4848_vm3, %v6268_v57  ;;  %v15512_v57 = vcombine.low %v1142_v36, %v1144_v30  ;;  %v1175_v36 = vld [vmem:[%s19000_s27 + $0x1538] sm:$0xff] }
0x134c   : > { %7064 = vmatpush1.bf16.msra.mxu1 %v15460_v53  ;;  %7095 = vmatprep.mubr.bf16.mxu1 %v6399_v40  ;;  %v1120_v40 = vld [vmem:[%s19000_s27 + $0x7b0] sm:$0xff]  ;;  %v1177_v30 = vld [vmem:[%s19000_s27 + $0x15b8] sm:$0xff] }
0x134d   : > { %7065 = vmatprep.subr.bf16.mxu1 %v15465_v49  ;;  %v15489_v44 = vcombine.high %v1118_v45, %v1120_v40  ;;  %v15488_v27 = vcombine.low %v1118_v45, %v1120_v40  ;;  %v1148_v53 = vld [vmem:[%s19000_s27 + $0xeb0] sm:$0xff]  ;;  %v1163_v45 = vld [vmem:[%s19000_s27 + $0x1238] sm:$0xff] }
0x134e   : > { %v15517_v49 = vcombine.high %v1146_v47, %v1148_v53  ;;  %v1165_v40 = vld [vmem:[%s19000_s27 + $0x12b8] sm:$0xff] }
0x134f   : > { %v15535_v51 = vcombine.high %v1163_v45, %v1165_v40 }
0x1350   : > { %7066 = vmatpush1.bf16.msra.mxu1 %v15464_v62  ;;  %v15516_v62 = vcombine.low %v1146_v47, %v1148_v53  ;;  %v15547_v53 = vcombine.high %v1175_v36, %v1177_v30 }
0x1351   : > { %7067 = vmatprep.subr.bf16.mxu1 %v15469_v2  ;;  %v15521_v2 = vcombine.high %v1150_v56, %v1152_v61  ;;  %v1179_v56 = vld [vmem:[%s19000_s27 + $0x1638] sm:$0xff] }
0x1352   : > { %v1181_v61 = vld [vmem:[%s19000_s27 + $0x16b8] sm:$0xff] }
0x1354   : > { %7068 = vmatpush1.bf16.msra.mxu1 %v15468_v54  ;;  %v1156_v54 = vld [vmem:[%s19000_s27 + $0x10b0] sm:$0xff] }
0x1355   : > { %7069 = vmatprep.subr.bf16.mxu1 %v15473_v17  ;;  %v1155_v17 = vld [vmem:[%s19000_s27 + $0x1038] sm:$0xff]  ;;  %v15524_v19 = vcombine.low %v1154_v58, %v1156_v54  ;;  %v15525_v31 = vcombine.high %v1154_v58, %v1156_v54  ;;  %v15551_v58 = vcombine.high %v1179_v56, %v1181_v61  ;;  %v1182_v54 = vld [vmem:[%s19000_s27 + $0x1730] sm:$0xff] }
0x1358   : > { %7070 = vmatpush1.bf16.msra.mxu1 %v15472_v34  ;;  %v1157_v34 = vld [vmem:[%s19000_s27 + $0x10b8] sm:$0xff] }
0x1359   : > { %7071 = vmatprep.subr.bf16.mxu1 %v15477_v60  ;;  %v1158_v60 = vld [vmem:[%s19000_s27 + $0x1130] sm:$0xff]  ;;  %v15526_v9 = vcombine.low %v1155_v17, %v1157_v34 }
0x135c   : > { %7072 = vmatpush1.bf16.msra.mxu1 %v15476_v43  ;;  %v15527_v43 = vcombine.high %v1155_v17, %v1157_v34  ;;  %v1184_v17 = vld [vmem:[%s19000_s27 + $0x17b0] sm:$0xff] }
0x135d   : > { %7073 = vmatprep.subr.bf16.mxu1 %v15481_v32  ;;  %v15529_v32 = vcombine.high %v1158_v60, %v1160_v63 }
0x135e   : > { %7192 = vmatprep.subr.bf16.mxu0 %v15527_v43  ;;  %v1186_v43 = vld [vmem:[%s19000_s27 + $0x1830] sm:$0xff] }
0x135f   : > { %7193 = vmatpush1.bf16.msra.mxu0 %v15526_v9 }
0x1360   : > { %7074 = vmatpush1.bf16.msra.mxu1 %v15480_v50  ;;  %v1162_v50 = vld [vmem:[%s19000_s27 + $0x1230] sm:$0xff] }
0x1361   : > { %7075 = vmatprep.subr.bf16.mxu1 %v15485_v48  ;;  %v1164_v48 = vld [vmem:[%s19000_s27 + $0x12b0] sm:$0xff] }
0x1362   : > { %v15533_v12 = vcombine.high %v1162_v50, %v1164_v48 }
0x1364   : > { %7076 = vmatpush1.bf16.msra.mxu1 %v15484_v42  ;;  %v15528_v42 = vcombine.low %v1158_v60, %v1160_v63  ;;  %v15550_v60 = vcombine.low %v1179_v56, %v1181_v61  ;;  %v15553_v63 = vcombine.high %v1182_v54, %v1184_v17  ;;  %v1206_v61 = vld [vmem:[%s19000_s27 + $0x1d30] sm:$0xff] }
0x1365   : > { %7077 = vmatprep.subr.bf16.mxu1 %v15489_v44  ;;  %v15530_v44 = vcombine.low %v1159_v35, %v1161_v15 }
0x1368   : > { %7078 = vmatpush1.bf16.msra.mxu1 %v15488_v27  ;;  %v1166_v27 = vld [vmem:[%s19000_s27 + $0x1330] sm:$0xff] }
0x1369   : > { %7079 = vmatprep.subr.bf16.mxu1 %v15493_v18  ;;  %v1168_v18 = vld [vmem:[%s19000_s27 + $0x13b0] sm:$0xff] }
0x136a   : > { %v15537_v13 = vcombine.high %v1166_v27, %v1168_v18 }
0x136c   : > { %7080 = vmatpush1.bf16.msra.mxu1 %v15492_v5  ;;  %v15532_v5 = vcombine.low %v1162_v50, %v1164_v48  ;;  %v15552_v50 = vcombine.low %v1182_v54, %v1184_v17 }
0x136d   : > { %7081 = vmatprep.subr.bf16.mxu1 %v15497_v16  ;;  %v15534_v16 = vcombine.low %v1163_v45, %v1165_v40  ;;  %v1190_v40 = vld [vmem:[%s19000_s27 + $0x1930] sm:$0xff] }
0x1370   : > { %7082 = vmatpush1.bf16.msra.mxu1 %v15496_v33  ;;  %v1170_v33 = vld [vmem:[%s19000_s27 + $0x1430] sm:$0xff] }
0x1371   : > { %7083 = vmatprep.subr.bf16.mxu1 %v15501_v14  ;;  %v1172_v14 = vld [vmem:[%s19000_s27 + $0x14b0] sm:$0xff] }
0x1372   : > { %v15541_v4 = vcombine.high %v1170_v33, %v1172_v14 }
0x1374   : > { %7084 = vmatpush1.bf16.msra.mxu1 %v15500_v24  ;;  %v15536_v24 = vcombine.low %v1166_v27, %v1168_v18 }
0x1375   : > { %7085 = vmatprep.subr.bf16.mxu1 %v15505_v6  ;;  %v15538_v6 = vcombine.low %v1167_v52, %v1169_v1  ;;  %v1194_v1 = vld [vmem:[%s19000_s27 + $0x1a30] sm:$0xff] }
0x1378   : > { %7086 = vmatpush1.bf16.msra.mxu1 %v15504_v0  ;;  %v1174_v0 = vld [vmem:[%s19000_s27 + $0x1530] sm:$0xff] }
0x1379   : > { %7087 = vmatprep.subr.bf16.mxu1 %v15509_v28  ;;  %v1176_v28 = vld [vmem:[%s19000_s27 + $0x15b0] sm:$0xff] }
0x137a   : > { %v15545_v47 = vcombine.high %v1174_v0, %v1176_v28 }
0x137c   : > { %7088 = vmatpush1.bf16.msra.mxu1 %v15508_v20  ;;  %v15540_v20 = vcombine.low %v1170_v33, %v1172_v14 }
0x137d   : > { %7089 = vmatprep.subr.bf16.mxu1 %v15513_v25  ;;  %v15542_v25 = vcombine.low %v1171_v3, %v1173_v37  ;;  %v1198_v37 = vld [vmem:[%s19000_s27 + $0x1b30] sm:$0xff] }
0x1380   : > { %7090 = vmatpush1.bf16.msra.mxu1 %v15512_v57  ;;  %v1178_v57 = vld [vmem:[%s19000_s27 + $0x1630] sm:$0xff] }
0x1381   : > { %7091 = vmatprep.subr.bf16.mxu1 %v15517_v49  ;;  %v1180_v49 = vld [vmem:[%s19000_s27 + $0x16b0] sm:$0xff] }
0x1382   : > { %v15548_v34 = vcombine.low %v1178_v57, %v1180_v49 }
0x1384   : > { %7092 = vmatpush1.bf16.msra.mxu1 %v15516_v62  ;;  %v15544_v62 = vcombine.low %v1174_v0, %v1176_v28 }
0x1385   : > { %7093 = vmatprep.subr.bf16.mxu1 %v15521_v2  ;;  %v15546_v2 = vcombine.low %v1175_v36, %v1177_v30  ;;  %v1202_v30 = vld [vmem:[%s19000_s27 + $0x1c30] sm:$0xff] }
0x1388   : > { %7094 = vmatpush1.bf16.msra.mxu1 %v15520_v7  ;;  %v15549_v7 = vcombine.high %v1178_v57, %v1180_v49 }
0x1389   : > { %7106 = vmatprep.subr.bf16.mxu1 %v15525_v31  ;;  %v1185_v31 = vld [vmem:[%s19000_s27 + $0x17b8] sm:$0xff] }
0x138b   : > { %7096 = vmatmul.mubr.bf16.vlgmr.msra.gmra.mrb[28].mxu1 %v19859_v38  ;;  %v15531_v38 = vcombine.high %v1159_v35, %v1161_v15  ;;  %v1187_v35 = vld [vmem:[%s19000_s27 + $0x1838] sm:$0xff] }
0x138c   : > { %7107 = vmatpush1.bf16.msra.mxu1 %v15524_v19  ;;  %v1183_v19 = vld [vmem:[%s19000_s27 + $0x1738] sm:$0xff] }
0x138d   : > { %7108 = vmatprep.subr.bf16.mxu1 %v15529_v32  ;;  %7194 = vmatprep.subr.bf16.mxu0 %v15531_v38  ;;  %v15555_v9 = vcombine.high %v1183_v19, %v1185_v31  ;;  %v1188_v32 = vld [vmem:[%s19000_s27 + $0x18b0] sm:$0xff]  ;;  %v1189_v15 = vld [vmem:[%s19000_s27 + $0x18b8] sm:$0xff]  ;;  %v15554_v38 = vcombine.low %v1183_v19, %v1185_v31 }
0x138e   : > { %7195 = vmatpush1.bf16.msra.mxu0 %v15530_v44  ;;  %v15557_v48 = vcombine.high %v1186_v43, %v1188_v32  ;;  %v15559_v45 = vcombine.high %v1187_v35, %v1189_v15  ;;  %v1191_v44 = vld [vmem:[%s19000_s27 + $0x1938] sm:$0xff]  ;;  %v15558_v27 = vcombine.low %v1187_v35, %v1189_v15  ;;  %v1210_v31 = vld [vmem:[%s19000_s27 + $0x1e30] sm:$0xff] }
0x138f   : > { %7196 = vmatprep.subr.bf16.mxu0 %v15535_v51  ;;  %v15556_v51 = vcombine.low %v1186_v43, %v1188_v32 }
0x1390   : > { %7109 = vmatpush1.bf16.msra.mxu1 %v15528_v42  ;;  %v1192_v42 = vld [vmem:[%s19000_s27 + $0x19b0] sm:$0xff] }
0x1391   : > { %7110 = vmatprep.subr.bf16.mxu1 %v15533_v12  ;;  %v1193_v12 = vld [vmem:[%s19000_s27 + $0x19b8] sm:$0xff]  ;;  %v15561_v18 = vcombine.high %v1190_v40, %v1192_v42 }
0x1392   : > { %7197 = vmatpush1.bf16.msra.mxu0 %v15534_v16  ;;  %v15563_v52 = vcombine.high %v1191_v44, %v1193_v12  ;;  %v1195_v16 = vld [vmem:[%s19000_s27 + $0x1a38] sm:$0xff]  ;;  %v15562_v33 = vcombine.low %v1191_v44, %v1193_v12 }
0x1393   : > { %7198 = vmatprep.subr.bf16.mxu0 %v15539_v11  ;;  %v15560_v11 = vcombine.low %v1190_v40, %v1192_v42  ;;  %v1217_v44 = vld [vmem:[%s19000_s27 + $0x1fb8] sm:$0xff] }
0x1394   : > { %7111 = vmatpush1.bf16.msra.mxu1 %v15532_v5  ;;  %v1196_v5 = vld [vmem:[%s19000_s27 + $0x1ab0] sm:$0xff] }
0x1395   : > { %7112 = vmatprep.subr.bf16.mxu1 %v15537_v13  ;;  %v1197_v13 = vld [vmem:[%s19000_s27 + $0x1ab8] sm:$0xff]  ;;  %v15565_v14 = vcombine.high %v1194_v1, %v1196_v5 }
0x1396   : > { %7199 = vmatpush1.bf16.msra.mxu0 %v15538_v6  ;;  %v15567_v3 = vcombine.high %v1195_v16, %v1197_v13  ;;  %v1199_v6 = vld [vmem:[%s19000_s27 + $0x1b38] sm:$0xff]  ;;  %v15566_v0 = vcombine.low %v1195_v16, %v1197_v13 }
0x1397   : > { %7200 = vmatprep.subr.bf16.mxu0 %v15543_v55  ;;  %v15564_v55 = vcombine.low %v1194_v1, %v1196_v5 }
0x1398   : > { %7113 = vmatpush1.bf16.msra.mxu1 %v15536_v24  ;;  %v1200_v24 = vld [vmem:[%s19000_s27 + $0x1bb0] sm:$0xff] }
0x1399   : > { %7114 = vmatprep.subr.bf16.mxu1 %v15541_v4  ;;  %v1201_v4 = vld [vmem:[%s19000_s27 + $0x1bb8] sm:$0xff]  ;;  %v15569_v28 = vcombine.high %v1198_v37, %v1200_v24 }
0x139a   : > { %7201 = vmatpush1.bf16.msra.mxu0 %v15542_v25  ;;  %v15571_v36 = vcombine.high %v1199_v6, %v1201_v4  ;;  %v1203_v25 = vld [vmem:[%s19000_s27 + $0x1c38] sm:$0xff]  ;;  %v15570_v57 = vcombine.low %v1199_v6, %v1201_v4 }
0x139b   : > { %7202 = vmatprep.subr.bf16.mxu0 %v15547_v53  ;;  %v15568_v53 = vcombine.low %v1198_v37, %v1200_v24 }
0x139c   : > { %7115 = vmatpush1.bf16.msra.mxu1 %v15540_v20  ;;  %v1204_v20 = vld [vmem:[%s19000_s27 + $0x1cb0] sm:$0xff] }
0x139d   : > { %7116 = vmatprep.subr.bf16.mxu1 %v15545_v47  ;;  %v1205_v47 = vld [vmem:[%s19000_s27 + $0x1cb8] sm:$0xff]  ;;  %v15573_v49 = vcombine.high %v1202_v30, %v1204_v20 }
0x139e   : > { %7203 = vmatpush1.bf16.msra.mxu0 %v15546_v2  ;;  %v15575_v56 = vcombine.high %v1203_v25, %v1205_v47  ;;  %v1207_v2 = vld [vmem:[%s19000_s27 + $0x1d38] sm:$0xff]  ;;  %v15574_v54 = vcombine.low %v1203_v25, %v1205_v47  ;;  %v18233_v25 = vld [vmem:[#allocation2] sm:$0xff] }
0x139f   : > { %7204 = vmatprep.subr.bf16.mxu0 %v15551_v58  ;;  %v15572_v58 = vcombine.low %v1202_v30, %v1204_v20 }
0x13a0   : > { %7117 = vmatpush1.bf16.msra.mxu1 %v15544_v62  ;;  %v1208_v62 = vld [vmem:[%s19000_s27 + $0x1db0] sm:$0xff] }
0x13a1   : > { %7118 = vmatprep.subr.bf16.mxu1 %v15549_v7  ;;  %v1209_v7 = vld [vmem:[%s19000_s27 + $0x1db8] sm:$0xff]  ;;  %v15577_v17 = vcombine.high %v1206_v61, %v1208_v62 }
0x13a2   : > { %7205 = vmatpush1.bf16.msra.mxu0 %v15550_v60  ;;  %v15579_v19 = vcombine.high %v1207_v2, %v1209_v7  ;;  %v1211_v60 = vld [vmem:[%s19000_s27 + $0x1e38] sm:$0xff]  ;;  %v15578_v43 = vcombine.low %v1207_v2, %v1209_v7  ;;  %v18235_v7 = vld [vmem:[#allocation2 + $0x20] sm:$0xff] }
0x13a3   : > { %7206 = vmatprep.subr.bf16.mxu0 %v15555_v9  ;;  %v15576_v9 = vcombine.low %v1206_v61, %v1208_v62 }
0x13a4   : > { %7119 = vmatpush1.bf16.msra.mxu1 %v15548_v34  ;;  %v1212_v34 = vld [vmem:[%s19000_s27 + $0x1eb0] sm:$0xff] }
0x13a5   : > { %7120 = vmatprep.subr.bf16.mxu1 %v15553_v63  ;;  %v1213_v63 = vld [vmem:[%s19000_s27 + $0x1eb8] sm:$0xff]  ;;  %v15581_v32 = vcombine.high %v1210_v31, %v1212_v34  ;;  %v15580_v15 = vcombine.low %v1210_v31, %v1212_v34 }
0x13a6   : > { %7207 = vmatpush1.bf16.msra.mxu0 %v15554_v38  ;;  %v15583_v35 = vcombine.high %v1211_v60, %v1213_v63  ;;  %v1214_v38 = vld [vmem:[%s19000_s27 + $0x1f30] sm:$0xff] }
0x13a7   : > { %7208 = vmatprep.subr.bf16.mxu0 %v15559_v45  ;;  %v1215_v45 = vld [vmem:[%s19000_s27 + $0x1f38] sm:$0xff] }
0x13a8   : > { %7121 = vmatpush1.bf16.msra.mxu1 %v15552_v50  ;;  %v15582_v50 = vcombine.low %v1211_v60, %v1213_v63  ;;  %v15586_v12 = vcombine.low %v1215_v45, %v1217_v44  ;;  %v18237_v31 = vld [vmem:[#allocation2 + $0x28] sm:$0xff]  ;;  %v18238_v63 = vld [vmem:[#allocation2 + $0x18] sm:$0xff] }
0x13a9   : > { %7122 = vmatprep.subr.bf16.mxu1 %v15557_v48  ;;  %v1216_v48 = vld [vmem:[%s19000_s27 + $0x1fb0] sm:$0xff] }
0x13aa   : > { %7209 = vmatpush1.bf16.msra.mxu0 %v15558_v27  ;;  %v15584_v40 = vcombine.low %v1214_v38, %v1216_v48  ;;  %v15585_v42 = vcombine.high %v1214_v38, %v1216_v48 }
0x13ab   : > { %7210 = vmatprep.subr.bf16.mxu0 %v15563_v52 }
0x13ac   : > { %7123 = vmatpush1.bf16.msra.mxu1 %v15556_v51  ;;  %v15587_v51 = vcombine.high %v1215_v45, %v1217_v44  ;;  %v1226_v44 = vld [vmem:[%s19000_s27 + $0xc0] sm:$0xff] }
0x13ad   : > { %7124 = vmatprep.subr.bf16.mxu1 %v15561_v18 }
0x13ae   : > { %7211 = vmatpush1.bf16.msra.mxu0 %v15562_v33 }
0x13af   : > { %7212 = vmatprep.subr.bf16.mxu0 %v15567_v3 }
0x13b0   : > { %7125 = vmatpush1.bf16.msra.mxu1 %v15560_v11 }
0x13b1   : > { %7126 = vmatprep.subr.bf16.mxu1 %v15565_v14  ;;  %v2244_v14 = vld [vmem:[%s19008_s8 + $0xc] sm:$0xf] }
0x13b2   : > { %7213 = vmatpush1.bf16.msra.mxu0 %v15566_v0  ;;  %v6406_v3 = vrot.slane %v2244_v14, %v19289_v26  ;;  %v6414_v37 = vrot.slane %v2244_v14, %v19617_v21  ;;  %v6410_v24 = vrot.slane %v2244_v14, %v19511_v29 }
0x13b3   : > { %7214 = vmatprep.subr.bf16.mxu0 %v15571_v36 }
0x13b4   : > { %7127 = vmatpush1.bf16.msra.mxu1 %v15564_v55 }
0x13b5   : > { %7128 = vmatprep.subr.bf16.mxu1 %v15569_v28 }
0x13b6   : > { %7215 = vmatpush1.bf16.msra.mxu0 %v15570_v57 }
0x13b7   : > { %7216 = vmatprep.subr.bf16.mxu0 %v15575_v56 }
0x13b8   : > { %7129 = vmatpush1.bf16.msra.mxu1 %v15568_v53 }
0x13b9   : > { %7130 = vmatprep.subr.bf16.mxu1 %v15573_v49  ;;  %v18234_v49 = vld [vmem:[#allocation2 + $0x8] sm:$0xff] }
0x13ba   : > { %7217 = vmatpush1.bf16.msra.mxu0 %v15574_v54  ;;  %v18236_v54 = vld [vmem:[#allocation2 + $0x10] sm:$0xff] }
0x13bb   : > { %7218 = vmatprep.subr.bf16.mxu0 %v15579_v19 }
0x13bc   : > { %7131 = vmatpush1.bf16.msra.mxu1 %v15572_v58 }
0x13bd   : > { %7132 = vmatprep.subr.bf16.mxu1 %v15577_v17 }
0x13be   : > { %7219 = vmatpush1.bf16.msra.mxu0 %v15578_v43  ;;  %v18239_v43 = vld [vmem:[#allocation2 + $0x30] sm:$0xff] }
0x13bf   : > { %7220 = vmatprep.subr.bf16.mxu0 %v15583_v35 }
0x13c0   : > { %7133 = vmatpush1.bf16.msra.mxu1 %v15576_v9 }
0x13c1   : > { %7134 = vmatprep.subr.bf16.mxu1 %v15581_v32 }
0x13c2   : > { %7221 = vmatpush1.bf16.msra.mxu0 %v15582_v50  ;;  %v18240_v50 = vld [vmem:[#allocation2 + $0x38] sm:$0xff] }
0x13c3   : > { %7222 = vmatprep.subr.bf16.mxu0 %v15587_v51 }
0x13c4   : > { %7135 = vmatpush1.bf16.msra.mxu1 %v15580_v15 }
0x13c5   : > { %7136 = vmatprep.subr.bf16.mxu1 %v15585_v42  ;;  %v1218_v42 = vld [vmem:[%s19000_s27 + $0x40] sm:$0xff] }
0x13c6   : > { %7223 = vmatpush1.bf16.msra.mxu0 %v15586_v12  ;;  %v1219_v12 = vld [vmem:[%s19000_s27 + $0x48] sm:$0xff]  ;;  %v15588_v51 = vcombine.low %v1218_v42, %v1226_v44 }
0x13c8   : > { %7137 = vmatpush1.bf16.msra.mxu1 %v15584_v40 }
0x141e   : > { %v16869_v27 = vpop.f32.mrb[26].mxu1 }
0x141f   : > { %v6349_v18 = vpop.f32.mrb[27].mxu1 }
0x1420   : > { %v17318_v52 = vpack.i.bf16 %v16869_v27, %v6349_v18  ;;  %v15589_v27 = vcombine.high %v1218_v42, %v1226_v44  ;;  %v1227_v18 = vld [vmem:[%s19000_s27 + $0xc8] sm:$0xff] }
0x1421   : > { %v1315_v42 = vld [vmem:[%s19000_s27 + $0x648] sm:$0xff] }
0x1422   : > { %17319 = vrot.lane.b32.xlu0 %v17318_v52, %s18607_s26  ;;  %v1234_v52 = vld [vmem:[%s19000_s27 + $0x140] sm:$0xff]  ;;  %10000 = vmatprep.subr.bf16.mxu1 %v15589_v27  ;;  %v1323_v44 = vld [vmem:[%s19000_s27 + $0x6c8] sm:$0xff] }
0x1494   : > { %v17320_v1 = vpop.permute.xlu0 %17319 }
0x1495   : > { %v17322_v5 = vunpack.i.h.bf16 %v17320_v1  ;;  %v17321_v16 = vunpack.i.l.bf16 %v17320_v1  ;;  %v1242_v1 = vld [vmem:[%s19000_s27 + $0x1c0] sm:$0xff] }
0x1497   : > { %v6396_v13 = vsel %vm4756_vm1, %v19827_v23, %v17321_v16  ;;  %v6397_v11 = vsel %vm4756_vm1, %v19825_v46, %v17322_v5  ;;  %v6418_v23 = vrot.slane %v2244_v14, %v19620_v22  ;;  %v15590_v5 = vcombine.low %v1219_v12, %v1227_v18  ;;  %v1250_v14 = vld [vmem:[%s19000_s27 + $0x240] sm:$0xff] }
0x1498   : > { %v6401_v33 = vpack.c.bf16 %v6397_v11, %v6396_v13  ;;  %v15591_v16 = vcombine.high %v1219_v12, %v1227_v18  ;;  %v15605_v13 = vcombine.high %v1234_v52, %v1242_v1  ;;  %v1235_v11 = vld [vmem:[%s19000_s27 + $0x148] sm:$0xff]  ;;  %v15687_v18 = vcombine.high %v1315_v42, %v1323_v44 }
0x149a   : > { %7138 = vmatprep.mubr.bf16.mxu1 %v6401_v33  ;;  %7224 = vmatprep.mubr.bf16.mxu0 %v6401_v33  ;;  %v1243_v33 = vld [vmem:[%s19000_s27 + $0x1c8] sm:$0xff] }
0x149b   : > { %7139 = vmatmul.mubr.bf16.vlgmr.msra.gmra.mrb[28].mxu1 %v19866_v59  ;;  %7225 = vmatmul.mubr.bf16.vlgmr.msra.gmra.mrb[28].mxu0 %v19866_v59 }
0x149c   : > { %10086 = vmatprep.subr.bf16.mxu0 %v15591_v16  ;;  %10001 = vmatpush1.bf16.msra.mxu1 %v15588_v51  ;;  %v1339_v16 = vld [vmem:[%s19000_s27 + $0x7c8] sm:$0xff] }
0x149d   : > { %10087 = vmatpush1.bf16.msra.mxu0 %v15590_v5  ;;  %10002 = vmatprep.subr.bf16.mxu1 %v15605_v13  ;;  %v1331_v5 = vld [vmem:[%s19000_s27 + $0x748] sm:$0xff] }
0x156e   : > { %v7140_v6 = vpop.f32.mrb[28].mxu1  ;;  %v7226_v4 = vpop.f32.mrb[28].mxu0 }
0x156f   : > { %v16974_v55 = vadd.f32 %v7140_v6, %v6406_v3  ;;  %v7142_v46 = vpop.f32.mrb[29].mxu1  ;;  %v7228_v0 = vpop.f32.mrb[29].mxu0  ;;  %v16978_v28 = vadd.f32 %v7226_v4, %v6414_v37  ;;  %v1259_v6 = vld [vmem:[%s19000_s27 + $0x2c8] sm:$0xff]  ;;  %v15604_v4 = vcombine.low %v1234_v52, %v1242_v1  ;;  %v1330_v52 = vld [vmem:[%s19000_s27 + $0x740] sm:$0xff] }
0x1570   : > { %v16975_v36 = vadd.f32 %v7142_v46, %v6410_v24  ;;  %v7144_v30 = vpop.f32.mrb[30].mxu1  ;;  %v7230_v20 = vpop.f32.mrb[30].mxu0  ;;  %v16979_v61 = vadd.f32 %v7228_v0, %v6418_v23  ;;  %v1266_v0 = vld [vmem:[%s19000_s27 + $0x340] sm:$0xff] }
0x1571   : > { %v19985_v59 = vadd.f32 %v18233_v25, %v16974_v55  ;;  %v16976_v47 = vadd.f32 %v7144_v30, %v6406_v3  ;;  %v7146_v53 = vpop.f32.mrb[31].mxu1  ;;  %v7232_v57 = vpop.f32.mrb[31].mxu0  ;;  %v16980_v62 = vadd.f32 %v7230_v20, %v6414_v37  ;;  %v19991_v17 = vadd.f32 %v18236_v54, %v16978_v28  ;;  %v1258_v37 = vld [vmem:[%s19000_s27 + $0x2c0] sm:$0xff]  ;;  %v1275_v30 = vld [vmem:[%s19000_s27 + $0x3c8] sm:$0xff]  ;;  %10003 = vmatpush1.bf16.msra.mxu1 %v15604_v4 }
0x1572   : > { %v19987_v56 = vadd.f32 %v18234_v49, %v16975_v36  ;;  %v16977_v2 = vadd.f32 %v7146_v53, %v6410_v24  ;;  %v16981_v60 = vadd.f32 %v7232_v57, %v6418_v23  ;;  %v19997_v9 = vadd.f32 %v18238_v63, %v16979_v61  ;;  %v1251_v24 = vld [vmem:[%s19000_s27 + $0x248] sm:$0xff]  ;;  %v1274_v28 = vld [vmem:[%s19000_s27 + $0x3c0] sm:$0xff] }
0x1573   : > { %v19989_v58 = vadd.f32 %v18235_v7, %v16976_v47  ;;  %v19999_v32 = vadd.f32 %v18239_v43, %v16980_v62  ;;  %v15607_v3 = vcombine.high %v1235_v11, %v1243_v33  ;;  %v15606_v23 = vcombine.low %v1235_v11, %v1243_v33  ;;  %v1267_v36 = vld [vmem:[%s19000_s27 + $0x348] sm:$0xff]  ;;  %v1282_v57 = vld [vmem:[%s19000_s27 + $0x440] sm:$0xff] }
0x1574   : > { %v7243_v19 = vadd.f32 %v19987_v56, %v19985_v59  ;;  %v19995_v34 = vadd.f32 %v18237_v31, %v16977_v2  ;;  %v20004_v38 = vadd.f32 %v18240_v50, %v16981_v60  ;;  %v15621_v55 = vcombine.high %v1250_v14, %v1258_v37  ;;  %v1290_v49 = vld [vmem:[%s19000_s27 + $0x4c0] sm:$0xff]  ;;  %v1283_v61 = vld [vmem:[%s19000_s27 + $0x448] sm:$0xff] }
0x1575   : > { %10088 = vmatprep.subr.bf16.mxu0 %v15607_v3  ;;  %v15623_v46 = vcombine.high %v1251_v24, %v1259_v6  ;;  %v15620_v20 = vcombine.low %v1250_v14, %v1258_v37  ;;  %v15622_v25 = vcombine.low %v1251_v24, %v1259_v6  ;;  %v15637_v47 = vcombine.high %v1266_v0, %v1274_v28  ;;  %v1291_v62 = vld [vmem:[%s19000_s27 + $0x4c8] sm:$0xff]  ;;  %v1298_v31 = vld [vmem:[%s19000_s27 + $0x540] sm:$0xff] }
0x1576   : > { %v7248_v35 = vadd.f32 %v19995_v34, %v19989_v58  ;;  %v7244_v15 = vadd.f32 %v7243_v19, %v19991_v17  ;;  %10089 = vmatpush1.bf16.msra.mxu0 %v15606_v23  ;;  %10004 = vmatprep.subr.bf16.mxu1 %v15621_v55  ;;  %v15639_v53 = vcombine.high %v1267_v36, %v1275_v30  ;;  %v1306_v60 = vld [vmem:[%s19000_s27 + $0x5c0] sm:$0xff]  ;;  %v1299_v63 = vld [vmem:[%s19000_s27 + $0x548] sm:$0xff] }
0x1577   : > { %10090 = vmatprep.subr.bf16.mxu0 %v15623_v46  ;;  %10005 = vmatpush1.bf16.msra.mxu1 %v15620_v20  ;;  %v15636_v2 = vcombine.low %v1266_v0, %v1274_v28  ;;  %v15638_v7 = vcombine.low %v1267_v36, %v1275_v30  ;;  %v15653_v54 = vcombine.high %v1282_v57, %v1290_v49  ;;  %v1307_v43 = vld [vmem:[%s19000_s27 + $0x5c8] sm:$0xff]  ;;  %v1338_v1 = vld [vmem:[%s19000_s27 + $0x7c0] sm:$0xff] }
0x1578   : > { %v7245_v48 = vadd.f32 %v7244_v15, %v19997_v9  ;;  %v7249_v45 = vadd.f32 %v7248_v35, %v19999_v32  ;;  %10006 = vmatprep.subr.bf16.mxu1 %v15637_v47  ;;  %v15655_v19 = vcombine.high %v1283_v61, %v1291_v62  ;;  %v15652_v35 = vcombine.low %v1282_v57, %v1290_v49  ;;  %v1346_v3 = vld [vmem:[%s19000_s27 + $0x840] sm:$0xff]  ;;  %v1347_v24 = vld [vmem:[%s19000_s27 + $0x848] sm:$0xff] }
0x1579   : > { %v15654_v15 = vcombine.low %v1283_v61, %v1291_v62  ;;  %v15669_v50 = vcombine.high %v1298_v31, %v1306_v60  ;;  %v15668_v12 = vcombine.low %v1298_v31, %v1306_v60  ;;  %v15670_v51 = vcombine.low %v1299_v63, %v1307_v43  ;;  %v1354_v37 = vld [vmem:[%s19000_s27 + $0x8c0] sm:$0xff]  ;;  %v1355_v6 = vld [vmem:[%s19000_s27 + $0x8c8] sm:$0xff] }
0x157a   : > { %7246 = vadd.xlane.f32.xlu0 %v7245_v48  ;;  %v7250_v40 = vadd.f32 %v7249_v45, %v20004_v38  ;;  %10091 = vmatpush1.bf16.msra.mxu0 %v15622_v25  ;;  %v15671_v48 = vcombine.high %v1299_v63, %v1307_v43  ;;  %v1314_v45 = vld [vmem:[%s19000_s27 + $0x640] sm:$0xff]  ;;  %v15686_v11 = vcombine.low %v1315_v42, %v1323_v44  ;;  %v1363_v36 = vld [vmem:[%s19000_s27 + $0x948] sm:$0xff] }
0x157b   : > { %10092 = vmatprep.subr.bf16.mxu0 %v15639_v53  ;;  %10007 = vmatpush1.bf16.msra.mxu1 %v15636_v2  ;;  %v15701_v33 = vcombine.high %v1330_v52, %v1338_v1  ;;  %v15703_v14 = vcombine.high %v1331_v5, %v1339_v16  ;;  %v15700_v4 = vcombine.low %v1330_v52, %v1338_v1  ;;  %v1362_v0 = vld [vmem:[%s19000_s27 + $0x940] sm:$0xff]  ;;  %v1371_v30 = vld [vmem:[%s19000_s27 + $0x9c8] sm:$0xff] }
0x157c   : > { %7251 = vadd.xlane.f32.xlu1 %v7250_v40  ;;  %10008 = vmatprep.subr.bf16.mxu1 %v15653_v54  ;;  %v1322_v40 = vld [vmem:[%s19000_s27 + $0x6c0] sm:$0xff]  ;;  %v15702_v23 = vcombine.low %v1331_v5, %v1339_v16  ;;  %v15717_v55 = vcombine.high %v1346_v3, %v1354_v37  ;;  %v15719_v46 = vcombine.high %v1347_v24, %v1355_v6  ;;  %v1387_v52 = vld [vmem:[%s19000_s27 + $0xac8] sm:$0xff] }
0x157d   : > { %v15685_v27 = vcombine.high %v1314_v45, %v1322_v40  ;;  %v15684_v13 = vcombine.low %v1314_v45, %v1322_v40  ;;  %v1370_v28 = vld [vmem:[%s19000_s27 + $0x9c0] sm:$0xff]  ;;  %v15716_v20 = vcombine.low %v1346_v3, %v1354_v37  ;;  %v15718_v25 = vcombine.low %v1347_v24, %v1355_v6  ;;  %v1403_v3 = vld [vmem:[%s19000_s27 + $0xbc8] sm:$0xff] }
0x157e   : > { %10093 = vmatpush1.bf16.msra.mxu0 %v15638_v7  ;;  %v15733_v47 = vcombine.high %v1362_v0, %v1370_v28  ;;  %v15735_v53 = vcombine.high %v1363_v36, %v1371_v30  ;;  %v15732_v57 = vcombine.low %v1362_v0, %v1370_v28  ;;  %v15734_v49 = vcombine.low %v1363_v36, %v1371_v30  ;;  %v1419_v28 = vld [vmem:[%s19000_s27 + $0xcc8] sm:$0xff]  ;;  %v1426_v36 = vld [vmem:[%s19000_s27 + $0xd40] sm:$0xff] }
0x157f   : > { %10094 = vmatprep.subr.bf16.mxu0 %v15655_v19  ;;  %10009 = vmatpush1.bf16.msra.mxu1 %v15652_v35  ;;  %v1434_v30 = vld [vmem:[%s19000_s27 + $0xdc0] sm:$0xff] }
0x1580   : > { %10010 = vmatprep.subr.bf16.mxu1 %v15669_v50 }
0x1582   : > { %10095 = vmatpush1.bf16.msra.mxu0 %v15654_v15 }
0x1583   : > { %10096 = vmatprep.subr.bf16.mxu0 %v15671_v48  ;;  %10011 = vmatpush1.bf16.msra.mxu1 %v15668_v12 }
0x1584   : > { %10012 = vmatprep.subr.bf16.mxu1 %v15685_v27  ;;  %v1386_v27 = vld [vmem:[%s19000_s27 + $0xac0] sm:$0xff] }
0x1586   : > { %10097 = vmatpush1.bf16.msra.mxu0 %v15670_v51  ;;  %v1378_v51 = vld [vmem:[%s19000_s27 + $0xa40] sm:$0xff] }
0x1587   : > { %10098 = vmatprep.subr.bf16.mxu0 %v15687_v18  ;;  %10013 = vmatpush1.bf16.msra.mxu1 %v15684_v13  ;;  %v15749_v18 = vcombine.high %v1378_v51, %v1386_v27  ;;  %v15748_v1 = vcombine.low %v1378_v51, %v1386_v27  ;;  %v1394_v13 = vld [vmem:[%s19000_s27 + $0xb40] sm:$0xff] }
0x1588   : > { %10014 = vmatprep.subr.bf16.mxu1 %v15701_v33  ;;  %v1395_v33 = vld [vmem:[%s19000_s27 + $0xb48] sm:$0xff]  ;;  %v20114_v51 = vld [vmem:[%s19000_s27 + $0x1040] sm:$0xff] }
0x1589   : > { %v15766_v24 = vcombine.low %v1395_v33, %v1403_v3  ;;  %v15767_v6 = vcombine.high %v1395_v33, %v1403_v3  ;;  %v20117_v27 = vld [vmem:[%s19000_s27 + $0x10c0] sm:$0xff] }
0x158a   : > { %10099 = vmatpush1.bf16.msra.mxu0 %v15686_v11  ;;  %v1402_v11 = vld [vmem:[%s19000_s27 + $0xbc0] sm:$0xff] }
0x158b   : > { %10100 = vmatprep.subr.bf16.mxu0 %v15703_v14  ;;  %10015 = vmatpush1.bf16.msra.mxu1 %v15700_v4  ;;  %v15765_v14 = vcombine.high %v1394_v13, %v1402_v11  ;;  %v15764_v37 = vcombine.low %v1394_v13, %v1402_v11  ;;  %v1410_v4 = vld [vmem:[%s19000_s27 + $0xc40] sm:$0xff] }
0x158c   : > { %10016 = vmatprep.subr.bf16.mxu1 %v15717_v55  ;;  %v1411_v55 = vld [vmem:[%s19000_s27 + $0xc48] sm:$0xff] }
0x158e   : > { %10101 = vmatpush1.bf16.msra.mxu0 %v15702_v23  ;;  %v1418_v23 = vld [vmem:[%s19000_s27 + $0xcc0] sm:$0xff] }
0x158f   : > { %10102 = vmatprep.subr.bf16.mxu0 %v15719_v46  ;;  %10017 = vmatpush1.bf16.msra.mxu1 %v15716_v20  ;;  %v15780_v46 = vcombine.low %v1410_v4, %v1418_v23  ;;  %v15781_v0 = vcombine.high %v1410_v4, %v1418_v23  ;;  %v15782_v20 = vcombine.low %v1411_v55, %v1419_v28 }
0x1590   : > { %10018 = vmatprep.subr.bf16.mxu1 %v15733_v47  ;;  %v15797_v47 = vcombine.high %v1426_v36, %v1434_v30 }
0x1592   : > { %10103 = vmatpush1.bf16.msra.mxu0 %v15718_v25  ;;  %v15783_v25 = vcombine.high %v1411_v55, %v1419_v28 }
0x1593   : > { %10104 = vmatprep.subr.bf16.mxu0 %v15735_v53  ;;  %10019 = vmatpush1.bf16.msra.mxu1 %v15732_v57  ;;  %v1427_v53 = vld [vmem:[%s19000_s27 + $0xd48] sm:$0xff] }
0x1594   : > { %10020 = vmatprep.subr.bf16.mxu1 %v15749_v18  ;;  %v1435_v57 = vld [vmem:[%s19000_s27 + $0xdc8] sm:$0xff]  ;;  %v15845_v18 = vcombine.high %v20114_v51, %v20117_v27 }
0x1596   : > { %10105 = vmatpush1.bf16.msra.mxu0 %v15734_v49  ;;  %v15799_v49 = vcombine.high %v1427_v53, %v1435_v57 }
0x1597   : > { %10021 = vmatpush1.bf16.msra.mxu1 %v15748_v1  ;;  %v15844_v1 = vcombine.low %v20114_v51, %v20117_v27  ;;  %v1530_v51 = vld [vmem:[%s19000_s27 + $0x13c0] sm:$0xff]  ;;  %v1523_v27 = vld [vmem:[%s19000_s27 + $0x1348] sm:$0xff] }
0x1598   : > { %10022 = vmatprep.subr.bf16.mxu1 %v15765_v14 }
0x159b   : > { %10023 = vmatpush1.bf16.msra.mxu1 %v15764_v37 }
0x159c   : > { %10024 = vmatprep.subr.bf16.mxu1 %v15781_v0 }
0x159f   : > { %10025 = vmatpush1.bf16.msra.mxu1 %v15780_v46 }
0x15a0   : > { %10026 = vmatprep.subr.bf16.mxu1 %v15797_v47 }
0x1607   : > { %v7247_v61 = vpop.xlane.xlu0 %7246 }
0x1608   : > { %v7254_v62 = vmul.f32 0.001953125, %v7247_v61  ;;  %v1442_v61 = vld [vmem:[%s19000_s27 + $0xe40] sm:$0xff] }
0x1609   : > { %v7252_v2 = vpop.xlane.xlu1 %7251 }
0x160a   : > { %v20050_v7 = vsub.f32 %v19985_v59, %v7254_v62  ;;  %v20053_v54 = vsub.f32 %v19987_v56, %v7254_v62  ;;  %v7255_v19 = vmul.f32 0.001953125, %v7252_v2  ;;  %v20056_v31 = vsub.f32 %v19991_v17, %v7254_v62  ;;  %v1443_v2 = vld [vmem:[%s19000_s27 + $0xe48] sm:$0xff] }
0x160b   : > { %v20059_v60 = vsub.f32 %v19997_v9, %v7254_v62  ;;  %v1450_v62 = vld [vmem:[%s19000_s27 + $0xec0] sm:$0xff] }
0x160c   : > { %v20062_v63 = vsub.f32 %v19989_v58, %v7255_v19  ;;  %v20065_v43 = vsub.f32 %v19995_v34, %v7255_v19  ;;  %v7264_v59 = vmul.f32 %v20050_v7, %v20050_v7  ;;  %v7265_v56 = vmul.f32 %v20053_v54, %v20053_v54 }
0x160d   : > { %v20072_v35 = vsub.f32 %v19999_v32, %v7255_v19  ;;  %v7266_v17 = vmul.f32 %v20056_v31, %v20056_v31  ;;  %v7267_v15 = vmul.f32 %v20059_v60, %v20059_v60  ;;  %v20083_v32 = vsub.f32 %v20004_v38, %v7255_v19  ;;  %v1379_v38 = vld [vmem:[%s19000_s27 + $0xa48] sm:$0xff] }
0x160e   : > { %v7272_v9 = vadd.f32 %v7265_v56, %v7264_v59  ;;  %v7268_v58 = vmul.f32 %v20062_v63, %v20062_v63  ;;  %v7269_v34 = vmul.f32 %v20065_v43, %v20065_v43  ;;  %v15750_v5 = vcombine.low %v1379_v38, %v1387_v52  ;;  %v1451_v19 = vld [vmem:[%s19000_s27 + $0xec8] sm:$0xff] }
0x160f   : > { %v7270_v48 = vmul.f32 %v20072_v35, %v20072_v35  ;;  %v7271_v44 = vmul.f32 %v20083_v32, %v20083_v32  ;;  %v15751_v16 = vcombine.high %v1379_v38, %v1387_v52  ;;  %v15796_v59 = vcombine.low %v1426_v36, %v1434_v30  ;;  %v20120_v38 = vld [vmem:[%s19000_s27 + $0x1048] sm:$0xff] }
0x1610   : > { %v7273_v50 = vadd.f32 %v7272_v9, %v7266_v17  ;;  %v7277_v45 = vadd.f32 %v7269_v34, %v7268_v58  ;;  %v15798_v56 = vcombine.low %v1427_v53, %v1435_v57  ;;  %v15813_v17 = vcombine.high %v1442_v61, %v1450_v62  ;;  %v1458_v58 = vld [vmem:[%s19000_s27 + $0xf40] sm:$0xff]  ;;  %v20125_v52 = vld [vmem:[%s19000_s27 + $0x10c8] sm:$0xff] }
0x1611   : > { %10106 = vmatprep.subr.bf16.mxu0 %v15751_v16  ;;  %v15815_v9 = vcombine.high %v1443_v2, %v1451_v19  ;;  %v1466_v34 = vld [vmem:[%s19000_s27 + $0xfc0] sm:$0xff]  ;;  %10027 = vmatpush1.bf16.msra.mxu1 %v15796_v59  ;;  %v15847_v16 = vcombine.high %v20120_v38, %v20125_v52 }
0x1612   : > { %v7274_v40 = vadd.f32 %v7273_v50, %v7267_v15  ;;  %v7278_v42 = vadd.f32 %v7277_v45, %v7270_v48  ;;  %10107 = vmatpush1.bf16.msra.mxu0 %v15750_v5  ;;  %v1459_v15 = vld [vmem:[%s19000_s27 + $0xf48] sm:$0xff]  ;;  %v15812_v48 = vcombine.low %v1442_v61, %v1450_v62  ;;  %10028 = vmatprep.subr.bf16.mxu1 %v15813_v17 }
0x1613   : > { %10108 = vmatprep.subr.bf16.mxu0 %v15767_v6  ;;  %v1467_v50 = vld [vmem:[%s19000_s27 + $0xfc8] sm:$0xff]  ;;  %v15814_v45 = vcombine.low %v1443_v2, %v1451_v19  ;;  %v15846_v5 = vcombine.low %v20120_v38, %v20125_v52 }
0x1614   : > { %7275 = vadd.xlane.f32.xlu0 %v7274_v40  ;;  %v7279_v12 = vadd.f32 %v7278_v42, %v7271_v44  ;;  %v15829_v40 = vcombine.high %v1458_v58, %v1466_v34  ;;  %v15831_v42 = vcombine.high %v1459_v15, %v1467_v50  ;;  %v15828_v44 = vcombine.low %v1458_v58, %v1466_v34  ;;  %v2249_v6 = vld [vmem:[%s19008_s8 + $0x28] sm:$0xf] }
0x1615   : > { %10029 = vmatpush1.bf16.msra.mxu1 %v15812_v48  ;;  %v7337_v30 = vrot.slane %v2249_v6, %v19617_v21  ;;  %v7333_v47 = vrot.slane %v2249_v6, %v19511_v29  ;;  %v7329_v53 = vrot.slane %v2249_v6, %v19289_v26  ;;  %v1491_v48 = vld [vmem:[%s19000_s27 + $0x1148] sm:$0xff] }
0x1616   : > { %10109 = vmatpush1.bf16.msra.mxu0 %v15766_v24  ;;  %10030 = vmatprep.subr.bf16.mxu1 %v15829_v40  ;;  %v2248_v24 = vld [vmem:[%s19008_s8 + $0x24] sm:$0xf] }
0x1617   : > { %10110 = vmatprep.subr.bf16.mxu0 %v15783_v25  ;;  %v7308_v4 = vrot.slane %v2248_v24, %v19617_v21  ;;  %v7304_v55 = vrot.slane %v2248_v24, %v19511_v29  ;;  %v7300_v28 = vrot.slane %v2248_v24, %v19289_v26 }
0x1618   : > { %7280 = vadd.xlane.f32.xlu0 %v7279_v12  ;;  %v15830_v12 = vcombine.low %v1459_v15, %v1467_v50  ;;  %v1498_v50 = vld [vmem:[%s19000_s27 + $0x11c0] sm:$0xff] }
0x1619   : > { %10031 = vmatpush1.bf16.msra.mxu1 %v15828_v44 }
0x161a   : > { %10111 = vmatpush1.bf16.msra.mxu0 %v15782_v20  ;;  %10043 = vmatprep.subr.bf16.mxu1 %v15845_v18  ;;  %v1506_v18 = vld [vmem:[%s19000_s27 + $0x1240] sm:$0xff] }
0x161b   : > { %10112 = vmatprep.subr.bf16.mxu0 %v15799_v49  ;;  %v7312_v49 = vrot.slane %v2248_v24, %v19620_v22 }
0x161e   : > { %10113 = vmatpush1.bf16.msra.mxu0 %v15798_v56 }
0x161f   : > { %10114 = vmatprep.subr.bf16.mxu0 %v15815_v9 }
0x1622   : > { %10115 = vmatpush1.bf16.msra.mxu0 %v15814_v45  ;;  %v1499_v45 = vld [vmem:[%s19000_s27 + $0x11c8] sm:$0xff] }
0x1623   : > { %10116 = vmatprep.subr.bf16.mxu0 %v15831_v42  ;;  %v15862_v24 = vcombine.low %v1491_v48, %v1499_v45 }
0x1626   : > { %10117 = vmatpush1.bf16.msra.mxu0 %v15830_v12 }
0x1627   : > { %10129 = vmatprep.subr.bf16.mxu0 %v15847_v16 }
0x16a1   : > { %v7276_v13 = vpop.xlane.xlu0 %7275 }
0x16a2   : > { %v7282_v11 = vmul.f32 0.001953125, %v7276_v13  ;;  %v15863_v13 = vcombine.high %v1491_v48, %v1499_v45  ;;  %v1594_v48 = vld [vmem:[%s19000_s27 + $0x17c0] sm:$0xff]  ;;  %v1587_v45 = vld [vmem:[%s19000_s27 + $0x1748] sm:$0xff] }
0x16a4   : > { %v7284_v33 = vadd.f32 1e-05, %v7282_v11  ;;  %v1514_v11 = vld [vmem:[%s19000_s27 + $0x12c0] sm:$0xff] }
0x16a5   : > { %v7281_v14 = vpop.xlane.xlu0 %7280  ;;  %v15876_v38 = vcombine.low %v1506_v18, %v1514_v11 }
0x16a6   : > { %18160 = vrsqrt.f32 %v7284_v33  ;;  %v7283_v3 = vmul.f32 0.001953125, %v7281_v14  ;;  %v1507_v33 = vld [vmem:[%s19000_s27 + $0x1248] sm:$0xff] }
0x16a7   : > { %v1515_v14 = vld [vmem:[%s19000_s27 + $0x12c8] sm:$0xff] }
0x16a8   : > { %v7285_v37 = vadd.f32 1e-05, %v7283_v3  ;;  %v15878_v52 = vcombine.low %v1507_v33, %v1515_v14 }
0x16aa   : > { %18162 = vrsqrt.f32 %v7285_v37 }
0x16b0   : > { %v18161_v23 = vpop.eup %18160 }
0x16b1   : > { %v7289_v46 = vmul.f32 %v18161_v23, %v20053_v54  ;;  %v7288_v0 = vmul.f32 %v18161_v23, %v20050_v7  ;;  %v7290_v36 = vmul.f32 %v18161_v23, %v20056_v31  ;;  %v7291_v57 = vmul.f32 %v18161_v23, %v20059_v60  ;;  %v1522_v23 = vld [vmem:[%s19000_s27 + $0x1340] sm:$0xff] }
0x16b3   : > { %v7319_v20 = vmul.f32 %v7308_v4, %v7290_v36  ;;  %v7318_v61 = vmul.f32 %v7304_v55, %v7289_v46  ;;  %v7317_v62 = vmul.f32 %v7300_v28, %v7288_v0  ;;  %v7320_v56 = vmul.f32 %v7312_v49, %v7291_v57  ;;  %v1538_v46 = vld [vmem:[%s19000_s27 + $0x1440] sm:$0xff]  ;;  %v1547_v36 = vld [vmem:[%s19000_s27 + $0x14c8] sm:$0xff] }
0x16b4   : > { %v18163_v25 = vpop.eup %18162  ;;  %v1546_v0 = vld [vmem:[%s19000_s27 + $0x14c0] sm:$0xff] }
0x16b5   : > { %v7293_v54 = vmul.f32 %v18163_v25, %v20065_v43  ;;  %v7292_v7 = vmul.f32 %v18163_v25, %v20062_v63  ;;  %v7295_v31 = vmul.f32 %v18163_v25, %v20083_v32  ;;  %v7294_v2 = vmul.f32 %v18163_v25, %v20072_v35  ;;  %v1490_v35 = vld [vmem:[%s19000_s27 + $0x1140] sm:$0xff] }
0x16b6   : > { %v20150_v19 = vadd.f32 %v7337_v30, %v7319_v20  ;;  %v7341_v43 = vrot.slane %v2249_v6, %v19620_v22  ;;  %v20153_v58 = vadd.f32 %v7333_v47, %v7318_v61  ;;  %v20157_v34 = vadd.f32 %v7329_v53, %v7317_v62  ;;  %v1562_v57 = vld [vmem:[%s19000_s27 + $0x15c0] sm:$0xff] }
0x16b7   : > { %v7322_v59 = vmul.f32 %v7304_v55, %v7293_v54  ;;  %v7321_v60 = vmul.f32 %v7300_v28, %v7292_v7  ;;  %v7324_v17 = vmul.f32 %v7312_v49, %v7295_v31  ;;  %v7323_v9 = vmul.f32 %v7308_v4, %v7294_v2  ;;  %v1539_v28 = vld [vmem:[%s19000_s27 + $0x1448] sm:$0xff]  ;;  %v1570_v2 = vld [vmem:[%s19000_s27 + $0x1640] sm:$0xff] }
0x16b8   : > { %v20177_v12 = vadd.f32 %v7341_v43, %v7320_v56  ;;  %v15861_v16 = vcombine.high %v1490_v35, %v1498_v50  ;;  %v15860_v37 = vcombine.low %v1490_v35, %v1498_v50  ;;  %v15877_v6 = vcombine.high %v1506_v18, %v1514_v11  ;;  %v1555_v49 = vld [vmem:[%s19000_s27 + $0x1548] sm:$0xff]  ;;  %v1586_v50 = vld [vmem:[%s19000_s27 + $0x1740] sm:$0xff] }
0x16b9   : > { %v20155_v63 = vadd.f32 %v7333_v47, %v7322_v59  ;;  %v20159_v32 = vadd.f32 %v7329_v53, %v7321_v60  ;;  %v20162_v15 = vadd.f32 %v7341_v43, %v7324_v17  ;;  %v20167_v40 = vadd.f32 %v7337_v30, %v7323_v9  ;;  %v1554_v53 = vld [vmem:[%s19000_s27 + $0x1540] sm:$0xff]  ;;  %v1563_v54 = vld [vmem:[%s19000_s27 + $0x15c8] sm:$0xff] }
0x16ba   : > { %v15879_v4 = vcombine.high %v1507_v33, %v1515_v14  ;;  %v15892_v30 = vcombine.low %v1522_v23, %v1530_v51  ;;  %v15909_v25 = vcombine.high %v1538_v46, %v1546_v0  ;;  %v15911_v47 = vcombine.high %v1539_v28, %v1547_v36  ;;  %v1578_v59 = vld [vmem:[%s19000_s27 + $0x16c0] sm:$0xff]  ;;  %v1571_v60 = vld [vmem:[%s19000_s27 + $0x1648] sm:$0xff] }
0x16bb   : > { %v20171_v42 = vpack.c.bf16 %v20155_v63, %v20153_v58  ;;  %v20175_v44 = vpack.c.bf16 %v20159_v32, %v20157_v34  ;;  %v20189_v3 = vpack.c.bf16 %v20162_v15, %v20177_v12  ;;  %v15908_v61 = vcombine.low %v1538_v46, %v1546_v0  ;;  %v1579_v56 = vld [vmem:[%s19000_s27 + $0x16c8] sm:$0xff]  ;;  %v1602_v14 = vld [vmem:[%s19000_s27 + $0x1840] sm:$0xff] }
0x16bc   : > { %v15910_v7 = vcombine.low %v1539_v28, %v1547_v36  ;;  %v15925_v62 = vcombine.high %v1554_v53, %v1562_v57  ;;  %v15927_v31 = vcombine.high %v1555_v49, %v1563_v54  ;;  %v15924_v17 = vcombine.low %v1554_v53, %v1562_v57  ;;  %v1595_v18 = vld [vmem:[%s19000_s27 + $0x17c8] sm:$0xff]  ;;  %v1634_v36 = vld [vmem:[%s19000_s27 + $0x1a40] sm:$0xff] }
0x16bd   : > { %10032 = vmatprep.mubr.bf16.mxu1 %v20171_v42  ;;  %10118 = vmatprep.mubr.bf16.mxu0 %v20171_v42  ;;  %v15926_v43 = vcombine.low %v1555_v49, %v1563_v54  ;;  %v15941_v9 = vcombine.high %v1570_v2, %v1578_v59  ;;  %v15943_v35 = vcombine.high %v1571_v60, %v1579_v56  ;;  %v1650_v54 = vld [vmem:[%s19000_s27 + $0x1b40] sm:$0xff] }
0x16be   : > { %10033 = vmatmul.mubr.bf16.vlgmr.msra.gmra.mrb[32].mxu1 %v20175_v44  ;;  %10119 = vmatmul.mubr.bf16.vlgmr.msra.gmra.mrb[32].mxu0 %v20175_v44  ;;  %v15957_v11 = vcombine.high %v1586_v50, %v1594_v48  ;;  %v15959_v33 = vcombine.high %v1587_v45, %v1595_v18 }
0x16bf   : > { %10044 = vmatpush1.bf16.msra.mxu1 %v15844_v1  ;;  %10130 = vmatpush1.bf16.msra.mxu0 %v15846_v5  ;;  %v1531_v1 = vld [vmem:[%s19000_s27 + $0x13c8] sm:$0xff]  ;;  %v15893_v5 = vcombine.high %v1522_v23, %v1530_v51  ;;  %v15958_v23 = vcombine.low %v1587_v45, %v1595_v18  ;;  %v1682_v18 = vld [vmem:[%s19000_s27 + $0x1d40] sm:$0xff] }
0x16c0   : > { %10075 = vmatprep.mubr.bf16.mxu1 %v20189_v3  ;;  %10161 = vmatprep.mubr.bf16.mxu0 %v20189_v3  ;;  %v15895_v55 = vcombine.high %v1523_v27, %v1531_v1  ;;  %v15894_v20 = vcombine.low %v1523_v27, %v1531_v1  ;;  %v1618_v1 = vld [vmem:[%s19000_s27 + $0x1940] sm:$0xff] }
0x16c1   : > { %10045 = vmatprep.subr.bf16.mxu1 %v15861_v16  ;;  %10131 = vmatprep.subr.bf16.mxu0 %v15863_v13  ;;  %v15940_v16 = vcombine.low %v1570_v2, %v1578_v59  ;;  %v15942_v13 = vcombine.low %v1571_v60, %v1579_v56  ;;  %v1666_v56 = vld [vmem:[%s19000_s27 + $0x1c40] sm:$0xff] }
0x16c3   : > { %10046 = vmatpush1.bf16.msra.mxu1 %v15860_v37  ;;  %10132 = vmatpush1.bf16.msra.mxu0 %v15862_v24  ;;  %v1610_v37 = vld [vmem:[%s19000_s27 + $0x18c0] sm:$0xff]  ;;  %v1603_v24 = vld [vmem:[%s19000_s27 + $0x1848] sm:$0xff] }
0x16c4   : > { %10047 = vmatprep.subr.bf16.mxu1 %v15877_v6  ;;  %10133 = vmatprep.subr.bf16.mxu0 %v15879_v4  ;;  %v1611_v6 = vld [vmem:[%s19000_s27 + $0x18c8] sm:$0xff]  ;;  %v15956_v4 = vcombine.low %v1586_v50, %v1594_v48  ;;  %v15973_v51 = vcombine.high %v1602_v14, %v1610_v37 }
0x16c5   : > { %v15975_v27 = vcombine.high %v1603_v24, %v1611_v6  ;;  %v15974_v46 = vcombine.low %v1603_v24, %v1611_v6  ;;  %v1698_v6 = vld [vmem:[%s19000_s27 + $0x1e40] sm:$0xff] }
0x16c7   : > { %10048 = vmatpush1.bf16.msra.mxu1 %v15876_v38  ;;  %10134 = vmatpush1.bf16.msra.mxu0 %v15878_v52  ;;  %v1626_v38 = vld [vmem:[%s19000_s27 + $0x19c0] sm:$0xff]  ;;  %v1619_v52 = vld [vmem:[%s19000_s27 + $0x1948] sm:$0xff] }
0x16c8   : > { %10049 = vmatprep.subr.bf16.mxu1 %v15893_v5  ;;  %10135 = vmatprep.subr.bf16.mxu0 %v15895_v55  ;;  %v1627_v5 = vld [vmem:[%s19000_s27 + $0x19c8] sm:$0xff]  ;;  %v15972_v55 = vcombine.low %v1602_v14, %v1610_v37  ;;  %v15989_v0 = vcombine.high %v1618_v1, %v1626_v38 }
0x16c9   : > { %v15991_v28 = vcombine.high %v1619_v52, %v1627_v5  ;;  %v15990_v53 = vcombine.low %v1619_v52, %v1627_v5  ;;  %v1714_v5 = vld [vmem:[%s19000_s27 + $0x1f40] sm:$0xff] }
0x16cb   : > { %10050 = vmatpush1.bf16.msra.mxu1 %v15892_v30  ;;  %10136 = vmatpush1.bf16.msra.mxu0 %v15894_v20  ;;  %v1642_v30 = vld [vmem:[%s19000_s27 + $0x1ac0] sm:$0xff]  ;;  %v1635_v20 = vld [vmem:[%s19000_s27 + $0x1a48] sm:$0xff] }
0x16cc   : > { %10051 = vmatprep.subr.bf16.mxu1 %v15909_v25  ;;  %10137 = vmatprep.subr.bf16.mxu0 %v15911_v47  ;;  %v1643_v25 = vld [vmem:[%s19000_s27 + $0x1ac8] sm:$0xff]  ;;  %v15988_v47 = vcombine.low %v1618_v1, %v1626_v38  ;;  %v16005_v57 = vcombine.high %v1634_v36, %v1642_v30 }
0x16cd   : > { %v16007_v49 = vcombine.high %v1635_v20, %v1643_v25  ;;  %v16006_v2 = vcombine.low %v1635_v20, %v1643_v25  ;;  %v1220_v25 = vld [vmem:[%s19000_s27 + $0x50] sm:$0xff] }
0x16cf   : > { %10052 = vmatpush1.bf16.msra.mxu1 %v15908_v61  ;;  %10138 = vmatpush1.bf16.msra.mxu0 %v15910_v7  ;;  %v1658_v61 = vld [vmem:[%s19000_s27 + $0x1bc0] sm:$0xff]  ;;  %v1651_v7 = vld [vmem:[%s19000_s27 + $0x1b48] sm:$0xff] }
0x16d0   : > { %10053 = vmatprep.subr.bf16.mxu1 %v15925_v62  ;;  %10139 = vmatprep.subr.bf16.mxu0 %v15927_v31  ;;  %v1659_v62 = vld [vmem:[%s19000_s27 + $0x1bc8] sm:$0xff]  ;;  %v16004_v31 = vcombine.low %v1634_v36, %v1642_v30  ;;  %v16021_v59 = vcombine.high %v1650_v54, %v1658_v61 }
0x16d1   : > { %v16023_v60 = vcombine.high %v1651_v7, %v1659_v62  ;;  %v16022_v50 = vcombine.low %v1651_v7, %v1659_v62  ;;  %v1236_v62 = vld [vmem:[%s19000_s27 + $0x150] sm:$0xff] }
0x16d3   : > { %10054 = vmatpush1.bf16.msra.mxu1 %v15924_v17  ;;  %10140 = vmatpush1.bf16.msra.mxu0 %v15926_v43  ;;  %v1674_v17 = vld [vmem:[%s19000_s27 + $0x1cc0] sm:$0xff]  ;;  %v1667_v43 = vld [vmem:[%s19000_s27 + $0x1c48] sm:$0xff] }
0x16d4   : > { %10055 = vmatprep.subr.bf16.mxu1 %v15941_v9  ;;  %10141 = vmatprep.subr.bf16.mxu0 %v15943_v35  ;;  %v1675_v9 = vld [vmem:[%s19000_s27 + $0x1cc8] sm:$0xff]  ;;  %v16020_v35 = vcombine.low %v1650_v54, %v1658_v61  ;;  %v16037_v48 = vcombine.high %v1666_v56, %v1674_v17 }
0x16d5   : > { %v16039_v45 = vcombine.high %v1667_v43, %v1675_v9  ;;  %v16038_v14 = vcombine.low %v1667_v43, %v1675_v9 }
0x16d7   : > { %10056 = vmatpush1.bf16.msra.mxu1 %v15940_v16  ;;  %10142 = vmatpush1.bf16.msra.mxu0 %v15942_v13  ;;  %v1690_v16 = vld [vmem:[%s19000_s27 + $0x1dc0] sm:$0xff]  ;;  %v1683_v13 = vld [vmem:[%s19000_s27 + $0x1d48] sm:$0xff] }
0x16d8   : > { %10057 = vmatprep.subr.bf16.mxu1 %v15957_v11  ;;  %10143 = vmatprep.subr.bf16.mxu0 %v15959_v33  ;;  %v1691_v11 = vld [vmem:[%s19000_s27 + $0x1dc8] sm:$0xff]  ;;  %v16036_v33 = vcombine.low %v1666_v56, %v1674_v17  ;;  %v16053_v37 = vcombine.high %v1682_v18, %v1690_v16  ;;  %v20261_v56 = vpack.c.bf16 %v20167_v40, %v20150_v19 }
0x16d9   : > { %v16055_v24 = vcombine.high %v1683_v13, %v1691_v11  ;;  %v16054_v1 = vcombine.low %v1683_v13, %v1691_v11 }
0x16db   : > { %10058 = vmatpush1.bf16.msra.mxu1 %v15956_v4  ;;  %10144 = vmatpush1.bf16.msra.mxu0 %v15958_v23  ;;  %v1706_v4 = vld [vmem:[%s19000_s27 + $0x1ec0] sm:$0xff]  ;;  %v1699_v23 = vld [vmem:[%s19000_s27 + $0x1e48] sm:$0xff] }
0x16dc   : > { %10059 = vmatprep.subr.bf16.mxu1 %v15973_v51  ;;  %10145 = vmatprep.subr.bf16.mxu0 %v15975_v27  ;;  %v1707_v51 = vld [vmem:[%s19000_s27 + $0x1ec8] sm:$0xff]  ;;  %v16052_v27 = vcombine.low %v1682_v18, %v1690_v16  ;;  %v16069_v38 = vcombine.high %v1698_v6, %v1706_v4 }
0x16dd   : > { %v16071_v52 = vcombine.high %v1699_v23, %v1707_v51  ;;  %v16070_v36 = vcombine.low %v1699_v23, %v1707_v51 }
0x16df   : > { %10060 = vmatpush1.bf16.msra.mxu1 %v15972_v55  ;;  %10146 = vmatpush1.bf16.msra.mxu0 %v15974_v46  ;;  %v1722_v55 = vld [vmem:[%s19000_s27 + $0x1fc0] sm:$0xff]  ;;  %v1715_v46 = vld [vmem:[%s19000_s27 + $0x1f48] sm:$0xff] }
0x16e0   : > { %10061 = vmatprep.subr.bf16.mxu1 %v15989_v0  ;;  %10147 = vmatprep.subr.bf16.mxu0 %v15991_v28  ;;  %v1723_v0 = vld [vmem:[%s19000_s27 + $0x1fc8] sm:$0xff]  ;;  %v16068_v28 = vcombine.low %v1698_v6, %v1706_v4  ;;  %v16085_v30 = vcombine.high %v1714_v5, %v1722_v55 }
0x16e1   : > { %v16087_v20 = vcombine.high %v1715_v46, %v1723_v0  ;;  %v16086_v54 = vcombine.low %v1715_v46, %v1723_v0 }
0x16e3   : > { %10062 = vmatpush1.bf16.msra.mxu1 %v15988_v47  ;;  %10148 = vmatpush1.bf16.msra.mxu0 %v15990_v53  ;;  %v1228_v47 = vld [vmem:[%s19000_s27 + $0xd0] sm:$0xff]  ;;  %v1221_v53 = vld [vmem:[%s19000_s27 + $0x58] sm:$0xff] }
0x16e4   : > { %10063 = vmatprep.subr.bf16.mxu1 %v16005_v57  ;;  %10149 = vmatprep.subr.bf16.mxu0 %v16007_v49  ;;  %v1229_v57 = vld [vmem:[%s19000_s27 + $0xd8] sm:$0xff]  ;;  %v16084_v49 = vcombine.low %v1714_v5, %v1722_v55  ;;  %v15593_v61 = vcombine.high %v1220_v25, %v1228_v47 }
0x16e5   : > { %v15595_v7 = vcombine.high %v1221_v53, %v1229_v57  ;;  %v15594_v17 = vcombine.low %v1221_v53, %v1229_v57 }
0x16e7   : > { %10064 = vmatpush1.bf16.msra.mxu1 %v16004_v31  ;;  %10150 = vmatpush1.bf16.msra.mxu0 %v16006_v2  ;;  %v1244_v31 = vld [vmem:[%s19000_s27 + $0x1d0] sm:$0xff]  ;;  %v1237_v2 = vld [vmem:[%s19000_s27 + $0x158] sm:$0xff] }
0x16e8   : > { %10065 = vmatprep.subr.bf16.mxu1 %v16021_v59  ;;  %10151 = vmatprep.subr.bf16.mxu0 %v16023_v60  ;;  %v1245_v59 = vld [vmem:[%s19000_s27 + $0x1d8] sm:$0xff]  ;;  %v15592_v60 = vcombine.low %v1220_v25, %v1228_v47  ;;  %v15609_v43 = vcombine.high %v1236_v62, %v1244_v31  ;;  %v15608_v18 = vcombine.low %v1236_v62, %v1244_v31 }
0x16e9   : > { %v15611_v9 = vcombine.high %v1237_v2, %v1245_v59  ;;  %v15610_v16 = vcombine.low %v1237_v2, %v1245_v59 }
0x16eb   : > { %10066 = vmatpush1.bf16.msra.mxu1 %v16020_v35  ;;  %10152 = vmatpush1.bf16.msra.mxu0 %v16022_v50  ;;  %v1252_v35 = vld [vmem:[%s19000_s27 + $0x250] sm:$0xff] }
0x16ec   : > { %10067 = vmatprep.subr.bf16.mxu1 %v16037_v48  ;;  %10153 = vmatprep.subr.bf16.mxu0 %v16039_v45  ;;  %v1260_v50 = vld [vmem:[%s19000_s27 + $0x2d0] sm:$0xff]  ;;  %v1253_v48 = vld [vmem:[%s19000_s27 + $0x258] sm:$0xff] }
0x16ed   : > { %v1261_v45 = vld [vmem:[%s19000_s27 + $0x2d8] sm:$0xff]  ;;  %v15625_v13 = vcombine.high %v1252_v35, %v1260_v50  ;;  %v15624_v6 = vcombine.low %v1252_v35, %v1260_v50 }
0x16ee   : > { %v15627_v11 = vcombine.high %v1253_v48, %v1261_v45  ;;  %v15626_v4 = vcombine.low %v1253_v48, %v1261_v45 }
0x16ef   : > { %10068 = vmatpush1.bf16.msra.mxu1 %v16036_v33  ;;  %10154 = vmatpush1.bf16.msra.mxu0 %v16038_v14  ;;  %v1268_v33 = vld [vmem:[%s19000_s27 + $0x350] sm:$0xff] }
0x16f0   : > { %10069 = vmatprep.subr.bf16.mxu1 %v16053_v37  ;;  %10155 = vmatprep.subr.bf16.mxu0 %v16055_v24  ;;  %v1276_v14 = vld [vmem:[%s19000_s27 + $0x3d0] sm:$0xff]  ;;  %v1269_v37 = vld [vmem:[%s19000_s27 + $0x358] sm:$0xff] }
0x16f1   : > { %v1277_v24 = vld [vmem:[%s19000_s27 + $0x3d8] sm:$0xff]  ;;  %v15641_v23 = vcombine.high %v1268_v33, %v1276_v14  ;;  %v15640_v5 = vcombine.low %v1268_v33, %v1276_v14 }
0x16f2   : > { %v15643_v51 = vcombine.high %v1269_v37, %v1277_v24  ;;  %v15642_v55 = vcombine.low %v1269_v37, %v1277_v24 }
0x16f3   : > { %10070 = vmatpush1.bf16.msra.mxu1 %v16052_v27  ;;  %10156 = vmatpush1.bf16.msra.mxu0 %v16054_v1  ;;  %v1284_v27 = vld [vmem:[%s19000_s27 + $0x450] sm:$0xff] }
0x16f4   : > { %10071 = vmatprep.subr.bf16.mxu1 %v16069_v38  ;;  %10157 = vmatprep.subr.bf16.mxu0 %v16071_v52  ;;  %v1292_v1 = vld [vmem:[%s19000_s27 + $0x4d0] sm:$0xff]  ;;  %v1285_v38 = vld [vmem:[%s19000_s27 + $0x458] sm:$0xff] }
0x16f5   : > { %v1293_v52 = vld [vmem:[%s19000_s27 + $0x4d8] sm:$0xff]  ;;  %v15657_v46 = vcombine.high %v1284_v27, %v1292_v1  ;;  %v15656_v25 = vcombine.low %v1284_v27, %v1292_v1 }
0x16f6   : > { %v15659_v0 = vcombine.high %v1285_v38, %v1293_v52  ;;  %v15658_v47 = vcombine.low %v1285_v38, %v1293_v52 }
0x16f7   : > { %10072 = vmatpush1.bf16.msra.mxu1 %v16068_v28  ;;  %10158 = vmatpush1.bf16.msra.mxu0 %v16070_v36  ;;  %v1300_v28 = vld [vmem:[%s19000_s27 + $0x550] sm:$0xff] }
0x16f8   : > { %10073 = vmatprep.subr.bf16.mxu1 %v16085_v30  ;;  %10159 = vmatprep.subr.bf16.mxu0 %v16087_v20  ;;  %v1308_v36 = vld [vmem:[%s19000_s27 + $0x5d0] sm:$0xff]  ;;  %v1301_v30 = vld [vmem:[%s19000_s27 + $0x558] sm:$0xff] }
0x16f9   : > { %v1309_v20 = vld [vmem:[%s19000_s27 + $0x5d8] sm:$0xff]  ;;  %v15673_v53 = vcombine.high %v1300_v28, %v1308_v36  ;;  %v15672_v62 = vcombine.low %v1300_v28, %v1308_v36 }
0x16fa   : > { %v15675_v57 = vcombine.high %v1301_v30, %v1309_v20  ;;  %v15674_v31 = vcombine.low %v1301_v30, %v1309_v20 }
0x16fb   : > { %10074 = vmatpush1.bf16.msra.mxu1 %v16084_v49  ;;  %10160 = vmatpush1.bf16.msra.mxu0 %v16086_v54  ;;  %v1316_v49 = vld [vmem:[%s19000_s27 + $0x650] sm:$0xff] }
0x16fc   : > { %10172 = vmatprep.subr.bf16.mxu1 %v15593_v61  ;;  %10258 = vmatprep.subr.bf16.mxu0 %v15595_v7  ;;  %v1324_v54 = vld [vmem:[%s19000_s27 + $0x6d0] sm:$0xff]  ;;  %v1317_v61 = vld [vmem:[%s19000_s27 + $0x658] sm:$0xff] }
0x16fd   : > { %v1325_v7 = vld [vmem:[%s19000_s27 + $0x6d8] sm:$0xff]  ;;  %v15689_v2 = vcombine.high %v1316_v49, %v1324_v54  ;;  %v15688_v35 = vcombine.low %v1316_v49, %v1324_v54 }
0x16fe   : > { %10076 = vmatmul.mubr.bf16.vlgmr.msra.gmra.mrb[32].mxu1 %v20261_v56  ;;  %10162 = vmatmul.mubr.bf16.vlgmr.msra.gmra.mrb[32].mxu0 %v20261_v56  ;;  %v15691_v59 = vcombine.high %v1317_v61, %v1325_v7  ;;  %v15690_v50 = vcombine.low %v1317_v61, %v1325_v7 }
0x16ff   : > { %10173 = vmatpush1.bf16.msra.mxu1 %v15592_v60  ;;  %10204 = vmatprep.mubr.bf16.mxu1 %v20171_v42  ;;  %v1332_v60 = vld [vmem:[%s19000_s27 + $0x750] sm:$0xff] }
0x1700   : > { %10259 = vmatpush1.bf16.msra.mxu0 %v15594_v17  ;;  %10290 = vmatprep.mubr.bf16.mxu0 %v20171_v42  ;;  %v1340_v17 = vld [vmem:[%s19000_s27 + $0x7d0] sm:$0xff] }
0x1701   : > { %10174 = vmatprep.subr.bf16.mxu1 %v15609_v43  ;;  %10260 = vmatprep.subr.bf16.mxu0 %v15611_v9  ;;  %v1333_v43 = vld [vmem:[%s19000_s27 + $0x758] sm:$0xff]  ;;  %v15705_v48 = vcombine.high %v1332_v60, %v1340_v17  ;;  %v15704_v33 = vcombine.low %v1332_v60, %v1340_v17 }
0x1702   : > { %v1341_v9 = vld [vmem:[%s19000_s27 + $0x7d8] sm:$0xff] }
0x1703   : > { %10175 = vmatpush1.bf16.msra.mxu1 %v15608_v18  ;;  %v15707_v45 = vcombine.high %v1333_v43, %v1341_v9  ;;  %v1348_v18 = vld [vmem:[%s19000_s27 + $0x850] sm:$0xff]  ;;  %v15706_v14 = vcombine.low %v1333_v43, %v1341_v9 }
0x1704   : > { %10261 = vmatpush1.bf16.msra.mxu0 %v15610_v16  ;;  %10176 = vmatprep.subr.bf16.mxu1 %v15625_v13  ;;  %v1356_v16 = vld [vmem:[%s19000_s27 + $0x8d0] sm:$0xff]  ;;  %v1349_v13 = vld [vmem:[%s19000_s27 + $0x858] sm:$0xff] }
0x1705   : > { %10262 = vmatprep.subr.bf16.mxu0 %v15627_v11  ;;  %v1357_v11 = vld [vmem:[%s19000_s27 + $0x8d8] sm:$0xff]  ;;  %v15721_v37 = vcombine.high %v1348_v18, %v1356_v16  ;;  %v15720_v27 = vcombine.low %v1348_v18, %v1356_v16 }
0x1706   : > { %v15723_v24 = vcombine.high %v1349_v13, %v1357_v11  ;;  %v15722_v1 = vcombine.low %v1349_v13, %v1357_v11 }
0x1707   : > { %10177 = vmatpush1.bf16.msra.mxu1 %v15624_v6  ;;  %v1364_v6 = vld [vmem:[%s19000_s27 + $0x950] sm:$0xff] }
0x1708   : > { %10263 = vmatpush1.bf16.msra.mxu0 %v15626_v4  ;;  %10178 = vmatprep.subr.bf16.mxu1 %v15641_v23  ;;  %v1372_v4 = vld [vmem:[%s19000_s27 + $0x9d0] sm:$0xff]  ;;  %v1365_v23 = vld [vmem:[%s19000_s27 + $0x958] sm:$0xff] }
0x1709   : > { %10264 = vmatprep.subr.bf16.mxu0 %v15643_v51  ;;  %v1373_v51 = vld [vmem:[%s19000_s27 + $0x9d8] sm:$0xff]  ;;  %v15737_v38 = vcombine.high %v1364_v6, %v1372_v4  ;;  %v15736_v28 = vcombine.low %v1364_v6, %v1372_v4 }
0x170a   : > { %v15739_v52 = vcombine.high %v1365_v23, %v1373_v51  ;;  %v15738_v36 = vcombine.low %v1365_v23, %v1373_v51 }
0x170b   : > { %10179 = vmatpush1.bf16.msra.mxu1 %v15640_v5  ;;  %v1380_v5 = vld [vmem:[%s19000_s27 + $0xa50] sm:$0xff] }
0x170c   : > { %10265 = vmatpush1.bf16.msra.mxu0 %v15642_v55  ;;  %10180 = vmatprep.subr.bf16.mxu1 %v15657_v46  ;;  %v1388_v55 = vld [vmem:[%s19000_s27 + $0xad0] sm:$0xff]  ;;  %v1381_v46 = vld [vmem:[%s19000_s27 + $0xa58] sm:$0xff] }
0x170d   : > { %10266 = vmatprep.subr.bf16.mxu0 %v15659_v0  ;;  %v1389_v0 = vld [vmem:[%s19000_s27 + $0xad8] sm:$0xff]  ;;  %v15753_v30 = vcombine.high %v1380_v5, %v1388_v55  ;;  %v15752_v49 = vcombine.low %v1380_v5, %v1388_v55 }
0x170e   : > { %v15755_v20 = vcombine.high %v1381_v46, %v1389_v0  ;;  %v15754_v54 = vcombine.low %v1381_v46, %v1389_v0 }
0x170f   : > { %10181 = vmatpush1.bf16.msra.mxu1 %v15656_v25  ;;  %v1396_v25 = vld [vmem:[%s19000_s27 + $0xb50] sm:$0xff] }
0x1710   : > { %10267 = vmatpush1.bf16.msra.mxu0 %v15658_v47  ;;  %10182 = vmatprep.subr.bf16.mxu1 %v15673_v53  ;;  %v1404_v47 = vld [vmem:[%s19000_s27 + $0xbd0] sm:$0xff]  ;;  %v1397_v53 = vld [vmem:[%s19000_s27 + $0xb58] sm:$0xff] }
0x1711   : > { %10268 = vmatprep.subr.bf16.mxu0 %v15675_v57  ;;  %v1405_v57 = vld [vmem:[%s19000_s27 + $0xbd8] sm:$0xff]  ;;  %v15769_v61 = vcombine.high %v1396_v25, %v1404_v47  ;;  %v15768_v60 = vcombine.low %v1396_v25, %v1404_v47 }
0x1712   : > { %v15771_v7 = vcombine.high %v1397_v53, %v1405_v57  ;;  %v15770_v17 = vcombine.low %v1397_v53, %v1405_v57 }
0x1713   : > { %10183 = vmatpush1.bf16.msra.mxu1 %v15672_v62  ;;  %v1412_v62 = vld [vmem:[%s19000_s27 + $0xc50] sm:$0xff] }
0x1714   : > { %10269 = vmatpush1.bf16.msra.mxu0 %v15674_v31  ;;  %10184 = vmatprep.subr.bf16.mxu1 %v15689_v2  ;;  %v1420_v31 = vld [vmem:[%s19000_s27 + $0xcd0] sm:$0xff]  ;;  %v1413_v2 = vld [vmem:[%s19000_s27 + $0xc58] sm:$0xff] }
0x1715   : > { %10270 = vmatprep.subr.bf16.mxu0 %v15691_v59  ;;  %v1421_v59 = vld [vmem:[%s19000_s27 + $0xcd8] sm:$0xff]  ;;  %v15785_v43 = vcombine.high %v1412_v62, %v1420_v31  ;;  %v15784_v18 = vcombine.low %v1412_v62, %v1420_v31 }
0x1716   : > { %v15787_v9 = vcombine.high %v1413_v2, %v1421_v59  ;;  %v15786_v16 = vcombine.low %v1413_v2, %v1421_v59  ;;  %v1501_v62 = vld [vmem:[%s19000_s27 + $0x11d8] sm:$0xff]  ;;  %v1508_v59 = vld [vmem:[%s19000_s27 + $0x1250] sm:$0xff] }
0x1717   : > { %10185 = vmatpush1.bf16.msra.mxu1 %v15688_v35  ;;  %v1428_v35 = vld [vmem:[%s19000_s27 + $0xd50] sm:$0xff] }
0x1718   : > { %10271 = vmatpush1.bf16.msra.mxu0 %v15690_v50  ;;  %10186 = vmatprep.subr.bf16.mxu1 %v15705_v48  ;;  %v1436_v50 = vld [vmem:[%s19000_s27 + $0xdd0] sm:$0xff]  ;;  %v1429_v48 = vld [vmem:[%s19000_s27 + $0xd58] sm:$0xff] }
0x1719   : > { %10272 = vmatprep.subr.bf16.mxu0 %v15707_v45  ;;  %v1437_v45 = vld [vmem:[%s19000_s27 + $0xdd8] sm:$0xff]  ;;  %v15801_v13 = vcombine.high %v1428_v35, %v1436_v50  ;;  %v15800_v6 = vcombine.low %v1428_v35, %v1436_v50 }
0x171a   : > { %v15803_v11 = vcombine.high %v1429_v48, %v1437_v45  ;;  %v15802_v4 = vcombine.low %v1429_v48, %v1437_v45 }
0x171b   : > { %10187 = vmatpush1.bf16.msra.mxu1 %v15704_v33  ;;  %v1444_v33 = vld [vmem:[%s19000_s27 + $0xe50] sm:$0xff] }
0x171c   : > { %10273 = vmatpush1.bf16.msra.mxu0 %v15706_v14  ;;  %10188 = vmatprep.subr.bf16.mxu1 %v15721_v37  ;;  %v1452_v14 = vld [vmem:[%s19000_s27 + $0xed0] sm:$0xff]  ;;  %v1445_v37 = vld [vmem:[%s19000_s27 + $0xe58] sm:$0xff] }
0x171d   : > { %10274 = vmatprep.subr.bf16.mxu0 %v15723_v24  ;;  %v1453_v24 = vld [vmem:[%s19000_s27 + $0xed8] sm:$0xff]  ;;  %v15817_v23 = vcombine.high %v1444_v33, %v1452_v14  ;;  %v15816_v5 = vcombine.low %v1444_v33, %v1452_v14 }
0x171e   : > { %v15819_v51 = vcombine.high %v1445_v37, %v1453_v24  ;;  %v15818_v55 = vcombine.low %v1445_v37, %v1453_v24 }
0x171f   : > { %10189 = vmatpush1.bf16.msra.mxu1 %v15720_v27  ;;  %v1460_v27 = vld [vmem:[%s19000_s27 + $0xf50] sm:$0xff] }
0x1720   : > { %10275 = vmatpush1.bf16.msra.mxu0 %v15722_v1  ;;  %10190 = vmatprep.subr.bf16.mxu1 %v15737_v38  ;;  %v1468_v1 = vld [vmem:[%s19000_s27 + $0xfd0] sm:$0xff]  ;;  %v1461_v38 = vld [vmem:[%s19000_s27 + $0xf58] sm:$0xff] }
0x1721   : > { %10276 = vmatprep.subr.bf16.mxu0 %v15739_v52  ;;  %v1469_v52 = vld [vmem:[%s19000_s27 + $0xfd8] sm:$0xff]  ;;  %v15833_v46 = vcombine.high %v1460_v27, %v1468_v1  ;;  %v15832_v25 = vcombine.low %v1460_v27, %v1468_v1 }
0x1722   : > { %v15835_v0 = vcombine.high %v1461_v38, %v1469_v52  ;;  %v15834_v47 = vcombine.low %v1461_v38, %v1469_v52 }
0x1723   : > { %10191 = vmatpush1.bf16.msra.mxu1 %v15736_v28  ;;  %v1476_v28 = vld [vmem:[%s19000_s27 + $0x1050] sm:$0xff] }
0x1724   : > { %10277 = vmatpush1.bf16.msra.mxu0 %v15738_v36  ;;  %10192 = vmatprep.subr.bf16.mxu1 %v15753_v30  ;;  %v1484_v36 = vld [vmem:[%s19000_s27 + $0x10d0] sm:$0xff]  ;;  %v1477_v30 = vld [vmem:[%s19000_s27 + $0x1058] sm:$0xff] }
0x1725   : > { %10278 = vmatprep.subr.bf16.mxu0 %v15755_v20  ;;  %v1485_v20 = vld [vmem:[%s19000_s27 + $0x10d8] sm:$0xff]  ;;  %v15849_v53 = vcombine.high %v1476_v28, %v1484_v36 }
0x1726   : > { %v15851_v57 = vcombine.high %v1477_v30, %v1485_v20  ;;  %v15850_v31 = vcombine.low %v1477_v30, %v1485_v20 }
0x1727   : > { %10193 = vmatpush1.bf16.msra.mxu1 %v15752_v49  ;;  %v1492_v49 = vld [vmem:[%s19000_s27 + $0x1150] sm:$0xff] }
0x1728   : > { %10279 = vmatpush1.bf16.msra.mxu0 %v15754_v54  ;;  %10194 = vmatprep.subr.bf16.mxu1 %v15769_v61  ;;  %v1500_v54 = vld [vmem:[%s19000_s27 + $0x11d0] sm:$0xff]  ;;  %v15848_v61 = vcombine.low %v1476_v28, %v1484_v36 }
0x1729   : > { %10280 = vmatprep.subr.bf16.mxu0 %v15771_v7  ;;  %v1493_v7 = vld [vmem:[%s19000_s27 + $0x1158] sm:$0xff]  ;;  %v15865_v2 = vcombine.high %v1492_v49, %v1500_v54  ;;  %v15864_v35 = vcombine.low %v1492_v49, %v1500_v54 }
0x172a   : > { %v15866_v50 = vcombine.low %v1493_v7, %v1501_v62 }
0x172b   : > { %10195 = vmatpush1.bf16.msra.mxu1 %v15768_v60  ;;  %v1516_v60 = vld [vmem:[%s19000_s27 + $0x12d0] sm:$0xff] }
0x172c   : > { %10281 = vmatpush1.bf16.msra.mxu0 %v15770_v17  ;;  %10196 = vmatprep.subr.bf16.mxu1 %v15785_v43  ;;  %v15867_v17 = vcombine.high %v1493_v7, %v1501_v62  ;;  %v1509_v43 = vld [vmem:[%s19000_s27 + $0x1258] sm:$0xff]  ;;  %v15881_v48 = vcombine.high %v1508_v59, %v1516_v60  ;;  %v15880_v33 = vcombine.low %v1508_v59, %v1516_v60  ;;  %v1588_v62 = vld [vmem:[%s19000_s27 + $0x1750] sm:$0xff] }
0x172d   : > { %10282 = vmatprep.subr.bf16.mxu0 %v15787_v9  ;;  %v1517_v9 = vld [vmem:[%s19000_s27 + $0x12d8] sm:$0xff] }
0x172e   : > { %v15883_v45 = vcombine.high %v1509_v43, %v1517_v9  ;;  %v15882_v14 = vcombine.low %v1509_v43, %v1517_v9  ;;  %v1597_v59 = vld [vmem:[%s19000_s27 + $0x17d8] sm:$0xff] }
0x172f   : > { %10197 = vmatpush1.bf16.msra.mxu1 %v15784_v18  ;;  %v1524_v18 = vld [vmem:[%s19000_s27 + $0x1350] sm:$0xff] }
0x1730   : > { %10283 = vmatpush1.bf16.msra.mxu0 %v15786_v16  ;;  %10198 = vmatprep.subr.bf16.mxu1 %v15801_v13  ;;  %v1532_v16 = vld [vmem:[%s19000_s27 + $0x13d0] sm:$0xff]  ;;  %v1525_v13 = vld [vmem:[%s19000_s27 + $0x1358] sm:$0xff] }
0x1731   : > { %10284 = vmatprep.subr.bf16.mxu0 %v15803_v11  ;;  %v1533_v11 = vld [vmem:[%s19000_s27 + $0x13d8] sm:$0xff]  ;;  %v15897_v37 = vcombine.high %v1524_v18, %v1532_v16  ;;  %v15896_v27 = vcombine.low %v1524_v18, %v1532_v16 }
0x1732   : > { %v15899_v24 = vcombine.high %v1525_v13, %v1533_v11  ;;  %v15898_v1 = vcombine.low %v1525_v13, %v1533_v11 }
0x1733   : > { %10199 = vmatpush1.bf16.msra.mxu1 %v15800_v6  ;;  %v1540_v6 = vld [vmem:[%s19000_s27 + $0x1450] sm:$0xff] }
0x1734   : > { %10285 = vmatpush1.bf16.msra.mxu0 %v15802_v4  ;;  %10200 = vmatprep.subr.bf16.mxu1 %v15817_v23  ;;  %v1548_v4 = vld [vmem:[%s19000_s27 + $0x14d0] sm:$0xff]  ;;  %v1541_v23 = vld [vmem:[%s19000_s27 + $0x1458] sm:$0xff] }
0x1735   : > { %10286 = vmatprep.subr.bf16.mxu0 %v15819_v51  ;;  %v1549_v51 = vld [vmem:[%s19000_s27 + $0x14d8] sm:$0xff]  ;;  %v15913_v38 = vcombine.high %v1540_v6, %v1548_v4  ;;  %v15912_v28 = vcombine.low %v1540_v6, %v1548_v4 }
0x1736   : > { %v15915_v52 = vcombine.high %v1541_v23, %v1549_v51  ;;  %v15914_v36 = vcombine.low %v1541_v23, %v1549_v51 }
0x1737   : > { %10201 = vmatpush1.bf16.msra.mxu1 %v15816_v5  ;;  %v1556_v5 = vld [vmem:[%s19000_s27 + $0x1550] sm:$0xff] }
0x1738   : > { %10287 = vmatpush1.bf16.msra.mxu0 %v15818_v55  ;;  %10202 = vmatprep.subr.bf16.mxu1 %v15833_v46  ;;  %v1564_v55 = vld [vmem:[%s19000_s27 + $0x15d0] sm:$0xff]  ;;  %v1557_v46 = vld [vmem:[%s19000_s27 + $0x1558] sm:$0xff] }
0x1739   : > { %10288 = vmatprep.subr.bf16.mxu0 %v15835_v0  ;;  %v1565_v0 = vld [vmem:[%s19000_s27 + $0x15d8] sm:$0xff]  ;;  %v15929_v30 = vcombine.high %v1556_v5, %v1564_v55  ;;  %v15928_v49 = vcombine.low %v1556_v5, %v1564_v55 }
0x173a   : > { %v15931_v20 = vcombine.high %v1557_v46, %v1565_v0  ;;  %v15930_v54 = vcombine.low %v1557_v46, %v1565_v0 }
0x173b   : > { %10203 = vmatpush1.bf16.msra.mxu1 %v15832_v25  ;;  %v1572_v25 = vld [vmem:[%s19000_s27 + $0x1650] sm:$0xff] }
0x173c   : > { %10289 = vmatpush1.bf16.msra.mxu0 %v15834_v47  ;;  %10215 = vmatprep.subr.bf16.mxu1 %v15849_v53  ;;  %v1580_v47 = vld [vmem:[%s19000_s27 + $0x16d0] sm:$0xff]  ;;  %v1573_v53 = vld [vmem:[%s19000_s27 + $0x1658] sm:$0xff] }
0x173d   : > { %10301 = vmatprep.subr.bf16.mxu0 %v15851_v57  ;;  %v1581_v57 = vld [vmem:[%s19000_s27 + $0x16d8] sm:$0xff]  ;;  %v15944_v60 = vcombine.low %v1572_v25, %v1580_v47 }
0x173e   : > { %10205 = vmatmul.mubr.bf16.vlgmr.msra.gmra.mrb[36].mxu1 %v20175_v44  ;;  %v15947_v7 = vcombine.high %v1573_v53, %v1581_v57 }
0x173f   : > { %10291 = vmatmul.mubr.bf16.vlgmr.msra.gmra.mrb[36].mxu0 %v20175_v44  ;;  %10216 = vmatpush1.bf16.msra.mxu1 %v15848_v61  ;;  %v15945_v61 = vcombine.high %v1572_v25, %v1580_v47 }
0x1740   : > { %10247 = vmatprep.mubr.bf16.mxu1 %v20189_v3  ;;  %10302 = vmatpush1.bf16.msra.mxu0 %v15850_v31  ;;  %v1596_v31 = vld [vmem:[%s19000_s27 + $0x17d0] sm:$0xff] }
0x1741   : > { %10333 = vmatprep.mubr.bf16.mxu0 %v20189_v3  ;;  %10217 = vmatprep.subr.bf16.mxu1 %v15865_v2  ;;  %v1589_v2 = vld [vmem:[%s19000_s27 + $0x1758] sm:$0xff]  ;;  %v15961_v43 = vcombine.high %v1588_v62, %v1596_v31  ;;  %v15960_v18 = vcombine.low %v1588_v62, %v1596_v31 }
0x1742   : > { %10303 = vmatprep.subr.bf16.mxu0 %v15867_v17  ;;  %v15946_v17 = vcombine.low %v1573_v53, %v1581_v57  ;;  %v15963_v9 = vcombine.high %v1589_v2, %v1597_v59  ;;  %v15962_v16 = vcombine.low %v1589_v2, %v1597_v59 }
0x1743   : > { %10218 = vmatpush1.bf16.msra.mxu1 %v15864_v35  ;;  %v1604_v35 = vld [vmem:[%s19000_s27 + $0x1850] sm:$0xff] }
0x1744   : > { %10304 = vmatpush1.bf16.msra.mxu0 %v15866_v50  ;;  %10219 = vmatprep.subr.bf16.mxu1 %v15881_v48  ;;  %v1612_v50 = vld [vmem:[%s19000_s27 + $0x18d0] sm:$0xff]  ;;  %v1605_v48 = vld [vmem:[%s19000_s27 + $0x1858] sm:$0xff] }
0x1745   : > { %10305 = vmatprep.subr.bf16.mxu0 %v15883_v45  ;;  %v1613_v45 = vld [vmem:[%s19000_s27 + $0x18d8] sm:$0xff]  ;;  %v15977_v13 = vcombine.high %v1604_v35, %v1612_v50  ;;  %v15976_v6 = vcombine.low %v1604_v35, %v1612_v50 }
0x1746   : > { %v15979_v11 = vcombine.high %v1605_v48, %v1613_v45  ;;  %v15978_v4 = vcombine.low %v1605_v48, %v1613_v45 }
0x1747   : > { %10220 = vmatpush1.bf16.msra.mxu1 %v15880_v33  ;;  %v1620_v33 = vld [vmem:[%s19000_s27 + $0x1950] sm:$0xff] }
0x1748   : > { %10306 = vmatpush1.bf16.msra.mxu0 %v15882_v14  ;;  %10221 = vmatprep.subr.bf16.mxu1 %v15897_v37  ;;  %v1628_v14 = vld [vmem:[%s19000_s27 + $0x19d0] sm:$0xff]  ;;  %v1621_v37 = vld [vmem:[%s19000_s27 + $0x1958] sm:$0xff] }
0x1749   : > { %10307 = vmatprep.subr.bf16.mxu0 %v15899_v24  ;;  %v1629_v24 = vld [vmem:[%s19000_s27 + $0x19d8] sm:$0xff]  ;;  %v15993_v23 = vcombine.high %v1620_v33, %v1628_v14  ;;  %v15992_v5 = vcombine.low %v1620_v33, %v1628_v14 }
0x174a   : > { %v15995_v51 = vcombine.high %v1621_v37, %v1629_v24  ;;  %v15994_v55 = vcombine.low %v1621_v37, %v1629_v24 }
0x174b   : > { %10222 = vmatpush1.bf16.msra.mxu1 %v15896_v27  ;;  %v1636_v27 = vld [vmem:[%s19000_s27 + $0x1a50] sm:$0xff] }
0x174c   : > { %10308 = vmatpush1.bf16.msra.mxu0 %v15898_v1  ;;  %10223 = vmatprep.subr.bf16.mxu1 %v15913_v38  ;;  %v1644_v1 = vld [vmem:[%s19000_s27 + $0x1ad0] sm:$0xff]  ;;  %v1637_v38 = vld [vmem:[%s19000_s27 + $0x1a58] sm:$0xff] }
0x174d   : > { %10309 = vmatprep.subr.bf16.mxu0 %v15915_v52  ;;  %v1645_v52 = vld [vmem:[%s19000_s27 + $0x1ad8] sm:$0xff]  ;;  %v16009_v46 = vcombine.high %v1636_v27, %v1644_v1  ;;  %v16008_v25 = vcombine.low %v1636_v27, %v1644_v1 }
0x174e   : > { %v16011_v0 = vcombine.high %v1637_v38, %v1645_v52  ;;  %v16010_v47 = vcombine.low %v1637_v38, %v1645_v52 }
0x174f   : > { %10224 = vmatpush1.bf16.msra.mxu1 %v15912_v28  ;;  %v1652_v28 = vld [vmem:[%s19000_s27 + $0x1b50] sm:$0xff] }
0x1750   : > { %10310 = vmatpush1.bf16.msra.mxu0 %v15914_v36  ;;  %10225 = vmatprep.subr.bf16.mxu1 %v15929_v30  ;;  %v1660_v36 = vld [vmem:[%s19000_s27 + $0x1bd0] sm:$0xff]  ;;  %v1653_v30 = vld [vmem:[%s19000_s27 + $0x1b58] sm:$0xff] }
0x1751   : > { %10311 = vmatprep.subr.bf16.mxu0 %v15931_v20  ;;  %v1661_v20 = vld [vmem:[%s19000_s27 + $0x1bd8] sm:$0xff]  ;;  %v16025_v53 = vcombine.high %v1652_v28, %v1660_v36  ;;  %v16024_v62 = vcombine.low %v1652_v28, %v1660_v36 }
0x1752   : > { %v16027_v57 = vcombine.high %v1653_v30, %v1661_v20  ;;  %v16026_v31 = vcombine.low %v1653_v30, %v1661_v20 }
0x1753   : > { %10226 = vmatpush1.bf16.msra.mxu1 %v15928_v49  ;;  %v1668_v49 = vld [vmem:[%s19000_s27 + $0x1c50] sm:$0xff] }
0x1754   : > { %10312 = vmatpush1.bf16.msra.mxu0 %v15930_v54  ;;  %10227 = vmatprep.subr.bf16.mxu1 %v15945_v61  ;;  %v1676_v54 = vld [vmem:[%s19000_s27 + $0x1cd0] sm:$0xff]  ;;  %v1669_v61 = vld [vmem:[%s19000_s27 + $0x1c58] sm:$0xff] }
0x1755   : > { %10313 = vmatprep.subr.bf16.mxu0 %v15947_v7  ;;  %v1677_v7 = vld [vmem:[%s19000_s27 + $0x1cd8] sm:$0xff]  ;;  %v16041_v2 = vcombine.high %v1668_v49, %v1676_v54  ;;  %v16040_v35 = vcombine.low %v1668_v49, %v1676_v54  ;;  %v1247_v49 = vld [vmem:[%s19000_s27 + $0x1e8] sm:$0xff] }
0x1756   : > { %v16043_v59 = vcombine.high %v1669_v61, %v1677_v7  ;;  %v16042_v50 = vcombine.low %v1669_v61, %v1677_v7  ;;  %v1254_v7 = vld [vmem:[%s19000_s27 + $0x260] sm:$0xff] }
0x1757   : > { %10228 = vmatpush1.bf16.msra.mxu1 %v15944_v60  ;;  %v1684_v60 = vld [vmem:[%s19000_s27 + $0x1d50] sm:$0xff] }
0x1758   : > { %10314 = vmatpush1.bf16.msra.mxu0 %v15946_v17  ;;  %10229 = vmatprep.subr.bf16.mxu1 %v15961_v43  ;;  %v1692_v17 = vld [vmem:[%s19000_s27 + $0x1dd0] sm:$0xff]  ;;  %v1685_v43 = vld [vmem:[%s19000_s27 + $0x1d58] sm:$0xff] }
0x1759   : > { %10315 = vmatprep.subr.bf16.mxu0 %v15963_v9  ;;  %v1693_v9 = vld [vmem:[%s19000_s27 + $0x1dd8] sm:$0xff]  ;;  %v16057_v48 = vcombine.high %v1684_v60, %v1692_v17  ;;  %v16056_v33 = vcombine.low %v1684_v60, %v1692_v17 }
0x175a   : > { %v16059_v45 = vcombine.high %v1685_v43, %v1693_v9  ;;  %v16058_v14 = vcombine.low %v1685_v43, %v1693_v9 }
0x175b   : > { %10230 = vmatpush1.bf16.msra.mxu1 %v15960_v18  ;;  %v1700_v18 = vld [vmem:[%s19000_s27 + $0x1e50] sm:$0xff] }
0x175c   : > { %10316 = vmatpush1.bf16.msra.mxu0 %v15962_v16  ;;  %10231 = vmatprep.subr.bf16.mxu1 %v15977_v13  ;;  %v1708_v16 = vld [vmem:[%s19000_s27 + $0x1ed0] sm:$0xff]  ;;  %v1701_v13 = vld [vmem:[%s19000_s27 + $0x1e58] sm:$0xff] }
0x175d   : > { %10317 = vmatprep.subr.bf16.mxu0 %v15979_v11  ;;  %v1709_v11 = vld [vmem:[%s19000_s27 + $0x1ed8] sm:$0xff]  ;;  %v16073_v37 = vcombine.high %v1700_v18, %v1708_v16  ;;  %v16072_v27 = vcombine.low %v1700_v18, %v1708_v16 }
0x175e   : > { %v16075_v24 = vcombine.high %v1701_v13, %v1709_v11  ;;  %v16074_v1 = vcombine.low %v1701_v13, %v1709_v11 }
0x175f   : > { %10232 = vmatpush1.bf16.msra.mxu1 %v15976_v6  ;;  %v1716_v6 = vld [vmem:[%s19000_s27 + $0x1f50] sm:$0xff] }
0x1760   : > { %10318 = vmatpush1.bf16.msra.mxu0 %v15978_v4  ;;  %10233 = vmatprep.subr.bf16.mxu1 %v15993_v23  ;;  %v1724_v4 = vld [vmem:[%s19000_s27 + $0x1fd0] sm:$0xff]  ;;  %v1717_v23 = vld [vmem:[%s19000_s27 + $0x1f58] sm:$0xff] }
0x1761   : > { %10319 = vmatprep.subr.bf16.mxu0 %v15995_v51  ;;  %v1725_v51 = vld [vmem:[%s19000_s27 + $0x1fd8] sm:$0xff]  ;;  %v16089_v38 = vcombine.high %v1716_v6, %v1724_v4  ;;  %v16088_v28 = vcombine.low %v1716_v6, %v1724_v4 }
0x1762   : > { %v16091_v52 = vcombine.high %v1717_v23, %v1725_v51  ;;  %v16090_v36 = vcombine.low %v1717_v23, %v1725_v51 }
0x1763   : > { %10234 = vmatpush1.bf16.msra.mxu1 %v15992_v5  ;;  %v1222_v5 = vld [vmem:[%s19000_s27 + $0x60] sm:$0xff] }
0x1764   : > { %10320 = vmatpush1.bf16.msra.mxu0 %v15994_v55  ;;  %10235 = vmatprep.subr.bf16.mxu1 %v16009_v46  ;;  %v1230_v55 = vld [vmem:[%s19000_s27 + $0xe0] sm:$0xff]  ;;  %v1223_v46 = vld [vmem:[%s19000_s27 + $0x68] sm:$0xff] }
0x1765   : > { %10321 = vmatprep.subr.bf16.mxu0 %v16011_v0  ;;  %v1231_v0 = vld [vmem:[%s19000_s27 + $0xe8] sm:$0xff]  ;;  %v15597_v30 = vcombine.high %v1222_v5, %v1230_v55 }
0x1766   : > { %v15599_v20 = vcombine.high %v1223_v46, %v1231_v0  ;;  %v15598_v54 = vcombine.low %v1223_v46, %v1231_v0 }
0x1767   : > { %10236 = vmatpush1.bf16.msra.mxu1 %v16008_v25  ;;  %v1238_v25 = vld [vmem:[%s19000_s27 + $0x160] sm:$0xff] }
0x1768   : > { %10322 = vmatpush1.bf16.msra.mxu0 %v16010_v47  ;;  %10237 = vmatprep.subr.bf16.mxu1 %v16025_v53  ;;  %v1246_v47 = vld [vmem:[%s19000_s27 + $0x1e0] sm:$0xff]  ;;  %v15596_v53 = vcombine.low %v1222_v5, %v1230_v55 }
0x1769   : > { %10323 = vmatprep.subr.bf16.mxu0 %v16027_v57  ;;  %v1239_v57 = vld [vmem:[%s19000_s27 + $0x168] sm:$0xff]  ;;  %v15613_v61 = vcombine.high %v1238_v25, %v1246_v47  ;;  %v15612_v60 = vcombine.low %v1238_v25, %v1246_v47 }
0x176a   : > { %v15614_v17 = vcombine.low %v1239_v57, %v1247_v49 }
0x176b   : > { %10238 = vmatpush1.bf16.msra.mxu1 %v16024_v62  ;;  %v1262_v62 = vld [vmem:[%s19000_s27 + $0x2e0] sm:$0xff] }
0x176c   : > { %10324 = vmatpush1.bf16.msra.mxu0 %v16026_v31  ;;  %10239 = vmatprep.subr.bf16.mxu1 %v16041_v2  ;;  %v15615_v31 = vcombine.high %v1239_v57, %v1247_v49  ;;  %v1255_v2 = vld [vmem:[%s19000_s27 + $0x268] sm:$0xff]  ;;  %v15629_v43 = vcombine.high %v1254_v7, %v1262_v62  ;;  %v15628_v18 = vcombine.low %v1254_v7, %v1262_v62  ;;  %v1334_v49 = vld [vmem:[%s19000_s27 + $0x760] sm:$0xff] }
0x176d   : > { %10325 = vmatprep.subr.bf16.mxu0 %v16043_v59  ;;  %v1263_v59 = vld [vmem:[%s19000_s27 + $0x2e8] sm:$0xff] }
0x176e   : > { %v15631_v9 = vcombine.high %v1255_v2, %v1263_v59  ;;  %v15630_v16 = vcombine.low %v1255_v2, %v1263_v59  ;;  %v1343_v7 = vld [vmem:[%s19000_s27 + $0x7e8] sm:$0xff] }
0x176f   : > { %10240 = vmatpush1.bf16.msra.mxu1 %v16040_v35  ;;  %v1270_v35 = vld [vmem:[%s19000_s27 + $0x360] sm:$0xff] }
0x1770   : > { %10326 = vmatpush1.bf16.msra.mxu0 %v16042_v50  ;;  %10241 = vmatprep.subr.bf16.mxu1 %v16057_v48  ;;  %v1278_v50 = vld [vmem:[%s19000_s27 + $0x3e0] sm:$0xff]  ;;  %v1271_v48 = vld [vmem:[%s19000_s27 + $0x368] sm:$0xff] }
0x1771   : > { %10327 = vmatprep.subr.bf16.mxu0 %v16059_v45  ;;  %v1279_v45 = vld [vmem:[%s19000_s27 + $0x3e8] sm:$0xff]  ;;  %v15645_v13 = vcombine.high %v1270_v35, %v1278_v50  ;;  %v15644_v6 = vcombine.low %v1270_v35, %v1278_v50 }
0x1772   : > { %v15647_v11 = vcombine.high %v1271_v48, %v1279_v45  ;;  %v15646_v4 = vcombine.low %v1271_v48, %v1279_v45 }
0x1773   : > { %10242 = vmatpush1.bf16.msra.mxu1 %v16056_v33  ;;  %v1286_v33 = vld [vmem:[%s19000_s27 + $0x460] sm:$0xff] }
0x1774   : > { %10328 = vmatpush1.bf16.msra.mxu0 %v16058_v14  ;;  %10243 = vmatprep.subr.bf16.mxu1 %v16073_v37  ;;  %v1294_v14 = vld [vmem:[%s19000_s27 + $0x4e0] sm:$0xff]  ;;  %v1287_v37 = vld [vmem:[%s19000_s27 + $0x468] sm:$0xff] }
0x1775   : > { %10329 = vmatprep.subr.bf16.mxu0 %v16075_v24  ;;  %v1295_v24 = vld [vmem:[%s19000_s27 + $0x4e8] sm:$0xff]  ;;  %v15661_v23 = vcombine.high %v1286_v33, %v1294_v14  ;;  %v15660_v5 = vcombine.low %v1286_v33, %v1294_v14 }
0x1776   : > { %v15663_v51 = vcombine.high %v1287_v37, %v1295_v24  ;;  %v15662_v55 = vcombine.low %v1287_v37, %v1295_v24 }
0x1777   : > { %10244 = vmatpush1.bf16.msra.mxu1 %v16072_v27  ;;  %v1302_v27 = vld [vmem:[%s19000_s27 + $0x560] sm:$0xff] }
0x1778   : > { %10330 = vmatpush1.bf16.msra.mxu0 %v16074_v1  ;;  %10245 = vmatprep.subr.bf16.mxu1 %v16089_v38  ;;  %v1310_v1 = vld [vmem:[%s19000_s27 + $0x5e0] sm:$0xff]  ;;  %v1303_v38 = vld [vmem:[%s19000_s27 + $0x568] sm:$0xff] }
0x1779   : > { %10331 = vmatprep.subr.bf16.mxu0 %v16091_v52  ;;  %v1311_v52 = vld [vmem:[%s19000_s27 + $0x5e8] sm:$0xff]  ;;  %v15677_v46 = vcombine.high %v1302_v27, %v1310_v1  ;;  %v15676_v25 = vcombine.low %v1302_v27, %v1310_v1 }
0x177a   : > { %v15679_v0 = vcombine.high %v1303_v38, %v1311_v52  ;;  %v15678_v47 = vcombine.low %v1303_v38, %v1311_v52 }
0x177b   : > { %10246 = vmatpush1.bf16.msra.mxu1 %v16088_v28  ;;  %v1318_v28 = vld [vmem:[%s19000_s27 + $0x660] sm:$0xff] }
0x177c   : > { %10332 = vmatpush1.bf16.msra.mxu0 %v16090_v36  ;;  %10344 = vmatprep.subr.bf16.mxu1 %v15597_v30  ;;  %v1326_v36 = vld [vmem:[%s19000_s27 + $0x6e0] sm:$0xff]  ;;  %v1319_v30 = vld [vmem:[%s19000_s27 + $0x668] sm:$0xff] }
0x177d   : > { %10430 = vmatprep.subr.bf16.mxu0 %v15599_v20  ;;  %v1327_v20 = vld [vmem:[%s19000_s27 + $0x6e8] sm:$0xff]  ;;  %v15692_v62 = vcombine.low %v1318_v28, %v1326_v36 }
0x177e   : > { %10248 = vmatmul.mubr.bf16.vlgmr.msra.gmra.mrb[36].mxu1 %v20261_v56  ;;  %v15695_v57 = vcombine.high %v1319_v30, %v1327_v20 }
0x177f   : > { %10334 = vmatmul.mubr.bf16.vlgmr.msra.gmra.mrb[36].mxu0 %v20261_v56  ;;  %10345 = vmatpush1.bf16.msra.mxu1 %v15596_v53  ;;  %v15693_v53 = vcombine.high %v1318_v28, %v1326_v36 }
0x1780   : > { %10376 = vmatprep.mubr.bf16.mxu1 %v20171_v42  ;;  %10431 = vmatpush1.bf16.msra.mxu0 %v15598_v54  ;;  %v1342_v54 = vld [vmem:[%s19000_s27 + $0x7e0] sm:$0xff] }
0x1781   : > { %10462 = vmatprep.mubr.bf16.mxu0 %v20171_v42  ;;  %10346 = vmatprep.subr.bf16.mxu1 %v15613_v61  ;;  %v1335_v61 = vld [vmem:[%s19000_s27 + $0x768] sm:$0xff]  ;;  %v15709_v2 = vcombine.high %v1334_v49, %v1342_v54  ;;  %v15708_v35 = vcombine.low %v1334_v49, %v1342_v54 }
0x1782   : > { %10432 = vmatprep.subr.bf16.mxu0 %v15615_v31  ;;  %v15694_v31 = vcombine.low %v1319_v30, %v1327_v20  ;;  %v15711_v59 = vcombine.high %v1335_v61, %v1343_v7  ;;  %v15710_v50 = vcombine.low %v1335_v61, %v1343_v7 }
0x1783   : > { %10347 = vmatpush1.bf16.msra.mxu1 %v15612_v60  ;;  %v1350_v60 = vld [vmem:[%s19000_s27 + $0x860] sm:$0xff] }
0x1784   : > { %10433 = vmatpush1.bf16.msra.mxu0 %v15614_v17  ;;  %10348 = vmatprep.subr.bf16.mxu1 %v15629_v43  ;;  %v1358_v17 = vld [vmem:[%s19000_s27 + $0x8e0] sm:$0xff]  ;;  %v1351_v43 = vld [vmem:[%s19000_s27 + $0x868] sm:$0xff] }
0x1785   : > { %10434 = vmatprep.subr.bf16.mxu0 %v15631_v9  ;;  %v1359_v9 = vld [vmem:[%s19000_s27 + $0x8e8] sm:$0xff]  ;;  %v15725_v48 = vcombine.high %v1350_v60, %v1358_v17  ;;  %v15724_v33 = vcombine.low %v1350_v60, %v1358_v17 }
0x1786   : > { %v15727_v45 = vcombine.high %v1351_v43, %v1359_v9  ;;  %v15726_v14 = vcombine.low %v1351_v43, %v1359_v9 }
0x1787   : > { %10349 = vmatpush1.bf16.msra.mxu1 %v15628_v18  ;;  %v1366_v18 = vld [vmem:[%s19000_s27 + $0x960] sm:$0xff] }
0x1788   : > { %10435 = vmatpush1.bf16.msra.mxu0 %v15630_v16  ;;  %10350 = vmatprep.subr.bf16.mxu1 %v15645_v13  ;;  %v1374_v16 = vld [vmem:[%s19000_s27 + $0x9e0] sm:$0xff]  ;;  %v1367_v13 = vld [vmem:[%s19000_s27 + $0x968] sm:$0xff] }
0x1789   : > { %10436 = vmatprep.subr.bf16.mxu0 %v15647_v11  ;;  %v1375_v11 = vld [vmem:[%s19000_s27 + $0x9e8] sm:$0xff]  ;;  %v15741_v37 = vcombine.high %v1366_v18, %v1374_v16  ;;  %v15740_v27 = vcombine.low %v1366_v18, %v1374_v16 }
0x178a   : > { %v15743_v24 = vcombine.high %v1367_v13, %v1375_v11  ;;  %v15742_v1 = vcombine.low %v1367_v13, %v1375_v11 }
0x178b   : > { %10351 = vmatpush1.bf16.msra.mxu1 %v15644_v6  ;;  %v1382_v6 = vld [vmem:[%s19000_s27 + $0xa60] sm:$0xff] }
0x178c   : > { %10437 = vmatpush1.bf16.msra.mxu0 %v15646_v4  ;;  %10352 = vmatprep.subr.bf16.mxu1 %v15661_v23  ;;  %v1390_v4 = vld [vmem:[%s19000_s27 + $0xae0] sm:$0xff]  ;;  %v1383_v23 = vld [vmem:[%s19000_s27 + $0xa68] sm:$0xff] }
0x178d   : > { %10438 = vmatprep.subr.bf16.mxu0 %v15663_v51  ;;  %v1391_v51 = vld [vmem:[%s19000_s27 + $0xae8] sm:$0xff]  ;;  %v15757_v38 = vcombine.high %v1382_v6, %v1390_v4  ;;  %v15756_v28 = vcombine.low %v1382_v6, %v1390_v4 }
0x178e   : > { %v15759_v52 = vcombine.high %v1383_v23, %v1391_v51  ;;  %v15758_v36 = vcombine.low %v1383_v23, %v1391_v51 }
0x178f   : > { %10353 = vmatpush1.bf16.msra.mxu1 %v15660_v5  ;;  %v1398_v5 = vld [vmem:[%s19000_s27 + $0xb60] sm:$0xff] }
0x1790   : > { %10439 = vmatpush1.bf16.msra.mxu0 %v15662_v55  ;;  %10354 = vmatprep.subr.bf16.mxu1 %v15677_v46  ;;  %v1406_v55 = vld [vmem:[%s19000_s27 + $0xbe0] sm:$0xff]  ;;  %v1399_v46 = vld [vmem:[%s19000_s27 + $0xb68] sm:$0xff] }
0x1791   : > { %10440 = vmatprep.subr.bf16.mxu0 %v15679_v0  ;;  %v1407_v0 = vld [vmem:[%s19000_s27 + $0xbe8] sm:$0xff]  ;;  %v15773_v30 = vcombine.high %v1398_v5, %v1406_v55  ;;  %v15772_v49 = vcombine.low %v1398_v5, %v1406_v55 }
0x1792   : > { %v15775_v20 = vcombine.high %v1399_v46, %v1407_v0  ;;  %v15774_v54 = vcombine.low %v1399_v46, %v1407_v0 }
0x1793   : > { %10355 = vmatpush1.bf16.msra.mxu1 %v15676_v25  ;;  %v1414_v25 = vld [vmem:[%s19000_s27 + $0xc60] sm:$0xff] }
0x1794   : > { %10441 = vmatpush1.bf16.msra.mxu0 %v15678_v47  ;;  %10356 = vmatprep.subr.bf16.mxu1 %v15693_v53  ;;  %v1422_v47 = vld [vmem:[%s19000_s27 + $0xce0] sm:$0xff]  ;;  %v1415_v53 = vld [vmem:[%s19000_s27 + $0xc68] sm:$0xff] }
0x1795   : > { %10442 = vmatprep.subr.bf16.mxu0 %v15695_v57  ;;  %v1423_v57 = vld [vmem:[%s19000_s27 + $0xce8] sm:$0xff]  ;;  %v15789_v61 = vcombine.high %v1414_v25, %v1422_v47  ;;  %v15788_v60 = vcombine.low %v1414_v25, %v1422_v47 }
0x1796   : > { %v15791_v7 = vcombine.high %v1415_v53, %v1423_v57  ;;  %v15790_v17 = vcombine.low %v1415_v53, %v1423_v57  ;;  %v1503_v25 = vld [vmem:[%s19000_s27 + $0x11e8] sm:$0xff]  ;;  %v1510_v57 = vld [vmem:[%s19000_s27 + $0x1260] sm:$0xff] }
0x1797   : > { %10357 = vmatpush1.bf16.msra.mxu1 %v15692_v62  ;;  %v1430_v62 = vld [vmem:[%s19000_s27 + $0xd60] sm:$0xff] }
0x1798   : > { %10443 = vmatpush1.bf16.msra.mxu0 %v15694_v31  ;;  %10358 = vmatprep.subr.bf16.mxu1 %v15709_v2  ;;  %v1438_v31 = vld [vmem:[%s19000_s27 + $0xde0] sm:$0xff]  ;;  %v1431_v2 = vld [vmem:[%s19000_s27 + $0xd68] sm:$0xff] }
0x1799   : > { %10444 = vmatprep.subr.bf16.mxu0 %v15711_v59  ;;  %v1439_v59 = vld [vmem:[%s19000_s27 + $0xde8] sm:$0xff]  ;;  %v15805_v43 = vcombine.high %v1430_v62, %v1438_v31  ;;  %v15804_v18 = vcombine.low %v1430_v62, %v1438_v31 }
0x179a   : > { %v15807_v9 = vcombine.high %v1431_v2, %v1439_v59  ;;  %v15806_v16 = vcombine.low %v1431_v2, %v1439_v59 }
0x179b   : > { %10359 = vmatpush1.bf16.msra.mxu1 %v15708_v35  ;;  %v1446_v35 = vld [vmem:[%s19000_s27 + $0xe60] sm:$0xff] }
0x179c   : > { %10445 = vmatpush1.bf16.msra.mxu0 %v15710_v50  ;;  %10360 = vmatprep.subr.bf16.mxu1 %v15725_v48  ;;  %v1454_v50 = vld [vmem:[%s19000_s27 + $0xee0] sm:$0xff]  ;;  %v1447_v48 = vld [vmem:[%s19000_s27 + $0xe68] sm:$0xff] }
0x179d   : > { %10446 = vmatprep.subr.bf16.mxu0 %v15727_v45  ;;  %v1455_v45 = vld [vmem:[%s19000_s27 + $0xee8] sm:$0xff]  ;;  %v15821_v13 = vcombine.high %v1446_v35, %v1454_v50  ;;  %v15820_v6 = vcombine.low %v1446_v35, %v1454_v50 }
0x179e   : > { %v15823_v11 = vcombine.high %v1447_v48, %v1455_v45  ;;  %v15822_v4 = vcombine.low %v1447_v48, %v1455_v45 }
0x179f   : > { %10361 = vmatpush1.bf16.msra.mxu1 %v15724_v33  ;;  %v1462_v33 = vld [vmem:[%s19000_s27 + $0xf60] sm:$0xff] }
0x17a0   : > { %10447 = vmatpush1.bf16.msra.mxu0 %v15726_v14  ;;  %10362 = vmatprep.subr.bf16.mxu1 %v15741_v37  ;;  %v1470_v14 = vld [vmem:[%s19000_s27 + $0xfe0] sm:$0xff]  ;;  %v1463_v37 = vld [vmem:[%s19000_s27 + $0xf68] sm:$0xff] }
0x17a1   : > { %10448 = vmatprep.subr.bf16.mxu0 %v15743_v24  ;;  %v1471_v24 = vld [vmem:[%s19000_s27 + $0xfe8] sm:$0xff]  ;;  %v15837_v23 = vcombine.high %v1462_v33, %v1470_v14  ;;  %v15836_v5 = vcombine.low %v1462_v33, %v1470_v14 }
0x17a2   : > { %v15839_v51 = vcombine.high %v1463_v37, %v1471_v24  ;;  %v15838_v55 = vcombine.low %v1463_v37, %v1471_v24 }
0x17a3   : > { %10363 = vmatpush1.bf16.msra.mxu1 %v15740_v27  ;;  %v1478_v27 = vld [vmem:[%s19000_s27 + $0x1060] sm:$0xff] }
0x17a4   : > { %10449 = vmatpush1.bf16.msra.mxu0 %v15742_v1  ;;  %10364 = vmatprep.subr.bf16.mxu1 %v15757_v38  ;;  %v1486_v1 = vld [vmem:[%s19000_s27 + $0x10e0] sm:$0xff]  ;;  %v1479_v38 = vld [vmem:[%s19000_s27 + $0x1068] sm:$0xff] }
0x17a5   : > { %10450 = vmatprep.subr.bf16.mxu0 %v15759_v52  ;;  %v1487_v52 = vld [vmem:[%s19000_s27 + $0x10e8] sm:$0xff]  ;;  %v15853_v46 = vcombine.high %v1478_v27, %v1486_v1 }
0x17a6   : > { %v15855_v0 = vcombine.high %v1479_v38, %v1487_v52  ;;  %v15854_v47 = vcombine.low %v1479_v38, %v1487_v52 }
0x17a7   : > { %10365 = vmatpush1.bf16.msra.mxu1 %v15756_v28  ;;  %v1494_v28 = vld [vmem:[%s19000_s27 + $0x1160] sm:$0xff] }
0x17a8   : > { %10451 = vmatpush1.bf16.msra.mxu0 %v15758_v36  ;;  %10366 = vmatprep.subr.bf16.mxu1 %v15773_v30  ;;  %v1502_v36 = vld [vmem:[%s19000_s27 + $0x11e0] sm:$0xff]  ;;  %v15852_v30 = vcombine.low %v1478_v27, %v1486_v1 }
0x17a9   : > { %10452 = vmatprep.subr.bf16.mxu0 %v15775_v20  ;;  %v1495_v20 = vld [vmem:[%s19000_s27 + $0x1168] sm:$0xff]  ;;  %v15869_v53 = vcombine.high %v1494_v28, %v1502_v36  ;;  %v15868_v62 = vcombine.low %v1494_v28, %v1502_v36 }
0x17aa   : > { %v15870_v31 = vcombine.low %v1495_v20, %v1503_v25  ;;  %v20488_v1 = vld [vmem:[%s19008_s8 + $0x10] sm:$0xff] }
0x17ab   : > { %10367 = vmatpush1.bf16.msra.mxu1 %v15772_v49  ;;  %v1518_v49 = vld [vmem:[%s19000_s27 + $0x12e0] sm:$0xff]  ;;  %v7371_v28 = vrot.slane %v20488_v1, %v19617_v21  ;;  %v1575_v36 = vld [vmem:[%s19000_s27 + $0x1668] sm:$0xff] }
0x17ac   : > { %10453 = vmatpush1.bf16.msra.mxu0 %v15774_v54  ;;  %10368 = vmatprep.subr.bf16.mxu1 %v15789_v61  ;;  %v15871_v54 = vcombine.high %v1495_v20, %v1503_v25  ;;  %v1511_v61 = vld [vmem:[%s19000_s27 + $0x1268] sm:$0xff]  ;;  %v15885_v2 = vcombine.high %v1510_v57, %v1518_v49  ;;  %v15884_v35 = vcombine.low %v1510_v57, %v1518_v49  ;;  %v20506_v57 = vld [vmem:[%s19000_s27 + $0x17e0] sm:$0xff] }
0x17ad   : > { %10454 = vmatprep.subr.bf16.mxu0 %v15791_v7  ;;  %v1519_v7 = vld [vmem:[%s19000_s27 + $0x12e8] sm:$0xff]  ;;  %v7367_v20 = vrot.slane %v20488_v1, %v19511_v29  ;;  %v7375_v25 = vrot.slane %v20488_v1, %v19620_v22 }
0x17ae   : > { %v15887_v59 = vcombine.high %v1511_v61, %v1519_v7  ;;  %v15886_v50 = vcombine.low %v1511_v61, %v1519_v7  ;;  %v20509_v61 = vld [vmem:[%s19000_s27 + $0x1768] sm:$0xff] }
0x17af   : > { %10369 = vmatpush1.bf16.msra.mxu1 %v15788_v60  ;;  %v1526_v60 = vld [vmem:[%s19000_s27 + $0x1360] sm:$0xff]  ;;  %v20512_v7 = vld [vmem:[%s19000_s27 + $0x17e8] sm:$0xff] }
0x17b0   : > { %10455 = vmatpush1.bf16.msra.mxu0 %v15790_v17  ;;  %10370 = vmatprep.subr.bf16.mxu1 %v15805_v43  ;;  %v1534_v17 = vld [vmem:[%s19000_s27 + $0x13e0] sm:$0xff]  ;;  %v1527_v43 = vld [vmem:[%s19000_s27 + $0x1368] sm:$0xff] }
0x17b1   : > { %10456 = vmatprep.subr.bf16.mxu0 %v15807_v9  ;;  %v1535_v9 = vld [vmem:[%s19000_s27 + $0x13e8] sm:$0xff]  ;;  %v15901_v48 = vcombine.high %v1526_v60, %v1534_v17  ;;  %v15900_v33 = vcombine.low %v1526_v60, %v1534_v17 }
0x17b2   : > { %v15903_v45 = vcombine.high %v1527_v43, %v1535_v9  ;;  %v15902_v14 = vcombine.low %v1527_v43, %v1535_v9 }
0x17b3   : > { %10371 = vmatpush1.bf16.msra.mxu1 %v15804_v18  ;;  %v1542_v18 = vld [vmem:[%s19000_s27 + $0x1460] sm:$0xff] }
0x17b4   : > { %10457 = vmatpush1.bf16.msra.mxu0 %v15806_v16  ;;  %10372 = vmatprep.subr.bf16.mxu1 %v15821_v13  ;;  %v1550_v16 = vld [vmem:[%s19000_s27 + $0x14e0] sm:$0xff]  ;;  %v1543_v13 = vld [vmem:[%s19000_s27 + $0x1468] sm:$0xff] }
0x17b5   : > { %10458 = vmatprep.subr.bf16.mxu0 %v15823_v11  ;;  %v1551_v11 = vld [vmem:[%s19000_s27 + $0x14e8] sm:$0xff]  ;;  %v15917_v37 = vcombine.high %v1542_v18, %v1550_v16  ;;  %v15916_v27 = vcombine.low %v1542_v18, %v1550_v16 }
0x17b6   : > { %v15919_v24 = vcombine.high %v1543_v13, %v1551_v11  ;;  %v15918_v38 = vcombine.low %v1543_v13, %v1551_v11  ;;  %v15966_v11 = vcombine.low %v20509_v61, %v20512_v7 }
0x17b7   : > { %10373 = vmatpush1.bf16.msra.mxu1 %v15820_v6  ;;  %v1558_v6 = vld [vmem:[%s19000_s27 + $0x1560] sm:$0xff] }
0x17b8   : > { %10459 = vmatpush1.bf16.msra.mxu0 %v15822_v4  ;;  %10374 = vmatprep.subr.bf16.mxu1 %v15837_v23  ;;  %v1566_v4 = vld [vmem:[%s19000_s27 + $0x15e0] sm:$0xff]  ;;  %v1559_v23 = vld [vmem:[%s19000_s27 + $0x1568] sm:$0xff] }
0x17b9   : > { %10460 = vmatprep.subr.bf16.mxu0 %v15839_v51  ;;  %v1567_v51 = vld [vmem:[%s19000_s27 + $0x15e8] sm:$0xff]  ;;  %v15933_v52 = vcombine.high %v1558_v6, %v1566_v4 }
0x17ba   : > { %v15934_v49 = vcombine.low %v1559_v23, %v1567_v51 }
0x17bb   : > { %10375 = vmatpush1.bf16.msra.mxu1 %v15836_v5  ;;  %v15935_v5 = vcombine.high %v1559_v23, %v1567_v51 }
0x17bc   : > { %10461 = vmatpush1.bf16.msra.mxu0 %v15838_v55  ;;  %10387 = vmatprep.subr.bf16.mxu1 %v15853_v46  ;;  %v1574_v55 = vld [vmem:[%s19000_s27 + $0x1660] sm:$0xff] }
0x17bd   : > { %10473 = vmatprep.subr.bf16.mxu0 %v15855_v0  ;;  %v1582_v46 = vld [vmem:[%s19000_s27 + $0x16e0] sm:$0xff]  ;;  %v7363_v0 = vrot.slane %v20488_v1, %v19289_v26 }
0x17be   : > { %10377 = vmatmul.mubr.bf16.vlgmr.msra.gmra.mrb[40].mxu1 %v20175_v44 }
0x17bf   : > { %10463 = vmatmul.mubr.bf16.vlgmr.msra.gmra.mrb[40].mxu0 %v20175_v44  ;;  %10388 = vmatpush1.bf16.msra.mxu1 %v15852_v30  ;;  %v1583_v30 = vld [vmem:[%s19000_s27 + $0x16e8] sm:$0xff] }
0x17c0   : > { %10419 = vmatprep.mubr.bf16.mxu1 %v20189_v3  ;;  %10474 = vmatpush1.bf16.msra.mxu0 %v15854_v47  ;;  %v15932_v47 = vcombine.low %v1558_v6, %v1566_v4 }
0x17c1   : > { %10505 = vmatprep.mubr.bf16.mxu0 %v20189_v3  ;;  %10389 = vmatprep.subr.bf16.mxu1 %v15869_v53  ;;  %v20503_v53 = vld [vmem:[%s19000_s27 + $0x1760] sm:$0xff] }
0x17c2   : > { %10475 = vmatprep.subr.bf16.mxu0 %v15871_v54  ;;  %v15949_v54 = vcombine.high %v1574_v55, %v1582_v46  ;;  %v15964_v13 = vcombine.low %v20503_v53, %v20506_v57 }
0x17c3   : > { %10390 = vmatpush1.bf16.msra.mxu1 %v15868_v62 }
0x17c4   : > { %10476 = vmatpush1.bf16.msra.mxu0 %v15870_v31  ;;  %10391 = vmatprep.subr.bf16.mxu1 %v15885_v2  ;;  %v15948_v2 = vcombine.low %v1574_v55, %v1582_v46 }
0x17c5   : > { %10477 = vmatprep.subr.bf16.mxu0 %v15887_v59  ;;  %v15951_v59 = vcombine.high %v1575_v36, %v1583_v30 }
0x17c7   : > { %10392 = vmatpush1.bf16.msra.mxu1 %v15884_v35  ;;  %v15950_v35 = vcombine.low %v1575_v36, %v1583_v30  ;;  %v1607_v36 = vld [vmem:[%s19000_s27 + $0x1868] sm:$0xff] }
0x17c8   : > { %10478 = vmatpush1.bf16.msra.mxu0 %v15886_v50  ;;  %10393 = vmatprep.subr.bf16.mxu1 %v15901_v48  ;;  %v15965_v50 = vcombine.high %v20503_v53, %v20506_v57  ;;  %v1615_v30 = vld [vmem:[%s19000_s27 + $0x18e8] sm:$0xff] }
0x17c9   : > { %10479 = vmatprep.subr.bf16.mxu0 %v15903_v45 }
0x17cb   : > { %10394 = vmatpush1.bf16.msra.mxu1 %v15900_v33  ;;  %v20529_v33 = vld [vmem:[%s19000_s27 + $0x1860] sm:$0xff] }
0x17cc   : > { %10480 = vmatpush1.bf16.msra.mxu0 %v15902_v14  ;;  %10395 = vmatprep.subr.bf16.mxu1 %v15917_v37  ;;  %v20532_v14 = vld [vmem:[%s19000_s27 + $0x18e0] sm:$0xff] }
0x17cd   : > { %10481 = vmatprep.subr.bf16.mxu0 %v15919_v24  ;;  %v15981_v53 = vcombine.high %v20529_v33, %v20532_v14 }
0x17cf   : > { %10396 = vmatpush1.bf16.msra.mxu1 %v15916_v27 }
0x17d0   : > { %10482 = vmatpush1.bf16.msra.mxu0 %v15918_v38  ;;  %10397 = vmatprep.subr.bf16.mxu1 %v15933_v52 }
0x17d1   : > { %v10077_v62 = vpop.f32.mrb[32].mxu1  ;;  %v10163_v31 = vpop.f32.mrb[32].mxu0  ;;  %10483 = vmatprep.subr.bf16.mxu0 %v15935_v5  ;;  %v15967_v5 = vcombine.high %v20509_v61, %v20512_v7  ;;  %v1622_v7 = vld [vmem:[%s19000_s27 + $0x1960] sm:$0xff] }
0x17d2   : > { %v20514_v60 = vadd.f32 %v10077_v62, %v7363_v0  ;;  %v20516_v17 = vadd.f32 %v10163_v31, %v7371_v28  ;;  %v10079_v43 = vpop.f32.mrb[33].mxu1  ;;  %v10165_v9 = vpop.f32.mrb[33].mxu0  ;;  %v1630_v62 = vld [vmem:[%s19000_s27 + $0x19e0] sm:$0xff] }
0x17d3   : > { %v20520_v48 = vadd.f32 %v10079_v43, %v7367_v20  ;;  %v20522_v45 = vadd.f32 %v10165_v9, %v7375_v25  ;;  %v10081_v18 = vpop.f32.mrb[34].mxu1  ;;  %v10167_v16 = vpop.f32.mrb[34].mxu0  ;;  %10398 = vmatpush1.bf16.msra.mxu1 %v15932_v47  ;;  %v15983_v43 = vcombine.high %v1607_v36, %v1615_v30 }
0x17d4   : > { %v10720_v37 = vmul.f32 0.044715, %v20514_v60  ;;  %v10722_v24 = vmul.f32 0.044715, %v20516_v17  ;;  %v20536_v6 = vadd.f32 %v10081_v18, %v7363_v0  ;;  %v20538_v4 = vadd.f32 %v10167_v16, %v7371_v28  ;;  %10484 = vmatpush1.bf16.msra.mxu0 %v15934_v49  ;;  %v10083_v23 = vpop.f32.mrb[35].mxu1  ;;  %v10169_v51 = vpop.f32.mrb[35].mxu0  ;;  %10399 = vmatprep.subr.bf16.mxu1 %v15949_v54 }
0x17d5   : > { %v10721_v27 = vmul.f32 0.044715, %v20520_v48  ;;  %v20541_v38 = vadd.f32 %v10083_v23, %v7367_v20  ;;  %v20543_v52 = vadd.f32 %v10169_v51, %v7375_v25  ;;  %10485 = vmatprep.subr.bf16.mxu0 %v15951_v59  ;;  %v10723_v20 = vmul.f32 0.044715, %v20522_v45 }
0x17d6   : > { %v10752_v55 = vmul.f32 %v20514_v60, %v10720_v37  ;;  %v10754_v46 = vmul.f32 %v20516_v17, %v10722_v24  ;;  %v10736_v0 = vmul.f32 0.044715, %v20536_v6  ;;  %v10738_v28 = vmul.f32 0.044715, %v20538_v4  ;;  %v1631_v24 = vld [vmem:[%s19000_s27 + $0x19e8] sm:$0xff] }
0x17d7   : > { %v10737_v25 = vmul.f32 0.044715, %v20541_v38  ;;  %v10739_v47 = vmul.f32 0.044715, %v20543_v52  ;;  %10400 = vmatpush1.bf16.msra.mxu1 %v15948_v2  ;;  %v10753_v31 = vmul.f32 %v20520_v48, %v10721_v27  ;;  %v15980_v2 = vcombine.low %v20529_v33, %v20532_v14 }
0x17d8   : > { %v10784_v57 = vmul.f32 %v20514_v60, %v10752_v55  ;;  %v10786_v49 = vmul.f32 %v20516_v17, %v10754_v46  ;;  %v10768_v54 = vmul.f32 %v20536_v6, %v10736_v0  ;;  %v10770_v61 = vmul.f32 %v20538_v4, %v10738_v28  ;;  %10486 = vmatpush1.bf16.msra.mxu0 %v15950_v35  ;;  %v1623_v35 = vld [vmem:[%s19000_s27 + $0x1968] sm:$0xff]  ;;  %v1638_v0 = vld [vmem:[%s19000_s27 + $0x1a60] sm:$0xff] }
0x17d9   : > { %10401 = vmatprep.subr.bf16.mxu1 %v15965_v50  ;;  %v15982_v59 = vcombine.low %v1607_v36, %v1615_v30  ;;  %10487 = vmatprep.subr.bf16.mxu0 %v15967_v5  ;;  %v10755_v50 = vmul.f32 %v20522_v45, %v10723_v20  ;;  %v10769_v23 = vmul.f32 %v20541_v38, %v10737_v25  ;;  %v1646_v28 = vld [vmem:[%s19000_s27 + $0x1ae0] sm:$0xff]  ;;  %v1639_v20 = vld [vmem:[%s19000_s27 + $0x1a68] sm:$0xff] }
0x17da   : > { %v10816_v9 = vadd.f32 %v20514_v60, %v10784_v57  ;;  %v10818_v18 = vadd.f32 %v20516_v17, %v10786_v49  ;;  %v10800_v16 = vmul.f32 %v20536_v6, %v10768_v54  ;;  %v10802_v37 = vmul.f32 %v20538_v4, %v10770_v61  ;;  %v1647_v25 = vld [vmem:[%s19000_s27 + $0x1ae8] sm:$0xff] }
0x17db   : > { %v10771_v33 = vmul.f32 %v20543_v52, %v10739_v47  ;;  %10402 = vmatpush1.bf16.msra.mxu1 %v15964_v13  ;;  %v15997_v14 = vcombine.high %v1622_v7, %v1630_v62  ;;  %v15999_v46 = vcombine.high %v1623_v35, %v1631_v24  ;;  %v10785_v36 = vmul.f32 %v20520_v48, %v10753_v31  ;;  %v1654_v31 = vld [vmem:[%s19000_s27 + $0x1b60] sm:$0xff] }
0x17dc   : > { %v10848_v51 = vmul.f32 0.7978846, %v10816_v9  ;;  %v10850_v27 = vmul.f32 0.7978846, %v10818_v18  ;;  %v10832_v55 = vadd.f32 %v20536_v6, %v10800_v16  ;;  %v10834_v5 = vadd.f32 %v20538_v4, %v10802_v37  ;;  %10488 = vmatpush1.bf16.msra.mxu0 %v15966_v11  ;;  %10403 = vmatprep.subr.bf16.mxu1 %v15981_v53  ;;  %v1655_v9 = vld [vmem:[%s19000_s27 + $0x1b68] sm:$0xff] }
0x17dd   : > { %10489 = vmatprep.subr.bf16.mxu0 %v15983_v43  ;;  %v10801_v47 = vmul.f32 %v20541_v38, %v10769_v23  ;;  %v15996_v11 = vcombine.low %v1622_v7, %v1630_v62  ;;  %v15998_v53 = vcombine.low %v1623_v35, %v1631_v24  ;;  %v10787_v57 = vmul.f32 %v20522_v45, %v10755_v50  ;;  %v1662_v43 = vld [vmem:[%s19000_s27 + $0x1be0] sm:$0xff]  ;;  %v1663_v18 = vld [vmem:[%s19000_s27 + $0x1be8] sm:$0xff] }
0x17de   : > { %18164 = vtanh.f32 %v10848_v51  ;;  %v10864_v30 = vmul.f32 0.7978846, %v10832_v55  ;;  %v10866_v13 = vmul.f32 0.7978846, %v10834_v5  ;;  %v10803_v49 = vmul.f32 %v20543_v52, %v10771_v33  ;;  %v1670_v23 = vld [vmem:[%s19000_s27 + $0x1c60] sm:$0xff]  ;;  %v1671_v51 = vld [vmem:[%s19000_s27 + $0x1c68] sm:$0xff] }
0x17df   : > { %18166 = vtanh.f32 %v10850_v27  ;;  %10404 = vmatpush1.bf16.msra.mxu1 %v15980_v2  ;;  %v16013_v54 = vcombine.high %v1638_v0, %v1646_v28  ;;  %v16015_v61 = vcombine.high %v1639_v20, %v1647_v25  ;;  %v10817_v7 = vadd.f32 %v20520_v48, %v10785_v36  ;;  %v1678_v33 = vld [vmem:[%s19000_s27 + $0x1ce0] sm:$0xff]  ;;  %v1679_v27 = vld [vmem:[%s19000_s27 + $0x1ce8] sm:$0xff] }
0x17e0   : > { %18168 = vtanh.f32 %v10864_v30  ;;  %10490 = vmatpush1.bf16.msra.mxu0 %v15982_v59  ;;  %10405 = vmatprep.subr.bf16.mxu1 %v15997_v14  ;;  %v16012_v62 = vcombine.low %v1638_v0, %v1646_v28  ;;  %v16014_v2 = vcombine.low %v1639_v20, %v1647_v25  ;;  %v10833_v59 = vadd.f32 %v20541_v38, %v10801_v47  ;;  %v1686_v20 = vld [vmem:[%s19000_s27 + $0x1d60] sm:$0xff] }
0x17e1   : > { %18170 = vtanh.f32 %v10866_v13  ;;  %10491 = vmatprep.subr.bf16.mxu0 %v15999_v46  ;;  %v16029_v16 = vcombine.high %v1654_v31, %v1662_v43  ;;  %v10849_v37 = vmul.f32 0.7978846, %v10817_v7  ;;  %v10819_v35 = vadd.f32 %v20522_v45, %v10787_v57  ;;  %v1694_v25 = vld [vmem:[%s19000_s27 + $0x1de0] sm:$0xff]  ;;  %v1687_v57 = vld [vmem:[%s19000_s27 + $0x1d68] sm:$0xff] }
0x17e2   : > { %v10835_v24 = vadd.f32 %v20543_v52, %v10803_v49  ;;  %v16031_v50 = vcombine.high %v1655_v9, %v1663_v18  ;;  %v10865_v14 = vmul.f32 0.7978846, %v10833_v59  ;;  %v16028_v55 = vcombine.low %v1654_v31, %v1662_v43  ;;  %v1695_v49 = vld [vmem:[%s19000_s27 + $0x1de8] sm:$0xff] }
0x17e3   : > { %10406 = vmatpush1.bf16.msra.mxu1 %v15996_v11  ;;  %18172 = vtanh.f32 %v10849_v37  ;;  %v10851_v5 = vmul.f32 0.7978846, %v10819_v35  ;;  %v16030_v28 = vcombine.low %v1655_v9, %v1663_v18  ;;  %v16045_v36 = vcombine.high %v1670_v23, %v1678_v33  ;;  %v1702_v37 = vld [vmem:[%s19000_s27 + $0x1e60] sm:$0xff] }
0x17e4   : > { %10492 = vmatpush1.bf16.msra.mxu0 %v15998_v53  ;;  %10407 = vmatprep.subr.bf16.mxu1 %v16013_v54  ;;  %18174 = vtanh.f32 %v10865_v14  ;;  %v10867_v46 = vmul.f32 0.7978846, %v10835_v24  ;;  %v16047_v13 = vcombine.high %v1671_v51, %v1679_v27  ;;  %v16044_v53 = vcombine.low %v1670_v23, %v1678_v33  ;;  %v1710_v35 = vld [vmem:[%s19000_s27 + $0x1ee0] sm:$0xff]  ;;  %v1703_v23 = vld [vmem:[%s19000_s27 + $0x1e68] sm:$0xff] }
0x17e5   : > { %10493 = vmatprep.subr.bf16.mxu0 %v16015_v61  ;;  %18176 = vtanh.f32 %v10851_v5  ;;  %v16046_v31 = vcombine.low %v1671_v51, %v1679_v27  ;;  %v10688_v43 = vmul.f32 0.5, %v20514_v60  ;;  %v10704_v9 = vmul.f32 0.5, %v20536_v6  ;;  %v1711_v60 = vld [vmem:[%s19000_s27 + $0x1ee8] sm:$0xff] }
0x17e6   : > { %18178 = vtanh.f32 %v10867_v46  ;;  %v16061_v7 = vcombine.high %v1686_v20, %v1694_v25  ;;  %v16060_v14 = vcombine.low %v1686_v20, %v1694_v25  ;;  %v16062_v51 = vcombine.low %v1687_v57, %v1695_v49 }
0x17e7   : > { %10408 = vmatpush1.bf16.msra.mxu1 %v16012_v62  ;;  %v10690_v62 = vmul.f32 0.5, %v20516_v17  ;;  %v16077_v27 = vcombine.high %v1702_v37, %v1710_v35  ;;  %v16079_v46 = vcombine.high %v1703_v23, %v1711_v60  ;;  %v10705_v20 = vmul.f32 0.5, %v20541_v38 }
0x17e8   : > { %v18165_v0 = vpop.eup %18164  ;;  %10494 = vmatpush1.bf16.msra.mxu0 %v16014_v2  ;;  %10409 = vmatprep.subr.bf16.mxu1 %v16029_v16  ;;  %v10706_v2 = vmul.f32 0.5, %v20538_v4  ;;  %v16063_v16 = vcombine.high %v1687_v57, %v1695_v49  ;;  %v16078_v57 = vcombine.low %v1703_v23, %v1711_v60  ;;  %v10691_v38 = vmul.f32 0.5, %v20522_v45  ;;  %v1240_v60 = vld [vmem:[%s19000_s27 + $0x170] sm:$0xff] }
0x17e9   : > { %v18167_v30 = vpop.eup %18166  ;;  %10495 = vmatprep.subr.bf16.mxu0 %v16031_v50  ;;  %v10912_v47 = vadd.f32 1.0, %v18165_v0  ;;  %v1718_v0 = vld [vmem:[%s19000_s27 + $0x1f60] sm:$0xff] }
0x17ea   : > { %v18169_v11 = vpop.eup %18168  ;;  %v10914_v54 = vadd.f32 1.0, %v18167_v30  ;;  %v1719_v30 = vld [vmem:[%s19000_s27 + $0x1f68] sm:$0xff] }
0x17eb   : > { %v18171_v61 = vpop.eup %18170  ;;  %10410 = vmatpush1.bf16.msra.mxu1 %v16028_v55  ;;  %v10928_v18 = vadd.f32 1.0, %v18169_v11  ;;  %v10944_v24 = vmul.f32 %v10912_v47, %v10688_v43  ;;  %v10689_v47 = vmul.f32 0.5, %v20520_v48 }
0x17ec   : > { %10496 = vmatpush1.bf16.msra.mxu0 %v16030_v28  ;;  %10411 = vmatprep.subr.bf16.mxu1 %v16045_v36  ;;  %v10930_v59 = vadd.f32 1.0, %v18171_v61  ;;  %v10946_v6 = vmul.f32 %v10914_v54, %v10690_v62  ;;  %v1726_v28 = vld [vmem:[%s19000_s27 + $0x1fe0] sm:$0xff] }
0x17ed   : > { %10497 = vmatprep.subr.bf16.mxu0 %v16047_v13  ;;  %v10960_v50 = vmul.f32 %v10928_v18, %v10704_v9  ;;  %v18173_v4 = vpop.eup %18172  ;;  %v1727_v13 = vld [vmem:[%s19000_s27 + $0x1fe8] sm:$0xff]  ;;  %v16093_v54 = vcombine.high %v1718_v0, %v1726_v28  ;;  %v1224_v9 = vld [vmem:[%s19000_s27 + $0x70] sm:$0xff] }
0x17ee   : > { %v10962_v33 = vmul.f32 %v10930_v59, %v10706_v2  ;;  %v18175_v5 = vpop.eup %18174  ;;  %v10913_v36 = vadd.f32 1.0, %v18173_v4  ;;  %v16095_v48 = vcombine.high %v1719_v30, %v1727_v13  ;;  %v1232_v18 = vld [vmem:[%s19000_s27 + $0xf0] sm:$0xff]  ;;  %v1225_v2 = vld [vmem:[%s19000_s27 + $0x78] sm:$0xff] }
0x17ef   : > { %10412 = vmatpush1.bf16.msra.mxu1 %v16044_v53  ;;  %v20610_v17 = vpack.c.bf16 %v10960_v50, %v10944_v24  ;;  %v10929_v25 = vadd.f32 1.0, %v18175_v5  ;;  %v18177_v11 = vpop.eup %18176  ;;  %v16076_v53 = vcombine.low %v1702_v37, %v1710_v35  ;;  %v1233_v59 = vld [vmem:[%s19000_s27 + $0xf8] sm:$0xff]  ;;  %v16092_v37 = vcombine.low %v1718_v0, %v1726_v28  ;;  %v1256_v5 = vld [vmem:[%s19000_s27 + $0x270] sm:$0xff] }
0x17f0   : > { %10498 = vmatpush1.bf16.msra.mxu0 %v16046_v31  ;;  %10413 = vmatprep.subr.bf16.mxu1 %v16061_v7  ;;  %v20612_v55 = vpack.c.bf16 %v10962_v33, %v10946_v6  ;;  %v18179_v49 = vpop.eup %18178  ;;  %v10945_v61 = vmul.f32 %v10913_v36, %v10689_v47  ;;  %v10915_v43 = vadd.f32 1.0, %v18177_v11  ;;  %v10707_v7 = vmul.f32 0.5, %v20543_v52  ;;  %v1248_v6 = vld [vmem:[%s19000_s27 + $0x1f0] sm:$0xff]  ;;  %v1249_v4 = vld [vmem:[%s19000_s27 + $0x1f8] sm:$0xff] }
0x17f1   : > { %10499 = vmatprep.subr.bf16.mxu0 %v16063_v16  ;;  %v10961_v31 = vmul.f32 %v10929_v25, %v10705_v20  ;;  %v10931_v62 = vadd.f32 1.0, %v18179_v49  ;;  %v16094_v50 = vcombine.low %v1719_v30, %v1727_v13  ;;  %v15601_v45 = vcombine.high %v1224_v9, %v1232_v18  ;;  %v1257_v28 = vld [vmem:[%s19000_s27 + $0x278] sm:$0xff]  ;;  %v1272_v25 = vld [vmem:[%s19000_s27 + $0x370] sm:$0xff] }
0x17f2   : > { %v10947_v35 = vmul.f32 %v10915_v43, %v10691_v38  ;;  %v15603_v52 = vcombine.high %v1225_v2, %v1233_v59  ;;  %v15600_v33 = vcombine.low %v1224_v9, %v1232_v18  ;;  %v1265_v36 = vld [vmem:[%s19000_s27 + $0x2f8] sm:$0xff]  ;;  %v15616_v30 = vcombine.low %v1240_v60, %v1248_v6  ;;  %v1280_v11 = vld [vmem:[%s19000_s27 + $0x3f0] sm:$0xff] }
0x17f3   : > { %10414 = vmatpush1.bf16.msra.mxu1 %v16060_v14  ;;  %v20626_v16 = vpack.c.bf16 %v10961_v31, %v10945_v61  ;;  %v10963_v24 = vmul.f32 %v10931_v62, %v10707_v7  ;;  %v1241_v14 = vld [vmem:[%s19000_s27 + $0x178] sm:$0xff]  ;;  %v15635_v20 = vcombine.high %v1257_v28, %v1265_v36  ;;  %v15649_v61 = vcombine.high %v1272_v25, %v1280_v11  ;;  %v1288_v31 = vld [vmem:[%s19000_s27 + $0x470] sm:$0xff] }
0x17f4   : > { %10500 = vmatpush1.bf16.msra.mxu0 %v16062_v51  ;;  %10415 = vmatprep.subr.bf16.mxu1 %v16077_v27  ;;  %v15602_v51 = vcombine.low %v1225_v2, %v1233_v59  ;;  %v15617_v27 = vcombine.high %v1240_v60, %v1248_v6  ;;  %v15619_v0 = vcombine.high %v1241_v14, %v1249_v4  ;;  %v1296_v43 = vld [vmem:[%s19000_s27 + $0x4f0] sm:$0xff]  ;;  %v1297_v9 = vld [vmem:[%s19000_s27 + $0x4f8] sm:$0xff] }
0x17f5   : > { %10501 = vmatprep.subr.bf16.mxu0 %v16079_v46  ;;  %v20628_v23 = vpack.c.bf16 %v10963_v24, %v10947_v35  ;;  %v1264_v46 = vld [vmem:[%s19000_s27 + $0x2f0] sm:$0xff]  ;;  %v15618_v13 = vcombine.low %v1241_v14, %v1249_v4  ;;  %v15648_v18 = vcombine.low %v1272_v25, %v1280_v11  ;;  %v15665_v7 = vcombine.high %v1288_v31, %v1296_v43  ;;  %v1313_v35 = vld [vmem:[%s19000_s27 + $0x5f8] sm:$0xff] }
0x17f6   : > { %v15633_v47 = vcombine.high %v1256_v5, %v1264_v46  ;;  %v15632_v49 = vcombine.low %v1256_v5, %v1264_v46  ;;  %v1304_v2 = vld [vmem:[%s19000_s27 + $0x570] sm:$0xff]  ;;  %v15664_v24 = vcombine.low %v1288_v31, %v1296_v43  ;;  %v1329_v14 = vld [vmem:[%s19000_s27 + $0x6f8] sm:$0xff] }
0x17f7   : > { %10416 = vmatpush1.bf16.msra.mxu1 %v16076_v53  ;;  %v1273_v53 = vld [vmem:[%s19000_s27 + $0x378] sm:$0xff]  ;;  %v1312_v59 = vld [vmem:[%s19000_s27 + $0x5f0] sm:$0xff] }
0x17f8   : > { %10502 = vmatpush1.bf16.msra.mxu0 %v16078_v57  ;;  %10417 = vmatprep.subr.bf16.mxu1 %v16093_v54  ;;  %v1281_v57 = vld [vmem:[%s19000_s27 + $0x3f8] sm:$0xff]  ;;  %v15634_v54 = vcombine.low %v1257_v28, %v1265_v36  ;;  %v1320_v60 = vld [vmem:[%s19000_s27 + $0x670] sm:$0xff]  ;;  %v15680_v4 = vcombine.low %v1304_v2, %v1312_v59 }
0x17f9   : > { %10503 = vmatprep.subr.bf16.mxu0 %v16095_v48  ;;  %v1289_v48 = vld [vmem:[%s19000_s27 + $0x478] sm:$0xff]  ;;  %v15650_v38 = vcombine.low %v1273_v53, %v1281_v57  ;;  %v1328_v6 = vld [vmem:[%s19000_s27 + $0x6f0] sm:$0xff] }
0x17fa   : > { %v15667_v62 = vcombine.high %v1289_v48, %v1297_v9  ;;  %v1336_v46 = vld [vmem:[%s19000_s27 + $0x770] sm:$0xff]  ;;  %v1337_v28 = vld [vmem:[%s19000_s27 + $0x778] sm:$0xff] }
0x17fb   : > { %10418 = vmatpush1.bf16.msra.mxu1 %v16092_v37  ;;  %v1305_v37 = vld [vmem:[%s19000_s27 + $0x578] sm:$0xff]  ;;  %v1352_v25 = vld [vmem:[%s19000_s27 + $0x870] sm:$0xff] }
0x17fc   : > { %10504 = vmatpush1.bf16.msra.mxu0 %v16094_v50  ;;  %10516 = vmatprep.subr.bf16.mxu1 %v15601_v45  ;;  %v15666_v50 = vcombine.low %v1289_v48, %v1297_v9  ;;  %v15681_v45 = vcombine.high %v1304_v2, %v1312_v59  ;;  %v1345_v36 = vld [vmem:[%s19000_s27 + $0x7f8] sm:$0xff]  ;;  %v1360_v11 = vld [vmem:[%s19000_s27 + $0x8f0] sm:$0xff] }
0x17fd   : > { %10602 = vmatprep.subr.bf16.mxu0 %v15603_v52  ;;  %v15683_v52 = vcombine.high %v1305_v37, %v1313_v35  ;;  %v1368_v31 = vld [vmem:[%s19000_s27 + $0x970] sm:$0xff]  ;;  %v1369_v48 = vld [vmem:[%s19000_s27 + $0x978] sm:$0xff] }
0x17fe   : > { %10420 = vmatmul.mubr.bf16.vlgmr.msra.gmra.mrb[40].mxu1 %v20261_v56  ;;  %v1376_v43 = vld [vmem:[%s19000_s27 + $0x9f0] sm:$0xff]  ;;  %v1377_v9 = vld [vmem:[%s19000_s27 + $0x9f8] sm:$0xff] }
0x17ff   : > { %10506 = vmatmul.mubr.bf16.vlgmr.msra.gmra.mrb[40].mxu0 %v20261_v56  ;;  %10517 = vmatpush1.bf16.msra.mxu1 %v15600_v33  ;;  %v1321_v33 = vld [vmem:[%s19000_s27 + $0x678] sm:$0xff]  ;;  %v1384_v2 = vld [vmem:[%s19000_s27 + $0xa70] sm:$0xff] }
0x1800   : > { %10548 = vmatprep.mubr.bf16.mxu1 %v20171_v42  ;;  %10603 = vmatpush1.bf16.msra.mxu0 %v15602_v51  ;;  %v15682_v51 = vcombine.low %v1305_v37, %v1313_v35  ;;  %v15699_v5 = vcombine.high %v1321_v33, %v1329_v14  ;;  %v1392_v59 = vld [vmem:[%s19000_s27 + $0xaf0] sm:$0xff]  ;;  %v1385_v37 = vld [vmem:[%s19000_s27 + $0xa78] sm:$0xff] }
0x1801   : > { %10634 = vmatprep.mubr.bf16.mxu0 %v20171_v42  ;;  %10518 = vmatprep.subr.bf16.mxu1 %v15617_v27  ;;  %v15651_v42 = vcombine.high %v1273_v53, %v1281_v57  ;;  %v15697_v27 = vcombine.high %v1320_v60, %v1328_v6  ;;  %v1353_v53 = vld [vmem:[%s19000_s27 + $0x878] sm:$0xff] }
0x1802   : > { %10604 = vmatprep.subr.bf16.mxu0 %v15619_v0  ;;  %v1344_v0 = vld [vmem:[%s19000_s27 + $0x7f0] sm:$0xff]  ;;  %v1361_v57 = vld [vmem:[%s19000_s27 + $0x8f8] sm:$0xff] }
0x1803   : > { %10519 = vmatpush1.bf16.msra.mxu1 %v15616_v30  ;;  %v15696_v30 = vcombine.low %v1320_v60, %v1328_v6  ;;  %v1393_v35 = vld [vmem:[%s19000_s27 + $0xaf8] sm:$0xff]  ;;  %v1400_v60 = vld [vmem:[%s19000_s27 + $0xb70] sm:$0xff] }
0x1804   : > { %10605 = vmatpush1.bf16.msra.mxu0 %v15618_v13  ;;  %10520 = vmatprep.subr.bf16.mxu1 %v15633_v47  ;;  %v15698_v13 = vcombine.low %v1321_v33, %v1329_v14  ;;  %v15713_v47 = vcombine.high %v1336_v46, %v1344_v0  ;;  %v1408_v6 = vld [vmem:[%s19000_s27 + $0xbf0] sm:$0xff]  ;;  %v1401_v33 = vld [vmem:[%s19000_s27 + $0xb78] sm:$0xff] }
0x1805   : > { %10606 = vmatprep.subr.bf16.mxu0 %v15635_v20  ;;  %v15715_v20 = vcombine.high %v1337_v28, %v1345_v36  ;;  %v1409_v14 = vld [vmem:[%s19000_s27 + $0xbf8] sm:$0xff] }
0x1807   : > { %10521 = vmatpush1.bf16.msra.mxu1 %v15632_v49  ;;  %v15712_v49 = vcombine.low %v1336_v46, %v1344_v0  ;;  %v1416_v46 = vld [vmem:[%s19000_s27 + $0xc70] sm:$0xff] }
0x1808   : > { %10607 = vmatpush1.bf16.msra.mxu0 %v15634_v54  ;;  %10522 = vmatprep.subr.bf16.mxu1 %v15649_v61  ;;  %v15714_v54 = vcombine.low %v1337_v28, %v1345_v36  ;;  %v15729_v61 = vcombine.high %v1352_v25, %v1360_v11  ;;  %v1424_v0 = vld [vmem:[%s19000_s27 + $0xcf0] sm:$0xff]  ;;  %v1417_v28 = vld [vmem:[%s19000_s27 + $0xc78] sm:$0xff] }
0x1809   : > { %10608 = vmatprep.subr.bf16.mxu0 %v15651_v42  ;;  %v15731_v42 = vcombine.high %v1353_v53, %v1361_v57  ;;  %v1425_v36 = vld [vmem:[%s19000_s27 + $0xcf8] sm:$0xff] }
0x180b   : > { %10523 = vmatpush1.bf16.msra.mxu1 %v15648_v18  ;;  %v15728_v18 = vcombine.low %v1352_v25, %v1360_v11  ;;  %v1432_v25 = vld [vmem:[%s19000_s27 + $0xd70] sm:$0xff] }
0x180c   : > { %10609 = vmatpush1.bf16.msra.mxu0 %v15650_v38  ;;  %10524 = vmatprep.subr.bf16.mxu1 %v15665_v7  ;;  %v15730_v38 = vcombine.low %v1353_v53, %v1361_v57  ;;  %v15745_v7 = vcombine.high %v1368_v31, %v1376_v43  ;;  %v1440_v11 = vld [vmem:[%s19000_s27 + $0xdf0] sm:$0xff]  ;;  %v1433_v53 = vld [vmem:[%s19000_s27 + $0xd78] sm:$0xff] }
0x180d   : > { %10610 = vmatprep.subr.bf16.mxu0 %v15667_v62  ;;  %v15747_v62 = vcombine.high %v1369_v48, %v1377_v9  ;;  %v1441_v57 = vld [vmem:[%s19000_s27 + $0xdf8] sm:$0xff] }
0x180f   : > { %10525 = vmatpush1.bf16.msra.mxu1 %v15664_v24  ;;  %v15744_v24 = vcombine.low %v1368_v31, %v1376_v43  ;;  %v1448_v31 = vld [vmem:[%s19000_s27 + $0xe70] sm:$0xff] }
0x1810   : > { %10611 = vmatpush1.bf16.msra.mxu0 %v15666_v50  ;;  %10526 = vmatprep.subr.bf16.mxu1 %v15681_v45  ;;  %v15746_v50 = vcombine.low %v1369_v48, %v1377_v9  ;;  %v15761_v45 = vcombine.high %v1384_v2, %v1392_v59  ;;  %v1456_v43 = vld [vmem:[%s19000_s27 + $0xef0] sm:$0xff]  ;;  %v1449_v48 = vld [vmem:[%s19000_s27 + $0xe78] sm:$0xff] }
0x1811   : > { %10612 = vmatprep.subr.bf16.mxu0 %v15683_v52  ;;  %v15763_v52 = vcombine.high %v1385_v37, %v1393_v35  ;;  %v1457_v9 = vld [vmem:[%s19000_s27 + $0xef8] sm:$0xff] }
0x1813   : > { %10527 = vmatpush1.bf16.msra.mxu1 %v15680_v4  ;;  %v15760_v4 = vcombine.low %v1384_v2, %v1392_v59  ;;  %v1464_v2 = vld [vmem:[%s19000_s27 + $0xf70] sm:$0xff] }
0x1814   : > { %10613 = vmatpush1.bf16.msra.mxu0 %v15682_v51  ;;  %10528 = vmatprep.subr.bf16.mxu1 %v15697_v27  ;;  %v15762_v51 = vcombine.low %v1385_v37, %v1393_v35  ;;  %v15777_v27 = vcombine.high %v1400_v60, %v1408_v6  ;;  %v1472_v59 = vld [vmem:[%s19000_s27 + $0xff0] sm:$0xff]  ;;  %v1465_v37 = vld [vmem:[%s19000_s27 + $0xf78] sm:$0xff] }
0x1815   : > { %10614 = vmatprep.subr.bf16.mxu0 %v15699_v5  ;;  %v15779_v5 = vcombine.high %v1401_v33, %v1409_v14  ;;  %v1473_v35 = vld [vmem:[%s19000_s27 + $0xff8] sm:$0xff] }
0x1817   : > { %10529 = vmatpush1.bf16.msra.mxu1 %v15696_v30  ;;  %v15776_v30 = vcombine.low %v1400_v60, %v1408_v6  ;;  %v1480_v60 = vld [vmem:[%s19000_s27 + $0x1070] sm:$0xff] }
0x1818   : > { %10615 = vmatpush1.bf16.msra.mxu0 %v15698_v13  ;;  %10530 = vmatprep.subr.bf16.mxu1 %v15713_v47  ;;  %v15778_v13 = vcombine.low %v1401_v33, %v1409_v14  ;;  %v15793_v47 = vcombine.high %v1416_v46, %v1424_v0  ;;  %v1488_v6 = vld [vmem:[%s19000_s27 + $0x10f0] sm:$0xff]  ;;  %v1481_v33 = vld [vmem:[%s19000_s27 + $0x1078] sm:$0xff] }
0x1819   : > { %10616 = vmatprep.subr.bf16.mxu0 %v15715_v20  ;;  %v15795_v20 = vcombine.high %v1417_v28, %v1425_v36  ;;  %v1489_v14 = vld [vmem:[%s19000_s27 + $0x10f8] sm:$0xff] }
0x181b   : > { %10531 = vmatpush1.bf16.msra.mxu1 %v15712_v49  ;;  %v15792_v49 = vcombine.low %v1416_v46, %v1424_v0  ;;  %v1496_v46 = vld [vmem:[%s19000_s27 + $0x1170] sm:$0xff] }
0x181c   : > { %10617 = vmatpush1.bf16.msra.mxu0 %v15714_v54  ;;  %10532 = vmatprep.subr.bf16.mxu1 %v15729_v61  ;;  %v15794_v54 = vcombine.low %v1417_v28, %v1425_v36  ;;  %v15809_v61 = vcombine.high %v1432_v25, %v1440_v11  ;;  %v1504_v0 = vld [vmem:[%s19000_s27 + $0x11f0] sm:$0xff]  ;;  %v15856_v28 = vcombine.low %v1480_v60, %v1488_v6  ;;  %v1497_v36 = vld [vmem:[%s19000_s27 + $0x1178] sm:$0xff] }
0x181d   : > { %10618 = vmatprep.subr.bf16.mxu0 %v15731_v42  ;;  %v15811_v42 = vcombine.high %v1433_v53, %v1441_v57 }
0x181f   : > { %10533 = vmatpush1.bf16.msra.mxu1 %v15728_v18  ;;  %v15808_v18 = vcombine.low %v1432_v25, %v1440_v11  ;;  %v1520_v25 = vld [vmem:[%s19000_s27 + $0x12f0] sm:$0xff] }
0x1820   : > { %10619 = vmatpush1.bf16.msra.mxu0 %v15730_v38  ;;  %10534 = vmatprep.subr.bf16.mxu1 %v15745_v7  ;;  %v15810_v38 = vcombine.low %v1433_v53, %v1441_v57  ;;  %v15825_v7 = vcombine.high %v1448_v31, %v1456_v43  ;;  %v1513_v53 = vld [vmem:[%s19000_s27 + $0x1278] sm:$0xff] }
0x1821   : > { %10620 = vmatprep.subr.bf16.mxu0 %v15747_v62  ;;  %v15827_v62 = vcombine.high %v1449_v48, %v1457_v9  ;;  %v1521_v57 = vld [vmem:[%s19000_s27 + $0x12f8] sm:$0xff] }
0x1823   : > { %10535 = vmatpush1.bf16.msra.mxu1 %v15744_v24  ;;  %v15824_v24 = vcombine.low %v1448_v31, %v1456_v43  ;;  %v1528_v31 = vld [vmem:[%s19000_s27 + $0x1370] sm:$0xff] }
0x1824   : > { %10621 = vmatpush1.bf16.msra.mxu0 %v15746_v50  ;;  %10536 = vmatprep.subr.bf16.mxu1 %v15761_v45  ;;  %v15826_v50 = vcombine.low %v1449_v48, %v1457_v9  ;;  %v15841_v45 = vcombine.high %v1464_v2, %v1472_v59  ;;  %v1536_v43 = vld [vmem:[%s19000_s27 + $0x13f0] sm:$0xff]  ;;  %v1529_v48 = vld [vmem:[%s19000_s27 + $0x1378] sm:$0xff] }
0x1825   : > { %10622 = vmatprep.subr.bf16.mxu0 %v15763_v52  ;;  %v15843_v52 = vcombine.high %v1465_v37, %v1473_v35 }
0x1827   : > { %10537 = vmatpush1.bf16.msra.mxu1 %v15760_v4  ;;  %v15840_v4 = vcombine.low %v1464_v2, %v1472_v59  ;;  %v1545_v2 = vld [vmem:[%s19000_s27 + $0x1478] sm:$0xff] }
0x1828   : > { %10623 = vmatpush1.bf16.msra.mxu0 %v15762_v51  ;;  %10538 = vmatprep.subr.bf16.mxu1 %v15777_v27  ;;  %v15842_v51 = vcombine.low %v1465_v37, %v1473_v35  ;;  %v15857_v27 = vcombine.high %v1480_v60, %v1488_v6  ;;  %v1553_v59 = vld [vmem:[%s19000_s27 + $0x14f8] sm:$0xff]  ;;  %v15904_v37 = vcombine.low %v1528_v31, %v1536_v43 }
0x1829   : > { %10624 = vmatprep.subr.bf16.mxu0 %v15779_v5  ;;  %v15859_v5 = vcombine.high %v1481_v33, %v1489_v14  ;;  %v1561_v60 = vld [vmem:[%s19000_s27 + $0x1578] sm:$0xff] }
0x182a   : > { %v1569_v6 = vld [vmem:[%s19000_s27 + $0x15f8] sm:$0xff] }
0x182b   : > { %10539 = vmatpush1.bf16.msra.mxu1 %v15776_v30  ;;  %v1505_v30 = vld [vmem:[%s19000_s27 + $0x11f8] sm:$0xff] }
0x182c   : > { %10625 = vmatpush1.bf16.msra.mxu0 %v15778_v13  ;;  %10540 = vmatprep.subr.bf16.mxu1 %v15793_v47  ;;  %v15858_v13 = vcombine.low %v1481_v33, %v1489_v14  ;;  %v15873_v47 = vcombine.high %v1496_v46, %v1504_v0  ;;  %v15875_v11 = vcombine.high %v1497_v36, %v1505_v30 }
0x182d   : > { %10626 = vmatprep.subr.bf16.mxu0 %v15795_v20  ;;  %v1512_v20 = vld [vmem:[%s19000_s27 + $0x1270] sm:$0xff]  ;;  %v15922_v14 = vcombine.low %v1545_v2, %v1553_v59 }
0x182e   : > { %v15888_v9 = vcombine.low %v1512_v20, %v1520_v25 }
0x182f   : > { %10541 = vmatpush1.bf16.msra.mxu1 %v15792_v49  ;;  %v15872_v49 = vcombine.low %v1496_v46, %v1504_v0  ;;  %v7379_v46 = vrot.slane %v20488_v1, %v19403_v39  ;;  %v1577_v0 = vld [vmem:[%s19000_s27 + $0x1678] sm:$0xff] }
0x1830   : > { %10627 = vmatpush1.bf16.msra.mxu0 %v15794_v54  ;;  %10542 = vmatprep.subr.bf16.mxu1 %v15809_v61  ;;  %v15874_v54 = vcombine.low %v1497_v36, %v1505_v30  ;;  %v15889_v61 = vcombine.high %v1512_v20, %v1520_v25  ;;  %v7387_v36 = vrot.slane %v20488_v1, %v19585_v8 }
0x1831   : > { %10628 = vmatprep.subr.bf16.mxu0 %v15811_v42  ;;  %v15891_v42 = vcombine.high %v1513_v53, %v1521_v57  ;;  %v7383_v30 = vrot.slane %v20488_v1, %v19406_v41  ;;  %v15938_v25 = vcombine.low %v1561_v60, %v1569_v6 }
0x1833   : > { %10543 = vmatpush1.bf16.msra.mxu1 %v15808_v18  ;;  %v15890_v18 = vcombine.low %v1513_v53, %v1521_v57  ;;  %v20735_v53 = vld [vmem:[%s19000_s27 + $0x1770] sm:$0xff] }
0x1834   : > { %10629 = vmatpush1.bf16.msra.mxu0 %v15810_v38  ;;  %10544 = vmatprep.subr.bf16.mxu1 %v15825_v7  ;;  %v15905_v38 = vcombine.high %v1528_v31, %v1536_v43  ;;  %v1544_v7 = vld [vmem:[%s19000_s27 + $0x1470] sm:$0xff] }
0x1835   : > { %10630 = vmatprep.subr.bf16.mxu0 %v15827_v62  ;;  %v1552_v62 = vld [vmem:[%s19000_s27 + $0x14f0] sm:$0xff] }
0x1836   : > { %v15920_v33 = vcombine.low %v1544_v7, %v1552_v62  ;;  %v20738_v57 = vld [vmem:[%s19000_s27 + $0x17f0] sm:$0xff] }
0x1837   : > { %10545 = vmatpush1.bf16.msra.mxu1 %v15824_v24  ;;  %v15921_v24 = vcombine.high %v1544_v7, %v1552_v62  ;;  %v15968_v7 = vcombine.low %v20735_v53, %v20738_v57  ;;  %v15969_v62 = vcombine.high %v20735_v53, %v20738_v57 }
0x1838   : > { %10631 = vmatpush1.bf16.msra.mxu0 %v15826_v50  ;;  %10546 = vmatprep.subr.bf16.mxu1 %v15841_v45  ;;  %v15923_v50 = vcombine.high %v1545_v2, %v1553_v59  ;;  %v1560_v45 = vld [vmem:[%s19000_s27 + $0x1570] sm:$0xff] }
0x1839   : > { %10632 = vmatprep.subr.bf16.mxu0 %v15843_v52  ;;  %v1568_v52 = vld [vmem:[%s19000_s27 + $0x15f0] sm:$0xff] }
0x183b   : > { %10547 = vmatpush1.bf16.msra.mxu1 %v15840_v4  ;;  %v15937_v4 = vcombine.high %v1560_v45, %v1568_v52 }
0x183c   : > { %10633 = vmatpush1.bf16.msra.mxu0 %v15842_v51  ;;  %10559 = vmatprep.subr.bf16.mxu1 %v15857_v27  ;;  %v15939_v51 = vcombine.high %v1561_v60, %v1569_v6  ;;  %v1576_v27 = vld [vmem:[%s19000_s27 + $0x1670] sm:$0xff] }
0x183d   : > { %10645 = vmatprep.subr.bf16.mxu0 %v15859_v5  ;;  %v1584_v5 = vld [vmem:[%s19000_s27 + $0x16f0] sm:$0xff] }
0x183e   : > { %10549 = vmatmul.mubr.bf16.vlgmr.msra.gmra.mrb[44].mxu1 %v20175_v44 }
0x183f   : > { %10635 = vmatmul.mubr.bf16.vlgmr.msra.gmra.mrb[44].mxu0 %v20175_v44  ;;  %10560 = vmatpush1.bf16.msra.mxu1 %v15856_v28  ;;  %v1537_v44 = vld [vmem:[%s19000_s27 + $0x13f8] sm:$0xff] }
0x1840   : > { %10591 = vmatprep.mubr.bf16.mxu1 %v20189_v3  ;;  %10646 = vmatpush1.bf16.msra.mxu0 %v15858_v13  ;;  %v15906_v35 = vcombine.low %v1529_v48, %v1537_v44  ;;  %v1585_v28 = vld [vmem:[%s19000_s27 + $0x16f8] sm:$0xff]  ;;  %v15936_v13 = vcombine.low %v1560_v45, %v1568_v52  ;;  %v20764_v45 = vld [vmem:[%s19000_s27 + $0x1870] sm:$0xff] }
0x1841   : > { %10677 = vmatprep.mubr.bf16.mxu0 %v20189_v3  ;;  %10561 = vmatprep.subr.bf16.mxu1 %v15873_v47  ;;  %v15907_v3 = vcombine.high %v1529_v48, %v1537_v44  ;;  %v18241_v47 = vld [vmem:[%s19008_s8 + $0x10] sm:$0xff]  ;;  %v15952_v48 = vcombine.low %v1576_v27, %v1584_v5  ;;  %v15954_v44 = vcombine.low %v1577_v0, %v1585_v28 }
0x1842   : > { %10647 = vmatprep.subr.bf16.mxu0 %v15875_v11  ;;  %v7391_v20 = vrot.slane %v18241_v47, %v19588_v10  ;;  %v15953_v11 = vcombine.high %v1576_v27, %v1584_v5 }
0x1843   : > { %10562 = vmatpush1.bf16.msra.mxu1 %v15872_v49 }
0x1844   : > { %10648 = vmatpush1.bf16.msra.mxu0 %v15874_v54  ;;  %10563 = vmatprep.subr.bf16.mxu1 %v15889_v61  ;;  %v15955_v54 = vcombine.high %v1577_v0, %v1585_v28  ;;  %v20741_v61 = vld [vmem:[%s19000_s27 + $0x1778] sm:$0xff] }
0x1845   : > { %10649 = vmatprep.subr.bf16.mxu0 %v15891_v42  ;;  %v20744_v42 = vld [vmem:[%s19000_s27 + $0x17f8] sm:$0xff] }
0x1846   : > { %v1609_v0 = vld [vmem:[%s19000_s27 + $0x1878] sm:$0xff] }
0x1847   : > { %10564 = vmatpush1.bf16.msra.mxu1 %v15888_v9  ;;  %v1617_v28 = vld [vmem:[%s19000_s27 + $0x18f8] sm:$0xff] }
0x1848   : > { %10650 = vmatpush1.bf16.msra.mxu0 %v15890_v18  ;;  %10565 = vmatprep.subr.bf16.mxu1 %v15905_v38 }
0x1849   : > { %10651 = vmatprep.subr.bf16.mxu0 %v15907_v3 }
0x184b   : > { %10566 = vmatpush1.bf16.msra.mxu1 %v15904_v37 }
0x184c   : > { %10652 = vmatpush1.bf16.msra.mxu0 %v15906_v35  ;;  %10567 = vmatprep.subr.bf16.mxu1 %v15921_v24 }
0x184d   : > { %10653 = vmatprep.subr.bf16.mxu0 %v15923_v50  ;;  %v15971_v50 = vcombine.high %v20741_v61, %v20744_v42 }
0x184f   : > { %10568 = vmatpush1.bf16.msra.mxu1 %v15920_v33 }
0x1850   : > { %10654 = vmatpush1.bf16.msra.mxu0 %v15922_v14  ;;  %10569 = vmatprep.subr.bf16.mxu1 %v15937_v4  ;;  %v1616_v4 = vld [vmem:[%s19000_s27 + $0x18f0] sm:$0xff] }
0x1851   : > { %v10249_v49 = vpop.f32.mrb[36].mxu1  ;;  %10655 = vmatprep.subr.bf16.mxu0 %v15939_v51 }
0x1852   : > { %v20746_v1 = vadd.f32 %v10249_v49, %v7379_v46  ;;  %v10335_v31 = vpop.f32.mrb[36].mxu0  ;;  %v10251_v43 = vpop.f32.mrb[37].mxu1 }
0x1853   : > { %v20748_v9 = vadd.f32 %v10335_v31, %v7387_v36  ;;  %v20750_v18 = vadd.f32 %v10251_v43, %v7383_v30  ;;  %v10337_v38 = vpop.f32.mrb[37].mxu0  ;;  %v10253_v3 = vpop.f32.mrb[38].mxu1  ;;  %10570 = vmatpush1.bf16.msra.mxu1 %v15936_v13 }
0x1854   : > { %v10724_v2 = vmul.f32 0.044715, %v20746_v1  ;;  %v20757_v59 = vadd.f32 %v10337_v38, %v7391_v20  ;;  %v20759_v37 = vadd.f32 %v10253_v3, %v7379_v46  ;;  %v10339_v35 = vpop.f32.mrb[38].mxu0  ;;  %10656 = vmatpush1.bf16.msra.mxu0 %v15938_v25  ;;  %v10255_v24 = vpop.f32.mrb[39].mxu1  ;;  %10571 = vmatprep.subr.bf16.mxu1 %v15953_v11  ;;  %v15970_v46 = vcombine.low %v20741_v61, %v20744_v42  ;;  %v1624_v61 = vld [vmem:[%s19000_s27 + $0x1970] sm:$0xff]  ;;  %v1625_v38 = vld [vmem:[%s19000_s27 + $0x1978] sm:$0xff] }
0x1855   : > { %v10726_v52 = vmul.f32 0.044715, %v20748_v9  ;;  %v10725_v60 = vmul.f32 0.044715, %v20750_v18  ;;  %v20768_v6 = vadd.f32 %v10339_v35, %v7387_v36  ;;  %v20770_v33 = vadd.f32 %v10255_v24, %v7383_v30  ;;  %v10341_v14 = vpop.f32.mrb[39].mxu0  ;;  %10657 = vmatprep.subr.bf16.mxu0 %v15955_v54  ;;  %v1632_v42 = vld [vmem:[%s19000_s27 + $0x19f0] sm:$0xff] }
0x1856   : > { %v10756_v51 = vmul.f32 %v20746_v1, %v10724_v2  ;;  %v10740_v27 = vmul.f32 0.044715, %v20759_v37  ;;  %v20775_v5 = vadd.f32 %v10341_v14, %v7391_v20  ;;  %v15985_v11 = vcombine.high %v20764_v45, %v1616_v4  ;;  %v1633_v3 = vld [vmem:[%s19000_s27 + $0x19f8] sm:$0xff] }
0x1857   : > { %v10758_v36 = vmul.f32 %v20748_v9, %v10726_v52  ;;  %v10757_v30 = vmul.f32 %v20750_v18, %v10725_v60  ;;  %v10742_v13 = vmul.f32 0.044715, %v20768_v6  ;;  %v10741_v47 = vmul.f32 0.044715, %v20770_v33  ;;  %10572 = vmatpush1.bf16.msra.mxu1 %v15952_v48 }
0x1858   : > { %v10788_v25 = vmul.f32 %v20746_v1, %v10756_v51  ;;  %v10772_v20 = vmul.f32 %v20759_v37, %v10740_v27  ;;  %10658 = vmatpush1.bf16.msra.mxu0 %v15954_v44  ;;  %10573 = vmatprep.subr.bf16.mxu1 %v15969_v62  ;;  %v10727_v57 = vmul.f32 0.044715, %v20757_v59  ;;  %v15987_v54 = vcombine.high %v1609_v0, %v1617_v28 }
0x1859   : > { %v10790_v53 = vmul.f32 %v20748_v9, %v10758_v36  ;;  %v10774_v49 = vmul.f32 %v20768_v6, %v10742_v13  ;;  %10659 = vmatprep.subr.bf16.mxu0 %v15971_v50  ;;  %v10789_v43 = vmul.f32 %v20750_v18, %v10757_v30  ;;  %v10743_v44 = vmul.f32 0.044715, %v20775_v5  ;;  %v1640_v13 = vld [vmem:[%s19000_s27 + $0x1a70] sm:$0xff] }
0x185a   : > { %v10820_v31 = vadd.f32 %v20746_v1, %v10788_v25  ;;  %v10804_v48 = vmul.f32 %v20759_v37, %v10772_v20  ;;  %v10773_v35 = vmul.f32 %v20770_v33, %v10741_v47  ;;  %v15984_v24 = vcombine.low %v20764_v45, %v1616_v4  ;;  %v1641_v47 = vld [vmem:[%s19000_s27 + $0x1a78] sm:$0xff] }
0x185b   : > { %v10822_v62 = vadd.f32 %v20748_v9, %v10790_v53  ;;  %v10806_v2 = vmul.f32 %v20768_v6, %v10774_v49  ;;  %10574 = vmatpush1.bf16.msra.mxu1 %v15968_v7  ;;  %v15986_v60 = vcombine.low %v1609_v0, %v1617_v28  ;;  %v16001_v14 = vcombine.high %v1624_v61, %v1632_v42  ;;  %v1648_v7 = vld [vmem:[%s19000_s27 + $0x1af0] sm:$0xff]  ;;  %v1649_v25 = vld [vmem:[%s19000_s27 + $0x1af8] sm:$0xff] }
0x185c   : > { %v10852_v50 = vmul.f32 0.7978846, %v10820_v31  ;;  %v10836_v52 = vadd.f32 %v20759_v37, %v10804_v48  ;;  %10660 = vmatpush1.bf16.msra.mxu0 %v15970_v46  ;;  %10575 = vmatprep.subr.bf16.mxu1 %v15985_v11  ;;  %v10759_v27 = vmul.f32 %v20757_v59, %v10727_v57  ;;  %v16003_v30 = vcombine.high %v1625_v38, %v1633_v3  ;;  %v1656_v49 = vld [vmem:[%s19000_s27 + $0x1b70] sm:$0xff]  ;;  %v1657_v48 = vld [vmem:[%s19000_s27 + $0x1b78] sm:$0xff] }
0x185d   : > { %v10854_v51 = vmul.f32 0.7978846, %v10822_v62  ;;  %v10838_v36 = vadd.f32 %v20768_v6, %v10806_v2  ;;  %10661 = vmatprep.subr.bf16.mxu0 %v15987_v54  ;;  %v10775_v4 = vmul.f32 %v20775_v5, %v10743_v44  ;;  %v10821_v46 = vadd.f32 %v20750_v18, %v10789_v43  ;;  %v1664_v54 = vld [vmem:[%s19000_s27 + $0x1bf0] sm:$0xff] }
0x185e   : > { %18180 = vtanh.f32 %v10852_v50  ;;  %v10868_v45 = vmul.f32 0.7978846, %v10836_v52  ;;  %v10805_v28 = vmul.f32 %v20770_v33, %v10773_v35  ;;  %v16000_v20 = vcombine.low %v1624_v61, %v1632_v42  ;;  %v1665_v61 = vld [vmem:[%s19000_s27 + $0x1bf8] sm:$0xff]  ;;  %v1672_v35 = vld [vmem:[%s19000_s27 + $0x1c70] sm:$0xff] }
0x185f   : > { %18182 = vtanh.f32 %v10854_v51  ;;  %v10870_v0 = vmul.f32 0.7978846, %v10838_v36  ;;  %10576 = vmatpush1.bf16.msra.mxu1 %v15984_v24  ;;  %v16002_v11 = vcombine.low %v1625_v38, %v1633_v3  ;;  %v16017_v53 = vcombine.high %v1640_v13, %v1648_v7  ;;  %v1680_v24 = vld [vmem:[%s19000_s27 + $0x1cf0] sm:$0xff]  ;;  %v1673_v50 = vld [vmem:[%s19000_s27 + $0x1c78] sm:$0xff] }
0x1860   : > { %18184 = vtanh.f32 %v10868_v45  ;;  %10662 = vmatpush1.bf16.msra.mxu0 %v15986_v60  ;;  %10577 = vmatprep.subr.bf16.mxu1 %v16001_v14  ;;  %v16019_v57 = vcombine.high %v1641_v47, %v1649_v25  ;;  %v10791_v31 = vmul.f32 %v20757_v59, %v10759_v27  ;;  %v10807_v43 = vmul.f32 %v20775_v5, %v10775_v4  ;;  %v1681_v52 = vld [vmem:[%s19000_s27 + $0x1cf8] sm:$0xff]  ;;  %v1688_v27 = vld [vmem:[%s19000_s27 + $0x1d70] sm:$0xff] }
0x1861   : > { %18186 = vtanh.f32 %v10870_v0  ;;  %10663 = vmatprep.subr.bf16.mxu0 %v16003_v30  ;;  %v10853_v42 = vmul.f32 0.7978846, %v10821_v46  ;;  %v16016_v44 = vcombine.low %v1640_v13, %v1648_v7  ;;  %v10837_v38 = vadd.f32 %v20770_v33, %v10805_v28  ;;  %v1696_v36 = vld [vmem:[%s19000_s27 + $0x1df0] sm:$0xff]  ;;  %v1689_v46 = vld [vmem:[%s19000_s27 + $0x1d78] sm:$0xff] }
0x1862   : > { %v16018_v3 = vcombine.low %v1641_v47, %v1649_v25  ;;  %v16033_v62 = vcombine.high %v1656_v49, %v1664_v54  ;;  %v16035_v2 = vcombine.high %v1657_v48, %v1665_v61  ;;  %v10823_v60 = vadd.f32 %v20757_v59, %v10791_v31  ;;  %v1697_v0 = vld [vmem:[%s19000_s27 + $0x1df8] sm:$0xff] }
0x1863   : > { %10578 = vmatpush1.bf16.msra.mxu1 %v16000_v20  ;;  %18188 = vtanh.f32 %v10853_v42  ;;  %v10839_v14 = vadd.f32 %v20775_v5, %v10807_v43  ;;  %v16032_v51 = vcombine.low %v1656_v49, %v1664_v54  ;;  %v10869_v30 = vmul.f32 0.7978846, %v10837_v38 }
0x1864   : > { %10664 = vmatpush1.bf16.msra.mxu0 %v16002_v11  ;;  %10579 = vmatprep.subr.bf16.mxu1 %v16017_v53  ;;  %v16034_v7 = vcombine.low %v1657_v48, %v1665_v61  ;;  %v16049_v45 = vcombine.high %v1672_v35, %v1680_v24  ;;  %v16048_v47 = vcombine.low %v1672_v35, %v1680_v24  ;;  %v10692_v31 = vmul.f32 0.5, %v20746_v1  ;;  %v1713_v24 = vld [vmem:[%s19000_s27 + $0x1ef8] sm:$0xff] }
0x1865   : > { %10665 = vmatprep.subr.bf16.mxu0 %v16019_v57  ;;  %v16051_v25 = vcombine.high %v1673_v50, %v1681_v52  ;;  %18190 = vtanh.f32 %v10869_v30  ;;  %v16050_v11 = vcombine.low %v1673_v50, %v1681_v52  ;;  %v16065_v53 = vcombine.high %v1688_v27, %v1696_v36 }
0x1866   : > { %v10855_v57 = vmul.f32 0.7978846, %v10823_v60  ;;  %v10871_v49 = vmul.f32 0.7978846, %v10839_v14  ;;  %v10708_v43 = vmul.f32 0.5, %v20759_v37  ;;  %v16067_v42 = vcombine.high %v1689_v46, %v1697_v0  ;;  %v1705_v37 = vld [vmem:[%s19000_s27 + $0x1e78] sm:$0xff] }
0x1867   : > { %10580 = vmatpush1.bf16.msra.mxu1 %v16016_v44  ;;  %v10694_v44 = vmul.f32 0.5, %v20748_v9  ;;  %v10710_v38 = vmul.f32 0.5, %v20768_v6  ;;  %v16064_v50 = vcombine.low %v1688_v27, %v1696_v36  ;;  %v16066_v14 = vcombine.low %v1689_v46, %v1697_v0 }
0x1868   : > { %v18181_v13 = vpop.eup %18180  ;;  %10666 = vmatpush1.bf16.msra.mxu0 %v16018_v3  ;;  %10581 = vmatprep.subr.bf16.mxu1 %v16033_v62  ;;  %18192 = vtanh.f32 %v10855_v57  ;;  %v1704_v3 = vld [vmem:[%s19000_s27 + $0x1e70] sm:$0xff]  ;;  %v16083_v30 = vcombine.high %v1705_v37, %v1713_v24  ;;  %v10693_v0 = vmul.f32 0.5, %v20750_v18 }
0x1869   : > { %v18183_v4 = vpop.eup %18182  ;;  %10667 = vmatprep.subr.bf16.mxu0 %v16035_v2  ;;  %v10916_v28 = vadd.f32 1.0, %v18181_v13  ;;  %v1712_v62 = vld [vmem:[%s19000_s27 + $0x1ef0] sm:$0xff]  ;;  %18194 = vtanh.f32 %v10871_v49 }
0x186a   : > { %v18185_v20 = vpop.eup %18184  ;;  %v10918_v61 = vadd.f32 1.0, %v18183_v4  ;;  %v1720_v13 = vld [vmem:[%s19000_s27 + $0x1f70] sm:$0xff]  ;;  %v1721_v4 = vld [vmem:[%s19000_s27 + $0x1f78] sm:$0xff]  ;;  %v16080_v27 = vcombine.low %v1704_v3, %v1712_v62 }
0x186b   : > { %v18187_v54 = vpop.eup %18186  ;;  %10582 = vmatpush1.bf16.msra.mxu1 %v16032_v51  ;;  %v10932_v48 = vadd.f32 1.0, %v18185_v20  ;;  %v10948_v2 = vmul.f32 %v10916_v28, %v10692_v31  ;;  %v16081_v51 = vcombine.high %v1704_v3, %v1712_v62  ;;  %v16082_v28 = vcombine.low %v1705_v37, %v1713_v24  ;;  %v17328_v62 = vld [vmem:[%s19006_s29] ss:$16 sps:$4 sm:$0xff]   ;;  %v17336_v37 = vld [vmem:[%s19006_s29 + $0x24] ss:$16 sps:$4 sm:$0xff]  }
0x186c   : > { %10668 = vmatpush1.bf16.msra.mxu0 %v16034_v7  ;;  %10583 = vmatprep.subr.bf16.mxu1 %v16049_v45  ;;  %v10934_v1 = vadd.f32 1.0, %v18187_v54  ;;  %v10950_v9 = vmul.f32 %v10918_v61, %v10694_v44  ;;  %v1728_v7 = vld [vmem:[%s19000_s27 + $0x1ff0] sm:$0xff]  ;;  %v17333_v44 = vld [vmem:[%s19006_s29 + $0xc] ss:$16 sps:$4 sm:$0xff]  }
0x186d   : > { %10669 = vmatprep.subr.bf16.mxu0 %v16051_v25  ;;  %v10964_v35 = vmul.f32 %v10932_v48, %v10708_v43  ;;  %v18189_v6 = vpop.eup %18188  ;;  %v1729_v25 = vld [vmem:[%s19000_s27 + $0x1ff8] sm:$0xff]  ;;  %v16097_v20 = vcombine.high %v1720_v13, %v1728_v7  ;;  %v16096_v54 = vcombine.low %v1720_v13, %v1728_v7  ;;  %v17354_v13 = vld [vmem:[%s19006_s29 + $0x84] ss:$16 sps:$4 sm:$0xff]  }
0x186e   : > { %v10966_v60 = vmul.f32 %v10934_v1, %v10710_v38  ;;  %v10917_v36 = vadd.f32 1.0, %v18189_v6  ;;  %v16099_v46 = vcombine.high %v1721_v4, %v1729_v25  ;;  %v16098_v61 = vcombine.low %v1721_v4, %v1729_v25  ;;  %v17331_v1 = vld [vmem:[%s19006_s29 + $0x8] ss:$16 sps:$4 sm:$0xff]   ;;  %v17357_v7 = vld [vmem:[%s19006_s29 + $0x8c] ss:$16 sps:$4 sm:$0xff]  }
0x186f   : > { %10584 = vmatpush1.bf16.msra.mxu1 %v16048_v47  ;;  %v20838_v52 = vpack.c.bf16 %v10964_v35, %v10948_v2  ;;  %v18191_v47 = vpop.eup %18190  ;;  %v10711_v38 = vmul.f32 0.5, %v20775_v5  ;;  %v17334_v5 = vld [vmem:[%s19006_s29 + $0x20] ss:$16 sps:$4 sm:$0xff]   ;;  %v17343_v6 = vld [vmem:[%s19006_s29 + $0x48] ss:$16 sps:$4 sm:$0xff]  }
0x1870   : > { %10670 = vmatpush1.bf16.msra.mxu0 %v16050_v11  ;;  %10585 = vmatprep.subr.bf16.mxu1 %v16065_v53  ;;  %v20842_v45 = vpack.c.bf16 %v10966_v60, %v10950_v9  ;;  %v10709_v11 = vmul.f32 0.5, %v20770_v33  ;;  %v10933_v53 = vadd.f32 1.0, %v18191_v47  ;;  %v10949_v31 = vmul.f32 %v10917_v36, %v10693_v0  ;;  %v17342_v9 = vld [vmem:[%s19006_s29 + $0x44] ss:$16 sps:$4 sm:$0xff]   ;;  %v17345_v60 = vld [vmem:[%s19006_s29 + $0x4c] ss:$16 sps:$4 sm:$0xff]  }
0x1871   : > { %10671 = vmatprep.subr.bf16.mxu0 %v16067_v42  ;;  %v17330_v42 = vld [vmem:[%s19006_s29 + $0x4] ss:$16 sps:$4 sm:$0xff]   ;;  %v10695_v33 = vmul.f32 0.5, %v20757_v59  ;;  %v17339_v59 = vld [vmem:[%s19006_s29 + $0x2c] ss:$16 sps:$4 sm:$0xff]  }
0x1872   : > { %v18193_v57 = vpop.eup %18192  ;;  %v10965_v43 = vmul.f32 %v10933_v53, %v10709_v11  ;;  %v17352_v4 = vld [vmem:[%s19006_s29 + $0x80] ss:$16 sps:$4 sm:$0xff]   ;;  %v17355_v25 = vld [vmem:[%s19006_s29 + $0x88] ss:$16 sps:$4 sm:$0xff]   ;;  %v17360_v47 = vld [vmem:[%s19006_s29 + $0xa4] ss:$16 sps:$4 sm:$0xff]  }
0x1873   : > { %10586 = vmatpush1.bf16.msra.mxu1 %v16064_v50  ;;  %v18195_v49 = vpop.eup %18194  ;;  %v10919_v48 = vadd.f32 1.0, %v18193_v57  ;;  %v17337_v50 = vld [vmem:[%s19006_s29 + $0x28] ss:$16 sps:$4 sm:$0xff]   ;;  %v17358_v36 = vld [vmem:[%s19006_s29 + $0xa0] ss:$16 sps:$4 sm:$0xff]  }
0x1874   : > { %10672 = vmatpush1.bf16.msra.mxu0 %v16066_v14  ;;  %10587 = vmatprep.subr.bf16.mxu1 %v16081_v51  ;;  %v20850_v18 = vpack.c.bf16 %v10965_v43, %v10949_v31  ;;  %v10935_v3 = vadd.f32 1.0, %v18195_v49  ;;  %v17348_v14 = vld [vmem:[%s19006_s29 + $0x64] ss:$16 sps:$4 sm:$0xff]   ;;  %v17351_v51 = vld [vmem:[%s19006_s29 + $0x6c] ss:$16 sps:$4 sm:$0xff]  }
0x1875   : > { %10673 = vmatprep.subr.bf16.mxu0 %v16083_v30  ;;  %v10951_v2 = vmul.f32 %v10919_v48, %v10695_v33  ;;  %v17349_v30 = vld [vmem:[%s19006_s29 + $0x68] ss:$16 sps:$4 sm:$0xff]   ;;  %v17364_v0 = vld [vmem:[%s19006_s29 + $0xc0] ss:$16 sps:$4 sm:$0xff]   ;;  %v17372_v53 = vld [vmem:[%s19006_s29 + $0xe4] ss:$16 sps:$4 sm:$0xff]  }
0x1876   : > { %v10967_v35 = vmul.f32 %v10935_v3, %v10711_v38  ;;  %v17367_v11 = vld [vmem:[%s19006_s29 + $0xc8] ss:$16 sps:$4 sm:$0xff]   ;;  %v17375_v57 = vld [vmem:[%s19006_s29 + $0xec] ss:$16 sps:$4 sm:$0xff]   ;;  %v17370_v49 = vld [vmem:[%s19006_s29 + $0xe0] ss:$16 sps:$4 sm:$0xff]  }
0x1877   : > { %10588 = vmatpush1.bf16.msra.mxu1 %v16080_v27  ;;  %v17363_v27 = vld [vmem:[%s19006_s29 + $0xac] ss:$16 sps:$4 sm:$0xff]   ;;  %v17378_v31 = vld [vmem:[%s19006_s29 + $0x104] ss:$16 sps:$4 sm:$0xff]   ;;  %v17376_v48 = vld [vmem:[%s19006_s29 + $0x100] ss:$16 sps:$4 sm:$0xff]  }
0x1878   : > { %10674 = vmatpush1.bf16.msra.mxu0 %v16082_v28  ;;  %10589 = vmatprep.subr.bf16.mxu1 %v16097_v20  ;;  %v20857_v24 = vpack.c.bf16 %v10967_v35, %v10951_v2  ;;  %v17361_v28 = vld [vmem:[%s19006_s29 + $0xa8] ss:$16 sps:$4 sm:$0xff]   ;;  %v17366_v20 = vld [vmem:[%s19006_s29 + $0xc4] ss:$16 sps:$4 sm:$0xff]   ;;  %v17381_v43 = vld [vmem:[%s19006_s29 + $0x10c] ss:$16 sps:$4 sm:$0xff]  }
0x1879   : > { %10675 = vmatprep.subr.bf16.mxu0 %v16099_v46  ;;  %v17369_v46 = vld [vmem:[%s19006_s29 + $0xcc] ss:$16 sps:$4 sm:$0xff]   ;;  %v17382_v33 = vld [vmem:[%s19006_s29 + $0x120] ss:$16 sps:$4 sm:$0xff]   ;;  %v17385_v38 = vld [vmem:[%s19006_s29 + $0x128] ss:$16 sps:$4 sm:$0xff]  }
0x187a   : > { %v17390_v3 = vld [vmem:[%s19006_s29 + $0x144] ss:$16 sps:$4 sm:$0xff]   ;;  %v17388_v2 = vld [vmem:[%s19006_s29 + $0x140] ss:$16 sps:$4 sm:$0xff]   ;;  %v17391_v35 = vld [vmem:[%s19006_s29 + $0x148] ss:$16 sps:$4 sm:$0xff]  }
0x187b   : > { %10590 = vmatpush1.bf16.msra.mxu1 %v16096_v54  ;;  %v17373_v54 = vld [vmem:[%s19006_s29 + $0xe8] ss:$16 sps:$4 sm:$0xff]  }
0x187c   : > { %10676 = vmatpush1.bf16.msra.mxu0 %v16098_v61  ;;  %13573 = vmatprep.subr.bf16.mxu1 %v17330_v42  ;;  %v17379_v61 = vld [vmem:[%s19006_s29 + $0x108] ss:$16 sps:$4 sm:$0xff]   ;;  %v17384_v42 = vld [vmem:[%s19006_s29 + $0x124] ss:$16 sps:$4 sm:$0xff]  }
0x187d   : > { %13917 = vmatprep.subr.bf16.mxu0 %v17333_v44  ;;  %v17387_v44 = vld [vmem:[%s19006_s29 + $0x12c] ss:$16 sps:$4 sm:$0xff]  }
0x187e   : > { %10592 = vmatmul.mubr.bf16.vlgmr.msra.gmra.mrb[44].mxu1 %v20261_v56 }
0x187f   : > { %10678 = vmatmul.mubr.bf16.vlgmr.msra.gmra.mrb[44].mxu0 %v20261_v56  ;;  %13574 = vmatpush1.bf16.msra.mxu1 %v17328_v62  ;;  %v17340_v56 = vld [vmem:[%s19006_s29 + $0x40] ss:$16 sps:$4 sm:$0xff]   ;;  %v17393_v62 = vld [vmem:[%s19006_s29 + $0x14c] ss:$16 sps:$4 sm:$0xff]  }
0x1880   : > { %13605 = vmatprep.mubr.bf16.mxu1 %v20626_v16  ;;  %13918 = vmatpush1.bf16.msra.mxu0 %v17331_v1  ;;  %v17396_v1 = vld [vmem:[%s19006_s29 + $0x164] ss:$16 sps:$4 sm:$0xff]  }
0x1881   : > { %13949 = vmatprep.mubr.bf16.mxu0 %v20626_v16  ;;  %13575 = vmatprep.subr.bf16.mxu1 %v17336_v37  ;;  %v17346_v16 = vld [vmem:[%s19006_s29 + $0x60] ss:$16 sps:$4 sm:$0xff]   ;;  %v17399_v37 = vld [vmem:[%s19006_s29 + $0x16c] ss:$16 sps:$4 sm:$0xff]  }
0x1882   : > { %13919 = vmatprep.subr.bf16.mxu0 %v17339_v59  ;;  %v17394_v59 = vld [vmem:[%s19006_s29 + $0x160] ss:$16 sps:$4 sm:$0xff]  }
0x1883   : > { %13576 = vmatpush1.bf16.msra.mxu1 %v17334_v5  ;;  %v17397_v5 = vld [vmem:[%s19006_s29 + $0x168] ss:$16 sps:$4 sm:$0xff]  }
0x1884   : > { %13920 = vmatpush1.bf16.msra.mxu0 %v17337_v50  ;;  %13577 = vmatprep.subr.bf16.mxu1 %v17342_v9  ;;  %v17402_v50 = vld [vmem:[%s19006_s29 + $0x184] ss:$16 sps:$4 sm:$0xff]   ;;  %v17405_v9 = vld [vmem:[%s19006_s29 + $0x18c] ss:$16 sps:$4 sm:$0xff]  }
0x1885   : > { %13921 = vmatprep.subr.bf16.mxu0 %v17345_v60  ;;  %v17400_v60 = vld [vmem:[%s19006_s29 + $0x180] ss:$16 sps:$4 sm:$0xff]  }
0x1887   : > { %13578 = vmatpush1.bf16.msra.mxu1 %v17340_v56  ;;  %v17403_v56 = vld [vmem:[%s19006_s29 + $0x188] ss:$16 sps:$4 sm:$0xff]  }
0x1888   : > { %13922 = vmatpush1.bf16.msra.mxu0 %v17343_v6  ;;  %13579 = vmatprep.subr.bf16.mxu1 %v17348_v14  ;;  %v17408_v6 = vld [vmem:[%s19006_s29 + $0x1a4] ss:$16 sps:$4 sm:$0xff]   ;;  %v17411_v14 = vld [vmem:[%s19006_s29 + $0x1ac] ss:$16 sps:$4 sm:$0xff]  }
0x1889   : > { %13923 = vmatprep.subr.bf16.mxu0 %v17351_v51  ;;  %v17406_v51 = vld [vmem:[%s19006_s29 + $0x1a0] ss:$16 sps:$4 sm:$0xff]  }
0x188b   : > { %13580 = vmatpush1.bf16.msra.mxu1 %v17346_v16  ;;  %v17409_v16 = vld [vmem:[%s19006_s29 + $0x1a8] ss:$16 sps:$4 sm:$0xff]  }
0x188c   : > { %13924 = vmatpush1.bf16.msra.mxu0 %v17349_v30  ;;  %13581 = vmatprep.subr.bf16.mxu1 %v17354_v13  ;;  %v17414_v30 = vld [vmem:[%s19006_s29 + $0x1c4] ss:$16 sps:$4 sm:$0xff]   ;;  %v17417_v13 = vld [vmem:[%s19006_s29 + $0x1cc] ss:$16 sps:$4 sm:$0xff]  }
0x188d   : > { %13925 = vmatprep.subr.bf16.mxu0 %v17357_v7  ;;  %v17412_v7 = vld [vmem:[%s19006_s29 + $0x1c0] ss:$16 sps:$4 sm:$0xff]  }
0x188f   : > { %13582 = vmatpush1.bf16.msra.mxu1 %v17352_v4  ;;  %v17415_v4 = vld [vmem:[%s19006_s29 + $0x1c8] ss:$16 sps:$4 sm:$0xff]  }
0x1890   : > { %13926 = vmatpush1.bf16.msra.mxu0 %v17355_v25  ;;  %13583 = vmatprep.subr.bf16.mxu1 %v17360_v47  ;;  %v17420_v25 = vld [vmem:[%s19006_s29 + $0x1e4] ss:$16 sps:$4 sm:$0xff]   ;;  %v17423_v47 = vld [vmem:[%s19006_s29 + $0x1ec] ss:$16 sps:$4 sm:$0xff]  }
0x1891   : > { %13927 = vmatprep.subr.bf16.mxu0 %v17363_v27  ;;  %v17418_v27 = vld [vmem:[%s19006_s29 + $0x1e0] ss:$16 sps:$4 sm:$0xff]  }
0x1893   : > { %13584 = vmatpush1.bf16.msra.mxu1 %v17358_v36  ;;  %v17421_v36 = vld [vmem:[%s19006_s29 + $0x1e8] ss:$16 sps:$4 sm:$0xff]  }
0x1894   : > { %13928 = vmatpush1.bf16.msra.mxu0 %v17361_v28  ;;  %13585 = vmatprep.subr.bf16.mxu1 %v17366_v20  ;;  %v17426_v28 = vld [vmem:[%s19006_s29 + $0x204] ss:$16 sps:$4 sm:$0xff]   ;;  %v17429_v20 = vld [vmem:[%s19006_s29 + $0x20c] ss:$16 sps:$4 sm:$0xff]  }
0x1895   : > { %13929 = vmatprep.subr.bf16.mxu0 %v17369_v46  ;;  %v17424_v46 = vld [vmem:[%s19006_s29 + $0x200] ss:$16 sps:$4 sm:$0xff]  }
0x1897   : > { %13586 = vmatpush1.bf16.msra.mxu1 %v17364_v0  ;;  %v17427_v0 = vld [vmem:[%s19006_s29 + $0x208] ss:$16 sps:$4 sm:$0xff]  }
0x1898   : > { %13930 = vmatpush1.bf16.msra.mxu0 %v17367_v11  ;;  %13587 = vmatprep.subr.bf16.mxu1 %v17372_v53  ;;  %v17432_v11 = vld [vmem:[%s19006_s29 + $0x224] ss:$16 sps:$4 sm:$0xff]   ;;  %v17435_v53 = vld [vmem:[%s19006_s29 + $0x22c] ss:$16 sps:$4 sm:$0xff]  }
0x1899   : > { %13931 = vmatprep.subr.bf16.mxu0 %v17375_v57  ;;  %v17430_v57 = vld [vmem:[%s19006_s29 + $0x220] ss:$16 sps:$4 sm:$0xff]  }
0x189b   : > { %13588 = vmatpush1.bf16.msra.mxu1 %v17370_v49  ;;  %v17433_v49 = vld [vmem:[%s19006_s29 + $0x228] ss:$16 sps:$4 sm:$0xff]  }
0x189c   : > { %13932 = vmatpush1.bf16.msra.mxu0 %v17373_v54  ;;  %13589 = vmatprep.subr.bf16.mxu1 %v17378_v31  ;;  %v17438_v54 = vld [vmem:[%s19006_s29 + $0x244] ss:$16 sps:$4 sm:$0xff]   ;;  %v17441_v31 = vld [vmem:[%s19006_s29 + $0x24c] ss:$16 sps:$4 sm:$0xff]  }
0x189d   : > { %13933 = vmatprep.subr.bf16.mxu0 %v17381_v43  ;;  %v17439_v43 = vld [vmem:[%s19006_s29 + $0x248] ss:$16 sps:$4 sm:$0xff]  }
0x189f   : > { %13590 = vmatpush1.bf16.msra.mxu1 %v17376_v48  ;;  %v17444_v48 = vld [vmem:[%s19006_s29 + $0x264] ss:$16 sps:$4 sm:$0xff]  }
0x18a0   : > { %13934 = vmatpush1.bf16.msra.mxu0 %v17379_v61  ;;  %13591 = vmatprep.subr.bf16.mxu1 %v17384_v42  ;;  %v17447_v61 = vld [vmem:[%s19006_s29 + $0x26c] ss:$16 sps:$4 sm:$0xff]   ;;  %v17445_v42 = vld [vmem:[%s19006_s29 + $0x268] ss:$16 sps:$4 sm:$0xff]  }
0x18a1   : > { %13935 = vmatprep.subr.bf16.mxu0 %v17387_v44  ;;  %v17450_v44 = vld [vmem:[%s19006_s29 + $0x284] ss:$16 sps:$4 sm:$0xff]  }
0x18a3   : > { %13592 = vmatpush1.bf16.msra.mxu1 %v17382_v33  ;;  %v17453_v33 = vld [vmem:[%s19006_s29 + $0x28c] ss:$16 sps:$4 sm:$0xff]  }
0x18a4   : > { %13936 = vmatpush1.bf16.msra.mxu0 %v17385_v38  ;;  %13593 = vmatprep.subr.bf16.mxu1 %v17390_v3  ;;  %v17448_v38 = vld [vmem:[%s19006_s29 + $0x280] ss:$16 sps:$4 sm:$0xff]  }
0x18a5   : > { %13937 = vmatprep.subr.bf16.mxu0 %v17393_v62  ;;  %v20946_v3 = vld [vmem:[%s19008_s8 + $0x18] sm:$0xff] }
0x18a6   : > { %v17451_v62 = vld [vmem:[%s19006_s29 + $0x288] ss:$16 sps:$4 sm:$0xff]  }
0x18a7   : > { %13594 = vmatpush1.bf16.msra.mxu1 %v17388_v2  ;;  %v17456_v2 = vld [vmem:[%s19006_s29 + $0x2a4] ss:$16 sps:$4 sm:$0xff]  }
0x18a8   : > { %13938 = vmatpush1.bf16.msra.mxu0 %v17391_v35  ;;  %13595 = vmatprep.subr.bf16.mxu1 %v17396_v1  ;;  %v17459_v35 = vld [vmem:[%s19006_s29 + $0x2ac] ss:$16 sps:$4 sm:$0xff]   ;;  %v7395_v1 = vrot.slane %v20946_v3, %v19289_v26 }
0x18a9   : > { %13939 = vmatprep.subr.bf16.mxu0 %v17399_v37  ;;  %v7403_v37 = vrot.slane %v20946_v3, %v19617_v21 }
0x18ab   : > { %13596 = vmatpush1.bf16.msra.mxu1 %v17394_v59  ;;  %v7399_v59 = vrot.slane %v20946_v3, %v19511_v29 }
0x18ac   : > { %13940 = vmatpush1.bf16.msra.mxu0 %v17397_v5  ;;  %13597 = vmatprep.subr.bf16.mxu1 %v17402_v50  ;;  %v17454_v5 = vld [vmem:[%s19006_s29 + $0x2a0] ss:$16 sps:$4 sm:$0xff]   ;;  %v7407_v50 = vrot.slane %v20946_v3, %v19620_v22 }
0x18ad   : > { %13941 = vmatprep.subr.bf16.mxu0 %v17405_v9  ;;  %v17457_v9 = vld [vmem:[%s19006_s29 + $0x2a8] ss:$16 sps:$4 sm:$0xff]  }
0x18af   : > { %13598 = vmatpush1.bf16.msra.mxu1 %v17400_v60  ;;  %v17462_v60 = vld [vmem:[%s19006_s29 + $0x2c4] ss:$16 sps:$4 sm:$0xff]  }
0x18b0   : > { %13942 = vmatpush1.bf16.msra.mxu0 %v17403_v56  ;;  %13599 = vmatprep.subr.bf16.mxu1 %v17408_v6  ;;  %v17465_v6 = vld [vmem:[%s19006_s29 + $0x2cc] ss:$16 sps:$4 sm:$0xff]  }
0x18b1   : > { %13943 = vmatprep.subr.bf16.mxu0 %v17411_v14 }
0x18b3   : > { %13600 = vmatpush1.bf16.msra.mxu1 %v17406_v51 }
0x18b4   : > { %13944 = vmatpush1.bf16.msra.mxu0 %v17409_v16  ;;  %13601 = vmatprep.subr.bf16.mxu1 %v17414_v30  ;;  %v17460_v30 = vld [vmem:[%s19006_s29 + $0x2c0] ss:$16 sps:$4 sm:$0xff]  }
0x18b5   : > { %13945 = vmatprep.subr.bf16.mxu0 %v17417_v13 }
0x18b7   : > { %13602 = vmatpush1.bf16.msra.mxu1 %v17412_v7 }
0x18b8   : > { %13946 = vmatpush1.bf16.msra.mxu0 %v17415_v4  ;;  %13603 = vmatprep.subr.bf16.mxu1 %v17420_v25 }
0x18b9   : > { %13947 = vmatprep.subr.bf16.mxu0 %v17423_v47  ;;  %v17463_v47 = vld [vmem:[%s19006_s29 + $0x2c8] ss:$16 sps:$4 sm:$0xff]  }
0x18bb   : > { %13604 = vmatpush1.bf16.msra.mxu1 %v17418_v27  ;;  %v17468_v27 = vld [vmem:[%s19006_s29 + $0x2e4] ss:$16 sps:$4 sm:$0xff]  }
0x18bc   : > { %13948 = vmatpush1.bf16.msra.mxu0 %v17421_v36  ;;  %13616 = vmatprep.subr.bf16.mxu1 %v17426_v28 }
0x18bd   : > { %13960 = vmatprep.subr.bf16.mxu0 %v17429_v20 }
0x18be   : > { %13606 = vmatmul.mubr.bf16.vlgmr.msra.gmra.mrb[48].mxu1 %v20610_v17 }
0x18bf   : > { %13950 = vmatmul.mubr.bf16.vlgmr.msra.gmra.mrb[48].mxu0 %v20610_v17  ;;  %13617 = vmatpush1.bf16.msra.mxu1 %v17424_v46  ;;  %v17436_v17 = vld [vmem:[%s19006_s29 + $0x240] ss:$16 sps:$4 sm:$0xff]  }
0x18c0   : > { %13648 = vmatprep.mubr.bf16.mxu1 %v20628_v23  ;;  %13961 = vmatpush1.bf16.msra.mxu0 %v17427_v0 }
0x18c1   : > { %13992 = vmatprep.mubr.bf16.mxu0 %v20628_v23  ;;  %13618 = vmatprep.subr.bf16.mxu1 %v17432_v11  ;;  %v17442_v23 = vld [vmem:[%s19006_s29 + $0x260] ss:$16 sps:$4 sm:$0xff]   ;;  %v17471_v11 = vld [vmem:[%s19006_s29 + $0x2ec] ss:$16 sps:$4 sm:$0xff]  }
0x18c2   : > { %13962 = vmatprep.subr.bf16.mxu0 %v17435_v53 }
0x18c3   : > { %13619 = vmatpush1.bf16.msra.mxu1 %v17430_v57 }
0x18c4   : > { %13963 = vmatpush1.bf16.msra.mxu0 %v17433_v49  ;;  %13620 = vmatprep.subr.bf16.mxu1 %v17438_v54 }
0x18c5   : > { %13964 = vmatprep.subr.bf16.mxu0 %v17441_v31 }
0x18c7   : > { %13621 = vmatpush1.bf16.msra.mxu1 %v17436_v17 }
0x18c8   : > { %13965 = vmatpush1.bf16.msra.mxu0 %v17439_v43  ;;  %13622 = vmatprep.subr.bf16.mxu1 %v17444_v48 }
0x18c9   : > { %13966 = vmatprep.subr.bf16.mxu0 %v17447_v61 }
0x18cb   : > { %13623 = vmatpush1.bf16.msra.mxu1 %v17442_v23 }
0x18cc   : > { %13967 = vmatpush1.bf16.msra.mxu0 %v17445_v42  ;;  %13624 = vmatprep.subr.bf16.mxu1 %v17450_v44 }
0x18cd   : > { %13968 = vmatprep.subr.bf16.mxu0 %v17453_v33  ;;  %v17466_v33 = vld [vmem:[%s19006_s29 + $0x2e0] ss:$16 sps:$4 sm:$0xff]  }
0x18cf   : > { %13625 = vmatpush1.bf16.msra.mxu1 %v17448_v38 }
0x18d0   : > { %13969 = vmatpush1.bf16.msra.mxu0 %v17451_v62  ;;  %13626 = vmatprep.subr.bf16.mxu1 %v17456_v2  ;;  %v17469_v2 = vld [vmem:[%s19006_s29 + $0x2e8] ss:$16 sps:$4 sm:$0xff]  }
0x18d1   : > { %v10421_v56 = vpop.f32.mrb[40].mxu1  ;;  %13970 = vmatprep.subr.bf16.mxu0 %v17459_v35  ;;  %v17474_v35 = vld [vmem:[%s19006_s29 + $0x304] ss:$16 sps:$4 sm:$0xff]  }
0x18d2   : > { %v20963_v14 = vadd.f32 %v10421_v56, %v7395_v1  ;;  %v10507_v51 = vpop.f32.mrb[40].mxu0  ;;  %v10423_v16 = vpop.f32.mrb[41].mxu1 }
0x18d3   : > { %v20966_v13 = vadd.f32 %v10507_v51, %v7403_v37  ;;  %v20968_v7 = vadd.f32 %v10423_v16, %v7399_v59  ;;  %v10509_v4 = vpop.f32.mrb[41].mxu0  ;;  %v10425_v25 = vpop.f32.mrb[42].mxu1  ;;  %13627 = vmatpush1.bf16.msra.mxu1 %v17454_v5  ;;  %v17477_v5 = vld [vmem:[%s19006_s29 + $0x30c] ss:$16 sps:$4 sm:$0xff]  }
0x18d4   : > { %v10728_v36 = vmul.f32 0.044715, %v20963_v14  ;;  %v20973_v28 = vadd.f32 %v10509_v4, %v7407_v50  ;;  %v20975_v20 = vadd.f32 %v10425_v25, %v7395_v1  ;;  %v10511_v46 = vpop.f32.mrb[42].mxu0  ;;  %13971 = vmatpush1.bf16.msra.mxu0 %v17457_v9  ;;  %v10427_v0 = vpop.f32.mrb[43].mxu1  ;;  %13628 = vmatprep.subr.bf16.mxu1 %v17462_v60 }
0x18d5   : > { %v10730_v53 = vmul.f32 0.044715, %v20966_v13  ;;  %v10729_v57 = vmul.f32 0.044715, %v20968_v7  ;;  %v20980_v49 = vadd.f32 %v10511_v46, %v7403_v37  ;;  %v20982_v54 = vadd.f32 %v10427_v0, %v7399_v59  ;;  %v10513_v31 = vpop.f32.mrb[43].mxu0  ;;  %13972 = vmatprep.subr.bf16.mxu0 %v17465_v6 }
0x18d6   : > { %v10760_v17 = vmul.f32 %v20963_v14, %v10728_v36  ;;  %v10744_v43 = vmul.f32 0.044715, %v20975_v20  ;;  %v20986_v48 = vadd.f32 %v10513_v31, %v7407_v50  ;;  %v10731_v37 = vmul.f32 0.044715, %v20973_v28 }
0x18d7   : > { %v10762_v61 = vmul.f32 %v20966_v13, %v10730_v53  ;;  %v10761_v23 = vmul.f32 %v20968_v7, %v10729_v57  ;;  %v10746_v42 = vmul.f32 0.044715, %v20980_v49  ;;  %v10745_v44 = vmul.f32 0.044715, %v20982_v54  ;;  %13629 = vmatpush1.bf16.msra.mxu1 %v17460_v30  ;;  %v17472_v30 = vld [vmem:[%s19006_s29 + $0x300] ss:$16 sps:$4 sm:$0xff]  }
0x18d8   : > { %v10792_v38 = vmul.f32 %v20963_v14, %v10760_v17  ;;  %v10776_v62 = vmul.f32 %v20975_v20, %v10744_v43  ;;  %13973 = vmatpush1.bf16.msra.mxu0 %v17463_v47  ;;  %13630 = vmatprep.subr.bf16.mxu1 %v17468_v27  ;;  %v10747_v56 = vmul.f32 0.044715, %v20986_v48  ;;  %v17475_v47 = vld [vmem:[%s19006_s29 + $0x308] ss:$16 sps:$4 sm:$0xff]   ;;  %v17480_v27 = vld [vmem:[%s19006_s29 + $0x324] ss:$16 sps:$4 sm:$0xff]   ;;  %v10763_v46 = vmul.f32 %v20973_v28, %v10731_v37 }
0x18d9   : > { %v10794_v1 = vmul.f32 %v20966_v13, %v10762_v61  ;;  %v10778_v59 = vmul.f32 %v20980_v49, %v10746_v42  ;;  %13974 = vmatprep.subr.bf16.mxu0 %v17471_v11  ;;  %v10793_v9 = vmul.f32 %v20968_v7, %v10761_v23  ;;  %v10777_v16 = vmul.f32 %v20982_v54, %v10745_v44  ;;  %v17483_v11 = vld [vmem:[%s19006_s29 + $0x32c] ss:$16 sps:$4 sm:$0xff]   ;;  %v17478_v61 = vld [vmem:[%s19006_s29 + $0x320] ss:$16 sps:$4 sm:$0xff]   ;;  %v17481_v23 = vld [vmem:[%s19006_s29 + $0x328] ss:$16 sps:$4 sm:$0xff]  }
0x18da   : > { %v10824_v50 = vadd.f32 %v20963_v14, %v10792_v38  ;;  %v10808_v60 = vmul.f32 %v20975_v20, %v10776_v62  ;;  %v10779_v57 = vmul.f32 %v20986_v48, %v10747_v56  ;;  %v17486_v42 = vld [vmem:[%s19006_s29 + $0x344] ss:$16 sps:$4 sm:$0xff]   ;;  %v17489_v44 = vld [vmem:[%s19006_s29 + $0x34c] ss:$16 sps:$4 sm:$0xff]  }
0x18db   : > { %v10826_v6 = vadd.f32 %v20966_v13, %v10794_v1  ;;  %v10810_v51 = vmul.f32 %v20980_v49, %v10778_v59  ;;  %13631 = vmatpush1.bf16.msra.mxu1 %v17466_v33  ;;  %v10825_v31 = vadd.f32 %v20968_v7, %v10793_v9  ;;  %v10809_v43 = vmul.f32 %v20982_v54, %v10777_v16  ;;  %v17487_v1 = vld [vmem:[%s19006_s29 + $0x348] ss:$16 sps:$4 sm:$0xff]   ;;  %v17492_v37 = vld [vmem:[%s19006_s29 + $0x364] ss:$16 sps:$4 sm:$0xff]   ;;  %v17495_v59 = vld [vmem:[%s19006_s29 + $0x36c] ss:$16 sps:$4 sm:$0xff]  }
0x18dc   : > { %v10856_v4 = vmul.f32 0.7978846, %v10824_v50  ;;  %v10840_v25 = vadd.f32 %v20975_v20, %v10808_v60  ;;  %13975 = vmatpush1.bf16.msra.mxu0 %v17469_v2  ;;  %13632 = vmatprep.subr.bf16.mxu1 %v17474_v35  ;;  %v10795_v33 = vmul.f32 %v20973_v28, %v10763_v46  ;;  %v10811_v38 = vmul.f32 %v20986_v48, %v10779_v57  ;;  %v17484_v2 = vld [vmem:[%s19006_s29 + $0x340] ss:$16 sps:$4 sm:$0xff]  }
0x18dd   : > { %v10858_v36 = vmul.f32 0.7978846, %v10826_v6  ;;  %v10842_v0 = vadd.f32 %v20980_v49, %v10810_v51  ;;  %13976 = vmatprep.subr.bf16.mxu0 %v17477_v5  ;;  %v10857_v62 = vmul.f32 0.7978846, %v10825_v31  ;;  %v10841_v35 = vadd.f32 %v20982_v54, %v10809_v43  ;;  %v17490_v9 = vld [vmem:[%s19006_s29 + $0x360] ss:$16 sps:$4 sm:$0xff]  }
0x18de   : > { %18196 = vtanh.f32 %v10856_v4  ;;  %v10872_v53 = vmul.f32 0.7978846, %v10840_v25  ;;  %v10827_v5 = vadd.f32 %v20973_v28, %v10795_v33  ;;  %v10843_v50 = vadd.f32 %v20986_v48, %v10811_v38  ;;  %v17493_v6 = vld [vmem:[%s19006_s29 + $0x368] ss:$16 sps:$4 sm:$0xff]   ;;  %v17498_v51 = vld [vmem:[%s19006_s29 + $0x384] ss:$16 sps:$4 sm:$0xff]  }
0x18df   : > { %18198 = vtanh.f32 %v10858_v36  ;;  %v10874_v17 = vmul.f32 0.7978846, %v10842_v0  ;;  %13633 = vmatpush1.bf16.msra.mxu1 %v17472_v30  ;;  %v10873_v60 = vmul.f32 0.7978846, %v10841_v35  ;;  %v17501_v30 = vld [vmem:[%s19006_s29 + $0x38c] ss:$16 sps:$4 sm:$0xff]  }
0x18e0   : > { %18200 = vtanh.f32 %v10872_v53  ;;  %13977 = vmatpush1.bf16.msra.mxu0 %v17475_v47  ;;  %13634 = vmatprep.subr.bf16.mxu1 %v17480_v27  ;;  %v10859_v47 = vmul.f32 0.7978846, %v10827_v5  ;;  %v10875_v27 = vmul.f32 0.7978846, %v10843_v50  ;;  %v17496_v46 = vld [vmem:[%s19006_s29 + $0x380] ss:$16 sps:$4 sm:$0xff]  }
0x18e1   : > { %18202 = vtanh.f32 %v10874_v17  ;;  %13978 = vmatprep.subr.bf16.mxu0 %v17483_v11  ;;  %v10696_v0 = vmul.f32 0.5, %v20963_v14  ;;  %v10712_v11 = vmul.f32 0.5, %v20975_v20  ;;  %v17499_v31 = vld [vmem:[%s19006_s29 + $0x388] ss:$16 sps:$4 sm:$0xff]   ;;  %v17504_v17 = vld [vmem:[%s19006_s29 + $0x3a4] ss:$16 sps:$4 sm:$0xff]  }
0x18e2   : > { %18204 = vtanh.f32 %v10857_v62  ;;  %v10698_v43 = vmul.f32 0.5, %v20966_v13  ;;  %v17513_v35 = vld [vmem:[%s19006_s29 + $0x3cc] ss:$16 sps:$4 sm:$0xff]   ;;  %v17511_v50 = vld [vmem:[%s19006_s29 + $0x3c8] ss:$16 sps:$4 sm:$0xff]  }
0x18e3   : > { %13635 = vmatpush1.bf16.msra.mxu1 %v17478_v61  ;;  %18206 = vtanh.f32 %v10873_v60  ;;  %v10714_v61 = vmul.f32 0.5, %v20980_v49  ;;  %v17505_v49 = vld [vmem:[%s19006_s29 + $0x3a8] ss:$16 sps:$4 sm:$0xff]   ;;  %v17519_v60 = vld [vmem:[%s19006_s29 + $0x3ec] ss:$16 sps:$4 sm:$0xff]  }
0x18e4   : > { %13979 = vmatpush1.bf16.msra.mxu0 %v17481_v23  ;;  %13636 = vmatprep.subr.bf16.mxu1 %v17486_v42  ;;  %18208 = vtanh.f32 %v10859_v47  ;;  %v17507_v23 = vld [vmem:[%s19006_s29 + $0x3ac] ss:$16 sps:$4 sm:$0xff]  }
0x18e5   : > { %13980 = vmatprep.subr.bf16.mxu0 %v17489_v44  ;;  %18210 = vtanh.f32 %v10875_v27  ;;  %v17502_v44 = vld [vmem:[%s19006_s29 + $0x3a0] ss:$16 sps:$4 sm:$0xff]  }
0x18e7   : > { %13637 = vmatpush1.bf16.msra.mxu1 %v17484_v2  ;;  %v17510_v2 = vld [vmem:[%s19006_s29 + $0x3c4] ss:$16 sps:$4 sm:$0xff]  }
0x18e8   : > { %v18197_v56 = vpop.eup %18196  ;;  %13981 = vmatpush1.bf16.msra.mxu0 %v17487_v1  ;;  %13638 = vmatprep.subr.bf16.mxu1 %v17492_v37 }
0x18e9   : > { %v18199_v16 = vpop.eup %18198  ;;  %13982 = vmatprep.subr.bf16.mxu0 %v17495_v59  ;;  %v10920_v4 = vadd.f32 1.0, %v18197_v56  ;;  %v17508_v59 = vld [vmem:[%s19006_s29 + $0x3c0] ss:$16 sps:$4 sm:$0xff]   ;;  %v10697_v56 = vmul.f32 0.5, %v20968_v7 }
0x18ea   : > { %v18201_v25 = vpop.eup %18200  ;;  %v10922_v57 = vadd.f32 1.0, %v18199_v16 }
0x18eb   : > { %v18203_v36 = vpop.eup %18202  ;;  %13639 = vmatpush1.bf16.msra.mxu1 %v17490_v9  ;;  %v10936_v53 = vadd.f32 1.0, %v18201_v25  ;;  %v10952_v14 = vmul.f32 %v10920_v4, %v10696_v0  ;;  %v17516_v9 = vld [vmem:[%s19006_s29 + $0x3e4] ss:$16 sps:$4 sm:$0xff]   ;;  %v17514_v4 = vld [vmem:[%s19006_s29 + $0x3e0] ss:$16 sps:$4 sm:$0xff]  }
0x18ec   : > { %13983 = vmatpush1.bf16.msra.mxu0 %v17493_v6  ;;  %13640 = vmatprep.subr.bf16.mxu1 %v17498_v51  ;;  %v10938_v20 = vadd.f32 1.0, %v18203_v36  ;;  %v10954_v38 = vmul.f32 %v10922_v57, %v10698_v43  ;;  %v18205_v13 = vpop.eup %18204  ;;  %v10713_v6 = vmul.f32 0.5, %v20982_v54  ;;  %v17517_v36 = vld [vmem:[%s19006_s29 + $0x3e8] ss:$16 sps:$4 sm:$0xff]   ;;  %v17525_v0 = vld [vmem:[%s19006_s29 + $0x40c] ss:$16 sps:$4 sm:$0xff]  }
0x18ed   : > { %13984 = vmatprep.subr.bf16.mxu0 %v17501_v30  ;;  %v10968_v42 = vmul.f32 %v10936_v53, %v10712_v11  ;;  %v18207_v37 = vpop.eup %18206  ;;  %v10921_v5 = vadd.f32 1.0, %v18205_v13  ;;  %v10699_v54 = vmul.f32 0.5, %v20973_v28  ;;  %v10715_v11 = vmul.f32 0.5, %v20986_v48  ;;  %v17520_v57 = vld [vmem:[%s19006_s29 + $0x400] ss:$16 sps:$4 sm:$0xff]  }
0x18ee   : > { %v10970_v62 = vmul.f32 %v10938_v20, %v10714_v61  ;;  %v10937_v51 = vadd.f32 1.0, %v18207_v37  ;;  %v18209_v16 = vpop.eup %18208  ;;  %v17523_v43 = vld [vmem:[%s19006_s29 + $0x408] ss:$16 sps:$4 sm:$0xff]   ;;  %v17528_v61 = vld [vmem:[%s19006_s29 + $0x424] ss:$16 sps:$4 sm:$0xff]  }
0x18ef   : > { %13641 = vmatpush1.bf16.msra.mxu1 %v17496_v46  ;;  %v21044_v33 = vpack.c.bf16 %v10968_v42, %v10952_v14  ;;  %v18211_v30 = vpop.eup %18210  ;;  %v10953_v25 = vmul.f32 %v10921_v5, %v10697_v56  ;;  %v10923_v27 = vadd.f32 1.0, %v18209_v16  ;;  %v17522_v46 = vld [vmem:[%s19006_s29 + $0x404] ss:$16 sps:$4 sm:$0xff]   ;;  %v17531_v28 = vld [vmem:[%s19006_s29 + $0x42c] ss:$16 sps:$4 sm:$0xff]  }
0x18f0   : > { %13985 = vmatpush1.bf16.msra.mxu0 %v17499_v31  ;;  %13642 = vmatprep.subr.bf16.mxu1 %v17504_v17  ;;  %v21049_v1 = vpack.c.bf16 %v10970_v62, %v10954_v38  ;;  %v10969_v47 = vmul.f32 %v10937_v51, %v10713_v6  ;;  %v10939_v53 = vadd.f32 1.0, %v18211_v30  ;;  %v17526_v48 = vld [vmem:[%s19006_s29 + $0x420] ss:$16 sps:$4 sm:$0xff]   ;;  %v17529_v14 = vld [vmem:[%s19006_s29 + $0x428] ss:$16 sps:$4 sm:$0xff]  }
0x18f1   : > { %13986 = vmatprep.subr.bf16.mxu0 %v17507_v23  ;;  %v10955_v31 = vmul.f32 %v10923_v27, %v10699_v54  ;;  %v17534_v42 = vld [vmem:[%s19006_s29 + $0x444] ss:$16 sps:$4 sm:$0xff]   ;;  %v17537_v20 = vld [vmem:[%s19006_s29 + $0x44c] ss:$16 sps:$4 sm:$0xff]   ;;  %v17541_v13 = vld [vmem:[%s19006_s29 + $0x468] ss:$16 sps:$4 sm:$0xff]  }
0x18f2   : > { %v21061_v7 = vpack.c.bf16 %v10969_v47, %v10953_v25  ;;  %v10971_v17 = vmul.f32 %v10939_v53, %v10715_v11  ;;  %v17540_v38 = vld [vmem:[%s19006_s29 + $0x464] ss:$16 sps:$4 sm:$0xff]   ;;  %v17543_v62 = vld [vmem:[%s19006_s29 + $0x46c] ss:$16 sps:$4 sm:$0xff]   ;;  %v17547_v37 = vld [vmem:[%s19006_s29 + $0x488] ss:$16 sps:$4 sm:$0xff]  }
0x18f3   : > { %13643 = vmatpush1.bf16.msra.mxu1 %v17502_v44  ;;  %v17535_v44 = vld [vmem:[%s19006_s29 + $0x448] ss:$16 sps:$4 sm:$0xff]   ;;  %v17555_v5 = vld [vmem:[%s19006_s29 + $0x4ac] ss:$16 sps:$4 sm:$0xff]   ;;  %v17556_v6 = vld [vmem:[%s19006_s29 + $0x4c0] ss:$16 sps:$4 sm:$0xff]  }
0x18f4   : > { %13987 = vmatpush1.bf16.msra.mxu0 %v17505_v49  ;;  %13644 = vmatprep.subr.bf16.mxu1 %v17510_v2  ;;  %v21068_v23 = vpack.c.bf16 %v10971_v17, %v10955_v31  ;;  %v17546_v49 = vld [vmem:[%s19006_s29 + $0x484] ss:$16 sps:$4 sm:$0xff]   ;;  %v17549_v2 = vld [vmem:[%s19006_s29 + $0x48c] ss:$16 sps:$4 sm:$0xff]   ;;  %v17559_v51 = vld [vmem:[%s19006_s29 + $0x4c8] ss:$16 sps:$4 sm:$0xff]  }
0x18f5   : > { %13988 = vmatprep.subr.bf16.mxu0 %v17513_v35  ;;  %v17544_v35 = vld [vmem:[%s19006_s29 + $0x480] ss:$16 sps:$4 sm:$0xff]   ;;  %v17561_v56 = vld [vmem:[%s19006_s29 + $0x4cc] ss:$16 sps:$4 sm:$0xff]   ;;  %v17564_v16 = vld [vmem:[%s19006_s29 + $0x4e4] ss:$16 sps:$4 sm:$0xff]  }
0x18f6   : > { %v17567_v30 = vld [vmem:[%s19006_s29 + $0x4ec] ss:$16 sps:$4 sm:$0xff]   ;;  %v17565_v25 = vld [vmem:[%s19006_s29 + $0x4e8] ss:$16 sps:$4 sm:$0xff]   ;;  %v17570_v47 = vld [vmem:[%s19006_s29 + $0x504] ss:$16 sps:$4 sm:$0xff]  }
0x18f7   : > { %13645 = vmatpush1.bf16.msra.mxu1 %v17508_v59  ;;  %v17552_v59 = vld [vmem:[%s19006_s29 + $0x4a4] ss:$16 sps:$4 sm:$0xff]   ;;  %v17573_v27 = vld [vmem:[%s19006_s29 + $0x50c] ss:$16 sps:$4 sm:$0xff]   ;;  %v17574_v11 = vld [vmem:[%s19006_s29 + $0x520] ss:$16 sps:$4 sm:$0xff]  }
0x18f8   : > { %13989 = vmatpush1.bf16.msra.mxu0 %v17511_v50  ;;  %13646 = vmatprep.subr.bf16.mxu1 %v17516_v9  ;;  %v17550_v50 = vld [vmem:[%s19006_s29 + $0x4a0] ss:$16 sps:$4 sm:$0xff]   ;;  %v17553_v9 = vld [vmem:[%s19006_s29 + $0x4a8] ss:$16 sps:$4 sm:$0xff]   ;;  %v17579_v54 = vld [vmem:[%s19006_s29 + $0x52c] ss:$16 sps:$4 sm:$0xff]  }
0x18f9   : > { %13990 = vmatprep.subr.bf16.mxu0 %v17519_v60  ;;  %v17558_v60 = vld [vmem:[%s19006_s29 + $0x4c4] ss:$16 sps:$4 sm:$0xff]   ;;  %v17577_v53 = vld [vmem:[%s19006_s29 + $0x528] ss:$16 sps:$4 sm:$0xff]   ;;  %v17585_v31 = vld [vmem:[%s19006_s29 + $0x54c] ss:$16 sps:$4 sm:$0xff]  }
0x18fa   : > { %v17580_v17 = vld [vmem:[%s19006_s29 + $0x540] ss:$16 sps:$4 sm:$0xff]  }
0x18fb   : > { %13647 = vmatpush1.bf16.msra.mxu1 %v17514_v4  ;;  %v17562_v4 = vld [vmem:[%s19006_s29 + $0x4e0] ss:$16 sps:$4 sm:$0xff]  }
0x18fc   : > { %13991 = vmatpush1.bf16.msra.mxu0 %v17517_v36  ;;  %13659 = vmatprep.subr.bf16.mxu1 %v17522_v46  ;;  %v17568_v36 = vld [vmem:[%s19006_s29 + $0x500] ss:$16 sps:$4 sm:$0xff]   ;;  %v17571_v46 = vld [vmem:[%s19006_s29 + $0x508] ss:$16 sps:$4 sm:$0xff]  }
0x18fd   : > { %14003 = vmatprep.subr.bf16.mxu0 %v17525_v0  ;;  %v17576_v0 = vld [vmem:[%s19006_s29 + $0x524] ss:$16 sps:$4 sm:$0xff]  }
0x18fe   : > { %13649 = vmatmul.mubr.bf16.vlgmr.msra.gmra.mrb[48].mxu1 %v20612_v55 }
0x18ff   : > { %13993 = vmatmul.mubr.bf16.vlgmr.msra.gmra.mrb[48].mxu0 %v20612_v55  ;;  %13660 = vmatpush1.bf16.msra.mxu1 %v17520_v57  ;;  %v17532_v55 = vld [vmem:[%s19006_s29 + $0x440] ss:$16 sps:$4 sm:$0xff]   ;;  %v17582_v57 = vld [vmem:[%s19006_s29 + $0x544] ss:$16 sps:$4 sm:$0xff]  }
0x1900   : > { %13691 = vmatprep.mubr.bf16.mxu1 %v20850_v18  ;;  %14004 = vmatpush1.bf16.msra.mxu0 %v17523_v43  ;;  %v17583_v43 = vld [vmem:[%s19006_s29 + $0x548] ss:$16 sps:$4 sm:$0xff]  }
0x1901   : > { %14035 = vmatprep.mubr.bf16.mxu0 %v20850_v18  ;;  %13661 = vmatprep.subr.bf16.mxu1 %v17528_v61  ;;  %v17538_v18 = vld [vmem:[%s19006_s29 + $0x460] ss:$16 sps:$4 sm:$0xff]   ;;  %v17588_v61 = vld [vmem:[%s19006_s29 + $0x564] ss:$16 sps:$4 sm:$0xff]  }
0x1902   : > { %14005 = vmatprep.subr.bf16.mxu0 %v17531_v28  ;;  %v17591_v28 = vld [vmem:[%s19006_s29 + $0x56c] ss:$16 sps:$4 sm:$0xff]  }
0x1903   : > { %13662 = vmatpush1.bf16.msra.mxu1 %v17526_v48  ;;  %v17586_v48 = vld [vmem:[%s19006_s29 + $0x560] ss:$16 sps:$4 sm:$0xff]  }
0x1904   : > { %14006 = vmatpush1.bf16.msra.mxu0 %v17529_v14  ;;  %13663 = vmatprep.subr.bf16.mxu1 %v17534_v42  ;;  %v17589_v14 = vld [vmem:[%s19006_s29 + $0x568] ss:$16 sps:$4 sm:$0xff]   ;;  %v17594_v42 = vld [vmem:[%s19006_s29 + $0x584] ss:$16 sps:$4 sm:$0xff]  }
0x1905   : > { %14007 = vmatprep.subr.bf16.mxu0 %v17537_v20  ;;  %v17597_v20 = vld [vmem:[%s19006_s29 + $0x58c] ss:$16 sps:$4 sm:$0xff]  }
0x1907   : > { %13664 = vmatpush1.bf16.msra.mxu1 %v17532_v55  ;;  %v17592_v55 = vld [vmem:[%s19006_s29 + $0x580] ss:$16 sps:$4 sm:$0xff]  }
0x1908   : > { %14008 = vmatpush1.bf16.msra.mxu0 %v17535_v44  ;;  %13665 = vmatprep.subr.bf16.mxu1 %v17540_v38  ;;  %v17595_v44 = vld [vmem:[%s19006_s29 + $0x588] ss:$16 sps:$4 sm:$0xff]   ;;  %v17600_v38 = vld [vmem:[%s19006_s29 + $0x5a4] ss:$16 sps:$4 sm:$0xff]  }
0x1909   : > { %14009 = vmatprep.subr.bf16.mxu0 %v17543_v62  ;;  %v17603_v62 = vld [vmem:[%s19006_s29 + $0x5ac] ss:$16 sps:$4 sm:$0xff]  }
0x190b   : > { %13666 = vmatpush1.bf16.msra.mxu1 %v17538_v18  ;;  %v17598_v18 = vld [vmem:[%s19006_s29 + $0x5a0] ss:$16 sps:$4 sm:$0xff]  }
0x190c   : > { %14010 = vmatpush1.bf16.msra.mxu0 %v17541_v13  ;;  %13667 = vmatprep.subr.bf16.mxu1 %v17546_v49  ;;  %v17601_v13 = vld [vmem:[%s19006_s29 + $0x5a8] ss:$16 sps:$4 sm:$0xff]   ;;  %v17606_v49 = vld [vmem:[%s19006_s29 + $0x5c4] ss:$16 sps:$4 sm:$0xff]  }
0x190d   : > { %14011 = vmatprep.subr.bf16.mxu0 %v17549_v2  ;;  %v17609_v2 = vld [vmem:[%s19006_s29 + $0x5cc] ss:$16 sps:$4 sm:$0xff]  }
0x190f   : > { %13668 = vmatpush1.bf16.msra.mxu1 %v17544_v35  ;;  %v17604_v35 = vld [vmem:[%s19006_s29 + $0x5c0] ss:$16 sps:$4 sm:$0xff]  }
0x1910   : > { %14012 = vmatpush1.bf16.msra.mxu0 %v17547_v37  ;;  %13669 = vmatprep.subr.bf16.mxu1 %v17552_v59  ;;  %v17607_v37 = vld [vmem:[%s19006_s29 + $0x5c8] ss:$16 sps:$4 sm:$0xff]   ;;  %v17612_v59 = vld [vmem:[%s19006_s29 + $0x5e4] ss:$16 sps:$4 sm:$0xff]  }
0x1911   : > { %14013 = vmatprep.subr.bf16.mxu0 %v17555_v5  ;;  %v17615_v5 = vld [vmem:[%s19006_s29 + $0x5ec] ss:$16 sps:$4 sm:$0xff]  }
0x1913   : > { %13670 = vmatpush1.bf16.msra.mxu1 %v17550_v50  ;;  %v17610_v50 = vld [vmem:[%s19006_s29 + $0x5e0] ss:$16 sps:$4 sm:$0xff]  }
0x1914   : > { %14014 = vmatpush1.bf16.msra.mxu0 %v17553_v9  ;;  %13671 = vmatprep.subr.bf16.mxu1 %v17558_v60  ;;  %v17613_v9 = vld [vmem:[%s19006_s29 + $0x5e8] ss:$16 sps:$4 sm:$0xff]   ;;  %v17618_v60 = vld [vmem:[%s19006_s29 + $0x604] ss:$16 sps:$4 sm:$0xff]  }
0x1915   : > { %14015 = vmatprep.subr.bf16.mxu0 %v17561_v56  ;;  %v17621_v56 = vld [vmem:[%s19006_s29 + $0x60c] ss:$16 sps:$4 sm:$0xff]  }
0x1917   : > { %13672 = vmatpush1.bf16.msra.mxu1 %v17556_v6  ;;  %v17616_v6 = vld [vmem:[%s19006_s29 + $0x600] ss:$16 sps:$4 sm:$0xff]  }
0x1918   : > { %14016 = vmatpush1.bf16.msra.mxu0 %v17559_v51  ;;  %13673 = vmatprep.subr.bf16.mxu1 %v17564_v16  ;;  %v17619_v51 = vld [vmem:[%s19006_s29 + $0x608] ss:$16 sps:$4 sm:$0xff]   ;;  %v17624_v16 = vld [vmem:[%s19006_s29 + $0x624] ss:$16 sps:$4 sm:$0xff]  }
0x1919   : > { %14017 = vmatprep.subr.bf16.mxu0 %v17567_v30  ;;  %v17627_v30 = vld [vmem:[%s19006_s29 + $0x62c] ss:$16 sps:$4 sm:$0xff]  }
0x191b   : > { %13674 = vmatpush1.bf16.msra.mxu1 %v17562_v4  ;;  %v17622_v4 = vld [vmem:[%s19006_s29 + $0x620] ss:$16 sps:$4 sm:$0xff]  }
0x191c   : > { %14018 = vmatpush1.bf16.msra.mxu0 %v17565_v25  ;;  %13675 = vmatprep.subr.bf16.mxu1 %v17570_v47  ;;  %v17625_v25 = vld [vmem:[%s19006_s29 + $0x628] ss:$16 sps:$4 sm:$0xff]   ;;  %v17630_v47 = vld [vmem:[%s19006_s29 + $0x644] ss:$16 sps:$4 sm:$0xff]  }
0x191d   : > { %14019 = vmatprep.subr.bf16.mxu0 %v17573_v27  ;;  %v17633_v27 = vld [vmem:[%s19006_s29 + $0x64c] ss:$16 sps:$4 sm:$0xff]  }
0x191f   : > { %13676 = vmatpush1.bf16.msra.mxu1 %v17568_v36  ;;  %v17631_v36 = vld [vmem:[%s19006_s29 + $0x648] ss:$16 sps:$4 sm:$0xff]  }
0x1920   : > { %14020 = vmatpush1.bf16.msra.mxu0 %v17571_v46  ;;  %13677 = vmatprep.subr.bf16.mxu1 %v17576_v0  ;;  %v17636_v46 = vld [vmem:[%s19006_s29 + $0x664] ss:$16 sps:$4 sm:$0xff]   ;;  %v17639_v0 = vld [vmem:[%s19006_s29 + $0x66c] ss:$16 sps:$4 sm:$0xff]  }
0x1921   : > { %14021 = vmatprep.subr.bf16.mxu0 %v17579_v54  ;;  %v17637_v54 = vld [vmem:[%s19006_s29 + $0x668] ss:$16 sps:$4 sm:$0xff]  }
0x1923   : > { %13678 = vmatpush1.bf16.msra.mxu1 %v17574_v11  ;;  %v17642_v11 = vld [vmem:[%s19006_s29 + $0x684] ss:$16 sps:$4 sm:$0xff]  }
0x1924   : > { %14022 = vmatpush1.bf16.msra.mxu0 %v17577_v53  ;;  %13679 = vmatprep.subr.bf16.mxu1 %v17582_v57  ;;  %v17645_v53 = vld [vmem:[%s19006_s29 + $0x68c] ss:$16 sps:$4 sm:$0xff]   ;;  %v17640_v57 = vld [vmem:[%s19006_s29 + $0x680] ss:$16 sps:$4 sm:$0xff]  }
0x1925   : > { %14023 = vmatprep.subr.bf16.mxu0 %v17585_v31  ;;  %v17643_v31 = vld [vmem:[%s19006_s29 + $0x688] ss:$16 sps:$4 sm:$0xff]  }
0x1927   : > { %13680 = vmatpush1.bf16.msra.mxu1 %v17580_v17  ;;  %v17648_v17 = vld [vmem:[%s19006_s29 + $0x6a4] ss:$16 sps:$4 sm:$0xff]  }
0x1928   : > { %14024 = vmatpush1.bf16.msra.mxu0 %v17583_v43  ;;  %13681 = vmatprep.subr.bf16.mxu1 %v17588_v61  ;;  %v17651_v43 = vld [vmem:[%s19006_s29 + $0x6ac] ss:$16 sps:$4 sm:$0xff]   ;;  %v7411_v61 = vrot.slane %v20946_v3, %v19403_v39 }
0x1929   : > { %14025 = vmatprep.subr.bf16.mxu0 %v17591_v28  ;;  %v7419_v28 = vrot.slane %v20946_v3, %v19585_v8  ;;  %v17657_v39 = vld [vmem:[%s19006_s29 + $0x6cc] ss:$16 sps:$4 sm:$0xff]  }
0x192b   : > { %13682 = vmatpush1.bf16.msra.mxu1 %v17586_v48  ;;  %v7415_v48 = vrot.slane %v20946_v3, %v19406_v41 }
0x192c   : > { %14026 = vmatpush1.bf16.msra.mxu0 %v17589_v14  ;;  %13683 = vmatprep.subr.bf16.mxu1 %v17594_v42  ;;  %v17646_v14 = vld [vmem:[%s19006_s29 + $0x6a0] ss:$16 sps:$4 sm:$0xff]   ;;  %v7423_v42 = vrot.slane %v20946_v3, %v19588_v10  ;;  %v17655_v3 = vld [vmem:[%s19006_s29 + $0x6c8] ss:$16 sps:$4 sm:$0xff]  }
0x192d   : > { %14027 = vmatprep.subr.bf16.mxu0 %v17597_v20  ;;  %v17649_v20 = vld [vmem:[%s19006_s29 + $0x6a8] ss:$16 sps:$4 sm:$0xff]  }
0x192f   : > { %13684 = vmatpush1.bf16.msra.mxu1 %v17592_v55  ;;  %v17654_v55 = vld [vmem:[%s19006_s29 + $0x6c4] ss:$16 sps:$4 sm:$0xff]  }
0x1930   : > { %14028 = vmatpush1.bf16.msra.mxu0 %v17595_v44  ;;  %13685 = vmatprep.subr.bf16.mxu1 %v17600_v38 }
0x1931   : > { %14029 = vmatprep.subr.bf16.mxu0 %v17603_v62 }
0x1933   : > { %13686 = vmatpush1.bf16.msra.mxu1 %v17598_v18  ;;  %v17652_v18 = vld [vmem:[%s19006_s29 + $0x6c0] ss:$16 sps:$4 sm:$0xff]  }
0x1934   : > { %14030 = vmatpush1.bf16.msra.mxu0 %v17601_v13  ;;  %13687 = vmatprep.subr.bf16.mxu1 %v17606_v49 }
0x1935   : > { %14031 = vmatprep.subr.bf16.mxu0 %v17609_v2  ;;  %v17660_v2 = vld [vmem:[%s19006_s29 + $0x6e4] ss:$16 sps:$4 sm:$0xff]  }
0x1937   : > { %13688 = vmatpush1.bf16.msra.mxu1 %v17604_v35 }
0x1938   : > { %14032 = vmatpush1.bf16.msra.mxu0 %v17607_v37  ;;  %13689 = vmatprep.subr.bf16.mxu1 %v17612_v59 }
0x1939   : > { %14033 = vmatprep.subr.bf16.mxu0 %v17615_v5 }
0x193b   : > { %13690 = vmatpush1.bf16.msra.mxu1 %v17610_v50 }
0x193c   : > { %14034 = vmatpush1.bf16.msra.mxu0 %v17613_v9  ;;  %13702 = vmatprep.subr.bf16.mxu1 %v17618_v60  ;;  %v17663_v9 = vld [vmem:[%s19006_s29 + $0x6ec] ss:$16 sps:$4 sm:$0xff]  }
0x193d   : > { %14046 = vmatprep.subr.bf16.mxu0 %v17621_v56 }
0x193e   : > { %13692 = vmatmul.mubr.bf16.vlgmr.msra.gmra.mrb[48].mxu1 %v20838_v52 }
0x193f   : > { %14036 = vmatmul.mubr.bf16.vlgmr.msra.gmra.mrb[48].mxu0 %v20838_v52  ;;  %13703 = vmatpush1.bf16.msra.mxu1 %v17616_v6  ;;  %v17628_v52 = vld [vmem:[%s19006_s29 + $0x640] ss:$16 sps:$4 sm:$0xff]  }
0x1940   : > { %13734 = vmatprep.mubr.bf16.mxu1 %v20857_v24  ;;  %14047 = vmatpush1.bf16.msra.mxu0 %v17619_v51 }
0x1941   : > { %14078 = vmatprep.mubr.bf16.mxu0 %v20857_v24  ;;  %13704 = vmatprep.subr.bf16.mxu1 %v17624_v16  ;;  %v17634_v24 = vld [vmem:[%s19006_s29 + $0x660] ss:$16 sps:$4 sm:$0xff]  }
0x1942   : > { %14048 = vmatprep.subr.bf16.mxu0 %v17627_v30 }
0x1943   : > { %13705 = vmatpush1.bf16.msra.mxu1 %v17622_v4 }
0x1944   : > { %14049 = vmatpush1.bf16.msra.mxu0 %v17625_v25  ;;  %13706 = vmatprep.subr.bf16.mxu1 %v17630_v47 }
0x1945   : > { %14050 = vmatprep.subr.bf16.mxu0 %v17633_v27 }
0x1947   : > { %13707 = vmatpush1.bf16.msra.mxu1 %v17628_v52 }
0x1948   : > { %14051 = vmatpush1.bf16.msra.mxu0 %v17631_v36  ;;  %13708 = vmatprep.subr.bf16.mxu1 %v17636_v46 }
0x1949   : > { %14052 = vmatprep.subr.bf16.mxu0 %v17639_v0  ;;  %v17658_v0 = vld [vmem:[%s19006_s29 + $0x6e0] ss:$16 sps:$4 sm:$0xff]  }
0x194b   : > { %13709 = vmatpush1.bf16.msra.mxu1 %v17634_v24 }
0x194c   : > { %14053 = vmatpush1.bf16.msra.mxu0 %v17637_v54  ;;  %13710 = vmatprep.subr.bf16.mxu1 %v17642_v11 }
0x194d   : > { %14054 = vmatprep.subr.bf16.mxu0 %v17645_v53 }
0x194f   : > { %13711 = vmatpush1.bf16.msra.mxu1 %v17640_v57  ;;  %v17661_v57 = vld [vmem:[%s19006_s29 + $0x6e8] ss:$16 sps:$4 sm:$0xff]  }
0x1950   : > { %14055 = vmatpush1.bf16.msra.mxu0 %v17643_v31  ;;  %13712 = vmatprep.subr.bf16.mxu1 %v17648_v17  ;;  %v17666_v31 = vld [vmem:[%s19006_s29 + $0x704] ss:$16 sps:$4 sm:$0xff]  }
0x1951   : > { %v10593_v44 = vpop.f32.mrb[44].mxu1  ;;  %14056 = vmatprep.subr.bf16.mxu0 %v17651_v43 }
0x1952   : > { %v21171_v38 = vadd.f32 %v10593_v44, %v7411_v61  ;;  %v10679_v62 = vpop.f32.mrb[44].mxu0  ;;  %v10595_v8 = vpop.f32.mrb[45].mxu1 }
0x1953   : > { %v21174_v41 = vadd.f32 %v10679_v62, %v7419_v28  ;;  %v21176_v13 = vadd.f32 %v10595_v8, %v7415_v48  ;;  %v10681_v49 = vpop.f32.mrb[45].mxu0  ;;  %v10597_v10 = vpop.f32.mrb[46].mxu1  ;;  %13713 = vmatpush1.bf16.msra.mxu1 %v17646_v14  ;;  %v17664_v8 = vld [vmem:[%s19006_s29 + $0x700] ss:$16 sps:$4 sm:$0xff]  }
0x1954   : > { %v10732_v35 = vmul.f32 0.044715, %v21171_v38  ;;  %v21181_v37 = vadd.f32 %v10681_v49, %v7423_v42  ;;  %v21183_v59 = vadd.f32 %v10597_v10, %v7411_v61  ;;  %v10683_v5 = vpop.f32.mrb[46].mxu0  ;;  %14057 = vmatpush1.bf16.msra.mxu0 %v17649_v20  ;;  %v10599_v50 = vpop.f32.mrb[47].mxu1  ;;  %13714 = vmatprep.subr.bf16.mxu1 %v17654_v55 }
0x1955   : > { %v10734_v60 = vmul.f32 0.044715, %v21174_v41  ;;  %v10733_v56 = vmul.f32 0.044715, %v21176_v13  ;;  %v21188_v6 = vadd.f32 %v10683_v5, %v7419_v28  ;;  %v21190_v51 = vadd.f32 %v10599_v50, %v7415_v48  ;;  %v10685_v16 = vpop.f32.mrb[47].mxu0  ;;  %14058 = vmatprep.subr.bf16.mxu0 %v17657_v39 }
0x1956   : > { %v10764_v30 = vmul.f32 %v21171_v38, %v10732_v35  ;;  %v10735_v4 = vmul.f32 0.044715, %v21181_v37  ;;  %v10748_v25 = vmul.f32 0.044715, %v21183_v59  ;;  %v21195_v47 = vadd.f32 %v10685_v16, %v7423_v42  ;;  %v17669_v48 = vld [vmem:[%s19006_s29 + $0x70c] ss:$16 sps:$4 sm:$0xff]  }
0x1957   : > { %v10766_v27 = vmul.f32 %v21174_v41, %v10734_v60  ;;  %v10765_v52 = vmul.f32 %v21176_v13, %v10733_v56  ;;  %v10750_v36 = vmul.f32 0.044715, %v21188_v6  ;;  %v10749_v46 = vmul.f32 0.044715, %v21190_v51  ;;  %13715 = vmatpush1.bf16.msra.mxu1 %v17652_v18 }
0x1958   : > { %v10796_v24 = vmul.f32 %v21171_v38, %v10764_v30  ;;  %v10767_v54 = vmul.f32 %v21181_v37, %v10735_v4  ;;  %v10780_v11 = vmul.f32 %v21183_v59, %v10748_v25  ;;  %v10751_v53 = vmul.f32 0.044715, %v21195_v47  ;;  %14059 = vmatpush1.bf16.msra.mxu0 %v17655_v3  ;;  %13716 = vmatprep.subr.bf16.mxu1 %v17660_v2  ;;  %v17667_v3 = vld [vmem:[%s19006_s29 + $0x708] ss:$16 sps:$4 sm:$0xff]   ;;  %v17672_v2 = vld [vmem:[%s19006_s29 + $0x724] ss:$16 sps:$4 sm:$0xff]  }
0x1959   : > { %v10798_v17 = vmul.f32 %v21174_v41, %v10766_v27  ;;  %v10797_v43 = vmul.f32 %v21176_v13, %v10765_v52  ;;  %v10782_v61 = vmul.f32 %v21188_v6, %v10750_v36  ;;  %v10781_v28 = vmul.f32 %v21190_v51, %v10749_v46  ;;  %14060 = vmatprep.subr.bf16.mxu0 %v17663_v9  ;;  %v17675_v9 = vld [vmem:[%s19006_s29 + $0x72c] ss:$16 sps:$4 sm:$0xff]   ;;  %v17670_v25 = vld [vmem:[%s19006_s29 + $0x720] ss:$16 sps:$4 sm:$0xff]   ;;  %v17673_v52 = vld [vmem:[%s19006_s29 + $0x728] ss:$16 sps:$4 sm:$0xff]  }
0x195a   : > { %v10828_v14 = vadd.f32 %v21171_v38, %v10796_v24  ;;  %v10799_v42 = vmul.f32 %v21181_v37, %v10767_v54  ;;  %v10812_v20 = vmul.f32 %v21183_v59, %v10780_v11  ;;  %v10783_v55 = vmul.f32 %v21195_v47, %v10751_v53  ;;  %v17678_v36 = vld [vmem:[%s19006_s29 + $0x744] ss:$16 sps:$4 sm:$0xff]   ;;  %v17676_v11 = vld [vmem:[%s19006_s29 + $0x740] ss:$16 sps:$4 sm:$0xff]   ;;  %v17679_v53 = vld [vmem:[%s19006_s29 + $0x748] ss:$16 sps:$4 sm:$0xff]  }
0x195b   : > { %v10830_v44 = vadd.f32 %v21174_v41, %v10798_v17  ;;  %v10814_v39 = vmul.f32 %v21188_v6, %v10782_v61  ;;  %v10813_v62 = vmul.f32 %v21190_v51, %v10781_v28  ;;  %13717 = vmatpush1.bf16.msra.mxu1 %v17658_v0  ;;  %v10829_v35 = vadd.f32 %v21176_v13, %v10797_v43  ;;  %v17681_v0 = vld [vmem:[%s19006_s29 + $0x74c] ss:$16 sps:$4 sm:$0xff]   ;;  %v17682_v17 = vld [vmem:[%s19006_s29 + $0x760] ss:$16 sps:$4 sm:$0xff]   ;;  %v17685_v61 = vld [vmem:[%s19006_s29 + $0x768] ss:$16 sps:$4 sm:$0xff]  }
0x195c   : > { %v10860_v18 = vmul.f32 0.7978846, %v10828_v14  ;;  %v10844_v49 = vadd.f32 %v21183_v59, %v10812_v20  ;;  %v10815_v10 = vmul.f32 %v21195_v47, %v10783_v55  ;;  %14061 = vmatpush1.bf16.msra.mxu0 %v17661_v57  ;;  %13718 = vmatprep.subr.bf16.mxu1 %v17666_v31  ;;  %v10831_v30 = vadd.f32 %v21181_v37, %v10799_v42  ;;  %v17684_v57 = vld [vmem:[%s19006_s29 + $0x764] ss:$16 sps:$4 sm:$0xff]   ;;  %v17687_v31 = vld [vmem:[%s19006_s29 + $0x76c] ss:$16 sps:$4 sm:$0xff]  }
0x195d   : > { %v10862_v5 = vmul.f32 0.7978846, %v10830_v44  ;;  %v10846_v50 = vadd.f32 %v21188_v6, %v10814_v39  ;;  %14062 = vmatprep.subr.bf16.mxu0 %v17669_v48  ;;  %v10845_v60 = vadd.f32 %v21190_v51, %v10813_v62  ;;  %v10861_v16 = vmul.f32 0.7978846, %v10829_v35  ;;  %v17690_v28 = vld [vmem:[%s19006_s29 + $0x784] ss:$16 sps:$4 sm:$0xff]  }
0x195e   : > { %18212 = vtanh.f32 %v10860_v18  ;;  %v10876_v56 = vmul.f32 0.7978846, %v10844_v49  ;;  %v10847_v46 = vadd.f32 %v21195_v47, %v10815_v10  ;;  %v10863_v24 = vmul.f32 0.7978846, %v10831_v30  ;;  %v17693_v14 = vld [vmem:[%s19006_s29 + $0x78c] ss:$16 sps:$4 sm:$0xff]  }
0x195f   : > { %18214 = vtanh.f32 %v10862_v5  ;;  %v10878_v4 = vmul.f32 0.7978846, %v10846_v50  ;;  %13719 = vmatpush1.bf16.msra.mxu1 %v17664_v8  ;;  %v10877_v27 = vmul.f32 0.7978846, %v10845_v60  ;;  %v17688_v44 = vld [vmem:[%s19006_s29 + $0x780] ss:$16 sps:$4 sm:$0xff]  }
0x1960   : > { %18216 = vtanh.f32 %v10876_v56  ;;  %14063 = vmatpush1.bf16.msra.mxu0 %v17667_v3  ;;  %13720 = vmatprep.subr.bf16.mxu1 %v17672_v2  ;;  %v10879_v54 = vmul.f32 0.7978846, %v10847_v46  ;;  %v10700_v39 = vmul.f32 0.5, %v21171_v38  ;;  %v10716_v62 = vmul.f32 0.5, %v21183_v59  ;;  %v17691_v10 = vld [vmem:[%s19006_s29 + $0x788] ss:$16 sps:$4 sm:$0xff]  }
0x1961   : > { %18218 = vtanh.f32 %v10878_v4  ;;  %14064 = vmatprep.subr.bf16.mxu0 %v17675_v9  ;;  %v17696_v3 = vld [vmem:[%s19006_s29 + $0x7a4] ss:$16 sps:$4 sm:$0xff]   ;;  %v10702_v2 = vmul.f32 0.5, %v21174_v41  ;;  %v10718_v35 = vmul.f32 0.5, %v21188_v6  ;;  %v17699_v50 = vld [vmem:[%s19006_s29 + $0x7ac] ss:$16 sps:$4 sm:$0xff]  }
0x1962   : > { %18220 = vtanh.f32 %v10861_v16  ;;  %v10701_v16 = vmul.f32 0.5, %v21176_v13  ;;  %v10717_v30 = vmul.f32 0.5, %v21190_v51  ;;  %v17694_v41 = vld [vmem:[%s19006_s29 + $0x7a0] ss:$16 sps:$4 sm:$0xff]   ;;  %v17697_v46 = vld [vmem:[%s19006_s29 + $0x7a8] ss:$16 sps:$4 sm:$0xff]  }
0x1963   : > { %13721 = vmatpush1.bf16.msra.mxu1 %v17670_v25  ;;  %18222 = vtanh.f32 %v10877_v27  ;;  %v17705_v51 = vld [vmem:[%s19006_s29 + $0x7cc] ss:$16 sps:$4 sm:$0xff]  }
0x1964   : > { %14065 = vmatpush1.bf16.msra.mxu0 %v17673_v52  ;;  %13722 = vmatprep.subr.bf16.mxu1 %v17678_v36  ;;  %18224 = vtanh.f32 %v10863_v24 }
0x1965   : > { %14066 = vmatprep.subr.bf16.mxu0 %v17681_v0  ;;  %18226 = vtanh.f32 %v10879_v54  ;;  %v17702_v0 = vld [vmem:[%s19006_s29 + $0x7c4] ss:$16 sps:$4 sm:$0xff]   ;;  %v10703_v54 = vmul.f32 0.5, %v21181_v37 }
0x1966   : > { %v17708_v37 = vld [vmem:[%s19006_s29 + $0x7e4] ss:$16 sps:$4 sm:$0xff]  }
0x1967   : > { %13723 = vmatpush1.bf16.msra.mxu1 %v17676_v11  ;;  %v10719_v11 = vmul.f32 0.5, %v21195_v47  ;;  %v17711_v47 = vld [vmem:[%s19006_s29 + $0x7ec] ss:$16 sps:$4 sm:$0xff]  }
0x1968   : > { %v18213_v43 = vpop.eup %18212  ;;  %14067 = vmatpush1.bf16.msra.mxu0 %v17679_v53  ;;  %13724 = vmatprep.subr.bf16.mxu1 %v17684_v57 }
0x1969   : > { %v18215_v48 = vpop.eup %18214  ;;  %14068 = vmatprep.subr.bf16.mxu0 %v17687_v31  ;;  %v10924_v42 = vadd.f32 1.0, %v18213_v43 }
0x196a   : > { %v18217_v20 = vpop.eup %18216  ;;  %v10926_v18 = vadd.f32 1.0, %v18215_v48 }
0x196b   : > { %v18219_v55 = vpop.eup %18218  ;;  %13725 = vmatpush1.bf16.msra.mxu1 %v17682_v17  ;;  %v10940_v8 = vadd.f32 1.0, %v18217_v20  ;;  %v10956_v60 = vmul.f32 %v10924_v42, %v10700_v39  ;;  %v17700_v17 = vld [vmem:[%s19006_s29 + $0x7c0] ss:$16 sps:$4 sm:$0xff]   ;;  %v17709_v42 = vld [vmem:[%s19006_s29 + $0x7e8] ss:$16 sps:$4 sm:$0xff]  }
0x196c   : > { %v18221_v49 = vpop.eup %18220  ;;  %14069 = vmatpush1.bf16.msra.mxu0 %v17685_v61  ;;  %13726 = vmatprep.subr.bf16.mxu1 %v17690_v28  ;;  %v10942_v59 = vadd.f32 1.0, %v18219_v55  ;;  %v10958_v52 = vmul.f32 %v10926_v18, %v10702_v2  ;;  %v17703_v28 = vld [vmem:[%s19006_s29 + $0x7c8] ss:$16 sps:$4 sm:$0xff]   ;;  %v17714_v20 = vld [vmem:[%s19006_s29 + $0x804] ss:$16 sps:$4 sm:$0xff]  }
0x196d   : > { %v18223_v5 = vpop.eup %18222  ;;  %14070 = vmatprep.subr.bf16.mxu0 %v17693_v14  ;;  %v10925_v9 = vadd.f32 1.0, %v18221_v49  ;;  %v10972_v38 = vmul.f32 %v10940_v8, %v10716_v62  ;;  %v17706_v14 = vld [vmem:[%s19006_s29 + $0x7e0] ss:$16 sps:$4 sm:$0xff]   ;;  %v17717_v55 = vld [vmem:[%s19006_s29 + $0x80c] ss:$16 sps:$4 sm:$0xff]  }
0x196e   : > { %v18225_v56 = vpop.eup %18224  ;;  %v10941_v4 = vadd.f32 1.0, %v18223_v5  ;;  %v10974_v36 = vmul.f32 %v10942_v59, %v10718_v35  ;;  %v17715_v39 = vld [vmem:[%s19006_s29 + $0x808] ss:$16 sps:$4 sm:$0xff]   ;;  %v17720_v62 = vld [vmem:[%s19006_s29 + $0x824] ss:$16 sps:$4 sm:$0xff]  }
0x196f   : > { %v18227_v25 = vpop.eup %18226  ;;  %13727 = vmatpush1.bf16.msra.mxu1 %v17688_v44  ;;  %v21254_v6 = vpack.c.bf16 %v10972_v38, %v10956_v60  ;;  %v10927_v27 = vadd.f32 1.0, %v18225_v56  ;;  %v10957_v24 = vmul.f32 %v10925_v9, %v10701_v16  ;;  %v17712_v44 = vld [vmem:[%s19006_s29 + $0x800] ss:$16 sps:$4 sm:$0xff]   ;;  %v17723_v8 = vld [vmem:[%s19006_s29 + $0x82c] ss:$16 sps:$4 sm:$0xff]  }
0x1970   : > { %14071 = vmatpush1.bf16.msra.mxu0 %v17691_v10  ;;  %13728 = vmatprep.subr.bf16.mxu1 %v17696_v3  ;;  %v10973_v13 = vmul.f32 %v10941_v4, %v10717_v30  ;;  %v10943_v53 = vadd.f32 1.0, %v18227_v25  ;;  %v21261_v57 = vpack.c.bf16 %v10974_v36, %v10958_v52  ;;  %v17718_v18 = vld [vmem:[%s19006_s29 + $0x820] ss:$16 sps:$4 sm:$0xff]   ;;  %v17721_v49 = vld [vmem:[%s19006_s29 + $0x828] ss:$16 sps:$4 sm:$0xff]  }
0x1971   : > { %14072 = vmatprep.subr.bf16.mxu0 %v17699_v50  ;;  %v10959_v43 = vmul.f32 %v10927_v27, %v10703_v54  ;;  %v17726_v10 = vld [vmem:[%s19006_s29 + $0x844] ss:$16 sps:$4 sm:$0xff]   ;;  %v17729_v3 = vld [vmem:[%s19006_s29 + $0x84c] ss:$16 sps:$4 sm:$0xff]   ;;  %v17727_v2 = vld [vmem:[%s19006_s29 + $0x848] ss:$16 sps:$4 sm:$0xff]  }
0x1972   : > { %v21263_v31 = vpack.c.bf16 %v10973_v13, %v10957_v24  ;;  %v10975_v61 = vmul.f32 %v10943_v53, %v10719_v11  ;;  %v17732_v35 = vld [vmem:[%s19006_s29 + $0x864] ss:$16 sps:$4 sm:$0xff]   ;;  %v17735_v5 = vld [vmem:[%s19006_s29 + $0x86c] ss:$16 sps:$4 sm:$0xff]   ;;  %v17733_v50 = vld [vmem:[%s19006_s29 + $0x868] ss:$16 sps:$4 sm:$0xff]  }
0x1973   : > { %13729 = vmatpush1.bf16.msra.mxu1 %v17694_v41  ;;  %v17738_v9 = vld [vmem:[%s19006_s29 + $0x884] ss:$16 sps:$4 sm:$0xff]   ;;  %v17741_v60 = vld [vmem:[%s19006_s29 + $0x88c] ss:$16 sps:$4 sm:$0xff]   ;;  %v17736_v38 = vld [vmem:[%s19006_s29 + $0x880] ss:$16 sps:$4 sm:$0xff]  }
0x1974   : > { %14073 = vmatpush1.bf16.msra.mxu0 %v17697_v46  ;;  %13730 = vmatprep.subr.bf16.mxu1 %v17702_v0  ;;  %v21269_v48 = vpack.c.bf16 %v10975_v61, %v10959_v43  ;;  %v17739_v59 = vld [vmem:[%s19006_s29 + $0x888] ss:$16 sps:$4 sm:$0xff]   ;;  %v17744_v56 = vld [vmem:[%s19006_s29 + $0x8a4] ss:$16 sps:$4 sm:$0xff]   ;;  %v17747_v16 = vld [vmem:[%s19006_s29 + $0x8ac] ss:$16 sps:$4 sm:$0xff]  }
0x1975   : > { %14074 = vmatprep.subr.bf16.mxu0 %v17705_v51  ;;  %v17742_v30 = vld [vmem:[%s19006_s29 + $0x8a0] ss:$16 sps:$4 sm:$0xff]   ;;  %v17745_v4 = vld [vmem:[%s19006_s29 + $0x8a8] ss:$16 sps:$4 sm:$0xff]   ;;  %v17750_v25 = vld [vmem:[%s19006_s29 + $0x8c4] ss:$16 sps:$4 sm:$0xff]  }
0x1976   : > { %v17753_v41 = vld [vmem:[%s19006_s29 + $0x8cc] ss:$16 sps:$4 sm:$0xff]   ;;  %v17748_v27 = vld [vmem:[%s19006_s29 + $0x8c0] ss:$16 sps:$4 sm:$0xff]   ;;  %v17751_v52 = vld [vmem:[%s19006_s29 + $0x8c8] ss:$16 sps:$4 sm:$0xff]  }
0x1977   : > { %13731 = vmatpush1.bf16.msra.mxu1 %v17700_v17  ;;  %v17756_v36 = vld [vmem:[%s19006_s29 + $0x8e4] ss:$16 sps:$4 sm:$0xff]   ;;  %v17759_v46 = vld [vmem:[%s19006_s29 + $0x8ec] ss:$16 sps:$4 sm:$0xff]   ;;  %v17754_v0 = vld [vmem:[%s19006_s29 + $0x8e0] ss:$16 sps:$4 sm:$0xff]  }
0x1978   : > { %14075 = vmatpush1.bf16.msra.mxu0 %v17703_v28  ;;  %13732 = vmatprep.subr.bf16.mxu1 %v17708_v37  ;;  %v17757_v24 = vld [vmem:[%s19006_s29 + $0x8e8] ss:$16 sps:$4 sm:$0xff]   ;;  %v17762_v13 = vld [vmem:[%s19006_s29 + $0x904] ss:$16 sps:$4 sm:$0xff]   ;;  %v17765_v51 = vld [vmem:[%s19006_s29 + $0x90c] ss:$16 sps:$4 sm:$0xff]  }
0x1979   : > { %14076 = vmatprep.subr.bf16.mxu0 %v17711_v47  ;;  %v17760_v54 = vld [vmem:[%s19006_s29 + $0x900] ss:$16 sps:$4 sm:$0xff]   ;;  %v17763_v11 = vld [vmem:[%s19006_s29 + $0x908] ss:$16 sps:$4 sm:$0xff]   ;;  %v17768_v53 = vld [vmem:[%s19006_s29 + $0x924] ss:$16 sps:$4 sm:$0xff]  }
0x197a   : > { %v17771_v17 = vld [vmem:[%s19006_s29 + $0x92c] ss:$16 sps:$4 sm:$0xff]   ;;  %v17766_v43 = vld [vmem:[%s19006_s29 + $0x920] ss:$16 sps:$4 sm:$0xff]   ;;  %v17769_v61 = vld [vmem:[%s19006_s29 + $0x928] ss:$16 sps:$4 sm:$0xff]  }
0x197b   : > { %13733 = vmatpush1.bf16.msra.mxu1 %v17706_v14  ;;  %v17774_v28 = vld [vmem:[%s19006_s29 + $0x944] ss:$16 sps:$4 sm:$0xff]   ;;  %v17777_v37 = vld [vmem:[%s19006_s29 + $0x94c] ss:$16 sps:$4 sm:$0xff]   ;;  %v17772_v47 = vld [vmem:[%s19006_s29 + $0x940] ss:$16 sps:$4 sm:$0xff]  }
0x197c   : > { %14077 = vmatpush1.bf16.msra.mxu0 %v17709_v42  ;;  %13745 = vmatprep.subr.bf16.mxu1 %v17714_v20  ;;  %v17775_v14 = vld [vmem:[%s19006_s29 + $0x948] ss:$16 sps:$4 sm:$0xff]   ;;  %v17780_v42 = vld [vmem:[%s19006_s29 + $0x964] ss:$16 sps:$4 sm:$0xff]   ;;  %v17783_v20 = vld [vmem:[%s19006_s29 + $0x96c] ss:$16 sps:$4 sm:$0xff]  }
0x197d   : > { %14089 = vmatprep.subr.bf16.mxu0 %v17717_v55  ;;  %v17778_v55 = vld [vmem:[%s19006_s29 + $0x960] ss:$16 sps:$4 sm:$0xff]  }
0x197e   : > { %13735 = vmatmul.mubr.bf16.vlgmr.msra.gmra.mrb[48].mxu1 %v20842_v45 }
0x197f   : > { %14079 = vmatmul.mubr.bf16.vlgmr.msra.gmra.mrb[48].mxu0 %v20842_v45  ;;  %13746 = vmatpush1.bf16.msra.mxu1 %v17712_v44  ;;  %v17724_v45 = vld [vmem:[%s19006_s29 + $0x840] ss:$16 sps:$4 sm:$0xff]   ;;  %v17781_v44 = vld [vmem:[%s19006_s29 + $0x968] ss:$16 sps:$4 sm:$0xff]  }
0x1980   : > { %13777 = vmatprep.mubr.bf16.mxu1 %v21061_v7  ;;  %14090 = vmatpush1.bf16.msra.mxu0 %v17715_v39  ;;  %v17786_v39 = vld [vmem:[%s19006_s29 + $0x984] ss:$16 sps:$4 sm:$0xff]  }
0x1981   : > { %14121 = vmatprep.mubr.bf16.mxu0 %v21061_v7  ;;  %13747 = vmatprep.subr.bf16.mxu1 %v17720_v62  ;;  %v17730_v7 = vld [vmem:[%s19006_s29 + $0x860] ss:$16 sps:$4 sm:$0xff]   ;;  %v17789_v62 = vld [vmem:[%s19006_s29 + $0x98c] ss:$16 sps:$4 sm:$0xff]  }
0x1982   : > { %14091 = vmatprep.subr.bf16.mxu0 %v17723_v8  ;;  %v17784_v8 = vld [vmem:[%s19006_s29 + $0x980] ss:$16 sps:$4 sm:$0xff]  }
0x1983   : > { %13748 = vmatpush1.bf16.msra.mxu1 %v17718_v18  ;;  %v17787_v18 = vld [vmem:[%s19006_s29 + $0x988] ss:$16 sps:$4 sm:$0xff]  }
0x1984   : > { %14092 = vmatpush1.bf16.msra.mxu0 %v17721_v49  ;;  %13749 = vmatprep.subr.bf16.mxu1 %v17726_v10  ;;  %v17792_v49 = vld [vmem:[%s19006_s29 + $0x9a4] ss:$16 sps:$4 sm:$0xff]   ;;  %v17795_v10 = vld [vmem:[%s19006_s29 + $0x9ac] ss:$16 sps:$4 sm:$0xff]  }
0x1985   : > { %14093 = vmatprep.subr.bf16.mxu0 %v17729_v3  ;;  %v17790_v3 = vld [vmem:[%s19006_s29 + $0x9a0] ss:$16 sps:$4 sm:$0xff]  }
0x1987   : > { %13750 = vmatpush1.bf16.msra.mxu1 %v17724_v45  ;;  %v17793_v45 = vld [vmem:[%s19006_s29 + $0x9a8] ss:$16 sps:$4 sm:$0xff]  }
0x1988   : > { %14094 = vmatpush1.bf16.msra.mxu0 %v17727_v2  ;;  %13751 = vmatprep.subr.bf16.mxu1 %v17732_v35  ;;  %v17798_v2 = vld [vmem:[%s19006_s29 + $0x9c4] ss:$16 sps:$4 sm:$0xff]   ;;  %v17801_v35 = vld [vmem:[%s19006_s29 + $0x9cc] ss:$16 sps:$4 sm:$0xff]  }
0x1989   : > { %14095 = vmatprep.subr.bf16.mxu0 %v17735_v5  ;;  %v17796_v5 = vld [vmem:[%s19006_s29 + $0x9c0] ss:$16 sps:$4 sm:$0xff]  }
0x198b   : > { %13752 = vmatpush1.bf16.msra.mxu1 %v17730_v7  ;;  %v17799_v7 = vld [vmem:[%s19006_s29 + $0x9c8] ss:$16 sps:$4 sm:$0xff]  }
0x198c   : > { %14096 = vmatpush1.bf16.msra.mxu0 %v17733_v50  ;;  %13753 = vmatprep.subr.bf16.mxu1 %v17738_v9  ;;  %v17804_v50 = vld [vmem:[%s19006_s29 + $0x9e4] ss:$16 sps:$4 sm:$0xff]   ;;  %v17807_v9 = vld [vmem:[%s19006_s29 + $0x9ec] ss:$16 sps:$4 sm:$0xff]  }
0x198d   : > { %14097 = vmatprep.subr.bf16.mxu0 %v17741_v60  ;;  %v17802_v60 = vld [vmem:[%s19006_s29 + $0x9e0] ss:$16 sps:$4 sm:$0xff]  }
0x198f   : > { %13754 = vmatpush1.bf16.msra.mxu1 %v17736_v38  ;;  %v17805_v38 = vld [vmem:[%s19006_s29 + $0x9e8] ss:$16 sps:$4 sm:$0xff]  }
0x1990   : > { %14098 = vmatpush1.bf16.msra.mxu0 %v17739_v59  ;;  %13755 = vmatprep.subr.bf16.mxu1 %v17744_v56  ;;  %v17810_v59 = vld [vmem:[%s19006_s29 + $0xa04] ss:$16 sps:$4 sm:$0xff]   ;;  %v17813_v56 = vld [vmem:[%s19006_s29 + $0xa0c] ss:$16 sps:$4 sm:$0xff]  }
0x1991   : > { %14099 = vmatprep.subr.bf16.mxu0 %v17747_v16  ;;  %v17808_v16 = vld [vmem:[%s19006_s29 + $0xa00] ss:$16 sps:$4 sm:$0xff]  }
0x1993   : > { %13756 = vmatpush1.bf16.msra.mxu1 %v17742_v30  ;;  %v17811_v30 = vld [vmem:[%s19006_s29 + $0xa08] ss:$16 sps:$4 sm:$0xff]  }
0x1994   : > { %14100 = vmatpush1.bf16.msra.mxu0 %v17745_v4  ;;  %13757 = vmatprep.subr.bf16.mxu1 %v17750_v25  ;;  %v17816_v4 = vld [vmem:[%s19006_s29 + $0xa24] ss:$16 sps:$4 sm:$0xff]   ;;  %v17819_v25 = vld [vmem:[%s19006_s29 + $0xa2c] ss:$16 sps:$4 sm:$0xff]  }
0x1995   : > { %14101 = vmatprep.subr.bf16.mxu0 %v17753_v41  ;;  %v17814_v41 = vld [vmem:[%s19006_s29 + $0xa20] ss:$16 sps:$4 sm:$0xff]  }
0x1997   : > { %13758 = vmatpush1.bf16.msra.mxu1 %v17748_v27  ;;  %v17817_v27 = vld [vmem:[%s19006_s29 + $0xa28] ss:$16 sps:$4 sm:$0xff]  }
0x1998   : > { %14102 = vmatpush1.bf16.msra.mxu0 %v17751_v52  ;;  %13759 = vmatprep.subr.bf16.mxu1 %v17756_v36  ;;  %v17822_v52 = vld [vmem:[%s19006_s29 + $0xa44] ss:$16 sps:$4 sm:$0xff]   ;;  %v17825_v36 = vld [vmem:[%s19006_s29 + $0xa4c] ss:$16 sps:$4 sm:$0xff]  }
0x1999   : > { %14103 = vmatprep.subr.bf16.mxu0 %v17759_v46  ;;  %v17823_v46 = vld [vmem:[%s19006_s29 + $0xa48] ss:$16 sps:$4 sm:$0xff]  }
0x199b   : > { %13760 = vmatpush1.bf16.msra.mxu1 %v17754_v0  ;;  %v17828_v0 = vld [vmem:[%s19006_s29 + $0xa64] ss:$16 sps:$4 sm:$0xff]  }
0x199c   : > { %14104 = vmatpush1.bf16.msra.mxu0 %v17757_v24  ;;  %13761 = vmatprep.subr.bf16.mxu1 %v17762_v13  ;;  %v17831_v24 = vld [vmem:[%s19006_s29 + $0xa6c] ss:$16 sps:$4 sm:$0xff]   ;;  %v17829_v13 = vld [vmem:[%s19006_s29 + $0xa68] ss:$16 sps:$4 sm:$0xff]  }
0x199d   : > { %14105 = vmatprep.subr.bf16.mxu0 %v17765_v51  ;;  %v17834_v51 = vld [vmem:[%s19006_s29 + $0xa84] ss:$16 sps:$4 sm:$0xff]  }
0x199f   : > { %13762 = vmatpush1.bf16.msra.mxu1 %v17760_v54  ;;  %v17837_v54 = vld [vmem:[%s19006_s29 + $0xa8c] ss:$16 sps:$4 sm:$0xff]  }
0x19a0   : > { %14106 = vmatpush1.bf16.msra.mxu0 %v17763_v11  ;;  %13763 = vmatprep.subr.bf16.mxu1 %v17768_v53  ;;  %v17832_v11 = vld [vmem:[%s19006_s29 + $0xa80] ss:$16 sps:$4 sm:$0xff]   ;;  %v17835_v53 = vld [vmem:[%s19006_s29 + $0xa88] ss:$16 sps:$4 sm:$0xff]  }
0x19a1   : > { %14107 = vmatprep.subr.bf16.mxu0 %v17771_v17  ;;  %v17840_v17 = vld [vmem:[%s19006_s29 + $0xaa4] ss:$16 sps:$4 sm:$0xff]  }
0x19a3   : > { %13764 = vmatpush1.bf16.msra.mxu1 %v17766_v43  ;;  %v17843_v43 = vld [vmem:[%s19006_s29 + $0xaac] ss:$16 sps:$4 sm:$0xff]  }
0x19a4   : > { %14108 = vmatpush1.bf16.msra.mxu0 %v17769_v61  ;;  %13765 = vmatprep.subr.bf16.mxu1 %v17774_v28  ;;  %v17838_v61 = vld [vmem:[%s19006_s29 + $0xaa0] ss:$16 sps:$4 sm:$0xff]   ;;  %v17841_v28 = vld [vmem:[%s19006_s29 + $0xaa8] ss:$16 sps:$4 sm:$0xff]  }
0x19a5   : > { %14109 = vmatprep.subr.bf16.mxu0 %v17777_v37  ;;  %v17846_v37 = vld [vmem:[%s19006_s29 + $0xac4] ss:$16 sps:$4 sm:$0xff]  }
0x19a7   : > { %13766 = vmatpush1.bf16.msra.mxu1 %v17772_v47  ;;  %v17849_v47 = vld [vmem:[%s19006_s29 + $0xacc] ss:$16 sps:$4 sm:$0xff]  }
0x19a8   : > { %14110 = vmatpush1.bf16.msra.mxu0 %v17775_v14  ;;  %13767 = vmatprep.subr.bf16.mxu1 %v17780_v42  ;;  %v17844_v14 = vld [vmem:[%s19006_s29 + $0xac0] ss:$16 sps:$4 sm:$0xff]   ;;  %v17847_v42 = vld [vmem:[%s19006_s29 + $0xac8] ss:$16 sps:$4 sm:$0xff]  }
0x19a9   : > { %14111 = vmatprep.subr.bf16.mxu0 %v17783_v20  ;;  %v17852_v20 = vld [vmem:[%s19006_s29 + $0xae4] ss:$16 sps:$4 sm:$0xff]  }
0x19ab   : > { %13768 = vmatpush1.bf16.msra.mxu1 %v17778_v55  ;;  %v17855_v55 = vld [vmem:[%s19006_s29 + $0xaec] ss:$16 sps:$4 sm:$0xff]  }
0x19ac   : > { %14112 = vmatpush1.bf16.msra.mxu0 %v17781_v44  ;;  %13769 = vmatprep.subr.bf16.mxu1 %v17786_v39  ;;  %v17850_v44 = vld [vmem:[%s19006_s29 + $0xae0] ss:$16 sps:$4 sm:$0xff]   ;;  %v17853_v39 = vld [vmem:[%s19006_s29 + $0xae8] ss:$16 sps:$4 sm:$0xff]  }
0x19ad   : > { %14113 = vmatprep.subr.bf16.mxu0 %v17789_v62  ;;  %v17858_v62 = vld [vmem:[%s19006_s29 + $0xb04] ss:$16 sps:$4 sm:$0xff]  }
0x19af   : > { %13770 = vmatpush1.bf16.msra.mxu1 %v17784_v8  ;;  %v17861_v8 = vld [vmem:[%s19006_s29 + $0xb0c] ss:$16 sps:$4 sm:$0xff]  }
0x19b0   : > { %14114 = vmatpush1.bf16.msra.mxu0 %v17787_v18  ;;  %13771 = vmatprep.subr.bf16.mxu1 %v17792_v49  ;;  %v17856_v18 = vld [vmem:[%s19006_s29 + $0xb00] ss:$16 sps:$4 sm:$0xff]   ;;  %v17859_v49 = vld [vmem:[%s19006_s29 + $0xb08] ss:$16 sps:$4 sm:$0xff]  }
0x19b1   : > { %14115 = vmatprep.subr.bf16.mxu0 %v17795_v10  ;;  %v17864_v10 = vld [vmem:[%s19006_s29 + $0xb24] ss:$16 sps:$4 sm:$0xff]  }
0x19b3   : > { %13772 = vmatpush1.bf16.msra.mxu1 %v17790_v3  ;;  %v17867_v3 = vld [vmem:[%s19006_s29 + $0xb2c] ss:$16 sps:$4 sm:$0xff]  }
0x19b4   : > { %14116 = vmatpush1.bf16.msra.mxu0 %v17793_v45  ;;  %13773 = vmatprep.subr.bf16.mxu1 %v17798_v2  ;;  %v17862_v45 = vld [vmem:[%s19006_s29 + $0xb20] ss:$16 sps:$4 sm:$0xff]   ;;  %v17865_v2 = vld [vmem:[%s19006_s29 + $0xb28] ss:$16 sps:$4 sm:$0xff]  }
0x19b5   : > { %14117 = vmatprep.subr.bf16.mxu0 %v17801_v35  ;;  %v17870_v35 = vld [vmem:[%s19006_s29 + $0xb44] ss:$16 sps:$4 sm:$0xff]  }
0x19b7   : > { %13774 = vmatpush1.bf16.msra.mxu1 %v17796_v5  ;;  %v17873_v5 = vld [vmem:[%s19006_s29 + $0xb4c] ss:$16 sps:$4 sm:$0xff]  }
0x19b8   : > { %14118 = vmatpush1.bf16.msra.mxu0 %v17799_v7  ;;  %13775 = vmatprep.subr.bf16.mxu1 %v17804_v50  ;;  %v17868_v7 = vld [vmem:[%s19006_s29 + $0xb40] ss:$16 sps:$4 sm:$0xff]   ;;  %v17871_v50 = vld [vmem:[%s19006_s29 + $0xb48] ss:$16 sps:$4 sm:$0xff]  }
0x19b9   : > { %14119 = vmatprep.subr.bf16.mxu0 %v17807_v9  ;;  %v17876_v9 = vld [vmem:[%s19006_s29 + $0xb64] ss:$16 sps:$4 sm:$0xff]  }
0x19bb   : > { %13776 = vmatpush1.bf16.msra.mxu1 %v17802_v60  ;;  %v17879_v60 = vld [vmem:[%s19006_s29 + $0xb6c] ss:$16 sps:$4 sm:$0xff]  }
0x19bc   : > { %14120 = vmatpush1.bf16.msra.mxu0 %v17805_v38  ;;  %13788 = vmatprep.subr.bf16.mxu1 %v17810_v59  ;;  %v17874_v38 = vld [vmem:[%s19006_s29 + $0xb60] ss:$16 sps:$4 sm:$0xff]   ;;  %v17877_v59 = vld [vmem:[%s19006_s29 + $0xb68] ss:$16 sps:$4 sm:$0xff]  }
0x19bd   : > { %14132 = vmatprep.subr.bf16.mxu0 %v17813_v56  ;;  %v17882_v56 = vld [vmem:[%s19006_s29 + $0xb84] ss:$16 sps:$4 sm:$0xff]  }
0x19be   : > { %13778 = vmatmul.mubr.bf16.vlgmr.msra.gmra.mrb[48].mxu1 %v21044_v33 }
0x19bf   : > { %14122 = vmatmul.mubr.bf16.vlgmr.msra.gmra.mrb[48].mxu0 %v21044_v33  ;;  %13789 = vmatpush1.bf16.msra.mxu1 %v17808_v16  ;;  %v17820_v33 = vld [vmem:[%s19006_s29 + $0xa40] ss:$16 sps:$4 sm:$0xff]   ;;  %v17885_v16 = vld [vmem:[%s19006_s29 + $0xb8c] ss:$16 sps:$4 sm:$0xff]  }
0x19c0   : > { %13820 = vmatprep.mubr.bf16.mxu1 %v21068_v23  ;;  %14133 = vmatpush1.bf16.msra.mxu0 %v17811_v30  ;;  %v17880_v30 = vld [vmem:[%s19006_s29 + $0xb80] ss:$16 sps:$4 sm:$0xff]  }
0x19c1   : > { %14164 = vmatprep.mubr.bf16.mxu0 %v21068_v23  ;;  %13790 = vmatprep.subr.bf16.mxu1 %v17816_v4  ;;  %v17826_v23 = vld [vmem:[%s19006_s29 + $0xa60] ss:$16 sps:$4 sm:$0xff]   ;;  %v17883_v4 = vld [vmem:[%s19006_s29 + $0xb88] ss:$16 sps:$4 sm:$0xff]  }
0x19c2   : > { %14134 = vmatprep.subr.bf16.mxu0 %v17819_v25  ;;  %v17888_v25 = vld [vmem:[%s19006_s29 + $0xba4] ss:$16 sps:$4 sm:$0xff]  }
0x19c3   : > { %13791 = vmatpush1.bf16.msra.mxu1 %v17814_v41  ;;  %v17891_v41 = vld [vmem:[%s19006_s29 + $0xbac] ss:$16 sps:$4 sm:$0xff]  }
0x19c4   : > { %14135 = vmatpush1.bf16.msra.mxu0 %v17817_v27  ;;  %13792 = vmatprep.subr.bf16.mxu1 %v17822_v52  ;;  %v17886_v27 = vld [vmem:[%s19006_s29 + $0xba0] ss:$16 sps:$4 sm:$0xff]   ;;  %v17889_v52 = vld [vmem:[%s19006_s29 + $0xba8] ss:$16 sps:$4 sm:$0xff]  }
0x19c5   : > { %14136 = vmatprep.subr.bf16.mxu0 %v17825_v36  ;;  %v17894_v36 = vld [vmem:[%s19006_s29 + $0xbc4] ss:$16 sps:$4 sm:$0xff]  }
0x19c7   : > { %13793 = vmatpush1.bf16.msra.mxu1 %v17820_v33  ;;  %v17897_v33 = vld [vmem:[%s19006_s29 + $0xbcc] ss:$16 sps:$4 sm:$0xff]  }
0x19c8   : > { %14137 = vmatpush1.bf16.msra.mxu0 %v17823_v46  ;;  %13794 = vmatprep.subr.bf16.mxu1 %v17828_v0  ;;  %v17892_v46 = vld [vmem:[%s19006_s29 + $0xbc0] ss:$16 sps:$4 sm:$0xff]   ;;  %v17895_v0 = vld [vmem:[%s19006_s29 + $0xbc8] ss:$16 sps:$4 sm:$0xff]  }
0x19c9   : > { %14138 = vmatprep.subr.bf16.mxu0 %v17831_v24  ;;  %v17900_v24 = vld [vmem:[%s19006_s29 + $0xbe4] ss:$16 sps:$4 sm:$0xff]  }
0x19cb   : > { %13795 = vmatpush1.bf16.msra.mxu1 %v17826_v23  ;;  %v17903_v23 = vld [vmem:[%s19006_s29 + $0xbec] ss:$16 sps:$4 sm:$0xff]  }
0x19cc   : > { %14139 = vmatpush1.bf16.msra.mxu0 %v17829_v13  ;;  %13796 = vmatprep.subr.bf16.mxu1 %v17834_v51  ;;  %v17898_v13 = vld [vmem:[%s19006_s29 + $0xbe0] ss:$16 sps:$4 sm:$0xff]   ;;  %v17901_v51 = vld [vmem:[%s19006_s29 + $0xbe8] ss:$16 sps:$4 sm:$0xff]  }
0x19cd   : > { %14140 = vmatprep.subr.bf16.mxu0 %v17837_v54  ;;  %v17906_v54 = vld [vmem:[%s19006_s29 + $0xc04] ss:$16 sps:$4 sm:$0xff]  }
0x19cf   : > { %13797 = vmatpush1.bf16.msra.mxu1 %v17832_v11  ;;  %v17909_v11 = vld [vmem:[%s19006_s29 + $0xc0c] ss:$16 sps:$4 sm:$0xff]  }
0x19d0   : > { %14141 = vmatpush1.bf16.msra.mxu0 %v17835_v53  ;;  %13798 = vmatprep.subr.bf16.mxu1 %v17840_v17  ;;  %v17904_v53 = vld [vmem:[%s19006_s29 + $0xc00] ss:$16 sps:$4 sm:$0xff]   ;;  %v17907_v17 = vld [vmem:[%s19006_s29 + $0xc08] ss:$16 sps:$4 sm:$0xff]  }
0x19d1   : > { %14142 = vmatprep.subr.bf16.mxu0 %v17843_v43  ;;  %v17912_v43 = vld [vmem:[%s19006_s29 + $0xc24] ss:$16 sps:$4 sm:$0xff]  }
0x19d3   : > { %13799 = vmatpush1.bf16.msra.mxu1 %v17838_v61  ;;  %v17915_v61 = vld [vmem:[%s19006_s29 + $0xc2c] ss:$16 sps:$4 sm:$0xff]  }
0x19d4   : > { %14143 = vmatpush1.bf16.msra.mxu0 %v17841_v28  ;;  %13800 = vmatprep.subr.bf16.mxu1 %v17846_v37  ;;  %v17910_v28 = vld [vmem:[%s19006_s29 + $0xc20] ss:$16 sps:$4 sm:$0xff]   ;;  %v17913_v37 = vld [vmem:[%s19006_s29 + $0xc28] ss:$16 sps:$4 sm:$0xff]  }
0x19d5   : > { %14144 = vmatprep.subr.bf16.mxu0 %v17849_v47  ;;  %v17918_v47 = vld [vmem:[%s19006_s29 + $0xc44] ss:$16 sps:$4 sm:$0xff]  }
0x19d7   : > { %13801 = vmatpush1.bf16.msra.mxu1 %v17844_v14  ;;  %v17921_v14 = vld [vmem:[%s19006_s29 + $0xc4c] ss:$16 sps:$4 sm:$0xff]  }
0x19d8   : > { %14145 = vmatpush1.bf16.msra.mxu0 %v17847_v42  ;;  %13802 = vmatprep.subr.bf16.mxu1 %v17852_v20  ;;  %v17919_v42 = vld [vmem:[%s19006_s29 + $0xc48] ss:$16 sps:$4 sm:$0xff]   ;;  %v17924_v20 = vld [vmem:[%s19006_s29 + $0xc64] ss:$16 sps:$4 sm:$0xff]  }
0x19d9   : > { %14146 = vmatprep.subr.bf16.mxu0 %v17855_v55  ;;  %v17927_v55 = vld [vmem:[%s19006_s29 + $0xc6c] ss:$16 sps:$4 sm:$0xff]  }
0x19db   : > { %13803 = vmatpush1.bf16.msra.mxu1 %v17850_v44  ;;  %v17925_v44 = vld [vmem:[%s19006_s29 + $0xc68] ss:$16 sps:$4 sm:$0xff]  }
0x19dc   : > { %14147 = vmatpush1.bf16.msra.mxu0 %v17853_v39  ;;  %13804 = vmatprep.subr.bf16.mxu1 %v17858_v62  ;;  %v17930_v39 = vld [vmem:[%s19006_s29 + $0xc84] ss:$16 sps:$4 sm:$0xff]   ;;  %v17933_v62 = vld [vmem:[%s19006_s29 + $0xc8c] ss:$16 sps:$4 sm:$0xff]  }
0x19dd   : > { %14148 = vmatprep.subr.bf16.mxu0 %v17861_v8  ;;  %v17928_v8 = vld [vmem:[%s19006_s29 + $0xc80] ss:$16 sps:$4 sm:$0xff]  }
0x19df   : > { %13805 = vmatpush1.bf16.msra.mxu1 %v17856_v18  ;;  %v17931_v18 = vld [vmem:[%s19006_s29 + $0xc88] ss:$16 sps:$4 sm:$0xff]  }
0x19e0   : > { %14149 = vmatpush1.bf16.msra.mxu0 %v17859_v49  ;;  %13806 = vmatprep.subr.bf16.mxu1 %v17864_v10  ;;  %v17936_v49 = vld [vmem:[%s19006_s29 + $0xca4] ss:$16 sps:$4 sm:$0xff]   ;;  %v17939_v10 = vld [vmem:[%s19006_s29 + $0xcac] ss:$16 sps:$4 sm:$0xff]  }
0x19e1   : > { %14150 = vmatprep.subr.bf16.mxu0 %v17867_v3  ;;  %v17934_v3 = vld [vmem:[%s19006_s29 + $0xca0] ss:$16 sps:$4 sm:$0xff]  }
0x19e3   : > { %13807 = vmatpush1.bf16.msra.mxu1 %v17862_v45  ;;  %v17937_v45 = vld [vmem:[%s19006_s29 + $0xca8] ss:$16 sps:$4 sm:$0xff]  }
0x19e4   : > { %14151 = vmatpush1.bf16.msra.mxu0 %v17865_v2  ;;  %13808 = vmatprep.subr.bf16.mxu1 %v17870_v35  ;;  %v17942_v2 = vld [vmem:[%s19006_s29 + $0xcc4] ss:$16 sps:$4 sm:$0xff]   ;;  %v17945_v35 = vld [vmem:[%s19006_s29 + $0xccc] ss:$16 sps:$4 sm:$0xff]  }
0x19e5   : > { %14152 = vmatprep.subr.bf16.mxu0 %v17873_v5  ;;  %v17940_v5 = vld [vmem:[%s19006_s29 + $0xcc0] ss:$16 sps:$4 sm:$0xff]  }
0x19e7   : > { %13809 = vmatpush1.bf16.msra.mxu1 %v17868_v7  ;;  %v17943_v7 = vld [vmem:[%s19006_s29 + $0xcc8] ss:$16 sps:$4 sm:$0xff]  }
0x19e8   : > { %14153 = vmatpush1.bf16.msra.mxu0 %v17871_v50  ;;  %13810 = vmatprep.subr.bf16.mxu1 %v17876_v9  ;;  %v17948_v50 = vld [vmem:[%s19006_s29 + $0xce4] ss:$16 sps:$4 sm:$0xff]   ;;  %v17951_v9 = vld [vmem:[%s19006_s29 + $0xcec] ss:$16 sps:$4 sm:$0xff]  }
0x19e9   : > { %14154 = vmatprep.subr.bf16.mxu0 %v17879_v60  ;;  %v17946_v60 = vld [vmem:[%s19006_s29 + $0xce0] ss:$16 sps:$4 sm:$0xff]  }
0x19eb   : > { %13811 = vmatpush1.bf16.msra.mxu1 %v17874_v38  ;;  %v17949_v38 = vld [vmem:[%s19006_s29 + $0xce8] ss:$16 sps:$4 sm:$0xff]  }
0x19ec   : > { %14155 = vmatpush1.bf16.msra.mxu0 %v17877_v59  ;;  %13812 = vmatprep.subr.bf16.mxu1 %v17882_v56  ;;  %v17954_v59 = vld [vmem:[%s19006_s29 + $0xd04] ss:$16 sps:$4 sm:$0xff]   ;;  %v17957_v56 = vld [vmem:[%s19006_s29 + $0xd0c] ss:$16 sps:$4 sm:$0xff]  }
0x19ed   : > { %14156 = vmatprep.subr.bf16.mxu0 %v17885_v16  ;;  %v17952_v16 = vld [vmem:[%s19006_s29 + $0xd00] ss:$16 sps:$4 sm:$0xff]  }
0x19ef   : > { %13813 = vmatpush1.bf16.msra.mxu1 %v17880_v30  ;;  %v17955_v30 = vld [vmem:[%s19006_s29 + $0xd08] ss:$16 sps:$4 sm:$0xff]  }
0x19f0   : > { %14157 = vmatpush1.bf16.msra.mxu0 %v17883_v4  ;;  %13814 = vmatprep.subr.bf16.mxu1 %v17888_v25  ;;  %v17960_v4 = vld [vmem:[%s19006_s29 + $0xd24] ss:$16 sps:$4 sm:$0xff]   ;;  %v17963_v25 = vld [vmem:[%s19006_s29 + $0xd2c] ss:$16 sps:$4 sm:$0xff]  }
0x19f1   : > { %14158 = vmatprep.subr.bf16.mxu0 %v17891_v41  ;;  %v17958_v41 = vld [vmem:[%s19006_s29 + $0xd20] ss:$16 sps:$4 sm:$0xff]  }
0x19f3   : > { %13815 = vmatpush1.bf16.msra.mxu1 %v17886_v27  ;;  %v17961_v27 = vld [vmem:[%s19006_s29 + $0xd28] ss:$16 sps:$4 sm:$0xff]  }
0x19f4   : > { %14159 = vmatpush1.bf16.msra.mxu0 %v17889_v52  ;;  %13816 = vmatprep.subr.bf16.mxu1 %v17894_v36  ;;  %v17966_v52 = vld [vmem:[%s19006_s29 + $0xd44] ss:$16 sps:$4 sm:$0xff]   ;;  %v17969_v36 = vld [vmem:[%s19006_s29 + $0xd4c] ss:$16 sps:$4 sm:$0xff]  }
0x19f5   : > { %14160 = vmatprep.subr.bf16.mxu0 %v17897_v33  ;;  %v17964_v33 = vld [vmem:[%s19006_s29 + $0xd40] ss:$16 sps:$4 sm:$0xff]  }
0x19f7   : > { %13817 = vmatpush1.bf16.msra.mxu1 %v17892_v46  ;;  %v17967_v46 = vld [vmem:[%s19006_s29 + $0xd48] ss:$16 sps:$4 sm:$0xff]  }
0x19f8   : > { %14161 = vmatpush1.bf16.msra.mxu0 %v17895_v0  ;;  %13818 = vmatprep.subr.bf16.mxu1 %v17900_v24  ;;  %v17972_v0 = vld [vmem:[%s19006_s29 + $0xd64] ss:$16 sps:$4 sm:$0xff]   ;;  %v17975_v24 = vld [vmem:[%s19006_s29 + $0xd6c] ss:$16 sps:$4 sm:$0xff]  }
0x19f9   : > { %14162 = vmatprep.subr.bf16.mxu0 %v17903_v23  ;;  %v17970_v23 = vld [vmem:[%s19006_s29 + $0xd60] ss:$16 sps:$4 sm:$0xff]  }
0x19fb   : > { %13819 = vmatpush1.bf16.msra.mxu1 %v17898_v13  ;;  %v17973_v13 = vld [vmem:[%s19006_s29 + $0xd68] ss:$16 sps:$4 sm:$0xff]  }
0x19fc   : > { %14163 = vmatpush1.bf16.msra.mxu0 %v17901_v51  ;;  %13831 = vmatprep.subr.bf16.mxu1 %v17906_v54  ;;  %v17978_v51 = vld [vmem:[%s19006_s29 + $0xd84] ss:$16 sps:$4 sm:$0xff]   ;;  %v17981_v54 = vld [vmem:[%s19006_s29 + $0xd8c] ss:$16 sps:$4 sm:$0xff]  }
0x19fd   : > { %14175 = vmatprep.subr.bf16.mxu0 %v17909_v11  ;;  %v17976_v11 = vld [vmem:[%s19006_s29 + $0xd80] ss:$16 sps:$4 sm:$0xff]  }
0x19fe   : > { %13821 = vmatmul.mubr.bf16.vlgmr.msra.gmra.mrb[48].mxu1 %v21049_v1 }
0x19ff   : > { %14165 = vmatmul.mubr.bf16.vlgmr.msra.gmra.mrb[48].mxu0 %v21049_v1  ;;  %13832 = vmatpush1.bf16.msra.mxu1 %v17904_v53  ;;  %v17916_v1 = vld [vmem:[%s19006_s29 + $0xc40] ss:$16 sps:$4 sm:$0xff]   ;;  %v17979_v53 = vld [vmem:[%s19006_s29 + $0xd88] ss:$16 sps:$4 sm:$0xff]  }
0x1a00   : > { %13863 = vmatprep.mubr.bf16.mxu1 %v21263_v31  ;;  %14176 = vmatpush1.bf16.msra.mxu0 %v17907_v17  ;;  %v17984_v17 = vld [vmem:[%s19006_s29 + $0xda4] ss:$16 sps:$4 sm:$0xff]  }
0x1a01   : > { %14207 = vmatprep.mubr.bf16.mxu0 %v21263_v31  ;;  %13833 = vmatprep.subr.bf16.mxu1 %v17912_v43  ;;  %v17922_v31 = vld [vmem:[%s19006_s29 + $0xc60] ss:$16 sps:$4 sm:$0xff]   ;;  %v17987_v43 = vld [vmem:[%s19006_s29 + $0xdac] ss:$16 sps:$4 sm:$0xff]  }
0x1a02   : > { %14177 = vmatprep.subr.bf16.mxu0 %v17915_v61  ;;  %v17982_v61 = vld [vmem:[%s19006_s29 + $0xda0] ss:$16 sps:$4 sm:$0xff]  }
0x1a03   : > { %13834 = vmatpush1.bf16.msra.mxu1 %v17910_v28  ;;  %v17985_v28 = vld [vmem:[%s19006_s29 + $0xda8] ss:$16 sps:$4 sm:$0xff]  }
0x1a04   : > { %14178 = vmatpush1.bf16.msra.mxu0 %v17913_v37  ;;  %13835 = vmatprep.subr.bf16.mxu1 %v17918_v47  ;;  %v17990_v37 = vld [vmem:[%s19006_s29 + $0xdc4] ss:$16 sps:$4 sm:$0xff]   ;;  %v17993_v47 = vld [vmem:[%s19006_s29 + $0xdcc] ss:$16 sps:$4 sm:$0xff]  }
0x1a05   : > { %14179 = vmatprep.subr.bf16.mxu0 %v17921_v14  ;;  %v17988_v14 = vld [vmem:[%s19006_s29 + $0xdc0] ss:$16 sps:$4 sm:$0xff]  }
0x1a07   : > { %13836 = vmatpush1.bf16.msra.mxu1 %v17916_v1  ;;  %v17991_v1 = vld [vmem:[%s19006_s29 + $0xdc8] ss:$16 sps:$4 sm:$0xff]  }
0x1a08   : > { %14180 = vmatpush1.bf16.msra.mxu0 %v17919_v42  ;;  %13837 = vmatprep.subr.bf16.mxu1 %v17924_v20  ;;  %v17996_v42 = vld [vmem:[%s19006_s29 + $0xde4] ss:$16 sps:$4 sm:$0xff]   ;;  %v17999_v20 = vld [vmem:[%s19006_s29 + $0xdec] ss:$16 sps:$4 sm:$0xff]  }
0x1a09   : > { %14181 = vmatprep.subr.bf16.mxu0 %v17927_v55  ;;  %v17994_v55 = vld [vmem:[%s19006_s29 + $0xde0] ss:$16 sps:$4 sm:$0xff]  }
0x1a0b   : > { %13838 = vmatpush1.bf16.msra.mxu1 %v17922_v31  ;;  %v17997_v31 = vld [vmem:[%s19006_s29 + $0xde8] ss:$16 sps:$4 sm:$0xff]  }
0x1a0c   : > { %14182 = vmatpush1.bf16.msra.mxu0 %v17925_v44  ;;  %13839 = vmatprep.subr.bf16.mxu1 %v17930_v39  ;;  %v18002_v44 = vld [vmem:[%s19006_s29 + $0xe04] ss:$16 sps:$4 sm:$0xff]   ;;  %v18005_v39 = vld [vmem:[%s19006_s29 + $0xe0c] ss:$16 sps:$4 sm:$0xff]  }
0x1a0d   : > { %14183 = vmatprep.subr.bf16.mxu0 %v17933_v62  ;;  %v18000_v62 = vld [vmem:[%s19006_s29 + $0xe00] ss:$16 sps:$4 sm:$0xff]  }
0x1a0f   : > { %13840 = vmatpush1.bf16.msra.mxu1 %v17928_v8  ;;  %v18003_v8 = vld [vmem:[%s19006_s29 + $0xe08] ss:$16 sps:$4 sm:$0xff]  }
0x1a10   : > { %14184 = vmatpush1.bf16.msra.mxu0 %v17931_v18  ;;  %13841 = vmatprep.subr.bf16.mxu1 %v17936_v49  ;;  %v18008_v18 = vld [vmem:[%s19006_s29 + $0xe24] ss:$16 sps:$4 sm:$0xff]   ;;  %v18011_v49 = vld [vmem:[%s19006_s29 + $0xe2c] ss:$16 sps:$4 sm:$0xff]  }
0x1a11   : > { %14185 = vmatprep.subr.bf16.mxu0 %v17939_v10  ;;  %v18006_v10 = vld [vmem:[%s19006_s29 + $0xe20] ss:$16 sps:$4 sm:$0xff]  }
0x1a13   : > { %13842 = vmatpush1.bf16.msra.mxu1 %v17934_v3  ;;  %v18009_v3 = vld [vmem:[%s19006_s29 + $0xe28] ss:$16 sps:$4 sm:$0xff]  }
0x1a14   : > { %14186 = vmatpush1.bf16.msra.mxu0 %v17937_v45  ;;  %13843 = vmatprep.subr.bf16.mxu1 %v17942_v2  ;;  %v18014_v45 = vld [vmem:[%s19006_s29 + $0xe44] ss:$16 sps:$4 sm:$0xff]   ;;  %v18017_v2 = vld [vmem:[%s19006_s29 + $0xe4c] ss:$16 sps:$4 sm:$0xff]  }
0x1a15   : > { %14187 = vmatprep.subr.bf16.mxu0 %v17945_v35  ;;  %v18015_v35 = vld [vmem:[%s19006_s29 + $0xe48] ss:$16 sps:$4 sm:$0xff]  }
0x1a17   : > { %13844 = vmatpush1.bf16.msra.mxu1 %v17940_v5  ;;  %v18020_v5 = vld [vmem:[%s19006_s29 + $0xe64] ss:$16 sps:$4 sm:$0xff]  }
0x1a18   : > { %14188 = vmatpush1.bf16.msra.mxu0 %v17943_v7  ;;  %13845 = vmatprep.subr.bf16.mxu1 %v17948_v50  ;;  %v18023_v7 = vld [vmem:[%s19006_s29 + $0xe6c] ss:$16 sps:$4 sm:$0xff]   ;;  %v18021_v50 = vld [vmem:[%s19006_s29 + $0xe68] ss:$16 sps:$4 sm:$0xff]  }
0x1a19   : > { %14189 = vmatprep.subr.bf16.mxu0 %v17951_v9  ;;  %v18026_v9 = vld [vmem:[%s19006_s29 + $0xe84] ss:$16 sps:$4 sm:$0xff]  }
0x1a1b   : > { %13846 = vmatpush1.bf16.msra.mxu1 %v17946_v60  ;;  %v18029_v60 = vld [vmem:[%s19006_s29 + $0xe8c] ss:$16 sps:$4 sm:$0xff]  }
0x1a1c   : > { %14190 = vmatpush1.bf16.msra.mxu0 %v17949_v38  ;;  %13847 = vmatprep.subr.bf16.mxu1 %v17954_v59  ;;  %v18024_v38 = vld [vmem:[%s19006_s29 + $0xe80] ss:$16 sps:$4 sm:$0xff]   ;;  %v18027_v59 = vld [vmem:[%s19006_s29 + $0xe88] ss:$16 sps:$4 sm:$0xff]  }
0x1a1d   : > { %14191 = vmatprep.subr.bf16.mxu0 %v17957_v56  ;;  %v18032_v56 = vld [vmem:[%s19006_s29 + $0xea4] ss:$16 sps:$4 sm:$0xff]  }
0x1a1f   : > { %13848 = vmatpush1.bf16.msra.mxu1 %v17952_v16  ;;  %v18035_v16 = vld [vmem:[%s19006_s29 + $0xeac] ss:$16 sps:$4 sm:$0xff]  }
0x1a20   : > { %14192 = vmatpush1.bf16.msra.mxu0 %v17955_v30  ;;  %13849 = vmatprep.subr.bf16.mxu1 %v17960_v4  ;;  %v18030_v30 = vld [vmem:[%s19006_s29 + $0xea0] ss:$16 sps:$4 sm:$0xff]   ;;  %v18033_v4 = vld [vmem:[%s19006_s29 + $0xea8] ss:$16 sps:$4 sm:$0xff]  }
0x1a21   : > { %14193 = vmatprep.subr.bf16.mxu0 %v17963_v25  ;;  %v18038_v25 = vld [vmem:[%s19006_s29 + $0xec4] ss:$16 sps:$4 sm:$0xff]  }
0x1a23   : > { %13850 = vmatpush1.bf16.msra.mxu1 %v17958_v41  ;;  %v18041_v41 = vld [vmem:[%s19006_s29 + $0xecc] ss:$16 sps:$4 sm:$0xff]  }
0x1a24   : > { %14194 = vmatpush1.bf16.msra.mxu0 %v17961_v27  ;;  %13851 = vmatprep.subr.bf16.mxu1 %v17966_v52  ;;  %v18036_v27 = vld [vmem:[%s19006_s29 + $0xec0] ss:$16 sps:$4 sm:$0xff]   ;;  %v18039_v52 = vld [vmem:[%s19006_s29 + $0xec8] ss:$16 sps:$4 sm:$0xff]  }
0x1a25   : > { %14195 = vmatprep.subr.bf16.mxu0 %v17969_v36  ;;  %v18044_v36 = vld [vmem:[%s19006_s29 + $0xee4] ss:$16 sps:$4 sm:$0xff]  }
0x1a27   : > { %13852 = vmatpush1.bf16.msra.mxu1 %v17964_v33  ;;  %v18047_v33 = vld [vmem:[%s19006_s29 + $0xeec] ss:$16 sps:$4 sm:$0xff]  }
0x1a28   : > { %14196 = vmatpush1.bf16.msra.mxu0 %v17967_v46  ;;  %13853 = vmatprep.subr.bf16.mxu1 %v17972_v0  ;;  %v18042_v46 = vld [vmem:[%s19006_s29 + $0xee0] ss:$16 sps:$4 sm:$0xff]   ;;  %v18045_v0 = vld [vmem:[%s19006_s29 + $0xee8] ss:$16 sps:$4 sm:$0xff]  }
0x1a29   : > { %14197 = vmatprep.subr.bf16.mxu0 %v17975_v24  ;;  %v18050_v24 = vld [vmem:[%s19006_s29 + $0xf04] ss:$16 sps:$4 sm:$0xff]  }
0x1a2b   : > { %13854 = vmatpush1.bf16.msra.mxu1 %v17970_v23  ;;  %v18053_v23 = vld [vmem:[%s19006_s29 + $0xf0c] ss:$16 sps:$4 sm:$0xff]  }
0x1a2c   : > { %14198 = vmatpush1.bf16.msra.mxu0 %v17973_v13  ;;  %13855 = vmatprep.subr.bf16.mxu1 %v17978_v51  ;;  %v18048_v13 = vld [vmem:[%s19006_s29 + $0xf00] ss:$16 sps:$4 sm:$0xff]   ;;  %v18051_v51 = vld [vmem:[%s19006_s29 + $0xf08] ss:$16 sps:$4 sm:$0xff]  }
0x1a2d   : > { %14199 = vmatprep.subr.bf16.mxu0 %v17981_v54  ;;  %v18056_v54 = vld [vmem:[%s19006_s29 + $0xf24] ss:$16 sps:$4 sm:$0xff]  }
0x1a2f   : > { %13856 = vmatpush1.bf16.msra.mxu1 %v17976_v11  ;;  %v18059_v11 = vld [vmem:[%s19006_s29 + $0xf2c] ss:$16 sps:$4 sm:$0xff]  }
0x1a30   : > { %14200 = vmatpush1.bf16.msra.mxu0 %v17979_v53  ;;  %13857 = vmatprep.subr.bf16.mxu1 %v17984_v17  ;;  %v18054_v53 = vld [vmem:[%s19006_s29 + $0xf20] ss:$16 sps:$4 sm:$0xff]   ;;  %v18057_v17 = vld [vmem:[%s19006_s29 + $0xf28] ss:$16 sps:$4 sm:$0xff]  }
0x1a31   : > { %14201 = vmatprep.subr.bf16.mxu0 %v17987_v43  ;;  %v18062_v43 = vld [vmem:[%s19006_s29 + $0xf44] ss:$16 sps:$4 sm:$0xff]  }
0x1a33   : > { %13858 = vmatpush1.bf16.msra.mxu1 %v17982_v61  ;;  %v18065_v61 = vld [vmem:[%s19006_s29 + $0xf4c] ss:$16 sps:$4 sm:$0xff]  }
0x1a34   : > { %14202 = vmatpush1.bf16.msra.mxu0 %v17985_v28  ;;  %13859 = vmatprep.subr.bf16.mxu1 %v17990_v37  ;;  %v18060_v28 = vld [vmem:[%s19006_s29 + $0xf40] ss:$16 sps:$4 sm:$0xff]   ;;  %v18063_v37 = vld [vmem:[%s19006_s29 + $0xf48] ss:$16 sps:$4 sm:$0xff]  }
0x1a35   : > { %14203 = vmatprep.subr.bf16.mxu0 %v17993_v47  ;;  %v18068_v47 = vld [vmem:[%s19006_s29 + $0xf64] ss:$16 sps:$4 sm:$0xff]  }
0x1a37   : > { %13860 = vmatpush1.bf16.msra.mxu1 %v17988_v14  ;;  %v18071_v14 = vld [vmem:[%s19006_s29 + $0xf6c] ss:$16 sps:$4 sm:$0xff]  }
0x1a38   : > { %14204 = vmatpush1.bf16.msra.mxu0 %v17991_v1  ;;  %13861 = vmatprep.subr.bf16.mxu1 %v17996_v42  ;;  %v18066_v1 = vld [vmem:[%s19006_s29 + $0xf60] ss:$16 sps:$4 sm:$0xff]   ;;  %v18069_v42 = vld [vmem:[%s19006_s29 + $0xf68] ss:$16 sps:$4 sm:$0xff]  }
0x1a39   : > { %14205 = vmatprep.subr.bf16.mxu0 %v17999_v20  ;;  %v18074_v20 = vld [vmem:[%s19006_s29 + $0xf84] ss:$16 sps:$4 sm:$0xff]  }
0x1a3b   : > { %13862 = vmatpush1.bf16.msra.mxu1 %v17994_v55  ;;  %v18077_v55 = vld [vmem:[%s19006_s29 + $0xf8c] ss:$16 sps:$4 sm:$0xff]  }
0x1a3c   : > { %14206 = vmatpush1.bf16.msra.mxu0 %v17997_v31  ;;  %13874 = vmatprep.subr.bf16.mxu1 %v18002_v44  ;;  %v18072_v31 = vld [vmem:[%s19006_s29 + $0xf80] ss:$16 sps:$4 sm:$0xff]   ;;  %v18075_v44 = vld [vmem:[%s19006_s29 + $0xf88] ss:$16 sps:$4 sm:$0xff]  }
0x1a3d   : > { %14218 = vmatprep.subr.bf16.mxu0 %v18005_v39  ;;  %v18080_v39 = vld [vmem:[%s19006_s29 + $0xfa4] ss:$16 sps:$4 sm:$0xff]  }
0x1a3e   : > { %13864 = vmatmul.mubr.bf16.vlgmr.msra.gmra.mrb[48].mxu1 %v21254_v6 }
0x1a3f   : > { %14208 = vmatmul.mubr.bf16.vlgmr.msra.gmra.mrb[48].mxu0 %v21254_v6  ;;  %13875 = vmatpush1.bf16.msra.mxu1 %v18000_v62  ;;  %v18012_v6 = vld [vmem:[%s19006_s29 + $0xe40] ss:$16 sps:$4 sm:$0xff]   ;;  %v18083_v62 = vld [vmem:[%s19006_s29 + $0xfac] ss:$16 sps:$4 sm:$0xff]  }
0x1a40   : > { %13906 = vmatprep.mubr.bf16.mxu1 %v21269_v48  ;;  %14219 = vmatpush1.bf16.msra.mxu0 %v18003_v8  ;;  %v18078_v8 = vld [vmem:[%s19006_s29 + $0xfa0] ss:$16 sps:$4 sm:$0xff]  }
0x1a41   : > { %14250 = vmatprep.mubr.bf16.mxu0 %v21269_v48  ;;  %13876 = vmatprep.subr.bf16.mxu1 %v18008_v18  ;;  %v18018_v48 = vld [vmem:[%s19006_s29 + $0xe60] ss:$16 sps:$4 sm:$0xff]   ;;  %v18081_v18 = vld [vmem:[%s19006_s29 + $0xfa8] ss:$16 sps:$4 sm:$0xff]  }
0x1a42   : > { %14220 = vmatprep.subr.bf16.mxu0 %v18011_v49  ;;  %v18086_v49 = vld [vmem:[%s19006_s29 + $0xfc4] ss:$16 sps:$4 sm:$0xff]  }
0x1a43   : > { %13877 = vmatpush1.bf16.msra.mxu1 %v18006_v10  ;;  %v18089_v10 = vld [vmem:[%s19006_s29 + $0xfcc] ss:$16 sps:$4 sm:$0xff]  }
0x1a44   : > { %14221 = vmatpush1.bf16.msra.mxu0 %v18009_v3  ;;  %13878 = vmatprep.subr.bf16.mxu1 %v18014_v45  ;;  %v18084_v3 = vld [vmem:[%s19006_s29 + $0xfc0] ss:$16 sps:$4 sm:$0xff]   ;;  %v18087_v45 = vld [vmem:[%s19006_s29 + $0xfc8] ss:$16 sps:$4 sm:$0xff]  }
0x1a45   : > { %14222 = vmatprep.subr.bf16.mxu0 %v18017_v2  ;;  %v18092_v2 = vld [vmem:[%s19006_s29 + $0xfe4] ss:$16 sps:$4 sm:$0xff]  }
0x1a47   : > { %13879 = vmatpush1.bf16.msra.mxu1 %v18012_v6  ;;  %v18095_v6 = vld [vmem:[%s19006_s29 + $0xfec] ss:$16 sps:$4 sm:$0xff]  }
0x1a48   : > { %14223 = vmatpush1.bf16.msra.mxu0 %v18015_v35  ;;  %13880 = vmatprep.subr.bf16.mxu1 %v18020_v5  ;;  %v18090_v35 = vld [vmem:[%s19006_s29 + $0xfe0] ss:$16 sps:$4 sm:$0xff]   ;;  %v18093_v5 = vld [vmem:[%s19006_s29 + $0xfe8] ss:$16 sps:$4 sm:$0xff]  }
0x1a49   : > { %14224 = vmatprep.subr.bf16.mxu0 %v18023_v7  ;;  %v2247_v7 = vld [vmem:[%s19008_s8 + $0x20] sm:$0xf] }
0x1a4b   : > { %13881 = vmatpush1.bf16.msra.mxu1 %v18018_v48  ;;  %v10996_v48 = vrot.slane %v2247_v7, %v19289_v26 }
0x1a4c   : > { %14225 = vmatpush1.bf16.msra.mxu0 %v18021_v50  ;;  %13882 = vmatprep.subr.bf16.mxu1 %v18026_v9  ;;  %v11004_v50 = vrot.slane %v2247_v7, %v19617_v21  ;;  %v11000_v9 = vrot.slane %v2247_v7, %v19511_v29 }
0x1a4d   : > { %14226 = vmatprep.subr.bf16.mxu0 %v18029_v60 }
0x1a4f   : > { %13883 = vmatpush1.bf16.msra.mxu1 %v18024_v38  ;;  %v11008_v38 = vrot.slane %v2247_v7, %v19620_v22 }
0x1a50   : > { %14227 = vmatpush1.bf16.msra.mxu0 %v18027_v59  ;;  %13884 = vmatprep.subr.bf16.mxu1 %v18032_v56 }
0x1a51   : > { %14228 = vmatprep.subr.bf16.mxu0 %v18035_v16 }
0x1a53   : > { %13885 = vmatpush1.bf16.msra.mxu1 %v18030_v30 }
0x1a54   : > { %14229 = vmatpush1.bf16.msra.mxu0 %v18033_v4  ;;  %13886 = vmatprep.subr.bf16.mxu1 %v18038_v25 }
0x1a55   : > { %14230 = vmatprep.subr.bf16.mxu0 %v18041_v41 }
0x1a57   : > { %13887 = vmatpush1.bf16.msra.mxu1 %v18036_v27 }
0x1a58   : > { %14231 = vmatpush1.bf16.msra.mxu0 %v18039_v52  ;;  %13888 = vmatprep.subr.bf16.mxu1 %v18044_v36 }
0x1a59   : > { %14232 = vmatprep.subr.bf16.mxu0 %v18047_v33 }
0x1a5b   : > { %13889 = vmatpush1.bf16.msra.mxu1 %v18042_v46 }
0x1a5c   : > { %14233 = vmatpush1.bf16.msra.mxu0 %v18045_v0  ;;  %13890 = vmatprep.subr.bf16.mxu1 %v18050_v24 }
0x1a5d   : > { %14234 = vmatprep.subr.bf16.mxu0 %v18053_v23 }
0x1a5f   : > { %13891 = vmatpush1.bf16.msra.mxu1 %v18048_v13 }
0x1a60   : > { %14235 = vmatpush1.bf16.msra.mxu0 %v18051_v51  ;;  %13892 = vmatprep.subr.bf16.mxu1 %v18056_v54 }
0x1a61   : > { %14236 = vmatprep.subr.bf16.mxu0 %v18059_v11 }
0x1a63   : > { %13893 = vmatpush1.bf16.msra.mxu1 %v18054_v53 }
0x1a64   : > { %14237 = vmatpush1.bf16.msra.mxu0 %v18057_v17  ;;  %13894 = vmatprep.subr.bf16.mxu1 %v18062_v43 }
0x1a65   : > { %14238 = vmatprep.subr.bf16.mxu0 %v18065_v61 }
0x1a67   : > { %13895 = vmatpush1.bf16.msra.mxu1 %v18060_v28 }
0x1a68   : > { %14239 = vmatpush1.bf16.msra.mxu0 %v18063_v37  ;;  %13896 = vmatprep.subr.bf16.mxu1 %v18068_v47 }
0x1a69   : > { %14240 = vmatprep.subr.bf16.mxu0 %v18071_v14 }
0x1a6b   : > { %13897 = vmatpush1.bf16.msra.mxu1 %v18066_v1 }
0x1a6c   : > { %14241 = vmatpush1.bf16.msra.mxu0 %v18069_v42  ;;  %13898 = vmatprep.subr.bf16.mxu1 %v18074_v20 }
0x1a6d   : > { %14242 = vmatprep.subr.bf16.mxu0 %v18077_v55 }
0x1a6f   : > { %13899 = vmatpush1.bf16.msra.mxu1 %v18072_v31 }
0x1a70   : > { %14243 = vmatpush1.bf16.msra.mxu0 %v18075_v44  ;;  %13900 = vmatprep.subr.bf16.mxu1 %v18080_v39 }
0x1a71   : > { %14244 = vmatprep.subr.bf16.mxu0 %v18083_v62 }
0x1a73   : > { %13901 = vmatpush1.bf16.msra.mxu1 %v18078_v8 }
0x1a74   : > { %14245 = vmatpush1.bf16.msra.mxu0 %v18081_v18  ;;  %13902 = vmatprep.subr.bf16.mxu1 %v18086_v49 }
0x1a75   : > { %14246 = vmatprep.subr.bf16.mxu0 %v18089_v10 }
0x1a77   : > { %13903 = vmatpush1.bf16.msra.mxu1 %v18084_v3 }
0x1a78   : > { %14247 = vmatpush1.bf16.msra.mxu0 %v18087_v45  ;;  %13904 = vmatprep.subr.bf16.mxu1 %v18092_v2 }
0x1a79   : > { %14248 = vmatprep.subr.bf16.mxu0 %v18095_v6 }
0x1a7b   : > { %13905 = vmatpush1.bf16.msra.mxu1 %v18090_v35 }
0x1a7c   : > { %14249 = vmatpush1.bf16.msra.mxu0 %v18093_v5 }
0x1a7e   : > { %13907 = vmatmul.mubr.bf16.vlgmr.msra.gmra.mrb[48].mxu1 %v21261_v57 }
0x1a7f   : > { %14251 = vmatmul.mubr.bf16.vlgmr.msra.gmra.mrb[48].mxu0 %v21261_v57 }
0x1b51   : > { %v13908_v60 = vpop.f32.mrb[48].mxu1 }
0x1b52   : > { %v17014_v59 = vadd.f32 %v13908_v60, %v10996_v48  ;;  %v14252_v56 = vpop.f32.mrb[48].mxu0  ;;  %v13910_v16 = vpop.f32.mrb[49].mxu1 }
0x1b53   : > { %v17018_v30 = vadd.f32 %v14252_v56, %v11004_v50  ;;  %v17015_v4 = vadd.f32 %v13910_v16, %v11000_v9  ;;  %v14254_v25 = vpop.f32.mrb[49].mxu0  ;;  %v13912_v41 = vpop.f32.mrb[50].mxu1  ;;  %v2250_v56 = vld [vmem:[%s19008_s8 + $0x2c] sm:$0xf]  ;;  %v2251_v16 = vld [vmem:[%s19008_s8 + $0x30] sm:$0xf] }
0x1b54   : > { %v14261_v27 = vadd.f32 %v17014_v59, %v20157_v34  ;;  %v17016_v57 = vadd.f32 %v13912_v41, %v10996_v48  ;;  %v14256_v52 = vpop.f32.mrb[50].mxu0  ;;  %v13914_v36 = vpop.f32.mrb[51].mxu1  ;;  %v17019_v46 = vadd.f32 %v14254_v25, %v11008_v38  ;;  %v14333_v25 = vrot.slane %v2250_v56, %v19617_v21 }
0x1b55   : > { %v14262_v33 = vadd.f32 %v17015_v4, %v20153_v58  ;;  %v17020_v0 = vadd.f32 %v14256_v52, %v11004_v50  ;;  %v17017_v24 = vadd.f32 %v13914_v36, %v11000_v9  ;;  %v14258_v23 = vpop.f32.mrb[51].mxu0  ;;  %v14263_v51 = vadd.f32 %v17018_v30, %v20150_v19 }
0x1b56   : > { %v14265_v13 = vadd.f32 %v17016_v57, %v20159_v32  ;;  %v17021_v53 = vadd.f32 %v14258_v23, %v11008_v38  ;;  %v14264_v17 = vadd.f32 %v17019_v46, %v20177_v12  ;;  %v14325_v30 = vrot.slane %v2250_v56, %v19289_v26 }
0x1b57   : > { %v14269_v54 = vadd.f32 %v14262_v33, %v14261_v27  ;;  %v14266_v11 = vadd.f32 %v17017_v24, %v20155_v63  ;;  %v14267_v34 = vadd.f32 %v17020_v0, %v20167_v40  ;;  %v14329_v4 = vrot.slane %v2250_v56, %v19511_v29 }
0x1b58   : > { %v14268_v58 = vadd.f32 %v17021_v53, %v20162_v15  ;;  %v14337_v41 = vrot.slane %v2250_v56, %v19620_v22  ;;  %v14354_v57 = vrot.slane %v2251_v16, %v19289_v26  ;;  %v14358_v52 = vrot.slane %v2251_v16, %v19511_v29 }
0x1b59   : > { %v14274_v43 = vadd.f32 %v14266_v11, %v14265_v13  ;;  %v14270_v61 = vadd.f32 %v14269_v54, %v14263_v51  ;;  %v14362_v36 = vrot.slane %v2251_v16, %v19617_v21 }
0x1b5b   : > { %v14271_v28 = vadd.f32 %v14270_v61, %v14264_v17  ;;  %v14275_v37 = vadd.f32 %v14274_v43, %v14267_v34 }
0x1b5d   : > { %14272 = vadd.xlane.f32.xlu1 %v14271_v28  ;;  %v14276_v47 = vadd.f32 %v14275_v37, %v14268_v58 }
0x1b5f   : > { %14277 = vadd.xlane.f32.xlu0 %v14276_v47 }
0x1bea   : > { %v14273_v32 = vpop.xlane.xlu1 %14272 }
0x1beb   : > { %v14279_v14 = vmul.f32 0.001953125, %v14273_v32 }
0x1bec   : > { %v14278_v19 = vpop.xlane.xlu0 %14277 }
0x1bed   : > { %v14281_v1 = vsub.f32 %v14261_v27, %v14279_v14  ;;  %v14282_v42 = vsub.f32 %v14262_v33, %v14279_v14  ;;  %v14280_v63 = vmul.f32 0.001953125, %v14278_v19  ;;  %v14283_v20 = vsub.f32 %v14263_v51, %v14279_v14 }
0x1bee   : > { %v14284_v55 = vsub.f32 %v14264_v17, %v14279_v14  ;;  %v14366_v33 = vrot.slane %v2251_v16, %v19620_v22 }
0x1bef   : > { %v14285_v12 = vsub.f32 %v14265_v13, %v14280_v63  ;;  %v14286_v31 = vsub.f32 %v14266_v11, %v14280_v63  ;;  %v14289_v40 = vmul.f32 %v14281_v1, %v14281_v1  ;;  %v14290_v44 = vmul.f32 %v14282_v42, %v14282_v42 }
0x1bf0   : > { %v14291_v39 = vmul.f32 %v14283_v20, %v14283_v20  ;;  %v14287_v62 = vsub.f32 %v14267_v34, %v14280_v63  ;;  %v14288_v8 = vsub.f32 %v14268_v58, %v14280_v63  ;;  %v14292_v10 = vmul.f32 %v14284_v55, %v14284_v55 }
0x1bf1   : > { %v14297_v15 = vadd.f32 %v14290_v44, %v14289_v40  ;;  %v14293_v18 = vmul.f32 %v14285_v12, %v14285_v12  ;;  %v14294_v49 = vmul.f32 %v14286_v31, %v14286_v31 }
0x1bf2   : > { %v14295_v45 = vmul.f32 %v14287_v62, %v14287_v62  ;;  %v14296_v35 = vmul.f32 %v14288_v8, %v14288_v8 }
0x1bf3   : > { %v14298_v3 = vadd.f32 %v14297_v15, %v14291_v39  ;;  %v14302_v2 = vadd.f32 %v14294_v49, %v14293_v18  ;;  %v18242_v15 = vld [vmem:[%s21805_s0 + $0x40] sm:$0xff] (!%p16612_p9)  }
0x1bf4   : > { %v18244_v18 = vld [vmem:[%s21805_s0] sm:$0xff] (!%p16612_p9)   ;;  %16714 = vmatprep.subr.bf16.mxu0 (!%p16612_p9), %v18242_v15 }
0x1bf5   : > { %v14299_v6 = vadd.f32 %v14298_v3, %v14292_v10  ;;  %v14303_v5 = vadd.f32 %v14302_v2, %v14295_v45  ;;  %v18245_v49 = vld [vmem:[%s21805_s0 + $0x80] sm:$0xff] (!%p16612_p9)   ;;  %16715 = vmatpush3.bf16.msra.mxu0 (!%p16612_p9), %v18244_v18 }
0x1bf7   : > { %14300 = vadd.xlane.f32.xlu1 %v14299_v6  ;;  %v14304_v7 = vadd.f32 %v14303_v5, %v14296_v35 }
0x1bf9   : > { %14305 = vadd.xlane.f32.xlu0 %v14304_v7 }
0x1c84   : > { %v14301_v48 = vpop.xlane.xlu1 %14300 }
0x1c85   : > { %v14307_v50 = vmul.f32 0.001953125, %v14301_v48 }
0x1c86   : > { %v14306_v9 = vpop.xlane.xlu0 %14305 }
0x1c87   : > { %v14309_v60 = vadd.f32 1e-05, %v14307_v50  ;;  %v14308_v38 = vmul.f32 0.001953125, %v14306_v9 }
0x1c89   : > { %18228 = vrsqrt.f32 %v14309_v60  ;;  %v14310_v59 = vadd.f32 1e-05, %v14308_v38 }
0x1c8b   : > { %18230 = vrsqrt.f32 %v14310_v59 }
0x1c93   : > { %v18229_v27 = vpop.eup %18228 }
0x1c94   : > { %v14313_v46 = vmul.f32 %v18229_v27, %v14281_v1  ;;  %v14314_v0 = vmul.f32 %v18229_v27, %v14282_v42  ;;  %v14315_v24 = vmul.f32 %v18229_v27, %v14283_v20  ;;  %v14316_v23 = vmul.f32 %v18229_v27, %v14284_v55 }
0x1c95   : > { %v18231_v13 = vpop.eup %18230 }
0x1c96   : > { %v14342_v51 = vmul.f32 %v14325_v30, %v14313_v46  ;;  %v14343_v54 = vmul.f32 %v14329_v4, %v14314_v0  ;;  %v14344_v11 = vmul.f32 %v14333_v25, %v14315_v24  ;;  %v14345_v53 = vmul.f32 %v14337_v41, %v14316_v23  ;;  %v18246_v0 = vld [vmem:[%s21805_s0 + $0x48] sm:$0xff] (!%p16612_p9)  }
0x1c97   : > { %v14317_v17 = vmul.f32 %v18231_v13, %v14285_v12  ;;  %v14318_v34 = vmul.f32 %v18231_v13, %v14286_v31  ;;  %v14319_v43 = vmul.f32 %v18231_v13, %v14287_v62  ;;  %v14320_v61 = vmul.f32 %v18231_v13, %v14288_v8  ;;  %v18243_v8 = vld [vmem:[%s21805_s0 + $0xc0] sm:$0xff] (!%p16612_p9)   ;;  %v18247_v24 = vld [vmem:[%s21805_s0 + $0xc8] sm:$0xff] (!%p16612_p9)   ;;  %16716 = vmatprep.subr.bf16.mxu0 (!%p16612_p9), %v18246_v0 }
0x1c98   : > { %v14371_v58 = vadd.f32 %v14354_v57, %v14342_v51  ;;  %v14372_v28 = vadd.f32 %v14358_v52, %v14343_v54  ;;  %v14373_v37 = vadd.f32 %v14362_v36, %v14344_v11  ;;  %v14374_v47 = vadd.f32 %v14366_v33, %v14345_v53  ;;  %14390 = sbr.rel (%p16612_p9) target bundleno = 7874 (0x1ec2), region = 108  ;;  %16736 = vmatprep.subr.bf16.mxu1 (!%p16612_p9), %v18243_v8  ;;  %v18248_v23 = vld [vmem:[%s21805_s0 + $0x8] sm:$0xff] (!%p16612_p9)   ;;  %v18250_v51 = vld [vmem:[%s21805_s0 + $0x50] sm:$0xff] (!%p16612_p9)  }
0x1c99   : > { %v14346_v32 = vmul.f32 %v14325_v30, %v14317_v17  ;;  %v14347_v14 = vmul.f32 %v14329_v4, %v14318_v34  ;;  %v14348_v19 = vmul.f32 %v14333_v25, %v14319_v43  ;;  %v14349_v1 = vmul.f32 %v14337_v41, %v14320_v61  ;;  %16737 = vmatpush3.bf16.msra.mxu1 (!%p16612_p9), %v18245_v49  ;;  %v18249_v13 = vld [vmem:[%s21805_s0 + $0x88] sm:$0xff] (!%p16612_p9)   ;;  %v18251_v54 = vld [vmem:[%s21805_s0 + $0xd0] sm:$0xff] (!%p16612_p9)   ;;  %v18254_v17 = vld [vmem:[%s21805_s0 + $0x58] sm:$0xff] (!%p16612_p9)  }
0x1c9a   : > { %14379 = vst [vmem:[#allocation2] sm:$0xff] %v14371_v58  ;;  %14380 = vst [vmem:[#allocation2 + $0x8] sm:$0xff] %v14372_v28  ;;  %v14393_v12 = vadd.f32 (!%p16612_p9), %v14372_v28, %v14371_v58  ;;  %16738 = vmatprep.subr.bf16.mxu1 (!%p16612_p9), %v18247_v24  ;;  %16717 = vmatpush3.bf16.msra.mxu0 (!%p16612_p9), %v18248_v23  ;;  %v18252_v11 = vld [vmem:[%s21805_s0 + $0x10] sm:$0xff] (!%p16612_p9)   ;;  %v18255_v34 = vld [vmem:[%s21805_s0 + $0xd8] sm:$0xff] (!%p16612_p9)  }
0x1c9b   : > { %14381 = vst [vmem:[#allocation2 + $0x10] sm:$0xff] %v14373_v37  ;;  %14382 = vst [vmem:[#allocation2 + $0x18] sm:$0xff] %v14374_v47  ;;  %v14375_v42 = vadd.f32 %v14354_v57, %v14346_v32  ;;  %v14376_v63 = vadd.f32 %v14358_v52, %v14347_v14  ;;  %v14377_v20 = vadd.f32 %v14362_v36, %v14348_v19  ;;  %v18253_v53 = vld [vmem:[%s21805_s0 + $0x90] sm:$0xff] (!%p16612_p9)   ;;  %16718 = vmatprep.subr.bf16.mxu0 (!%p16612_p9), %v18250_v51  ;;  %v18256_v43 = vld [vmem:[%s21805_s0 + $0x18] sm:$0xff] (!%p16612_p9)  }
0x1c9c   : > { %v14378_v55 = vadd.f32 %v14366_v33, %v14349_v1  ;;  %v14394_v40 = vadd.f32 (!%p16612_p9), %v14393_v12, %v14373_v37  ;;  %v18257_v61 = vld [vmem:[%s21805_s0 + $0x98] sm:$0xff] (!%p16612_p9)   ;;  %v18262_v32 = vld [vmem:[%s21805_s0 + $0x68] sm:$0xff] (!%p16612_p9)  }
0x1c9d   : > { %14383 = vst [vmem:[#allocation2 + $0x20] sm:$0xff] %v14375_v42  ;;  %14384 = vst [vmem:[#allocation2 + $0x28] sm:$0xff] %v14376_v63  ;;  %v14398_v31 = vadd.f32 (!%p16612_p9), %v14376_v63, %v14375_v42  ;;  %16739 = vmatpush3.bf16.msra.mxu1 (!%p16612_p9), %v18249_v13  ;;  %v18263_v14 = vld [vmem:[%s21805_s0 + $0xe8] sm:$0xff] (!%p16612_p9)   ;;  %v18270_v12 = vld [vmem:[%s21805_s0 + $0x78] sm:$0xff] (!%p16612_p9)  }
0x1c9e   : > { %14385 = vst [vmem:[#allocation2 + $0x30] sm:$0xff] %v14377_v20  ;;  %14386 = vst [vmem:[#allocation2 + $0x38] sm:$0xff] %v14378_v55  ;;  %v14395_v39 = vadd.f32 (!%p16612_p9), %v14394_v40, %v14374_v47  ;;  %16740 = vmatprep.subr.bf16.mxu1 (!%p16612_p9), %v18251_v54  ;;  %16719 = vmatpush3.bf16.msra.mxu0 (!%p16612_p9), %v18252_v11  ;;  %v18264_v19 = vld [vmem:[%s21805_s0 + $0x28] sm:$0xff] (!%p16612_p9)   ;;  %v18272_v40 = vld [vmem:[%s21805_s0 + $0x38] sm:$0xff] (!%p16612_p9)  }
0x1c9f   : > { %v14399_v44 = vadd.f32 %v14398_v31, %v14377_v20  ;;  %16720 = vmatprep.subr.bf16.mxu0 %v18254_v17  ;;  %v18265_v1 = vld [vmem:[%s21805_s0 + $0xa8] sm:$0xff]   ;;  %v18271_v31 = vld [vmem:[%s21805_s0 + $0xf8] sm:$0xff]  }
0x1ca0   : > { %14396 = vadd.xlane.f32.xlu0 %v14395_v39 }
0x1ca1   : > { %v14400_v62 = vadd.f32 %v14399_v44, %v14378_v55  ;;  %16741 = vmatpush3.bf16.msra.mxu1 %v18253_v53  ;;  %v18273_v44 = vld [vmem:[%s21805_s0 + $0xb8] sm:$0xff]  }
0x1ca2   : > { %16742 = vmatprep.subr.bf16.mxu1 %v18255_v34  ;;  %16721 = vmatpush3.bf16.msra.mxu0 %v18256_v43 }
0x1ca4   : > { %14401 = vadd.xlane.f32.xlu0 %v14400_v62 }
0x1ca5   : > { %16743 = vmatpush3.bf16.msra.mxu1 %v18257_v61 }
0x1d2d   : > { %v14397_v10 = vpop.xlane.xlu0 %14396 }
0x1d2e   : > { %v14403_v3 = vmul.f32 0.001953125, %v14397_v10  ;;  %v14391_v10 = vld [vmem:[#allocation13] sm:$0xf] }
0x1d30   : > { %v21583_v45 = vsub.f32 %v14371_v58, %v14403_v3  ;;  %v21585_v2 = vsub.f32 %v14372_v28, %v14403_v3  ;;  %v21587_v6 = vsub.f32 %v14373_v37, %v14403_v3  ;;  %v21589_v5 = vsub.f32 %v14374_v47, %v14403_v3  ;;  %v18258_v58 = vld [vmem:[%s21805_s0 + $0x60] sm:$0xff]  }
0x1d31   : > { %v14402_v35 = vpop.xlane.xlu0 %14401  ;;  %v18259_v28 = vld [vmem:[%s21805_s0 + $0xe0] sm:$0xff]   ;;  %16722 = vmatprep.subr.bf16.mxu0 %v18258_v58 }
0x1d32   : > { %v14404_v7 = vmul.f32 0.001953125, %v14402_v35  ;;  %v14413_v48 = vmul.f32 %v21583_v45, %v21583_v45  ;;  %v14414_v50 = vmul.f32 %v21585_v2, %v21585_v2  ;;  %v14415_v9 = vmul.f32 %v21587_v6, %v21587_v6  ;;  %v18260_v37 = vld [vmem:[%s21805_s0 + $0x20] sm:$0xff]   ;;  %16744 = vmatprep.subr.bf16.mxu1 %v18259_v28 }
0x1d33   : > { %v14416_v16 = vmul.f32 %v21589_v5, %v21589_v5  ;;  %v18261_v47 = vld [vmem:[%s21805_s0 + $0xa0] sm:$0xff]   ;;  %16723 = vmatpush3.bf16.msra.mxu0 %v18260_v37 }
0x1d34   : > { %v21597_v60 = vsub.f32 %v14375_v42, %v14404_v7  ;;  %v21599_v38 = vsub.f32 %v14376_v63, %v14404_v7  ;;  %v14421_v59 = vadd.f32 %v14414_v50, %v14413_v48  ;;  %v21601_v56 = vsub.f32 %v14377_v20, %v14404_v7  ;;  %16745 = vmatpush3.bf16.msra.mxu1 %v18261_v47  ;;  %v18266_v42 = vld [vmem:[%s21805_s0 + $0x70] sm:$0xff]   ;;  %v14392_v35 = vld [vmem:[#allocation14] sm:$0xf]  ;;  %v16613_v58 = vld [vmem:[#allocation16] ss:$0 sm:$0xff] }
0x1d35   : > { %v21605_v4 = vsub.f32 %v14378_v55, %v14404_v7  ;;  %16724 = vmatprep.subr.bf16.mxu0 %v18262_v32  ;;  %16746 = vmatprep.subr.bf16.mxu1 %v18263_v14  ;;  %v18267_v63 = vld [vmem:[%s21805_s0 + $0xf0] sm:$0xff]   ;;  %v14453_v48 = vrot.slane %v14391_v10, %v19511_v29 }
0x1d36   : > { %v14422_v30 = vadd.f32 %v14421_v59, %v14415_v9  ;;  %v14417_v25 = vmul.f32 %v21597_v60, %v21597_v60  ;;  %v14418_v41 = vmul.f32 %v21599_v38, %v21599_v38  ;;  %v14419_v57 = vmul.f32 %v21601_v56, %v21601_v56  ;;  %v18268_v20 = vld [vmem:[%s21805_s0 + $0x30] sm:$0xff]  }
0x1d37   : > { %v14420_v36 = vmul.f32 %v21605_v4, %v21605_v4  ;;  %16725 = vmatpush3.bf16.msra.mxu0 %v18264_v19  ;;  %v18269_v55 = vld [vmem:[%s21805_s0 + $0xb0] sm:$0xff]   ;;  %v14461_v9 = vrot.slane %v14391_v10, %v19620_v22 }
0x1d38   : > { %v14423_v27 = vadd.f32 %v14422_v30, %v14416_v16  ;;  %v14426_v52 = vadd.f32 %v14418_v41, %v14417_v25  ;;  %16747 = vmatpush3.bf16.msra.mxu1 %v18265_v1  ;;  %16726 = vmatprep.subr.bf16.mxu0 %v18266_v42  ;;  %v14449_v16 = vrot.slane %v14391_v10, %v19289_v26 }
0x1d39   : > { %16748 = vmatprep.subr.bf16.mxu1 %v18267_v63  ;;  %v14457_v25 = vrot.slane %v14391_v10, %v19617_v21 }
0x1d3a   : > { %14424 = vadd.xlane.f32.xlu1 %v14423_v27  ;;  %v14427_v33 = vadd.f32 %v14426_v52, %v14419_v57  ;;  %v14482_v27 = vrot.slane %v14392_v35, %v19511_v29  ;;  %v14490_v57 = vrot.slane %v14392_v35, %v19620_v22  ;;  %v14486_v52 = vrot.slane %v14392_v35, %v19617_v21 }
0x1d3b   : > { %16727 = vmatpush3.bf16.msra.mxu0 %v18268_v20 }
0x1d3c   : > { %v14428_v46 = vadd.f32 %v14427_v33, %v14420_v36  ;;  %16749 = vmatpush3.bf16.msra.mxu1 %v18269_v55  ;;  %16728 = vmatprep.subr.bf16.mxu0 %v18270_v12 }
0x1d3d   : > { %16750 = vmatprep.subr.bf16.mxu1 %v18271_v31 }
0x1d3e   : > { %14429 = vadd.xlane.f32.xlu1 %v14428_v46 }
0x1d3f   : > { %16729 = vmatpush3.bf16.msra.mxu0 %v18272_v40 }
0x1d40   : > { %16751 = vmatpush3.bf16.msra.mxu1 %v18273_v44 }
0x1dc7   : > { %v14425_v39 = vpop.xlane.xlu1 %14424 }
0x1dc8   : > { %v14431_v62 = vmul.f32 0.001953125, %v14425_v39 }
0x1dca   : > { %v14433_v15 = vadd.f32 1e-05, %v14431_v62 }
0x1dcb   : > { %v14430_v8 = vpop.xlane.xlu1 %14429 }
0x1dcc   : > { %18274 = vrsqrt.f32 %v14433_v15  ;;  %v14432_v18 = vmul.f32 0.001953125, %v14430_v8 }
0x1dce   : > { %v14434_v49 = vadd.f32 1e-05, %v14432_v18 }
0x1dd0   : > { %18276 = vrsqrt.f32 %v14434_v49 }
0x1dd6   : > { %v18275_v3 = vpop.eup %18274 }
0x1dd7   : > { %v14438_v7 = vmul.f32 %v18275_v3, %v21585_v2  ;;  %v14440_v50 = vmul.f32 %v18275_v3, %v21589_v5  ;;  %v14437_v59 = vmul.f32 %v18275_v3, %v21583_v45  ;;  %v14439_v30 = vmul.f32 %v18275_v3, %v21587_v6 }
0x1dd8   : > { %v14478_v2 = vrot.slane %v14392_v35, %v19289_v26 }
0x1dd9   : > { %v14467_v36 = vmul.f32 %v14453_v48, %v14438_v7  ;;  %v14469_v33 = vmul.f32 %v14461_v9, %v14440_v50  ;;  %v14466_v6 = vmul.f32 %v14449_v16, %v14437_v59  ;;  %v14468_v24 = vmul.f32 %v14457_v25, %v14439_v30 }
0x1dda   : > { %v18277_v41 = vpop.eup %18276 }
0x1ddb   : > { %v14442_v5 = vmul.f32 %v18277_v41, %v21599_v38  ;;  %v14444_v45 = vmul.f32 %v18277_v41, %v21605_v4  ;;  %v14441_v46 = vmul.f32 %v18277_v41, %v21597_v60  ;;  %v14443_v0 = vmul.f32 %v18277_v41, %v21601_v56 }
0x1ddc   : > { %v14496_v51 = vadd.f32 %v14482_v27, %v14467_v36  ;;  %v14498_v54 = vadd.f32 %v14490_v57, %v14469_v33  ;;  %v14495_v11 = vadd.f32 %v14478_v2, %v14466_v6  ;;  %v14497_v53 = vadd.f32 %v14486_v52, %v14468_v24 }
0x1ddd   : > { %v14471_v23 = vmul.f32 %v14453_v48, %v14442_v5  ;;  %v14473_v29 = vmul.f32 %v14461_v9, %v14444_v45  ;;  %v14470_v13 = vmul.f32 %v14449_v16, %v14441_v46  ;;  %v14472_v22 = vmul.f32 %v14457_v25, %v14443_v0 }
0x1ddf   : > { %v14500_v26 = vadd.f32 %v14482_v27, %v14471_v23  ;;  %v14502_v21 = vadd.f32 %v14490_v57, %v14473_v29  ;;  %v14499_v38 = vadd.f32 %v14478_v2, %v14470_v13  ;;  %v14501_v17 = vadd.f32 %v14486_v52, %v14472_v22 }
0x1de1   : > { %v14504_v4 = vpack.c.bf16 %v14500_v26, %v14496_v51  ;;  %v14506_v34 = vpack.c.bf16 %v14502_v21, %v14498_v54  ;;  %v14503_v43 = vpack.c.bf16 %v14499_v38, %v14495_v11  ;;  %v14505_v60 = vpack.c.bf16 %v14501_v17, %v14497_v53 }
0x1de3   : > { %14802 = vmatprep.mubr.bf16.mxu0 %v14504_v4  ;;  %14843 = vmatprep.mubr.bf16.mxu1 %v14506_v34 }
0x1de4   : > { %14803 = vmatmul.mubr.bf16.vlgmr.msra.gmra.mrb[0].mxu0 %v14503_v43  ;;  %14844 = vmatmul.mubr.bf16.vlgmr.msra.gmra.mrb[0].mxu1 %v14505_v60 }
0x1eb7   : > { %v16730_v56 = vpop.f32.mrb[0].mxu0  ;;  %v16752_v61 = vpop.f32.mrb[0].mxu1 }
0x1eb8   : > { %v16731_v28 = vpop.f32.mrb[1].mxu0  ;;  %v16753_v37 = vpop.f32.mrb[1].mxu1 }
0x1eb9   : > { %v16732_v47 = vadd.f32 %v16731_v28, %v16730_v56  ;;  %v16754_v32 = vadd.f32 %v16753_v37, %v16752_v61  ;;  %v16733_v14 = vpop.f32.mrb[2].mxu0  ;;  %v16755_v19 = vpop.f32.mrb[2].mxu1 }
0x1eba   : > { %v16734_v1 = vpop.f32.mrb[3].mxu0  ;;  %v16756_v42 = vpop.f32.mrb[3].mxu1 }
0x1ebb   : > { %v14805_v63 = vadd.f32 %v16732_v47, %v16613_v58  ;;  %v16735_v20 = vadd.f32 %v16734_v1, %v16733_v14  ;;  %v16757_v55 = vadd.f32 %v16756_v42, %v16755_v19 }
0x1ebd   : > { %v14846_v12 = vadd.f32 %v16754_v32, %v14805_v63  ;;  %v14808_v31 = vadd.f32 %v16735_v20, %v16613_v58 }
0x1ebf   : > { %14853 = vst.msk [vmem:[%s21806_s4] sm:$0xff] %vm14852_vm4, %v14846_v12  ;;  %v14849_v40 = vadd.f32 %v16757_v55, %v14808_v31 }
0x1ec1   : > { %14854 = vst.msk [vmem:[%s21806_s4 + $0x8] sm:$0xff] %vm14852_vm4, %v14849_v40 }
0x1ec2 PF: > { %s21807_s16 = sld [smem:[#allocation23_spill]]  ;;  %s21808_s19 = sld [smem:[#allocation24_spill]] }
0x1ec3   : > { %p27_p3 = scmp.ge.s32.totalorder %s18792_s9, 6   ;;  %s21809_s17 = smov %s18582_s18 }
0x1ec4   : > { %s21811_s20 = smov %s18792_s9 }
0x1ec5   :  { %29 = sbr.rel (!%p27_p3) target bundleno = 16 (0x10), region = 157 }
0x1ec8   : > { %s21810_s18 = smov %s21807_s16 }
0x1ecc   :  { %14866 = vsyncpa [#allocation4], 1 }
0x1ecd   :  { %14868 = vsyncpa [#allocation4 + $0x1], 1 }
0x1ece   :  { %14869 = vsyncpa [#allocation6], 1 }
0x1ecf   :  { %14870 = vsyncpa [#allocation9], 1 }
0x1ed0   :  { %14872 = vsyncpa [#allocation9 + $0x1], 1 }
0x1ed1   :  { %14873 = vsyncpa [#allocation12], 1 }
0x1ed2   :  { %14875 = vsyncpa [#allocation12 + $0x1], 1 }
0x1ed3   :  { %14876 = vsyncpa [#allocation15], 1 }

</bundles_post_ra>
